<compile_context>
chip_gen: v7x
topology: tpu7x:2x2x1
jax: 0.10.0
libtpu: 0.0.40
codegen_flags: <defaults>
</compile_context>

<pallas_src>
import functools

import jax
import jax.numpy as jnp
import numpy as np
from jax.experimental import pallas as pl
from jax.experimental.pallas import tpu as pltpu

CP = 128          # channel lanes: every channel-like dim is zero-padded to this
PAD = 16          # guard rows above/below the activation slab inside scratch
N_CLASSES = 2     # lin2 output features (torch: nn.Linear(16, 2))


def _round_up(n, m):
    return ((n + m - 1) // m) * m


# --------------------------- host-side packing ---------------------------

def pack_params(p):
    """One-time host-side packing of torch-layout params into the lane-padded
    layouts the fused kernel consumes (no per-call XLA glue on weights)."""
    def conv_taps(w, b):
        w = np.asarray(w, np.float32)
        b = np.asarray(b, np.float32)
        cout, cin = w.shape[0], w.shape[1]
        # taps[kh*3+kw, ci, co] = w[co, ci, kh, kw]
        taps = np.transpose(w, (2, 3, 1, 0)).reshape(9, cin, cout)
        taps = np.pad(taps, ((0, 0), (0, CP - cin), (0, CP - cout)))
        bias = np.pad(b.reshape(1, cout), ((0, 0), (0, CP - cout)))
        return jnp.asarray(taps), jnp.asarray(bias)

    def lin(w, b):
        w = np.asarray(w, np.float32)
        b = np.asarray(b, np.float32)
        dout, din = w.shape
        wp = np.pad(w.T, ((0, CP - din), (0, CP - dout)))
        bp = np.pad(b.reshape(1, dout), ((0, 0), (0, CP - dout)))
        return jnp.asarray(wp), jnp.asarray(bp)

    w1, b1 = conv_taps(p['w_conv1'], p['b_conv1'])
    w2, b2 = conv_taps(p['w_conv2'], p['b_conv2'])
    w3, b3 = conv_taps(p['w_conv3'], p['b_conv3'])
    lw1, lb1 = lin(p['w_lin1'], p['b_lin1'])
    lw2, lb2 = lin(p['w_lin2'], p['b_lin2'])
    return dict(w_conv1=w1, b_conv1=b1, w_conv2=w2, b_conv2=b2,
                w_conv3=w3, b_conv3=b3,
                w_lin1=lw1, b_lin1=lb1, w_lin2=lw2, b_lin2=lb2)


def _pool_select(B, H, W, *, compact_out):
    """0/1 matrix that maps the (B*(H+2)*(W+2), C) max-reduced conv slab `u`
    to the pooled output.

    compact_out=False -> rows are the NEXT layer's halo-padded layout (its halo
                         rows are all-zero, i.e. the zero conv padding is free).
    compact_out=True  -> rows are compact (b, io, jo), padded to a multiple of 8
                         (used to feed the MLP head).
    """
    Ho, Wo = H // 2, W // 2
    mp_in = B * (H + 2) * (W + 2)
    n_rows = (_round_up(B * Ho * Wo, 8) if compact_out
              else B * (Ho + 2) * (Wo + 2))
    sel = np.zeros((n_rows, mp_in), np.float32)
    for b in range(B):
        for io in range(Ho):
            for jo in range(Wo):
                c = b * (H + 2) * (W + 2) + (2 * io + 1) * (W + 2) + (2 * jo + 1)
                if compact_out:
                    r = b * Ho * Wo + io * Wo + jo
                else:
                    r = b * (Ho + 2) * (Wo + 2) + (io + 1) * (Wo + 2) + (jo + 1)
                sel[r, c] = 1.0
    return sel


# ------------------------------ fused kernel ------------------------------

def _netz_kernel(x_ref, w1_ref, b1_ref, s1_ref, w2_ref, b2_ref, s2_ref,
                 w3_ref, b3_ref, s3_ref, lw1_ref, lb1_ref, lw2_ref, lb2_ref,
                 o_ref, scr_ref, *, batch, dims, n_classes):
    # Guard/halo rows feed only zero-weighted matmul rows and never-selected
    # pool windows, but they must be finite (0 * NaN = NaN), so zero the
    # scratch once up front.
    scr_ref[...] = jnp.zeros_like(scr_ref)

    def conv_pool_relu(src_ref, H, W, w_ref, b_ref, sel_ref):
        wp = W + 2                          # row stride of the halo-padded map
        mp = batch * (H + 2) * wp           # rows of this layer's slab
        # conv3x3(pad=1) as 9 shifted MXU taps; the halo rows are zero so no
        # boundary masks are needed.  All shifts are Python constants -> static
        # slices, and every slice size is a multiple of 8 rows.
        y = None
        for kh in range(3):
            for kw in range(3):
                shift = (kh - 1) * wp + (kw - 1)
                xs = src_ref[pl.ds(PAD + shift, mp), :]
                d = jnp.dot(xs, w_ref[kh * 3 + kw],
                            preferred_element_type=jnp.float32)
                y = d if y is None else y + d
        y = y + b_ref[...]
        # 2x2 stride-2 max-pool: one scratch store of y, then a 4-way max over
        # the {0, +1, +wp, +wp+1} row shifts (the four cells of each window);
        # one selection matmul gathers the window anchors (and writes the next
        # layer's zero halo rows).
        scr_ref[pl.ds(PAD, mp), :] = y
        u = jnp.maximum(
            jnp.maximum(y, scr_ref[pl.ds(PAD + 1, mp), :]),
            jnp.maximum(scr_ref[pl.ds(PAD + wp, mp), :],
                        scr_ref[pl.ds(PAD + wp + 1, mp), :]))
        pooled = jnp.dot(sel_ref[...], u, preferred_element_type=jnp.float32)
        return jnp.maximum(pooled, 0.0)

    conv_layers = ((w1_ref, b1_ref, s1_ref),
                   (w2_ref, b2_ref, s2_ref),
                   (w3_ref, b3_ref, s3_ref))
    a = None
    src = x_ref                     # layer-1 taps read the halo-padded input operand
    for (H, W), (w_ref, b_ref, s_ref) in zip(dims, conv_layers):
        if a is not None:
            scr_ref[pl.ds(PAD, a.shape[0]), :] = a
            src = scr_ref
        a = conv_pool_relu(src, H, W, w_ref, b_ref, s_ref)

    # MLP head: lin(30,16)+relu -> lin(16,2)+relu -> masked softmax.
    h = jnp.dot(a, lw1_ref[...], preferred_element_type=jnp.float32) + lb1_ref[...]
    h = jnp.maximum(h, 0.0)
    z = jnp.dot(h, lw2_ref[...], preferred_element_type=jnp.float32) + lb2_ref[...]
    z = jnp.maximum(z, 0.0)
    col = jax.lax.broadcasted_iota(jnp.int32, z.shape, 1)
    z = jnp.where(col < n_classes, z, -1e30)   # mask padded class lanes
    m = jnp.max(z, axis=1, keepdims=True)
    e = jnp.exp(z - m)
    denom = jnp.sum(e, axis=1, keepdims=True)
    # exact reciprocal keeps 1e-4 parity with the reference; approx=True would
    # also be fine and moves the op to the EUP, but at (8,1) it is irrelevant.
    o_ref[...] = (e * pl.reciprocal(denom, approx=False)).astype(o_ref.dtype)


# ------------------------------ wrapper / glue ------------------------------

def netz_forward(x_nchw, packed):
    B, Cin, H, W = x_nchw.shape
    assert Cin == 1 and H == 8 and W == 8, "Netz expects (B, 1, 8, 8) inputs"
    dims = ((H, W), (H // 2, W // 2), (H // 4, W // 4))

    # pool anchor-selection matrices: compile-time constants (numpy, traced once)
    s1 = jnp.asarray(_pool_select(B, *dims[0], compact_out=False))
    s2 = jnp.asarray(_pool_select(B, *dims[1], compact_out=False))
    s3 = jnp.asarray(_pool_select(B, *dims[2], compact_out=True))

    # Input -> lane-dense halo layout: rows (b, i+1, j+1) of the zero-padded
    # 10x10 map, lane 0 = pixel value, lanes 1..127 = 0; PAD guard rows on both
    # ends so every in-kernel shifted slice stays in bounds.
    xp = jnp.pad(x_nchw.reshape(B, H, W), ((0, 0), (1, 1), (1, 1)))
    xin = jnp.pad(xp.reshape(B * (H + 2) * (W + 2), 1),
                  ((PAD, PAD), (0, CP - 1)))

    scr_rows = 2 * PAD + B * (H + 2) * (W + 2)
    out_rows = s3.shape[0]   # round_up(B, 8): keeps the output store 8-row aligned

    kernel = functools.partial(_netz_kernel, batch=B, dims=dims,
                               n_classes=N_CLASSES)
    out = pl.pallas_call(
        kernel,
        out_shape=jax.ShapeDtypeStruct((out_rows, CP), jnp.float32),
        scratch_shapes=[pltpu.VMEM((scr_rows, CP), jnp.float32)],
    )(xin,
      packed['w_conv1'], packed['b_conv1'], s1,
      packed['w_conv2'], packed['b_conv2'], s2,
      packed['w_conv3'], packed['b_conv3'], s3,
      packed['w_lin1'], packed['b_lin1'],
      packed['w_lin2'], packed['b_lin2'])
    # spatial is 1x1 after the third pool, so row b == torch's x.view(-1, 30)[b]
    return out[:B, :N_CLASSES]


# --------------------------- reference & setup ---------------------------

def ref_forward(x_nchw, p):
    x = jnp.transpose(x_nchw, (0, 2, 3, 1))

    def conv(x, w, b):
        return jax.lax.conv_general_dilated(
            x, jnp.transpose(w, (2, 3, 1, 0)), (1, 1), ((1, 1), (1, 1)),
            dimension_numbers=('NHWC', 'HWIO', 'NHWC')) + b

    def pool(x):
        B, H, W, C = x.shape
        return jnp.max(x.reshape(B, H // 2, 2, W // 2, 2, C), axis=(2, 4))

    x = jnp.maximum(pool(conv(x, p['w_conv1'], p['b_conv1'])), 0.0)
    x = jnp.maximum(pool(conv(x, p['w_conv2'], p['b_conv2'])), 0.0)
    x = jnp.maximum(pool(conv(x, p['w_conv3'], p['b_conv3'])), 0.0)
    x = x.reshape(x.shape[0], -1)
    h = jnp.maximum(x @ p['w_lin1'].T + p['b_lin1'], 0.0)
    z = jnp.maximum(h @ p['w_lin2'].T + p['b_lin2'], 0.0)
    return jax.nn.softmax(z, axis=1)


def init_params(key):
    ks = jax.random.split(key, 10)

    def u(k, shape, fan_in):
        bound = 1.0 / np.sqrt(fan_in)
        return jax.random.uniform(k, shape, jnp.float32, -bound, bound)

    return dict(
        w_conv1=u(ks[0], (10, 1, 3, 3), 1 * 9),  b_conv1=u(ks[1], (10,), 1 * 9),
        w_conv2=u(ks[2], (20, 10, 3, 3), 10 * 9), b_conv2=u(ks[3], (20,), 10 * 9),
        w_conv3=u(ks[4], (30, 20, 3, 3), 20 * 9), b_conv3=u(ks[5], (30,), 20 * 9),
        w_lin1=u(ks[6], (16, 30), 30),           b_lin1=u(ks[7], (16,), 30),
        w_lin2=u(ks[8], (2, 16), 16),            b_lin2=u(ks[9], (2,), 16),
    )


if __name__ == "__main__":
    key = jax.random.PRNGKey(0)
    kp, kx = jax.random.split(key)
    params = init_params(kp)
    packed = pack_params(params)   # one-time host-side weight packing
    # batch=2, 1 input channel, 8x8 spatial: 8 -> 4 -> 2 -> 1 after the three
    # 2x2 max-pools, so the torch module's x.view(-1, 30) is well defined.
    x = jax.random.normal(kx, (2, 1, 8, 8), jnp.float32)

    fwd = jax.jit(netz_forward)
    out = jax.block_until_ready(fwd(x, packed))

    ref = ref_forward(x, params)
    assert out.shape == (2, 2), out.shape
    if not np.allclose(np.asarray(out), np.asarray(ref), atol=1e-4, rtol=1e-4):
        raise AssertionError(f"Pallas/reference mismatch:\n{out}\n{ref}")
    print("KERNEL_OK")
</pallas_src>

<mosaic_0001>
module attributes {stable_mosaic.version = 11 : i64} {
  func.func @_netz_kernel(%arg0: memref<232x128xf32, #tpu.memory_space<vmem>>, %arg1: memref<9x128x128xf32, #tpu.memory_space<vmem>>, %arg2: memref<1x128xf32, #tpu.memory_space<vmem>>, %arg3: memref<72x200xf32, #tpu.memory_space<vmem>>, %arg4: memref<9x128x128xf32, #tpu.memory_space<vmem>>, %arg5: memref<1x128xf32, #tpu.memory_space<vmem>>, %arg6: memref<32x72xf32, #tpu.memory_space<vmem>>, %arg7: memref<9x128x128xf32, #tpu.memory_space<vmem>>, %arg8: memref<1x128xf32, #tpu.memory_space<vmem>>, %arg9: memref<8x32xf32, #tpu.memory_space<vmem>>, %arg10: memref<128x128xf32, #tpu.memory_space<vmem>>, %arg11: memref<1x128xf32, #tpu.memory_space<vmem>>, %arg12: memref<128x128xf32, #tpu.memory_space<vmem>>, %arg13: memref<1x128xf32, #tpu.memory_space<vmem>>, %arg14: memref<8x128xf32, #tpu.memory_space<vmem>>, %arg15: memref<232x128xf32, #tpu.memory_space<vmem>>) attributes {dimension_semantics = [], scalar_prefetch = 0 : i64, scratch_operands = 1 : i64, tpu.core_type = #tpu.core_type<tc>} {
    %cst = arith.constant 0.000000e+00 : f32
    %0 = vector.broadcast %cst : f32 to vector<232x128xf32>
    %c0 = arith.constant 0 : index
    %c0_0 = arith.constant 0 : index
    %1 = vector.load %arg15[%c0, %c0_0] : memref<232x128xf32, #tpu.memory_space<vmem>>, vector<232x128xf32>
    tpu.vector_store %arg15[%c0, %c0_0], %0 {strides = array<i32>} : memref<232x128xf32, #tpu.memory_space<vmem>>, vector<232x128xf32>,
    %c5 = arith.constant 5 : index
    %c0_1 = arith.constant 0 : index
    %2 = vector.load %arg0[%c5, %c0_1] : memref<232x128xf32, #tpu.memory_space<vmem>>, vector<200x128xf32>
    %c0_2 = arith.constant 0 : index
    %c0_3 = arith.constant 0 : index
    %c0_4 = arith.constant 0 : index
    %3 = vector.load %arg1[%c0_2, %c0_3, %c0_4] : memref<9x128x128xf32, #tpu.memory_space<vmem>>, vector<1x128x128xf32>
    %4 = vector.shape_cast %3 : vector<1x128x128xf32> to vector<128x128xf32>
    %cst_5 = arith.constant dense<0.000000e+00> : vector<200x128xf32>
    %5 = tpu.matmul %2, %4, %cst_5 {dimension_numbers = #tpu.dot_dimension_numbers<[1], [0], [0], [1], [0, 0, 1, 1], [], []>} : vector<200x128xf32>, vector<128x128xf32>, vector<200x128xf32> -> vector<200x128xf32>
    %c6 = arith.constant 6 : index
    %c0_6 = arith.constant 0 : index
    %6 = vector.load %arg0[%c6, %c0_6] : memref<232x128xf32, #tpu.memory_space<vmem>>, vector<200x128xf32>
    %c1 = arith.constant 1 : index
    %c0_7 = arith.constant 0 : index
    %c0_8 = arith.constant 0 : index
    %7 = vector.load %arg1[%c1, %c0_7, %c0_8] : memref<9x128x128xf32, #tpu.memory_space<vmem>>, vector<1x128x128xf32>
    %8 = vector.shape_cast %7 : vector<1x128x128xf32> to vector<128x128xf32>
    %cst_9 = arith.constant dense<0.000000e+00> : vector<200x128xf32>
    %9 = tpu.matmul %6, %8, %cst_9 {dimension_numbers = #tpu.dot_dimension_numbers<[1], [0], [0], [1], [0, 0, 1, 1], [], []>} : vector<200x128xf32>, vector<128x128xf32>, vector<200x128xf32> -> vector<200x128xf32>
    %10 = arith.addf %5, %9 : vector<200x128xf32>
    %c7 = arith.constant 7 : index
    %c0_10 = arith.constant 0 : index
    %11 = vector.load %arg0[%c7, %c0_10] : memref<232x128xf32, #tpu.memory_space<vmem>>, vector<200x128xf32>
    %c2 = arith.constant 2 : index
    %c0_11 = arith.constant 0 : index
    %c0_12 = arith.constant 0 : index
    %12 = vector.load %arg1[%c2, %c0_11, %c0_12] : memref<9x128x128xf32, #tpu.memory_space<vmem>>, vector<1x128x128xf32>
    %13 = vector.shape_cast %12 : vector<1x128x128xf32> to vector<128x128xf32>
    %cst_13 = arith.constant dense<0.000000e+00> : vector<200x128xf32>
    %14 = tpu.matmul %11, %13, %cst_13 {dimension_numbers = #tpu.dot_dimension_numbers<[1], [0], [0], [1], [0, 0, 1, 1], [], []>} : vector<200x128xf32>, vector<128x128xf32>, vector<200x128xf32> -> vector<200x128xf32>
    %15 = arith.addf %10, %14 : vector<200x128xf32>
    %c15 = arith.constant 15 : index
    %c0_14 = arith.constant 0 : index
    %16 = vector.load %arg0[%c15, %c0_14] : memref<232x128xf32, #tpu.memory_space<vmem>>, vector<200x128xf32>
    %c3 = arith.constant 3 : index
    %c0_15 = arith.constant 0 : index
    %c0_16 = arith.constant 0 : index
    %17 = vector.load %arg1[%c3, %c0_15, %c0_16] : memref<9x128x128xf32, #tpu.memory_space<vmem>>, vector<1x128x128xf32>
    %18 = vector.shape_cast %17 : vector<1x128x128xf32> to vector<128x128xf32>
    %cst_17 = arith.constant dense<0.000000e+00> : vector<200x128xf32>
    %19 = tpu.matmul %16, %18, %cst_17 {dimension_numbers = #tpu.dot_dimension_numbers<[1], [0], [0], [1], [0, 0, 1, 1], [], []>} : vector<200x128xf32>, vector<128x128xf32>, vector<200x128xf32> -> vector<200x128xf32>
    %20 = arith.addf %15, %19 : vector<200x128xf32>
    %c16 = arith.constant 16 : index
    %c0_18 = arith.constant 0 : index
    %21 = vector.load %arg0[%c16, %c0_18] : memref<232x128xf32, #tpu.memory_space<vmem>>, vector<200x128xf32>
    %c4 = arith.constant 4 : index
    %c0_19 = arith.constant 0 : index
    %c0_20 = arith.constant 0 : index
    %22 = vector.load %arg1[%c4, %c0_19, %c0_20] : memref<9x128x128xf32, #tpu.memory_space<vmem>>, vector<1x128x128xf32>
    %23 = vector.shape_cast %22 : vector<1x128x128xf32> to vector<128x128xf32>
    %cst_21 = arith.constant dense<0.000000e+00> : vector<200x128xf32>
    %24 = tpu.matmul %21, %23, %cst_21 {dimension_numbers = #tpu.dot_dimension_numbers<[1], [0], [0], [1], [0, 0, 1, 1], [], []>} : vector<200x128xf32>, vector<128x128xf32>, vector<200x128xf32> -> vector<200x128xf32>
    %25 = arith.addf %20, %24 : vector<200x128xf32>
    %c17 = arith.constant 17 : index
    %c0_22 = arith.constant 0 : index
    %26 = vector.load %arg0[%c17, %c0_22] : memref<232x128xf32, #tpu.memory_space<vmem>>, vector<200x128xf32>
    %c5_23 = arith.constant 5 : index
    %c0_24 = arith.constant 0 : index
    %c0_25 = arith.constant 0 : index
    %27 = vector.load %arg1[%c5_23, %c0_24, %c0_25] : memref<9x128x128xf32, #tpu.memory_space<vmem>>, vector<1x128x128xf32>
    %28 = vector.shape_cast %27 : vector<1x128x128xf32> to vector<128x128xf32>
    %cst_26 = arith.constant dense<0.000000e+00> : vector<200x128xf32>
    %29 = tpu.matmul %26, %28, %cst_26 {dimension_numbers = #tpu.dot_dimension_numbers<[1], [0], [0], [1], [0, 0, 1, 1], [], []>} : vector<200x128xf32>, vector<128x128xf32>, vector<200x128xf32> -> vector<200x128xf32>
    %30 = arith.addf %25, %29 : vector<200x128xf32>
    %c25 = arith.constant 25 : index
    %c0_27 = arith.constant 0 : index
    %31 = vector.load %arg0[%c25, %c0_27] : memref<232x128xf32, #tpu.memory_space<vmem>>, vector<200x128xf32>
    %c6_28 = arith.constant 6 : index
    %c0_29 = arith.constant 0 : index
    %c0_30 = arith.constant 0 : index
    %32 = vector.load %arg1[%c6_28, %c0_29, %c0_30] : memref<9x128x128xf32, #tpu.memory_space<vmem>>, vector<1x128x128xf32>
    %33 = vector.shape_cast %32 : vector<1x128x128xf32> to vector<128x128xf32>
    %cst_31 = arith.constant dense<0.000000e+00> : vector<200x128xf32>
    %34 = tpu.matmul %31, %33, %cst_31 {dimension_numbers = #tpu.dot_dimension_numbers<[1], [0], [0], [1], [0, 0, 1, 1], [], []>} : vector<200x128xf32>, vector<128x128xf32>, vector<200x128xf32> -> vector<200x128xf32>
    %35 = arith.addf %30, %34 : vector<200x128xf32>
    %c26 = arith.constant 26 : index
    %c0_32 = arith.constant 0 : index
    %36 = vector.load %arg0[%c26, %c0_32] : memref<232x128xf32, #tpu.memory_space<vmem>>, vector<200x128xf32>
    %c7_33 = arith.constant 7 : index
    %c0_34 = arith.constant 0 : index
    %c0_35 = arith.constant 0 : index
    %37 = vector.load %arg1[%c7_33, %c0_34, %c0_35] : memref<9x128x128xf32, #tpu.memory_space<vmem>>, vector<1x128x128xf32>
    %38 = vector.shape_cast %37 : vector<1x128x128xf32> to vector<128x128xf32>
    %cst_36 = arith.constant dense<0.000000e+00> : vector<200x128xf32>
    %39 = tpu.matmul %36, %38, %cst_36 {dimension_numbers = #tpu.dot_dimension_numbers<[1], [0], [0], [1], [0, 0, 1, 1], [], []>} : vector<200x128xf32>, vector<128x128xf32>, vector<200x128xf32> -> vector<200x128xf32>
    %40 = arith.addf %35, %39 : vector<200x128xf32>
    %c27 = arith.constant 27 : index
    %c0_37 = arith.constant 0 : index
    %41 = vector.load %arg0[%c27, %c0_37] : memref<232x128xf32, #tpu.memory_space<vmem>>, vector<200x128xf32>
    %c8 = arith.constant 8 : index
    %c0_38 = arith.constant 0 : index
    %c0_39 = arith.constant 0 : index
    %42 = vector.load %arg1[%c8, %c0_38, %c0_39] : memref<9x128x128xf32, #tpu.memory_space<vmem>>, vector<1x128x128xf32>
    %43 = vector.shape_cast %42 : vector<1x128x128xf32> to vector<128x128xf32>
    %cst_40 = arith.constant dense<0.000000e+00> : vector<200x128xf32>
    %44 = tpu.matmul %41, %43, %cst_40 {dimension_numbers = #tpu.dot_dimension_numbers<[1], [0], [0], [1], [0, 0, 1, 1], [], []>} : vector<200x128xf32>, vector<128x128xf32>, vector<200x128xf32> -> vector<200x128xf32>
    %45 = arith.addf %40, %44 : vector<200x128xf32>
    %c0_41 = arith.constant 0 : index
    %c0_42 = arith.constant 0 : index
    %46 = vector.load %arg2[%c0_41, %c0_42] : memref<1x128xf32, #tpu.memory_space<vmem>>, vector<1x128xf32>
    %47 = vector.broadcast %46 : vector<1x128xf32> to vector<200x128xf32>
    %48 = arith.addf %45, %47 : vector<200x128xf32>
    %c16_43 = arith.constant 16 : index
    %c0_44 = arith.constant 0 : index
    %49 = vector.load %arg15[%c16_43, %c0_44] : memref<232x128xf32, #tpu.memory_space<vmem>>, vector<200x128xf32>
    tpu.vector_store %arg15[%c16_43, %c0_44], %48 {strides = array<i32>} : memref<232x128xf32, #tpu.memory_space<vmem>>, vector<200x128xf32>,
    %c17_45 = arith.constant 17 : index
    %c0_46 = arith.constant 0 : index
    %50 = vector.load %arg15[%c17_45, %c0_46] : memref<232x128xf32, #tpu.memory_space<vmem>>, vector<200x128xf32>
    %51 = arith.maximumf %48, %50 : vector<200x128xf32>
    %c26_47 = arith.constant 26 : index
    %c0_48 = arith.constant 0 : index
    %52 = vector.load %arg15[%c26_47, %c0_48] : memref<232x128xf32, #tpu.memory_space<vmem>>, vector<200x128xf32>
    %c27_49 = arith.constant 27 : index
    %c0_50 = arith.constant 0 : index
    %53 = vector.load %arg15[%c27_49, %c0_50] : memref<232x128xf32, #tpu.memory_space<vmem>>, vector<200x128xf32>
    %54 = arith.maximumf %52, %53 : vector<200x128xf32>
    %55 = arith.maximumf %51, %54 : vector<200x128xf32>
    %c0_51 = arith.constant 0 : index
    %c0_52 = arith.constant 0 : index
    %56 = vector.load %arg3[%c0_51, %c0_52] : memref<72x200xf32, #tpu.memory_space<vmem>>, vector<72x200xf32>
    %cst_53 = arith.constant dense<0.000000e+00> : vector<72x128xf32>
    %57 = tpu.matmul %56, %55, %cst_53 {dimension_numbers = #tpu.dot_dimension_numbers<[1], [0], [0], [1], [0, 0, 1, 1], [], []>} : vector<72x200xf32>, vector<200x128xf32>, vector<72x128xf32> -> vector<72x128xf32>
    %cst_54 = arith.constant 0.000000e+00 : f32
    %58 = vector.broadcast %cst_54 : f32 to vector<72x128xf32>
    %59 = arith.maximumf %57, %58 : vector<72x128xf32>
    %c16_55 = arith.constant 16 : index
    %c0_56 = arith.constant 0 : index
    %60 = vector.load %arg15[%c16_55, %c0_56] : memref<232x128xf32, #tpu.memory_space<vmem>>, vector<72x128xf32>
    tpu.vector_store %arg15[%c16_55, %c0_56], %59 {strides = array<i32>} : memref<232x128xf32, #tpu.memory_space<vmem>>, vector<72x128xf32>,
    %c9 = arith.constant 9 : index
    %c0_57 = arith.constant 0 : index
    %61 = vector.load %arg15[%c9, %c0_57] : memref<232x128xf32, #tpu.memory_space<vmem>>, vector<72x128xf32>
    %c0_58 = arith.constant 0 : index
    %c0_59 = arith.constant 0 : index
    %c0_60 = arith.constant 0 : index
    %62 = vector.load %arg4[%c0_58, %c0_59, %c0_60] : memref<9x128x128xf32, #tpu.memory_space<vmem>>, vector<1x128x128xf32>
    %63 = vector.shape_cast %62 : vector<1x128x128xf32> to vector<128x128xf32>
    %cst_61 = arith.constant dense<0.000000e+00> : vector<72x128xf32>
    %64 = tpu.matmul %61, %63, %cst_61 {dimension_numbers = #tpu.dot_dimension_numbers<[1], [0], [0], [1], [0, 0, 1, 1], [], []>} : vector<72x128xf32>, vector<128x128xf32>, vector<72x128xf32> -> vector<72x128xf32>
    %c10 = arith.constant 10 : index
    %c0_62 = arith.constant 0 : index
    %65 = vector.load %arg15[%c10, %c0_62] : memref<232x128xf32, #tpu.memory_space<vmem>>, vector<72x128xf32>
    %c1_63 = arith.constant 1 : index
    %c0_64 = arith.constant 0 : index
    %c0_65 = arith.constant 0 : index
    %66 = vector.load %arg4[%c1_63, %c0_64, %c0_65] : memref<9x128x128xf32, #tpu.memory_space<vmem>>, vector<1x128x128xf32>
    %67 = vector.shape_cast %66 : vector<1x128x128xf32> to vector<128x128xf32>
    %cst_66 = arith.constant dense<0.000000e+00> : vector<72x128xf32>
    %68 = tpu.matmul %65, %67, %cst_66 {dimension_numbers = #tpu.dot_dimension_numbers<[1], [0], [0], [1], [0, 0, 1, 1], [], []>} : vector<72x128xf32>, vector<128x128xf32>, vector<72x128xf32> -> vector<72x128xf32>
    %69 = arith.addf %64, %68 : vector<72x128xf32>
    %c11 = arith.constant 11 : index
    %c0_67 = arith.constant 0 : index
    %70 = vector.load %arg15[%c11, %c0_67] : memref<232x128xf32, #tpu.memory_space<vmem>>, vector<72x128xf32>
    %c2_68 = arith.constant 2 : index
    %c0_69 = arith.constant 0 : index
    %c0_70 = arith.constant 0 : index
    %71 = vector.load %arg4[%c2_68, %c0_69, %c0_70] : memref<9x128x128xf32, #tpu.memory_space<vmem>>, vector<1x128x128xf32>
    %72 = vector.shape_cast %71 : vector<1x128x128xf32> to vector<128x128xf32>
    %cst_71 = arith.constant dense<0.000000e+00> : vector<72x128xf32>
    %73 = tpu.matmul %70, %72, %cst_71 {dimension_numbers = #tpu.dot_dimension_numbers<[1], [0], [0], [1], [0, 0, 1, 1], [], []>} : vector<72x128xf32>, vector<128x128xf32>, vector<72x128xf32> -> vector<72x128xf32>
    %74 = arith.addf %69, %73 : vector<72x128xf32>
    %c15_72 = arith.constant 15 : index
    %c0_73 = arith.constant 0 : index
    %75 = vector.load %arg15[%c15_72, %c0_73] : memref<232x128xf32, #tpu.memory_space<vmem>>, vector<72x128xf32>
    %c3_74 = arith.constant 3 : index
    %c0_75 = arith.constant 0 : index
    %c0_76 = arith.constant 0 : index
    %76 = vector.load %arg4[%c3_74, %c0_75, %c0_76] : memref<9x128x128xf32, #tpu.memory_space<vmem>>, vector<1x128x128xf32>
    %77 = vector.shape_cast %76 : vector<1x128x128xf32> to vector<128x128xf32>
    %cst_77 = arith.constant dense<0.000000e+00> : vector<72x128xf32>
    %78 = tpu.matmul %75, %77, %cst_77 {dimension_numbers = #tpu.dot_dimension_numbers<[1], [0], [0], [1], [0, 0, 1, 1], [], []>} : vector<72x128xf32>, vector<128x128xf32>, vector<72x128xf32> -> vector<72x128xf32>
    %79 = arith.addf %74, %78 : vector<72x128xf32>
    %c16_78 = arith.constant 16 : index
    %c0_79 = arith.constant 0 : index
    %80 = vector.load %arg15[%c16_78, %c0_79] : memref<232x128xf32, #tpu.memory_space<vmem>>, vector<72x128xf32>
    %c4_80 = arith.constant 4 : index
    %c0_81 = arith.constant 0 : index
    %c0_82 = arith.constant 0 : index
    %81 = vector.load %arg4[%c4_80, %c0_81, %c0_82] : memref<9x128x128xf32, #tpu.memory_space<vmem>>, vector<1x128x128xf32>
    %82 = vector.shape_cast %81 : vector<1x128x128xf32> to vector<128x128xf32>
    %cst_83 = arith.constant dense<0.000000e+00> : vector<72x128xf32>
    %83 = tpu.matmul %80, %82, %cst_83 {dimension_numbers = #tpu.dot_dimension_numbers<[1], [0], [0], [1], [0, 0, 1, 1], [], []>} : vector<72x128xf32>, vector<128x128xf32>, vector<72x128xf32> -> vector<72x128xf32>
    %84 = arith.addf %79, %83 : vector<72x128xf32>
    %c17_84 = arith.constant 17 : index
    %c0_85 = arith.constant 0 : index
    %85 = vector.load %arg15[%c17_84, %c0_85] : memref<232x128xf32, #tpu.memory_space<vmem>>, vector<72x128xf32>
    %c5_86 = arith.constant 5 : index
    %c0_87 = arith.constant 0 : index
    %c0_88 = arith.constant 0 : index
    %86 = vector.load %arg4[%c5_86, %c0_87, %c0_88] : memref<9x128x128xf32, #tpu.memory_space<vmem>>, vector<1x128x128xf32>
    %87 = vector.shape_cast %86 : vector<1x128x128xf32> to vector<128x128xf32>
    %cst_89 = arith.constant dense<0.000000e+00> : vector<72x128xf32>
    %88 = tpu.matmul %85, %87, %cst_89 {dimension_numbers = #tpu.dot_dimension_numbers<[1], [0], [0], [1], [0, 0, 1, 1], [], []>} : vector<72x128xf32>, vector<128x128xf32>, vector<72x128xf32> -> vector<72x128xf32>
    %89 = arith.addf %84, %88 : vector<72x128xf32>
    %c21 = arith.constant 21 : index
    %c0_90 = arith.constant 0 : index
    %90 = vector.load %arg15[%c21, %c0_90] : memref<232x128xf32, #tpu.memory_space<vmem>>, vector<72x128xf32>
    %c6_91 = arith.constant 6 : index
    %c0_92 = arith.constant 0 : index
    %c0_93 = arith.constant 0 : index
    %91 = vector.load %arg4[%c6_91, %c0_92, %c0_93] : memref<9x128x128xf32, #tpu.memory_space<vmem>>, vector<1x128x128xf32>
    %92 = vector.shape_cast %91 : vector<1x128x128xf32> to vector<128x128xf32>
    %cst_94 = arith.constant dense<0.000000e+00> : vector<72x128xf32>
    %93 = tpu.matmul %90, %92, %cst_94 {dimension_numbers = #tpu.dot_dimension_numbers<[1], [0], [0], [1], [0, 0, 1, 1], [], []>} : vector<72x128xf32>, vector<128x128xf32>, vector<72x128xf32> -> vector<72x128xf32>
    %94 = arith.addf %89, %93 : vector<72x128xf32>
    %c22 = arith.constant 22 : index
    %c0_95 = arith.constant 0 : index
    %95 = vector.load %arg15[%c22, %c0_95] : memref<232x128xf32, #tpu.memory_space<vmem>>, vector<72x128xf32>
    %c7_96 = arith.constant 7 : index
    %c0_97 = arith.constant 0 : index
    %c0_98 = arith.constant 0 : index
    %96 = vector.load %arg4[%c7_96, %c0_97, %c0_98] : memref<9x128x128xf32, #tpu.memory_space<vmem>>, vector<1x128x128xf32>
    %97 = vector.shape_cast %96 : vector<1x128x128xf32> to vector<128x128xf32>
    %cst_99 = arith.constant dense<0.000000e+00> : vector<72x128xf32>
    %98 = tpu.matmul %95, %97, %cst_99 {dimension_numbers = #tpu.dot_dimension_numbers<[1], [0], [0], [1], [0, 0, 1, 1], [], []>} : vector<72x128xf32>, vector<128x128xf32>, vector<72x128xf32> -> vector<72x128xf32>
    %99 = arith.addf %94, %98 : vector<72x128xf32>
    %c23 = arith.constant 23 : index
    %c0_100 = arith.constant 0 : index
    %100 = vector.load %arg15[%c23, %c0_100] : memref<232x128xf32, #tpu.memory_space<vmem>>, vector<72x128xf32>
    %c8_101 = arith.constant 8 : index
    %c0_102 = arith.constant 0 : index
    %c0_103 = arith.constant 0 : index
    %101 = vector.load %arg4[%c8_101, %c0_102, %c0_103] : memref<9x128x128xf32, #tpu.memory_space<vmem>>, vector<1x128x128xf32>
    %102 = vector.shape_cast %101 : vector<1x128x128xf32> to vector<128x128xf32>
    %cst_104 = arith.constant dense<0.000000e+00> : vector<72x128xf32>
    %103 = tpu.matmul %100, %102, %cst_104 {dimension_numbers = #tpu.dot_dimension_numbers<[1], [0], [0], [1], [0, 0, 1, 1], [], []>} : vector<72x128xf32>, vector<128x128xf32>, vector<72x128xf32> -> vector<72x128xf32>
    %104 = arith.addf %99, %103 : vector<72x128xf32>
    %c0_105 = arith.constant 0 : index
    %c0_106 = arith.constant 0 : index
    %105 = vector.load %arg5[%c0_105, %c0_106] : memref<1x128xf32, #tpu.memory_space<vmem>>, vector<1x128xf32>
    %106 = vector.broadcast %105 : vector<1x128xf32> to vector<72x128xf32>
    %107 = arith.addf %104, %106 : vector<72x128xf32>
    %c16_107 = arith.constant 16 : index
    %c0_108 = arith.constant 0 : index
    %108 = vector.load %arg15[%c16_107, %c0_108] : memref<232x128xf32, #tpu.memory_space<vmem>>, vector<72x128xf32>
    tpu.vector_store %arg15[%c16_107, %c0_108], %107 {strides = array<i32>} : memref<232x128xf32, #tpu.memory_space<vmem>>, vector<72x128xf32>,
    %c17_109 = arith.constant 17 : index
    %c0_110 = arith.constant 0 : index
    %109 = vector.load %arg15[%c17_109, %c0_110] : memref<232x128xf32, #tpu.memory_space<vmem>>, vector<72x128xf32>
    %110 = arith.maximumf %107, %109 : vector<72x128xf32>
    %c22_111 = arith.constant 22 : index
    %c0_112 = arith.constant 0 : index
    %111 = vector.load %arg15[%c22_111, %c0_112] : memref<232x128xf32, #tpu.memory_space<vmem>>, vector<72x128xf32>
    %c23_113 = arith.constant 23 : index
    %c0_114 = arith.constant 0 : index
    %112 = vector.load %arg15[%c23_113, %c0_114] : memref<232x128xf32, #tpu.memory_space<vmem>>, vector<72x128xf32>
    %113 = arith.maximumf %111, %112 : vector<72x128xf32>
    %114 = arith.maximumf %110, %113 : vector<72x128xf32>
    %c0_115 = arith.constant 0 : index
    %c0_116 = arith.constant 0 : index
    %115 = vector.load %arg6[%c0_115, %c0_116] : memref<32x72xf32, #tpu.memory_space<vmem>>, vector<32x72xf32>
    %cst_117 = arith.constant dense<0.000000e+00> : vector<32x128xf32>
    %116 = tpu.matmul %115, %114, %cst_117 {dimension_numbers = #tpu.dot_dimension_numbers<[1], [0], [0], [1], [0, 0, 1, 1], [], []>} : vector<32x72xf32>, vector<72x128xf32>, vector<32x128xf32> -> vector<32x128xf32>
    %cst_118 = arith.constant 0.000000e+00 : f32
    %117 = vector.broadcast %cst_118 : f32 to vector<32x128xf32>
    %118 = arith.maximumf %116, %117 : vector<32x128xf32>
    %c16_119 = arith.constant 16 : index
    %c0_120 = arith.constant 0 : index
    %119 = vector.load %arg15[%c16_119, %c0_120] : memref<232x128xf32, #tpu.memory_space<vmem>>, vector<32x128xf32>
    tpu.vector_store %arg15[%c16_119, %c0_120], %118 {strides = array<i32>} : memref<232x128xf32, #tpu.memory_space<vmem>>, vector<32x128xf32>,
    %c11_121 = arith.constant 11 : index
    %c0_122 = arith.constant 0 : index
    %120 = vector.load %arg15[%c11_121, %c0_122] : memref<232x128xf32, #tpu.memory_space<vmem>>, vector<32x128xf32>
    %c0_123 = arith.constant 0 : index
    %c0_124 = arith.constant 0 : index
    %c0_125 = arith.constant 0 : index
    %121 = vector.load %arg7[%c0_123, %c0_124, %c0_125] : memref<9x128x128xf32, #tpu.memory_space<vmem>>, vector<1x128x128xf32>
    %122 = vector.shape_cast %121 : vector<1x128x128xf32> to vector<128x128xf32>
    %cst_126 = arith.constant dense<0.000000e+00> : vector<32x128xf32>
    %123 = tpu.matmul %120, %122, %cst_126 {dimension_numbers = #tpu.dot_dimension_numbers<[1], [0], [0], [1], [0, 0, 1, 1], [], []>} : vector<32x128xf32>, vector<128x128xf32>, vector<32x128xf32> -> vector<32x128xf32>
    %c12 = arith.constant 12 : index
    %c0_127 = arith.constant 0 : index
    %124 = vector.load %arg15[%c12, %c0_127] : memref<232x128xf32, #tpu.memory_space<vmem>>, vector<32x128xf32>
    %c1_128 = arith.constant 1 : index
    %c0_129 = arith.constant 0 : index
    %c0_130 = arith.constant 0 : index
    %125 = vector.load %arg7[%c1_128, %c0_129, %c0_130] : memref<9x128x128xf32, #tpu.memory_space<vmem>>, vector<1x128x128xf32>
    %126 = vector.shape_cast %125 : vector<1x128x128xf32> to vector<128x128xf32>
    %cst_131 = arith.constant dense<0.000000e+00> : vector<32x128xf32>
    %127 = tpu.matmul %124, %126, %cst_131 {dimension_numbers = #tpu.dot_dimension_numbers<[1], [0], [0], [1], [0, 0, 1, 1], [], []>} : vector<32x128xf32>, vector<128x128xf32>, vector<32x128xf32> -> vector<32x128xf32>
    %128 = arith.addf %123, %127 : vector<32x128xf32>
    %c13 = arith.constant 13 : index
    %c0_132 = arith.constant 0 : index
    %129 = vector.load %arg15[%c13, %c0_132] : memref<232x128xf32, #tpu.memory_space<vmem>>, vector<32x128xf32>
    %c2_133 = arith.constant 2 : index
    %c0_134 = arith.constant 0 : index
    %c0_135 = arith.constant 0 : index
    %130 = vector.load %arg7[%c2_133, %c0_134, %c0_135] : memref<9x128x128xf32, #tpu.memory_space<vmem>>, vector<1x128x128xf32>
    %131 = vector.shape_cast %130 : vector<1x128x128xf32> to vector<128x128xf32>
    %cst_136 = arith.constant dense<0.000000e+00> : vector<32x128xf32>
    %132 = tpu.matmul %129, %131, %cst_136 {dimension_numbers = #tpu.dot_dimension_numbers<[1], [0], [0], [1], [0, 0, 1, 1], [], []>} : vector<32x128xf32>, vector<128x128xf32>, vector<32x128xf32> -> vector<32x128xf32>
    %133 = arith.addf %128, %132 : vector<32x128xf32>
    %c15_137 = arith.constant 15 : index
    %c0_138 = arith.constant 0 : index
    %134 = vector.load %arg15[%c15_137, %c0_138] : memref<232x128xf32, #tpu.memory_space<vmem>>, vector<32x128xf32>
    %c3_139 = arith.constant 3 : index
    %c0_140 = arith.constant 0 : index
    %c0_141 = arith.constant 0 : index
    %135 = vector.load %arg7[%c3_139, %c0_140, %c0_141] : memref<9x128x128xf32, #tpu.memory_space<vmem>>, vector<1x128x128xf32>
    %136 = vector.shape_cast %135 : vector<1x128x128xf32> to vector<128x128xf32>
    %cst_142 = arith.constant dense<0.000000e+00> : vector<32x128xf32>
    %137 = tpu.matmul %134, %136, %cst_142 {dimension_numbers = #tpu.dot_dimension_numbers<[1], [0], [0], [1], [0, 0, 1, 1], [], []>} : vector<32x128xf32>, vector<128x128xf32>, vector<32x128xf32> -> vector<32x128xf32>
    %138 = arith.addf %133, %137 : vector<32x128xf32>
    %c16_143 = arith.constant 16 : index
    %c0_144 = arith.constant 0 : index
    %139 = vector.load %arg15[%c16_143, %c0_144] : memref<232x128xf32, #tpu.memory_space<vmem>>, vector<32x128xf32>
    %c4_145 = arith.constant 4 : index
    %c0_146 = arith.constant 0 : index
    %c0_147 = arith.constant 0 : index
    %140 = vector.load %arg7[%c4_145, %c0_146, %c0_147] : memref<9x128x128xf32, #tpu.memory_space<vmem>>, vector<1x128x128xf32>
    %141 = vector.shape_cast %140 : vector<1x128x128xf32> to vector<128x128xf32>
    %cst_148 = arith.constant dense<0.000000e+00> : vector<32x128xf32>
    %142 = tpu.matmul %139, %141, %cst_148 {dimension_numbers = #tpu.dot_dimension_numbers<[1], [0], [0], [1], [0, 0, 1, 1], [], []>} : vector<32x128xf32>, vector<128x128xf32>, vector<32x128xf32> -> vector<32x128xf32>
    %143 = arith.addf %138, %142 : vector<32x128xf32>
    %c17_149 = arith.constant 17 : index
    %c0_150 = arith.constant 0 : index
    %144 = vector.load %arg15[%c17_149, %c0_150] : memref<232x128xf32, #tpu.memory_space<vmem>>, vector<32x128xf32>
    %c5_151 = arith.constant 5 : index
    %c0_152 = arith.constant 0 : index
    %c0_153 = arith.constant 0 : index
    %145 = vector.load %arg7[%c5_151, %c0_152, %c0_153] : memref<9x128x128xf32, #tpu.memory_space<vmem>>, vector<1x128x128xf32>
    %146 = vector.shape_cast %145 : vector<1x128x128xf32> to vector<128x128xf32>
    %cst_154 = arith.constant dense<0.000000e+00> : vector<32x128xf32>
    %147 = tpu.matmul %144, %146, %cst_154 {dimension_numbers = #tpu.dot_dimension_numbers<[1], [0], [0], [1], [0, 0, 1, 1], [], []>} : vector<32x128xf32>, vector<128x128xf32>, vector<32x128xf32> -> vector<32x128xf32>
    %148 = arith.addf %143, %147 : vector<32x128xf32>
    %c19 = arith.constant 19 : index
    %c0_155 = arith.constant 0 : index
    %149 = vector.load %arg15[%c19, %c0_155] : memref<232x128xf32, #tpu.memory_space<vmem>>, vector<32x128xf32>
    %c6_156 = arith.constant 6 : index
    %c0_157 = arith.constant 0 : index
    %c0_158 = arith.constant 0 : index
    %150 = vector.load %arg7[%c6_156, %c0_157, %c0_158] : memref<9x128x128xf32, #tpu.memory_space<vmem>>, vector<1x128x128xf32>
    %151 = vector.shape_cast %150 : vector<1x128x128xf32> to vector<128x128xf32>
    %cst_159 = arith.constant dense<0.000000e+00> : vector<32x128xf32>
    %152 = tpu.matmul %149, %151, %cst_159 {dimension_numbers = #tpu.dot_dimension_numbers<[1], [0], [0], [1], [0, 0, 1, 1], [], []>} : vector<32x128xf32>, vector<128x128xf32>, vector<32x128xf32> -> vector<32x128xf32>
    %153 = arith.addf %148, %152 : vector<32x128xf32>
    %c20 = arith.constant 20 : index
    %c0_160 = arith.constant 0 : index
    %154 = vector.load %arg15[%c20, %c0_160] : memref<232x128xf32, #tpu.memory_space<vmem>>, vector<32x128xf32>
    %c7_161 = arith.constant 7 : index
    %c0_162 = arith.constant 0 : index
    %c0_163 = arith.constant 0 : index
    %155 = vector.load %arg7[%c7_161, %c0_162, %c0_163] : memref<9x128x128xf32, #tpu.memory_space<vmem>>, vector<1x128x128xf32>
    %156 = vector.shape_cast %155 : vector<1x128x128xf32> to vector<128x128xf32>
    %cst_164 = arith.constant dense<0.000000e+00> : vector<32x128xf32>
    %157 = tpu.matmul %154, %156, %cst_164 {dimension_numbers = #tpu.dot_dimension_numbers<[1], [0], [0], [1], [0, 0, 1, 1], [], []>} : vector<32x128xf32>, vector<128x128xf32>, vector<32x128xf32> -> vector<32x128xf32>
    %158 = arith.addf %153, %157 : vector<32x128xf32>
    %c21_165 = arith.constant 21 : index
    %c0_166 = arith.constant 0 : index
    %159 = vector.load %arg15[%c21_165, %c0_166] : memref<232x128xf32, #tpu.memory_space<vmem>>, vector<32x128xf32>
    %c8_167 = arith.constant 8 : index
    %c0_168 = arith.constant 0 : index
    %c0_169 = arith.constant 0 : index
    %160 = vector.load %arg7[%c8_167, %c0_168, %c0_169] : memref<9x128x128xf32, #tpu.memory_space<vmem>>, vector<1x128x128xf32>
    %161 = vector.shape_cast %160 : vector<1x128x128xf32> to vector<128x128xf32>
    %cst_170 = arith.constant dense<0.000000e+00> : vector<32x128xf32>
    %162 = tpu.matmul %159, %161, %cst_170 {dimension_numbers = #tpu.dot_dimension_numbers<[1], [0], [0], [1], [0, 0, 1, 1], [], []>} : vector<32x128xf32>, vector<128x128xf32>, vector<32x128xf32> -> vector<32x128xf32>
    %163 = arith.addf %158, %162 : vector<32x128xf32>
    %c0_171 = arith.constant 0 : index
    %c0_172 = arith.constant 0 : index
    %164 = vector.load %arg8[%c0_171, %c0_172] : memref<1x128xf32, #tpu.memory_space<vmem>>, vector<1x128xf32>
    %165 = vector.broadcast %164 : vector<1x128xf32> to vector<32x128xf32>
    %166 = arith.addf %163, %165 : vector<32x128xf32>
    %c16_173 = arith.constant 16 : index
    %c0_174 = arith.constant 0 : index
    %167 = vector.load %arg15[%c16_173, %c0_174] : memref<232x128xf32, #tpu.memory_space<vmem>>, vector<32x128xf32>
    tpu.vector_store %arg15[%c16_173, %c0_174], %166 {strides = array<i32>} : memref<232x128xf32, #tpu.memory_space<vmem>>, vector<32x128xf32>,
    %c17_175 = arith.constant 17 : index
    %c0_176 = arith.constant 0 : index
    %168 = vector.load %arg15[%c17_175, %c0_176] : memref<232x128xf32, #tpu.memory_space<vmem>>, vector<32x128xf32>
    %169 = arith.maximumf %166, %168 : vector<32x128xf32>
    %c20_177 = arith.constant 20 : index
    %c0_178 = arith.constant 0 : index
    %170 = vector.load %arg15[%c20_177, %c0_178] : memref<232x128xf32, #tpu.memory_space<vmem>>, vector<32x128xf32>
    %c21_179 = arith.constant 21 : index
    %c0_180 = arith.constant 0 : index
    %171 = vector.load %arg15[%c21_179, %c0_180] : memref<232x128xf32, #tpu.memory_space<vmem>>, vector<32x128xf32>
    %172 = arith.maximumf %170, %171 : vector<32x128xf32>
    %173 = arith.maximumf %169, %172 : vector<32x128xf32>
    %c0_181 = arith.constant 0 : index
    %c0_182 = arith.constant 0 : index
    %174 = vector.load %arg9[%c0_181, %c0_182] : memref<8x32xf32, #tpu.memory_space<vmem>>, vector<8x32xf32>
    %cst_183 = arith.constant dense<0.000000e+00> : vector<8x128xf32>
    %175 = tpu.matmul %174, %173, %cst_183 {dimension_numbers = #tpu.dot_dimension_numbers<[1], [0], [0], [1], [0, 0, 1, 1], [], []>} : vector<8x32xf32>, vector<32x128xf32>, vector<8x128xf32> -> vector<8x128xf32>
    %cst_184 = arith.constant 0.000000e+00 : f32
    %176 = vector.broadcast %cst_184 : f32 to vector<8x128xf32>
    %177 = arith.maximumf %175, %176 : vector<8x128xf32>
    %c0_185 = arith.constant 0 : index
    %c0_186 = arith.constant 0 : index
    %178 = vector.load %arg10[%c0_185, %c0_186] : memref<128x128xf32, #tpu.memory_space<vmem>>, vector<128x128xf32>
    %cst_187 = arith.constant dense<0.000000e+00> : vector<8x128xf32>
    %179 = tpu.matmul %177, %178, %cst_187 {dimension_numbers = #tpu.dot_dimension_numbers<[1], [0], [0], [1], [0, 0, 1, 1], [], []>} : vector<8x128xf32>, vector<128x128xf32>, vector<8x128xf32> -> vector<8x128xf32>
    %c0_188 = arith.constant 0 : index
    %c0_189 = arith.constant 0 : index
    %180 = vector.load %arg11[%c0_188, %c0_189] : memref<1x128xf32, #tpu.memory_space<vmem>>, vector<1x128xf32>
    %181 = vector.broadcast %180 : vector<1x128xf32> to vector<8x128xf32>
    %182 = arith.addf %179, %181 : vector<8x128xf32>
    %cst_190 = arith.constant 0.000000e+00 : f32
    %183 = vector.broadcast %cst_190 : f32 to vector<8x128xf32>
    %184 = arith.maximumf %182, %183 : vector<8x128xf32>
    %c0_191 = arith.constant 0 : index
    %c0_192 = arith.constant 0 : index
    %185 = vector.load %arg12[%c0_191, %c0_192] : memref<128x128xf32, #tpu.memory_space<vmem>>, vector<128x128xf32>
    %cst_193 = arith.constant dense<0.000000e+00> : vector<8x128xf32>
    %186 = tpu.matmul %184, %185, %cst_193 {dimension_numbers = #tpu.dot_dimension_numbers<[1], [0], [0], [1], [0, 0, 1, 1], [], []>} : vector<8x128xf32>, vector<128x128xf32>, vector<8x128xf32> -> vector<8x128xf32>
    %c0_194 = arith.constant 0 : index
    %c0_195 = arith.constant 0 : index
    %187 = vector.load %arg13[%c0_194, %c0_195] : memref<1x128xf32, #tpu.memory_space<vmem>>, vector<1x128xf32>
    %188 = vector.broadcast %187 : vector<1x128xf32> to vector<8x128xf32>
    %189 = arith.addf %186, %188 : vector<8x128xf32>
    %cst_196 = arith.constant 0.000000e+00 : f32
    %190 = vector.broadcast %cst_196 : f32 to vector<8x128xf32>
    %191 = arith.maximumf %189, %190 : vector<8x128xf32>
    %192 = tpu.iota {dimensions = array<i32: 1>} : vector<8x128xi32>
    %c2_i32 = arith.constant 2 : i32
    %193 = vector.broadcast %c2_i32 : i32 to vector<8x128xi32>
    %194 = arith.cmpi slt, %192, %193 : vector<8x128xi32>
    %cst_197 = arith.constant -1.000000e+30 : f32
    %195 = vector.broadcast %cst_197 : f32 to vector<8x128xf32>
    %196 = arith.select %194, %191, %195 : vector<8x128xi1>, vector<8x128xf32>
    %cst_198 = arith.constant dense<0xFF800000> : vector<8xf32>
    %197 = vector.multi_reduction <maximumf>, %196, %cst_198 [1] : vector<8x128xf32> to vector<8xf32>
    %198 = vector.shape_cast %197 : vector<8xf32> to vector<8x1xf32>
    %199 = vector.broadcast %198 : vector<8x1xf32> to vector<8x128xf32>
    %200 = arith.subf %196, %199 : vector<8x128xf32>
    %201 = math.exp %200 : vector<8x128xf32>
    %cst_199 = arith.constant dense<0.000000e+00> : vector<8xf32>
    %202 = vector.multi_reduction <add>, %201, %cst_199 [1] : vector<8x128xf32> to vector<8xf32>
    %203 = vector.shape_cast %202 : vector<8xf32> to vector<8x1xf32>
    %204 = tpu.reciprocal %203 : vector<8x1xf32> -> vector<8x1xf32>
    %205 = vector.broadcast %204 : vector<8x1xf32> to vector<8x128xf32>
    %206 = arith.mulf %201, %205 : vector<8x128xf32>
    %c0_200 = arith.constant 0 : index
    %c0_201 = arith.constant 0 : index
    %207 = vector.load %arg14[%c0_200, %c0_201] : memref<8x128xf32, #tpu.memory_space<vmem>>, vector<8x128xf32>
    tpu.vector_store %arg14[%c0_200, %c0_201], %206 {strides = array<i32>} : memref<8x128xf32, #tpu.memory_space<vmem>>, vector<8x128xf32>,
    return
  }
}

</mosaic_0001>

<bundles_post_ra>
// kernel: netz_forward.1
= control target key start
LH: loop header
LB: loop body
LE: loop exit
PB: predicated region body
PF: predicated region fallthrough
CT: control target
= control target key end

     0   :  { %19 = vsyncpa [#allocation4], 0  ;;  %s12119_s0 = inlined_call_operand.vmem [shape: f32[232,128], index: 0, kind: input, shape index: {}]   ;;  %s12120_s1 = inlined_call_operand.hbm [shape: f32[9,128,128], index: 1, kind: input, shape index: {}]   ;;  %s12121_s2 = inlined_call_operand.vmem [shape: f32[1,128], index: 2, kind: input, shape index: {}]   ;;  %s12122_s3 = inlined_call_operand.vmem [shape: f32[72,200], index: 3, kind: input, shape index: {}]   ;;  %s12123_s4 = inlined_call_operand.hbm [shape: f32[9,128,128], index: 4, kind: input, shape index: {}]   ;;  %s12124_s5 = inlined_call_operand.vmem [shape: f32[1,128], index: 5, kind: input, shape index: {}]   ;;  %s12125_s6 = inlined_call_operand.vmem [shape: f32[32,72], index: 6, kind: input, shape index: {}]   ;;  %s12126_s7 = inlined_call_operand.hbm [shape: f32[9,128,128], index: 7, kind: input, shape index: {}]   ;;  %s12127_s8 = inlined_call_operand.vmem [shape: f32[1,128], index: 8, kind: input, shape index: {}]   ;;  %s12128_s9 = inlined_call_operand.vmem [shape: f32[8,32], index: 9, kind: input, shape index: {}]   ;;  %s12129_s10 = inlined_call_operand.vmem [shape: f32[128,128], index: 10, kind: input, shape index: {}]   ;;  %s12130_s11 = inlined_call_operand.vmem [shape: f32[1,128], index: 11, kind: input, shape index: {}]   ;;  %s12131_s12 = inlined_call_operand.vmem [shape: f32[128,128], index: 12, kind: input, shape index: {}]   ;;  %s12132_s13 = inlined_call_operand.vmem [shape: f32[1,128], index: 13, kind: input, shape index: {}]   ;;  %s12133_s14 = inlined_call_operand.vmem [shape: f32[8,128], index: 14, kind: output, shape index: {}]  }
   0x1   :  { %20 = vsyncpa [#allocation6], 0  ;;  %s9269_s29 = smov [#allocation5]   ;;  %s9270_s15 = smov [#allocation3]  }
   0x2   :  { %s44_s30 = sshll.u32 %s9269_s29, 4  ;;  %s28_s16 = sshll.u32 %s9270_s15, 4  ;;  %s45_s30 = int_to_ptr.vmem [resolvable:$true] %s44_s30  ;;  %s9352_s16 = int_to_ptr.vmem [resolvable:$true] %s28_s16 }
   0x3   :  { %s9199_s19 = scalar_lea.hbm %s12123_s4, 18432 }
   0x4   :  { %p9200_p0 = scmp.ne.s32.totalorder %s12123_s4, %s9199_s19  ;;  %p9203_p1 = scmp.lt.u32.totalorder %s9199_s19, %s12123_s4 }
   0x6   :  { %p9205_p2 = pnand %p9203_p1, %p9200_p0 }
   0x8   :  { %9208 = shalt.err (!%p9205_p2)
}
   0x9   :  { %s9209_s24 = scalar_lea.vmem %s45_s30, 18432  ;;  %p9214_p4 = scmp.lt.s32.totalorder %s45_s30, %s45_s30 }
   0xa   :  { %p9210_p3 = scmp.ne.s32.totalorder %s45_s30, %s9209_s24  ;;  %p9215_p5 = scmp.lt.s32.totalorder %s9209_s24, %s9209_s24 }
   0xc   :  { %p9216_p6 = por %p9215_p5, %p9214_p4 }
   0xe   :  { %p9217_p7 = pnand %p9216_p6, %p9210_p3 }
  0x10   :  { %9220 = shalt.err (!%p9217_p7)
}
  0x11   :  { %s9271_s25 = smov 128   ;;  %s9272_s26 = smov 8  }
  0x12   :  { %50 = dma.hbm_to_vmem [thread:$0]  %s12123_s4, 18432, %s45_s30, [#allocation6], %s9271_s25, %s9271_s25, %s9272_s26  }
  0x13   :  { %s9221_s17 = scalar_lea.hbm %s12120_s1, 18432 }
  0x14   :  { %p9222_p8 = scmp.ne.s32.totalorder %s12120_s1, %s9221_s17  ;;  %p9225_p9 = scmp.lt.u32.totalorder %s9221_s17, %s12120_s1 }
  0x16   :  { %p9227_p10 = pnand %p9225_p9, %p9222_p8 }
  0x18   :  { %9230 = shalt.err (!%p9227_p10)
}
  0x19   :  { %s9231_s22 = scalar_lea.vmem %s9352_s16, 18432  ;;  %p9236_p12 = scmp.lt.s32.totalorder %s9352_s16, %s9352_s16 }
  0x1a   :  { %p9232_p11 = scmp.ne.s32.totalorder %s9352_s16, %s9231_s22  ;;  %p9237_p13 = scmp.lt.s32.totalorder %s9231_s22, %s9231_s22 }
  0x1c   :  { %p9238_p0 = por %p9237_p13, %p9236_p12 }
  0x1e   :  { %p9239_p1 = pnand %p9238_p0, %p9232_p11 }
  0x20   :  { %9242 = shalt.err (!%p9239_p1)
}
  0x21   :  { %34 = dma.hbm_to_vmem [thread:$0]  %s12120_s1, 18432, %s9352_s16, [#allocation4], %s9271_s25, %s9271_s25, %s9272_s26  }
  0x22   :  { %s9273_s23 = smov [#allocation7]   ;;  %s9243_s29 = scalar_lea.hbm %s12126_s7, 18432 }
  0x23   :  { %s60_s24 = sshll.u32 %s9273_s23, 4  ;;  %p9244_p2 = scmp.ne.s32.totalorder %s12126_s7, %s9243_s29  ;;  %s61_s24 = int_to_ptr.vmem [resolvable:$true] %s60_s24 }
  0x24   :  { %p9247_p3 = scmp.lt.u32.totalorder %s9243_s29, %s12126_s7 }
  0x26   :  { %p9249_p4 = pnand %p9247_p3, %p9244_p2 }
  0x28   :  { %9252 = shalt.err (!%p9249_p4)
}
  0x29   :  { %s9253_s20 = scalar_lea.vmem %s61_s24, 18432  ;;  %p9258_p6 = scmp.lt.s32.totalorder %s61_s24, %s61_s24 }
  0x2a   :  { %p9254_p5 = scmp.ne.s32.totalorder %s61_s24, %s9253_s20  ;;  %p9259_p7 = scmp.lt.s32.totalorder %s9253_s20, %s9253_s20 }
  0x2c   :  { %p9260_p8 = por %p9259_p7, %p9258_p6 }
  0x2e   :  { %p9261_p9 = pnand %p9260_p8, %p9254_p5 }
  0x30   :  { %9264 = shalt.err (!%p9261_p9)
}
  0x31   :  { %66 = dma.hbm_to_vmem [thread:$0]  %s12126_s7, 18432, %s61_s24, [#allocation6], %s9271_s25, %s9271_s25, %s9272_s26  }
  0x32   :  { %9265 = dma.done.wait [#allocation4], 18432  }
  0x33   :  { %9266 = vsyncadd [#allocation4], 4294948864 }
  0x34   :  { %9267 = dma.done.wait [#allocation6], 36864  }
  0x35   :  { %9268 = vsyncadd [#allocation6], 4294930432  ;;  %v9274_v0 = vmov 0.0   ;;  %v12134_v1 = vmov 0.0|0.0   ;;  %vm9276_vm0 = vmmov 0   ;;  %v184_v2 = vld [vmem:[#allocation3 + $0x80] sm:$0xff] }
  0x36   :  { %88 = vst [vmem:[#allocation2] sm:$0xff] %v9274_v0  ;;  %89 = vst [vmem:[#allocation2 + $0x8] sm:$0xff] %v9274_v0  ;;  %8324 = vmatprep.subr.bf16.mxu1 %v12134_v1  ;;  %6415 = vmatprep.mubr.msk.f32.mxu1 %vm9276_vm0, %v9274_v0  ;;  %v185_v3 = vld [vmem:[#allocation3 + $0x88] sm:$0xff]  ;;  %v186_v4 = vld [vmem:[#allocation3 + $0x90] sm:$0xff]  ;;  %vm2604_vm1 = vcmask 588800   ;;  %vm5255_vm2 = vcmask 261120  }
  0x37   :  { %115 = vst [vmem:[#allocation2 + $0xd8] sm:$0xff] %v9274_v0  ;;  %116 = vst [vmem:[#allocation2 + $0xe0] sm:$0xff] %v9274_v0  ;;  %8372 = vmatprep.subr.bf16.mxu0 %v12134_v1  ;;  %6629 = vmatprep.mubr.msk.f32.mxu0 %vm9276_vm0, %v9274_v0  ;;  %v8325_v5 = vpack.c.bf16 %v185_v3, %v184_v2  ;;  %v187_v6 = vld [vmem:[#allocation3 + $0x98] sm:$0xff]  ;;  %v188_v8 = vld [vmem:[#allocation3 + $0xa0] sm:$0xff] }
  0x38   :  { %v8328_v7 = vpack.c.bf16 %v187_v6, %v186_v4  ;;  %v189_v9 = vld [vmem:[#allocation3 + $0xa8] sm:$0xff]  ;;  %v190_v11 = vld [vmem:[#allocation3 + $0xb0] sm:$0xff]  ;;  %v191_v12 = vld [vmem:[#allocation3 + $0xb8] sm:$0xff] }
  0x39   :  { %8326 = vmatpush3.bf16.msra.mxu1 %v8325_v5  ;;  %v8331_v10 = vpack.c.bf16 %v189_v9, %v188_v8  ;;  %v8334_v13 = vpack.c.bf16 %v191_v12, %v190_v11  ;;  %v192_v14 = vld [vmem:[#allocation3 + $0xc0] sm:$0xff]  ;;  %v193_v15 = vld [vmem:[#allocation3 + $0xc8] sm:$0xff]  ;;  %v608_v19 = vld [vmem:[#allocation3 + $0x110] sm:$0xff] }
  0x3a   :  { %8327 = vmatprep.subr.bf16.mxu1 %v12134_v1  ;;  %v606_v16 = vld [vmem:[#allocation3 + $0x100] sm:$0xff]  ;;  %v8337_v17 = vpack.c.bf16 %v193_v15, %v192_v14  ;;  %v607_v18 = vld [vmem:[#allocation3 + $0x108] sm:$0xff]  ;;  %v194_v20 = vld [vmem:[#allocation3 + $0xd0] sm:$0xff] }
  0x3b   :  { %v195_v21 = vld [vmem:[#allocation3 + $0xd8] sm:$0xff]  ;;  %v8373_v22 = vpack.c.bf16 %v607_v18, %v606_v16  ;;  %v610_v26 = vld [vmem:[#allocation3 + $0x120] sm:$0xff]  ;;  %v611_v27 = vld [vmem:[#allocation3 + $0x128] sm:$0xff] }
  0x3c   :  { %v609_v23 = vld [vmem:[#allocation3 + $0x118] sm:$0xff]  ;;  %v8340_v25 = vpack.c.bf16 %v195_v21, %v194_v20  ;;  %v196_v28 = vld [vmem:[#allocation3 + $0xe0] sm:$0xff]  ;;  %v197_v29 = vld [vmem:[#allocation3 + $0xe8] sm:$0xff]  ;;  %v8379_v30 = vpack.c.bf16 %v611_v27, %v610_v26 }
  0x3d   :  { %8329 = vmatpush3.bf16.msra.mxu1 %v8328_v7  ;;  %8374 = vmatpush3.bf16.msra.mxu0 %v8373_v22  ;;  %v8376_v24 = vpack.c.bf16 %v609_v23, %v608_v19  ;;  %v8343_v31 = vpack.c.bf16 %v197_v29, %v196_v28  ;;  %v612_v32 = vld [vmem:[#allocation3 + $0x130] sm:$0xff]  ;;  %v613_v33 = vld [vmem:[#allocation3 + $0x138] sm:$0xff]  ;;  %v614_v38 = vld [vmem:[#allocation3 + $0x140] sm:$0xff] }
  0x3e   :  { %8330 = vmatprep.subr.bf16.mxu1 %v12134_v1  ;;  %8375 = vmatprep.subr.bf16.mxu0 %v12134_v1  ;;  %v198_v34 = vld [vmem:[#allocation3 + $0xf0] sm:$0xff]  ;;  %v199_v35 = vld [vmem:[#allocation3 + $0xf8] sm:$0xff]  ;;  %v8382_v36 = vpack.c.bf16 %v613_v33, %v612_v32  ;;  %v615_v39 = vld [vmem:[#allocation3 + $0x148] sm:$0xff] }
  0x3f   :  { %v8346_v37 = vpack.c.bf16 %v199_v35, %v198_v34  ;;  %v142_v40 = vld [vmem:[#allocation3] sm:$0xff]  ;;  %v143_v41 = vld [vmem:[#allocation3 + $0x8] sm:$0xff]  ;;  %v8385_v42 = vpack.c.bf16 %v615_v39, %v614_v38  ;;  %v616_v45 = vld [vmem:[#allocation3 + $0x150] sm:$0xff] }
  0x40   :  { %v158_v43 = vld [vmem:[%s12119_s0 + $0x6] sm:$0xff]  ;;  %v8349_v44 = vpack.c.bf16 %v143_v41, %v142_v40  ;;  %v144_v47 = vld [vmem:[#allocation3 + $0x10] sm:$0xff]  ;;  %v159_v50 = vld [vmem:[%s12119_s0 + $0xe] sm:$0xff] }
  0x41   :  { %8332 = vmatpush3.bf16.msra.mxu1 %v8331_v10  ;;  %8377 = vmatpush3.bf16.msra.mxu0 %v8376_v24  ;;  %v617_v46 = vld [vmem:[#allocation3 + $0x158] sm:$0xff]  ;;  %v618_v52 = vld [vmem:[#allocation3 + $0x160] sm:$0xff]  ;;  %v619_v53 = vld [vmem:[#allocation3 + $0x168] sm:$0xff] }
  0x42   :  { %8333 = vmatprep.subr.bf16.mxu1 %v12134_v1  ;;  %8378 = vmatprep.subr.bf16.mxu0 %v12134_v1  ;;  %v145_v48 = vld [vmem:[#allocation3 + $0x18] sm:$0xff]  ;;  %v8388_v49 = vpack.c.bf16 %v617_v46, %v616_v45  ;;  %v146_v54 = vld [vmem:[#allocation3 + $0x20] sm:$0xff]  ;;  %v147_v55 = vld [vmem:[#allocation3 + $0x28] sm:$0xff]  ;;  %v8391_v56 = vpack.c.bf16 %v619_v53, %v618_v52 }
  0x43   :  { %v8352_v51 = vpack.c.bf16 %v145_v48, %v144_v47  ;;  %v160_v57 = vld [vmem:[%s12119_s0 + $0x16] sm:$0xff]  ;;  %v8355_v58 = vpack.c.bf16 %v147_v55, %v146_v54  ;;  %v621_v60 = vld [vmem:[#allocation3 + $0x178] sm:$0xff]  ;;  %v150_v4 = vld [vmem:[#allocation3 + $0x40] sm:$0xff] }
  0x44   :  { %v620_v59 = vld [vmem:[#allocation3 + $0x170] sm:$0xff]  ;;  %v149_v62 = vld [vmem:[#allocation3 + $0x38] sm:$0xff]  ;;  %v151_v5 = vld [vmem:[#allocation3 + $0x48] sm:$0xff] }
  0x45   :  { %8335 = vmatpush3.bf16.msra.mxu1 %v8334_v13  ;;  %8380 = vmatpush3.bf16.msra.mxu0 %v8379_v30  ;;  %v148_v61 = vld [vmem:[#allocation3 + $0x30] sm:$0xff]  ;;  %v8394_v63 = vpack.c.bf16 %v621_v60, %v620_v59  ;;  %v1120_v6 = vld [vmem:[#allocation3 + $0x200] sm:$0xff]  ;;  %v1121_v7 = vld [vmem:[#allocation3 + $0x208] sm:$0xff]  ;;  %v8361_v10 = vpack.c.bf16 %v151_v5, %v150_v4 }
  0x46   :  { %8336 = vmatprep.subr.bf16.mxu1 %v12134_v1  ;;  %8381 = vmatprep.subr.bf16.mxu0 %v12134_v1  ;;  %v161_v2 = vld [vmem:[%s12119_s0 + $0x1e] sm:$0xff]  ;;  %v8358_v3 = vpack.c.bf16 %v149_v62, %v148_v61  ;;  %v580_v8 = vld [vmem:[%s12119_s0 + $0x7] sm:$0xff]  ;;  %v8421_v13 = vpack.c.bf16 %v1121_v7, %v1120_v6  ;;  %v9465_v16 = vld [vmem:[%s12119_s0 + $0xf] sm:$0xff] }
  0x47   :  { %v162_v9 = vld [vmem:[%s12119_s0 + $0x26] sm:$0xff]  ;;  %v152_v11 = vld [vmem:[#allocation3 + $0x50] sm:$0xff]  ;;  %v155_v20 = vld [vmem:[#allocation3 + $0x68] sm:$0xff] }
  0x48   :  { %v153_v12 = vld [vmem:[#allocation3 + $0x58] sm:$0xff]  ;;  %v1122_v14 = vld [vmem:[#allocation3 + $0x210] sm:$0xff]  ;;  %v154_v19 = vld [vmem:[#allocation3 + $0x60] sm:$0xff] }
  0x49   :  { %8338 = vmatpush3.bf16.msra.mxu1 %v8337_v17  ;;  %8383 = vmatpush3.bf16.msra.mxu0 %v8382_v36  ;;  %v1123_v15 = vld [vmem:[#allocation3 + $0x218] sm:$0xff]  ;;  %v163_v17 = vld [vmem:[%s12119_s0 + $0x2e] sm:$0xff]  ;;  %v8364_v18 = vpack.c.bf16 %v153_v12, %v152_v11  ;;  %v9480_v24 = vld [vmem:[%s12119_s0 + $0x17] sm:$0xff]  ;;  %v8367_v26 = vpack.c.bf16 %v155_v20, %v154_v19 }
  0x4a   :  { %8339 = vmatprep.subr.bf16.mxu1 %v12134_v1  ;;  %8384 = vmatprep.subr.bf16.mxu0 %v12134_v1  ;;  %v8424_v21 = vpack.c.bf16 %v1123_v15, %v1122_v14  ;;  %v1124_v22 = vld [vmem:[#allocation3 + $0x220] sm:$0xff]  ;;  %v1125_v23 = vld [vmem:[#allocation3 + $0x228] sm:$0xff]  ;;  %v156_v27 = vld [vmem:[#allocation3 + $0x70] sm:$0xff] }
  0x4b   :  { %v157_v28 = vld [vmem:[#allocation3 + $0x78] sm:$0xff]  ;;  %v8427_v29 = vpack.c.bf16 %v1125_v23, %v1124_v22  ;;  %v1126_v33 = vld [vmem:[#allocation3 + $0x230] sm:$0xff]  ;;  %v9525_v38 = vld [vmem:[%s12119_s0 + $0x2f] sm:$0xff] }
  0x4c   :  { %v9495_v30 = vld [vmem:[%s12119_s0 + $0x1f] sm:$0xff]  ;;  %v8370_v32 = vpack.c.bf16 %v157_v28, %v156_v27  ;;  %v9510_v36 = vld [vmem:[%s12119_s0 + $0x27] sm:$0xff]  ;;  %v9538_v40 = vld [vmem:[%s12119_s0 + $0x37] sm:$0xff] }
  0x4d   :  { %8341 = vmatpush3.bf16.msra.mxu1 %v8340_v25  ;;  %8386 = vmatpush3.bf16.msra.mxu0 %v8385_v42  ;;  %v164_v25 = vld [vmem:[%s12119_s0 + $0x36] sm:$0xff]  ;;  %v1127_v34 = vld [vmem:[#allocation3 + $0x238] sm:$0xff]  ;;  %v167_v39 = vld [vmem:[%s12119_s0 + $0x4e] sm:$0xff] }
  0x4e   :  { %8342 = vmatprep.subr.bf16.mxu1 %v12134_v1  ;;  %8387 = vmatprep.subr.bf16.mxu0 %v12134_v1  ;;  %v8430_v35 = vpack.c.bf16 %v1127_v34, %v1126_v33  ;;  %v168_v41 = vld [vmem:[%s12119_s0 + $0x56] sm:$0xff]  ;;  %v1128_v42 = vld [vmem:[#allocation3 + $0x240] sm:$0xff]  ;;  %v9551_v45 = vld [vmem:[%s12119_s0 + $0x3f] sm:$0xff] }
  0x4f   :  { %v169_v46 = vld [vmem:[%s12119_s0 + $0x5e] sm:$0xff]  ;;  %v9565_v47 = vld [vmem:[%s12119_s0 + $0x47] sm:$0xff]  ;;  %v172_v55 = vld [vmem:[%s12119_s0 + $0x76] sm:$0xff] }
  0x50   :  { %v170_v48 = vld [vmem:[%s12119_s0 + $0x66] sm:$0xff]  ;;  %v9591_v54 = vld [vmem:[%s12119_s0 + $0x57] sm:$0xff]  ;;  %v9685_v12 = vld [vmem:[%s12119_s0 + $0x8f] sm:$0xff] }
  0x51   :  { %8344 = vmatpush3.bf16.msra.mxu1 %v8343_v31  ;;  %8389 = vmatpush3.bf16.msra.mxu0 %v8388_v49  ;;  %v165_v31 = vld [vmem:[%s12119_s0 + $0x3e] sm:$0xff]  ;;  %v9578_v49 = vld [vmem:[%s12119_s0 + $0x4f] sm:$0xff]  ;;  %v174_v59 = vld [vmem:[%s12119_s0 + $0x86] sm:$0xff] }
  0x52   :  { %8345 = vmatprep.subr.bf16.mxu1 %v12134_v1  ;;  %8390 = vmatprep.subr.bf16.mxu0 %v12134_v1  ;;  %v1131_v52 = vld [vmem:[#allocation3 + $0x258] sm:$0xff]  ;;  %v1132_v60 = vld [vmem:[#allocation3 + $0x260] sm:$0xff]  ;;  %v1133_v61 = vld [vmem:[#allocation3 + $0x268] sm:$0xff] }
  0x53   :  { %v8439_v62 = vpack.c.bf16 %v1133_v61, %v1132_v60  ;;  %v1135_v4 = vld [vmem:[#allocation3 + $0x278] sm:$0xff]  ;;  %v9645_v5 = vld [vmem:[%s12119_s0 + $0x77] sm:$0xff]  ;;  %v9737_v23 = vld [vmem:[%s12119_s0 + $0xaf] sm:$0xff] }
  0x54   :  { %v176_v7 = vld [vmem:[%s12119_s0 + $0x96] sm:$0xff]  ;;  %v178_v11 = vld [vmem:[%s12119_s0 + $0xa6] sm:$0xff] }
  0x55   :  { %8347 = vmatpush3.bf16.msra.mxu1 %v8346_v37  ;;  %8392 = vmatpush3.bf16.msra.mxu0 %v8391_v56  ;;  %v166_v37 = vld [vmem:[%s12119_s0 + $0x46] sm:$0xff]  ;;  %v9698_v14 = vld [vmem:[%s12119_s0 + $0x97] sm:$0xff] }
  0x56   :  { %8348 = vmatprep.subr.bf16.mxu1 %v12134_v1  ;;  %8393 = vmatprep.subr.bf16.mxu0 %v12134_v1  ;;  %v9605_v56 = vld [vmem:[%s12119_s0 + $0x5f] sm:$0xff]  ;;  %v180_v15 = vld [vmem:[%s12119_s0 + $0xb6] sm:$0xff]  ;;  %v9724_v19 = vld [vmem:[%s12119_s0 + $0xa7] sm:$0xff] }
  0x57   :  { %v182_v20 = vld [vmem:[%s12119_s0 + $0xc6] sm:$0xff]  ;;  %v864_v22 = vld [vmem:[#allocation3 + $0x188] sm:$0xff]  ;;  %v865_v27 = vld [vmem:[#allocation3 + $0x190] sm:$0xff] }
  0x58   :  { %6416 = vmatmul.mubr.f32.vlgmr.msra.gmra.mrb[0].mxu1 %v158_v43  ;;  %v1129_v43 = vld [vmem:[#allocation3 + $0x248] sm:$0xff]  ;;  %v866_v28 = vld [vmem:[#allocation3 + $0x198] sm:$0xff]  ;;  %v867_v33 = vld [vmem:[#allocation3 + $0x1a0] sm:$0xff] }
  0x59   :  { %6418 = vmatprep.mubr.msk.f32.mxu1 %vm9276_vm0, %v9274_v0  ;;  %8350 = vmatpush3.bf16.msra.mxu1 %v8349_v44  ;;  %v8433_v44 = vpack.c.bf16 %v1129_v43, %v1128_v42  ;;  %v868_v34 = vld [vmem:[#allocation3 + $0x1a8] sm:$0xff]  ;;  %v870_v42 = vld [vmem:[#allocation3 + $0x1b8] sm:$0xff] }
  0x5a   :  { %8351 = vmatprep.subr.bf16.mxu1 %v12134_v1  ;;  %8395 = vmatpush3.bf16.msra.mxu0 %v8394_v63  ;;  %v9631_v63 = vld [vmem:[%s12119_s0 + $0x6f] sm:$0xff]  ;;  %v9778_v43 = vld [vmem:[%s12119_s0 + $0xc7] sm:$0xff] }
  0x5b   :  { %8420 = vmatprep.subr.bf16.mxu0 %v12134_v1  ;;  %v874_v60 = vld [vmem:[#allocation3 + $0x1d8] sm:$0xff] }
  0x5c   :  { %6419 = vmatmul.mubr.f32.gmra.mrb[2].mxu1 %v159_v50  ;;  %v171_v50 = vld [vmem:[%s12119_s0 + $0x6e] sm:$0xff] }
  0x5d   :  { %6421 = vmatprep.mubr.msk.f32.mxu1 %vm9276_vm0, %v9274_v0  ;;  %8353 = vmatpush3.bf16.msra.mxu1 %v8352_v51  ;;  %v1130_v51 = vld [vmem:[#allocation3 + $0x250] sm:$0xff] }
  0x5e   :  { %8354 = vmatprep.subr.bf16.mxu1 %v12134_v1  ;;  %6630 = vmatmul.mubr.f32.vlgmr.msra.gmra.mrb[0].mxu0 %v580_v8  ;;  %v8436_v53 = vpack.c.bf16 %v1131_v52, %v1130_v51  ;;  %v9659_v8 = vld [vmem:[%s12119_s0 + $0x7f] sm:$0xff]  ;;  %v1634_v51 = vld [vmem:[#allocation3 + $0x300] sm:$0xff]  ;;  %v1635_v52 = vld [vmem:[#allocation3 + $0x308] sm:$0xff] }
  0x5f   :  { %6632 = vmatprep.mubr.msk.f32.mxu0 %vm9276_vm0, %v9274_v0  ;;  %8422 = vmatpush3.bf16.msra.mxu0 %v8421_v13  ;;  %v179_v13 = vld [vmem:[%s12119_s0 + $0xae] sm:$0xff]  ;;  %v8469_v61 = vpack.c.bf16 %v1635_v52, %v1634_v51 }
  0x60   :  { %6422 = vmatmul.mubr.f32.gmra.mrb[4].mxu1 %v160_v57  ;;  %8423 = vmatprep.subr.bf16.mxu0 %v12134_v1  ;;  %v173_v57 = vld [vmem:[%s12119_s0 + $0x7e] sm:$0xff]  ;;  %v1101_v52 = vld [vmem:[%s12119_s0 + $0x48] sm:$0xff] }
  0x61   :  { %6424 = vmatprep.mubr.msk.f32.mxu1 %vm9276_vm0, %v9274_v0  ;;  %8356 = vmatpush3.bf16.msra.mxu1 %v8355_v58  ;;  %v9618_v58 = vld [vmem:[%s12119_s0 + $0x67] sm:$0xff] }
  0x62   :  { %8357 = vmatprep.subr.bf16.mxu1 %v12134_v1  ;;  %6633 = vmatmul.mubr.f32.gmra.mrb[2].mxu0 %v9465_v16 }
  0x63   :  { %6635 = vmatprep.mubr.msk.f32.mxu0 %vm9276_vm0, %v9274_v0  ;;  %8425 = vmatpush3.bf16.msra.mxu0 %v8424_v21  ;;  %v863_v21 = vld [vmem:[#allocation3 + $0x180] sm:$0xff] }
  0x64   :  { %6425 = vmatmul.mubr.f32.gmra.mrb[6].mxu1 %v161_v2  ;;  %8426 = vmatprep.subr.bf16.mxu0 %v12134_v1  ;;  %v175_v2 = vld [vmem:[%s12119_s0 + $0x8e] sm:$0xff] }
  0x65   :  { %6427 = vmatprep.mubr.msk.f32.mxu1 %vm9276_vm0, %v9274_v0  ;;  %8359 = vmatpush3.bf16.msra.mxu1 %v8358_v3  ;;  %v1134_v3 = vld [vmem:[#allocation3 + $0x270] sm:$0xff] }
  0x66   :  { %8360 = vmatprep.subr.bf16.mxu1 %v12134_v1  ;;  %6636 = vmatmul.mubr.f32.gmra.mrb[4].mxu0 %v9480_v24  ;;  %v8442_v6 = vpack.c.bf16 %v1135_v4, %v1134_v3  ;;  %v1095_v3 = vld [vmem:[%s12119_s0 + $0x18] sm:$0xff]  ;;  %v122_v4 = vld [vmem:[%s12119_s0 + $0x2d] sm:$0xff] }
  0x67   :  { %6638 = vmatprep.mubr.msk.f32.mxu0 %vm9276_vm0, %v9274_v0  ;;  %8428 = vmatpush3.bf16.msra.mxu0 %v8427_v29  ;;  %v9750_v29 = vld [vmem:[%s12119_s0 + $0xb7] sm:$0xff] }
  0x68   :  { %6428 = vmatmul.mubr.f32.gmra.mrb[8].mxu1 %v162_v9  ;;  %8429 = vmatprep.subr.bf16.mxu0 %v12134_v1  ;;  %v177_v9 = vld [vmem:[%s12119_s0 + $0x9e] sm:$0xff] }
  0x69   :  { %6430 = vmatprep.mubr.msk.f32.mxu1 %vm9276_vm0, %v9274_v0  ;;  %8362 = vmatpush3.bf16.msra.mxu1 %v8361_v10  ;;  %v9672_v10 = vld [vmem:[%s12119_s0 + $0x87] sm:$0xff] }
  0x6a   :  { %8363 = vmatprep.subr.bf16.mxu1 %v12134_v1  ;;  %6639 = vmatmul.mubr.f32.gmra.mrb[6].mxu0 %v9495_v30 }
  0x6b   :  { %6641 = vmatprep.mubr.msk.f32.mxu0 %vm9276_vm0, %v9274_v0  ;;  %8431 = vmatpush3.bf16.msra.mxu0 %v8430_v35  ;;  %v9764_v35 = vld [vmem:[%s12119_s0 + $0xbf] sm:$0xff] }
  0x6c   :  { %6431 = vmatmul.mubr.f32.gmra.mrb[10].mxu1 %v163_v17  ;;  %8432 = vmatprep.subr.bf16.mxu0 %v12134_v1  ;;  %v9711_v17 = vld [vmem:[%s12119_s0 + $0x9f] sm:$0xff] }
  0x6d   :  { %6433 = vmatprep.mubr.msk.f32.mxu1 %vm9276_vm0, %v9274_v0  ;;  %8365 = vmatpush3.bf16.msra.mxu1 %v8364_v18  ;;  %v181_v18 = vld [vmem:[%s12119_s0 + $0xbe] sm:$0xff] }
  0x6e   :  { %8366 = vmatprep.subr.bf16.mxu1 %v12134_v1  ;;  %6642 = vmatmul.mubr.f32.gmra.mrb[8].mxu0 %v9510_v36 }
  0x6f   :  { %6644 = vmatprep.mubr.msk.f32.mxu0 %vm9276_vm0, %v9274_v0  ;;  %8434 = vmatpush3.bf16.msra.mxu0 %v8433_v44  ;;  %v120_v44 = vld [vmem:[%s12119_s0 + $0x1d] sm:$0xff] }
  0x70   :  { %6434 = vmatmul.mubr.f32.gmra.mrb[12].mxu1 %v164_v25  ;;  %8435 = vmatprep.subr.bf16.mxu0 %v12134_v1  ;;  %v117_v25 = vld [vmem:[%s12119_s0 + $0x5] sm:$0xff] }
  0x71   :  { %6436 = vmatprep.mubr.msk.f32.mxu1 %vm9276_vm0, %v9274_v0  ;;  %8368 = vmatpush3.bf16.msra.mxu1 %v8367_v26  ;;  %v8397_v26 = vpack.c.bf16 %v864_v22, %v863_v21  ;;  %v877_v22 = vld [vmem:[#allocation3 + $0x1f0] sm:$0xff] }
  0x72   :  { %8369 = vmatprep.subr.bf16.mxu1 %v12134_v1  ;;  %6645 = vmatmul.mubr.f32.gmra.mrb[10].mxu0 %v9525_v38 }
  0x73   :  { %6647 = vmatprep.mubr.msk.f32.mxu0 %vm9276_vm0, %v9274_v0  ;;  %8437 = vmatpush3.bf16.msra.mxu0 %v8436_v53  ;;  %v1094_v53 = vld [vmem:[%s12119_s0 + $0x10] sm:$0xff] }
  0x74   :  { %6437 = vmatmul.mubr.f32.gmra.mrb[14].mxu1 %v165_v31  ;;  %8438 = vmatprep.subr.bf16.mxu0 %v12134_v1  ;;  %v118_v31 = vld [vmem:[%s12119_s0 + $0xd] sm:$0xff] }
  0x75   :  { %6439 = vmatprep.mubr.msk.f32.mxu1 %vm9276_vm0, %v9274_v0  ;;  %8371 = vmatpush3.bf16.msra.mxu1 %v8370_v32  ;;  %v8400_v32 = vpack.c.bf16 %v866_v28, %v865_v27  ;;  %v1097_v27 = vld [vmem:[%s12119_s0 + $0x28] sm:$0xff]  ;;  %v124_v28 = vld [vmem:[%s12119_s0 + $0x3d] sm:$0xff] }
  0x76   :  { %8396 = vmatprep.subr.bf16.mxu1 %v12134_v1  ;;  %6648 = vmatmul.mubr.f32.gmra.mrb[12].mxu0 %v9538_v40 }
  0x77   :  { %6650 = vmatprep.mubr.msk.f32.mxu0 %vm9276_vm0, %v9274_v0  ;;  %8440 = vmatpush3.bf16.msra.mxu0 %v8439_v62  ;;  %v1636_v62 = vld [vmem:[#allocation3 + $0x310] sm:$0xff] }
  0x78   :  { %6440 = vmatmul.mubr.f32.gmra.mrb[16].mxu1 %v166_v37  ;;  %8441 = vmatprep.subr.bf16.mxu0 %v12134_v1  ;;  %v119_v37 = vld [vmem:[%s12119_s0 + $0x15] sm:$0xff] }
  0x79   :  { %6442 = vmatprep.mubr.msk.f32.mxu1 %vm9276_vm0, %v9274_v0 }
  0x7a   :  { %6651 = vmatmul.mubr.f32.gmra.mrb[14].mxu0 %v9551_v45 }
  0x7b   :  { %6653 = vmatprep.mubr.msk.f32.mxu0 %vm9276_vm0, %v9274_v0  ;;  %8443 = vmatpush3.bf16.msra.mxu0 %v8442_v6 }
  0x7c   :  { %6443 = vmatmul.mubr.f32.gmra.mrb[18].mxu1 %v167_v39  ;;  %8468 = vmatprep.subr.bf16.mxu0 %v12134_v1  ;;  %v8403_v39 = vpack.c.bf16 %v868_v34, %v867_v33  ;;  %v1641_v33 = vld [vmem:[#allocation3 + $0x338] sm:$0xff] }
  0x7d   :  { %6445 = vmatprep.mubr.msk.f32.mxu1 %vm9276_vm0, %v9274_v0 }
  0x7e   :  { %6654 = vmatmul.mubr.f32.gmra.mrb[16].mxu0 %v9565_v47 }
  0x7f   :  { %6656 = vmatprep.mubr.msk.f32.mxu0 %vm9276_vm0, %v9274_v0 }
  0x80   :  { %6446 = vmatmul.mubr.f32.gmra.mrb[20].mxu1 %v168_v41  ;;  %v869_v41 = vld [vmem:[#allocation3 + $0x1b0] sm:$0xff] }
  0x81   :  { %6448 = vmatprep.mubr.msk.f32.mxu1 %vm9276_vm0, %v9274_v0 }
  0x82   :  { %6657 = vmatmul.mubr.f32.gmra.mrb[18].mxu0 %v9578_v49 }
  0x83   :  { %6659 = vmatprep.mubr.msk.f32.mxu0 %vm9276_vm0, %v9274_v0 }
  0x84   :  { %6449 = vmatmul.mubr.f32.gmra.mrb[22].mxu1 %v169_v46  ;;  %v8406_v46 = vpack.c.bf16 %v870_v42, %v869_v41  ;;  %v1099_v41 = vld [vmem:[%s12119_s0 + $0x38] sm:$0xff]  ;;  %v126_v42 = vld [vmem:[%s12119_s0 + $0x4d] sm:$0xff] }
  0x85   :  { %6451 = vmatprep.mubr.msk.f32.mxu1 %vm9276_vm0, %v9274_v0 }
  0x86   :  { %6660 = vmatmul.mubr.f32.gmra.mrb[20].mxu0 %v9591_v54 }
  0x87   :  { %6662 = vmatprep.mubr.msk.f32.mxu0 %vm9276_vm0, %v9274_v0 }
  0x88   :  { %6452 = vmatmul.mubr.f32.gmra.mrb[24].mxu1 %v170_v48  ;;  %v871_v48 = vld [vmem:[#allocation3 + $0x1c0] sm:$0xff] }
  0x89   :  { %6454 = vmatprep.mubr.msk.f32.mxu1 %vm9276_vm0, %v9274_v0 }
  0x8a   :  { %6663 = vmatmul.mubr.f32.gmra.mrb[22].mxu0 %v9605_v56 }
  0x8b   :  { %6665 = vmatprep.mubr.msk.f32.mxu0 %vm9276_vm0, %v9274_v0 }
  0x8c   :  { %6455 = vmatmul.mubr.f32.gmra.mrb[26].mxu1 %v171_v50  ;;  %v872_v50 = vld [vmem:[#allocation3 + $0x1c8] sm:$0xff] }
  0x8d   :  { %6457 = vmatprep.mubr.msk.f32.mxu1 %vm9276_vm0, %v9274_v0 }
  0x8e   :  { %6666 = vmatmul.mubr.f32.gmra.mrb[24].mxu0 %v9618_v58 }
  0x8f   :  { %6668 = vmatprep.mubr.msk.f32.mxu0 %vm9276_vm0, %v9274_v0 }
  0x90   :  { %6458 = vmatmul.mubr.f32.gmra.mrb[28].mxu1 %v172_v55  ;;  %v121_v55 = vld [vmem:[%s12119_s0 + $0x25] sm:$0xff] }
  0x91   :  { %6460 = vmatprep.mubr.msk.f32.mxu1 %vm9276_vm0, %v9274_v0 }
  0x92   :  { %6669 = vmatmul.mubr.f32.gmra.mrb[26].mxu0 %v9631_v63 }
  0x93   :  { %6671 = vmatprep.mubr.msk.f32.mxu0 %vm9276_vm0, %v9274_v0 }
  0x94   :  { %6461 = vmatmul.mubr.f32.gmra.mrb[30].mxu1 %v173_v57  ;;  %v8409_v57 = vpack.c.bf16 %v872_v50, %v871_v48  ;;  %v1642_v48 = vld [vmem:[#allocation3 + $0x340] sm:$0xff]  ;;  %v1643_v50 = vld [vmem:[#allocation3 + $0x348] sm:$0xff] }
  0x95   :  { %6463 = vmatprep.mubr.msk.f32.mxu1 %vm9276_vm0, %v9274_v0  ;;  %v8481_v51 = vpack.c.bf16 %v1643_v50, %v1642_v48  ;;  %v1114_v48 = vld [vmem:[%s12119_s0 + $0xb0] sm:$0xff]  ;;  %v141_v50 = vld [vmem:[%s12119_s0 + $0xc5] sm:$0xff] }
  0x96   :  { %6672 = vmatmul.mubr.f32.gmra.mrb[28].mxu0 %v9645_v5 }
  0x97   :  { %6674 = vmatprep.mubr.msk.f32.mxu0 %vm9276_vm0, %v9274_v0 }
  0x98   :  { %6464 = vmatmul.mubr.f32.gmra.mrb[32].mxu1 %v174_v59  ;;  %v873_v59 = vld [vmem:[#allocation3 + $0x1d0] sm:$0xff] }
  0x99   :  { %6466 = vmatprep.mubr.msk.f32.mxu1 %vm9276_vm0, %v9274_v0  ;;  %v8412_v6 = vpack.c.bf16 %v874_v60, %v873_v59  ;;  %v1103_v59 = vld [vmem:[%s12119_s0 + $0x58] sm:$0xff]  ;;  %v130_v60 = vld [vmem:[%s12119_s0 + $0x6d] sm:$0xff] }
  0x9a   :  { %6675 = vmatmul.mubr.f32.gmra.mrb[30].mxu0 %v9659_v8 }
  0x9b   :  { %6677 = vmatprep.mubr.msk.f32.mxu0 %vm9276_vm0, %v9274_v0 }
  0x9c   :  { %6467 = vmatmul.mubr.f32.gmra.mrb[34].mxu1 %v175_v2  ;;  %v1637_v2 = vld [vmem:[#allocation3 + $0x318] sm:$0xff] }
  0x9d   :  { %6469 = vmatprep.mubr.msk.f32.mxu1 %vm9276_vm0, %v9274_v0 }
  0x9e   :  { %6678 = vmatmul.mubr.f32.gmra.mrb[32].mxu0 %v9672_v10 }
  0x9f   :  { %6680 = vmatprep.mubr.msk.f32.mxu0 %vm9276_vm0, %v9274_v0 }
  0xa0   :  { %6470 = vmatmul.mubr.f32.gmra.mrb[36].mxu1 %v176_v7  ;;  %v875_v7 = vld [vmem:[#allocation3 + $0x1e0] sm:$0xff] }
  0xa1   :  { %6472 = vmatprep.mubr.msk.f32.mxu1 %vm9276_vm0, %v9274_v0 }
  0xa2   :  { %6681 = vmatmul.mubr.f32.gmra.mrb[34].mxu0 %v9685_v12 }
  0xa3   :  { %6683 = vmatprep.mubr.msk.f32.mxu0 %vm9276_vm0, %v9274_v0 }
  0xa4   :  { %6473 = vmatmul.mubr.f32.gmra.mrb[38].mxu1 %v177_v9  ;;  %v876_v9 = vld [vmem:[#allocation3 + $0x1e8] sm:$0xff] }
  0xa5   :  { %6475 = vmatprep.mubr.msk.f32.mxu1 %vm9276_vm0, %v9274_v0  ;;  %v8415_v21 = vpack.c.bf16 %v876_v9, %v875_v7  ;;  %v132_v7 = vld [vmem:[%s12119_s0 + $0x7d] sm:$0xff]  ;;  %v1106_v9 = vld [vmem:[%s12119_s0 + $0x70] sm:$0xff] }
  0xa6   :  { %6684 = vmatmul.mubr.f32.gmra.mrb[36].mxu0 %v9698_v14 }
  0xa7   :  { %6686 = vmatprep.mubr.msk.f32.mxu0 %vm9276_vm0, %v9274_v0 }
  0xa8   :  { %6476 = vmatmul.mubr.f32.gmra.mrb[40].mxu1 %v178_v11  ;;  %v8472_v11 = vpack.c.bf16 %v1637_v2, %v1636_v62  ;;  %v1645_v62 = vld [vmem:[#allocation3 + $0x358] sm:$0xff] }
  0xa9   :  { %6478 = vmatprep.mubr.msk.f32.mxu1 %vm9276_vm0, %v9274_v0  ;;  %v1104_v2 = vld [vmem:[%s12119_s0 + $0x60] sm:$0xff] }
  0xaa   :  { %6687 = vmatmul.mubr.f32.gmra.mrb[38].mxu0 %v9711_v17 }
  0xab   :  { %6689 = vmatprep.mubr.msk.f32.mxu0 %vm9276_vm0, %v9274_v0 }
  0xac   :  { %6479 = vmatmul.mubr.f32.gmra.mrb[42].mxu1 %v179_v13  ;;  %v1638_v13 = vld [vmem:[#allocation3 + $0x320] sm:$0xff] }
  0xad   :  { %6481 = vmatprep.mubr.msk.f32.mxu1 %vm9276_vm0, %v9274_v0 }
  0xae   :  { %6690 = vmatmul.mubr.f32.gmra.mrb[40].mxu0 %v9724_v19 }
  0xaf   :  { %6692 = vmatprep.mubr.msk.f32.mxu0 %vm9276_vm0, %v9274_v0 }
  0xb0   :  { %6482 = vmatmul.mubr.f32.gmra.mrb[44].mxu1 %v180_v15  ;;  %v1639_v15 = vld [vmem:[#allocation3 + $0x328] sm:$0xff] }
  0xb1   :  { %6484 = vmatprep.mubr.msk.f32.mxu1 %vm9276_vm0, %v9274_v0 }
  0xb2   :  { %6693 = vmatmul.mubr.f32.gmra.mrb[42].mxu0 %v9737_v23 }
  0xb3   :  { %6695 = vmatprep.mubr.msk.f32.mxu0 %vm9276_vm0, %v9274_v0 }
  0xb4   :  { %6485 = vmatmul.mubr.f32.gmra.mrb[46].mxu1 %v181_v18  ;;  %v1096_v18 = vld [vmem:[%s12119_s0 + $0x20] sm:$0xff] }
  0xb5   :  { %6487 = vmatprep.mubr.msk.f32.mxu1 %vm9276_vm0, %v9274_v0 }
  0xb6   :  { %6696 = vmatmul.mubr.f32.gmra.mrb[44].mxu0 %v9750_v29 }
  0xb7   :  { %6698 = vmatprep.mubr.msk.f32.mxu0 %vm9276_vm0, %v9274_v0 }
  0xb8   :  { %6488 = vmatmul.mubr.f32.gmra.mrb[48].mxu1 %v182_v20  ;;  %v123_v20 = vld [vmem:[%s12119_s0 + $0x35] sm:$0xff] }
  0xb9   :  { %6522 = vmatprep.mubr.msk.f32.mxu1 %vm9276_vm0, %v9274_v0 }
  0xba   :  { %6699 = vmatmul.mubr.f32.gmra.mrb[46].mxu0 %v9764_v35 }
  0xbb   :  { %6701 = vmatprep.mubr.msk.f32.mxu0 %vm9276_vm0, %v9274_v0 }
  0xbc   :  { %6523 = vmatmul.mubr.f32.vlgmr.msra.gmra.mrb[50].mxu1 %v117_v25  ;;  %v878_v25 = vld [vmem:[#allocation3 + $0x1f8] sm:$0xff] }
  0xbd   :  { %6525 = vmatprep.mubr.msk.f32.mxu1 %vm9276_vm0, %v9274_v0  ;;  %8398 = vmatpush3.bf16.msra.mxu1 %v8397_v26  ;;  %v8475_v26 = vpack.c.bf16 %v1639_v15, %v1638_v13  ;;  %v1646_v13 = vld [vmem:[#allocation3 + $0x360] sm:$0xff]  ;;  %v1647_v15 = vld [vmem:[#allocation3 + $0x368] sm:$0xff] }
  0xbe   :  { %8399 = vmatprep.subr.bf16.mxu1 %v12134_v1  ;;  %6702 = vmatmul.mubr.f32.gmra.mrb[48].mxu0 %v9778_v43 }
  0xbf   :  { %6843 = vmatprep.mubr.msk.f32.mxu0 %vm9276_vm0, %v9274_v0 }
  0xc0   :  { %6526 = vmatmul.mubr.f32.gmra.mrb[52].mxu1 %v118_v31  ;;  %v8418_v31 = vpack.c.bf16 %v878_v25, %v877_v22  ;;  %v1648_v22 = vld [vmem:[#allocation3 + $0x370] sm:$0xff]  ;;  %v1649_v25 = vld [vmem:[#allocation3 + $0x378] sm:$0xff] }
  0xc1   :  { %6528 = vmatprep.mubr.msk.f32.mxu1 %vm9276_vm0, %v9274_v0  ;;  %8401 = vmatpush3.bf16.msra.mxu1 %v8400_v32  ;;  %v1640_v32 = vld [vmem:[#allocation3 + $0x330] sm:$0xff] }
  0xc2   :  { %8402 = vmatprep.subr.bf16.mxu1 %v12134_v1  ;;  %6844 = vmatmul.mubr.f32.vlgmr.msra.gmra.mrb[50].mxu0 %v1094_v53  ;;  %v8478_v34 = vpack.c.bf16 %v1641_v33, %v1640_v32  ;;  %v128_v53 = vld [vmem:[%s12119_s0 + $0x5d] sm:$0xff]  ;;  %v1110_v33 = vld [vmem:[%s12119_s0 + $0x90] sm:$0xff] }
  0xc3   :  { %6846 = vmatprep.mubr.msk.f32.mxu0 %vm9276_vm0, %v9274_v0  ;;  %8470 = vmatpush3.bf16.msra.mxu0 %v8469_v61  ;;  %v1644_v61 = vld [vmem:[#allocation3 + $0x350] sm:$0xff] }
  0xc4   :  { %6529 = vmatmul.mubr.f32.gmra.mrb[54].mxu1 %v119_v37  ;;  %8471 = vmatprep.subr.bf16.mxu0 %v12134_v1  ;;  %v1098_v37 = vld [vmem:[%s12119_s0 + $0x30] sm:$0xff]  ;;  %v136_v32 = vld [vmem:[%s12119_s0 + $0x9d] sm:$0xff] }
  0xc5   :  { %6531 = vmatprep.mubr.msk.f32.mxu1 %vm9276_vm0, %v9274_v0  ;;  %8404 = vmatpush3.bf16.msra.mxu1 %v8403_v39  ;;  %v125_v39 = vld [vmem:[%s12119_s0 + $0x45] sm:$0xff] }
  0xc6   :  { %8405 = vmatprep.subr.bf16.mxu1 %v12134_v1  ;;  %6847 = vmatmul.mubr.f32.gmra.mrb[52].mxu0 %v1095_v3  ;;  %v8484_v3 = vpack.c.bf16 %v1645_v62, %v1644_v61  ;;  %v1381_v62 = vld [vmem:[#allocation3 + $0x2a0] sm:$0xff] }
  0xc7   :  { %6849 = vmatprep.mubr.msk.f32.mxu0 %vm9276_vm0, %v9274_v0  ;;  %8473 = vmatpush3.bf16.msra.mxu0 %v8472_v11  ;;  %v133_v11 = vld [vmem:[%s12119_s0 + $0x85] sm:$0xff] }
  0xc8   :  { %6532 = vmatmul.mubr.f32.gmra.mrb[56].mxu1 %v120_v44  ;;  %8474 = vmatprep.subr.bf16.mxu0 %v12134_v1  ;;  %v1100_v44 = vld [vmem:[%s12119_s0 + $0x40] sm:$0xff] }
  0xc9   :  { %6534 = vmatprep.mubr.msk.f32.mxu1 %vm9276_vm0, %v9274_v0  ;;  %8407 = vmatpush3.bf16.msra.mxu1 %v8406_v46  ;;  %v127_v46 = vld [vmem:[%s12119_s0 + $0x55] sm:$0xff] }
  0xca   :  { %8408 = vmatprep.subr.bf16.mxu1 %v12134_v1  ;;  %6850 = vmatmul.mubr.f32.gmra.mrb[54].mxu0 %v1096_v18  ;;  %v1107_v18 = vld [vmem:[%s12119_s0 + $0x78] sm:$0xff] }
  0xcb   :  { %6852 = vmatprep.mubr.msk.f32.mxu0 %vm9276_vm0, %v9274_v0  ;;  %8476 = vmatpush3.bf16.msra.mxu0 %v8475_v26  ;;  %v1108_v26 = vld [vmem:[%s12119_s0 + $0x80] sm:$0xff] }
  0xcc   :  { %6535 = vmatmul.mubr.f32.gmra.mrb[58].mxu1 %v121_v55  ;;  %8477 = vmatprep.subr.bf16.mxu0 %v12134_v1  ;;  %v1102_v55 = vld [vmem:[%s12119_s0 + $0x50] sm:$0xff] }
  0xcd   :  { %6537 = vmatprep.mubr.msk.f32.mxu1 %vm9276_vm0, %v9274_v0  ;;  %8410 = vmatpush3.bf16.msra.mxu1 %v8409_v57  ;;  %v129_v57 = vld [vmem:[%s12119_s0 + $0x65] sm:$0xff] }
  0xce   :  { %8411 = vmatprep.subr.bf16.mxu1 %v12134_v1  ;;  %6853 = vmatmul.mubr.f32.gmra.mrb[56].mxu0 %v1097_v27  ;;  %v8490_v27 = vpack.c.bf16 %v1649_v25, %v1648_v22  ;;  %v1387_v22 = vld [vmem:[#allocation3 + $0x2d0] sm:$0xff]  ;;  %v1388_v25 = vld [vmem:[#allocation3 + $0x2d8] sm:$0xff] }
  0xcf   :  { %6855 = vmatprep.mubr.msk.f32.mxu0 %vm9276_vm0, %v9274_v0  ;;  %8479 = vmatpush3.bf16.msra.mxu0 %v8478_v34  ;;  %v137_v34 = vld [vmem:[%s12119_s0 + $0xa5] sm:$0xff] }
  0xd0   :  { %6538 = vmatmul.mubr.f32.gmra.mrb[60].mxu1 %v122_v4  ;;  %8480 = vmatprep.subr.bf16.mxu0 %v12134_v1  ;;  %v131_v4 = vld [vmem:[%s12119_s0 + $0x75] sm:$0xff] }
  0xd1   :  { %6540 = vmatprep.mubr.msk.f32.mxu1 %vm9276_vm0, %v9274_v0  ;;  %8413 = vmatpush3.bf16.msra.mxu1 %v8412_v6  ;;  %v1105_v6 = vld [vmem:[%s12119_s0 + $0x68] sm:$0xff] }
  0xd2   :  { %8414 = vmatprep.subr.bf16.mxu1 %v12134_v1  ;;  %6856 = vmatmul.mubr.f32.gmra.mrb[58].mxu0 %v1098_v37  ;;  %v1111_v37 = vld [vmem:[%s12119_s0 + $0x98] sm:$0xff] }
  0xd3   :  { %6858 = vmatprep.mubr.msk.f32.mxu0 %vm9276_vm0, %v9274_v0  ;;  %8482 = vmatpush3.bf16.msra.mxu0 %v8481_v51  ;;  %v1377_v51 = vld [vmem:[#allocation3 + $0x280] sm:$0xff] }
  0xd4   :  { %6541 = vmatmul.mubr.f32.gmra.mrb[62].mxu1 %v123_v20  ;;  %8483 = vmatprep.subr.bf16.mxu0 %v12134_v1  ;;  %v8487_v20 = vpack.c.bf16 %v1647_v15, %v1646_v13  ;;  %v2149_v15 = vld [vmem:[#allocation3 + $0x408] sm:$0xff] }
  0xd5   :  { %6543 = vmatprep.mubr.msk.f32.mxu1 %vm9276_vm0, %v9274_v0  ;;  %8416 = vmatpush3.bf16.msra.mxu1 %v8415_v21  ;;  %v134_v21 = vld [vmem:[%s12119_s0 + $0x8d] sm:$0xff] }
  0xd6   :  { %8417 = vmatprep.subr.bf16.mxu1 %v12134_v1  ;;  %6859 = vmatmul.mubr.f32.gmra.mrb[60].mxu0 %v1099_v41  ;;  %v138_v41 = vld [vmem:[%s12119_s0 + $0xad] sm:$0xff] }
  0xd7   :  { %6861 = vmatprep.mubr.msk.f32.mxu0 %vm9276_vm0, %v9274_v0  ;;  %8485 = vmatpush3.bf16.msra.mxu0 %v8484_v3 }
  0xd8   :  { %6544 = vmatmul.mubr.f32.gmra.mrb[64].mxu1 %v124_v28  ;;  %8486 = vmatprep.subr.bf16.mxu0 %v12134_v1  ;;  %v135_v28 = vld [vmem:[%s12119_s0 + $0x95] sm:$0xff] }
  0xd9   :  { %6546 = vmatprep.mubr.msk.f32.mxu1 %vm9276_vm0, %v9274_v0  ;;  %8419 = vmatpush3.bf16.msra.mxu1 %v8418_v31  ;;  %v1109_v31 = vld [vmem:[%s12119_s0 + $0x88] sm:$0xff] }
  0xda   :  { %8444 = vmatprep.subr.bf16.mxu1 %v12134_v1  ;;  %6862 = vmatmul.mubr.f32.gmra.mrb[62].mxu0 %v1100_v44  ;;  %v1113_v44 = vld [vmem:[%s12119_s0 + $0xa8] sm:$0xff] }
  0xdb   :  { %6864 = vmatprep.mubr.msk.f32.mxu0 %vm9276_vm0, %v9274_v0  ;;  %8488 = vmatpush3.bf16.msra.mxu0 %v8487_v20  ;;  %v10054_v20 = vld [vmem:[%s12119_s0 + $0x19] sm:$0xff] }
  0xdc   :  { %6547 = vmatmul.mubr.f32.gmra.mrb[66].mxu1 %v125_v39  ;;  %8489 = vmatprep.subr.bf16.mxu0 %v12134_v1  ;;  %v9975_v39 = vld [vmem:[#allocation2] sm:$0xff] }
  0xdd   :  { %6549 = vmatprep.mubr.msk.f32.mxu1 %vm9276_vm0, %v9274_v0 }
  0xde   :  { %6865 = vmatmul.mubr.f32.gmra.mrb[64].mxu0 %v1101_v52  ;;  %v1378_v52 = vld [vmem:[#allocation3 + $0x288] sm:$0xff] }
  0xdf   :  { %6867 = vmatprep.mubr.msk.f32.mxu0 %vm9276_vm0, %v9274_v0  ;;  %8491 = vmatpush3.bf16.msra.mxu0 %v8490_v27 }
  0xe0   :  { %6550 = vmatmul.mubr.f32.gmra.mrb[68].mxu1 %v126_v42  ;;  %8516 = vmatprep.subr.bf16.mxu0 %v12134_v1  ;;  %v139_v42 = vld [vmem:[%s12119_s0 + $0xb5] sm:$0xff] }
  0xe1   :  { %6552 = vmatprep.mubr.msk.f32.mxu1 %vm9276_vm0, %v9274_v0 }
  0xe2   :  { %6868 = vmatmul.mubr.f32.gmra.mrb[66].mxu0 %v1102_v55  ;;  %v8445_v55 = vpack.c.bf16 %v1378_v52, %v1377_v51  ;;  %v1392_v51 = vld [vmem:[#allocation3 + $0x2f8] sm:$0xff] }
  0xe3   :  { %6870 = vmatprep.mubr.msk.f32.mxu0 %vm9276_vm0, %v9274_v0 }
  0xe4   :  { %6553 = vmatmul.mubr.f32.gmra.mrb[70].mxu1 %v127_v46  ;;  %v140_v46 = vld [vmem:[%s12119_s0 + $0xbd] sm:$0xff] }
  0xe5   :  { %6555 = vmatprep.mubr.msk.f32.mxu1 %vm9276_vm0, %v9274_v0 }
  0xe6   :  { %6871 = vmatmul.mubr.f32.gmra.mrb[68].mxu0 %v1103_v59  ;;  %v1380_v59 = vld [vmem:[#allocation3 + $0x298] sm:$0xff] }
  0xe7   :  { %6873 = vmatprep.mubr.msk.f32.mxu0 %vm9276_vm0, %v9274_v0 }
  0xe8   :  { %6556 = vmatmul.mubr.f32.gmra.mrb[72].mxu1 %v128_v53  ;;  %v1115_v53 = vld [vmem:[%s12119_s0 + $0xb8] sm:$0xff] }
  0xe9   :  { %6558 = vmatprep.mubr.msk.f32.mxu1 %vm9276_vm0, %v9274_v0 }
  0xea   :  { %6874 = vmatmul.mubr.f32.gmra.mrb[70].mxu0 %v1104_v2  ;;  %v1382_v2 = vld [vmem:[#allocation3 + $0x2a8] sm:$0xff] }
  0xeb   :  { %6876 = vmatprep.mubr.msk.f32.mxu0 %vm9276_vm0, %v9274_v0  ;;  %v8451_v3 = vpack.c.bf16 %v1382_v2, %v1381_v62  ;;  %v2155_v62 = vld [vmem:[#allocation3 + $0x438] sm:$0xff] }
  0xec   :  { %6559 = vmatmul.mubr.f32.gmra.mrb[74].mxu1 %v129_v57  ;;  %v1379_v57 = vld [vmem:[#allocation3 + $0x290] sm:$0xff] }
  0xed   :  { %6561 = vmatprep.mubr.msk.f32.mxu1 %vm9276_vm0, %v9274_v0  ;;  %v8448_v61 = vpack.c.bf16 %v1380_v59, %v1379_v57 }
  0xee   :  { %6877 = vmatmul.mubr.f32.gmra.mrb[72].mxu0 %v1105_v6  ;;  %v1384_v6 = vld [vmem:[#allocation3 + $0x2b8] sm:$0xff] }
  0xef   :  { %6879 = vmatprep.mubr.msk.f32.mxu0 %vm9276_vm0, %v9274_v0 }
  0xf0   :  { %6562 = vmatmul.mubr.f32.gmra.mrb[76].mxu1 %v130_v60  ;;  %v1116_v60 = vld [vmem:[%s12119_s0 + $0xc0] sm:$0xff] }
  0xf1   :  { %6564 = vmatprep.mubr.msk.f32.mxu1 %vm9276_vm0, %v9274_v0 }
  0xf2   :  { %6880 = vmatmul.mubr.f32.gmra.mrb[74].mxu0 %v1106_v9  ;;  %v1385_v9 = vld [vmem:[#allocation3 + $0x2c0] sm:$0xff] }
  0xf3   :  { %6882 = vmatprep.mubr.msk.f32.mxu0 %vm9276_vm0, %v9274_v0 }
  0xf4   :  { %6565 = vmatmul.mubr.f32.gmra.mrb[78].mxu1 %v131_v4  ;;  %v1383_v4 = vld [vmem:[#allocation3 + $0x2b0] sm:$0xff] }
  0xf5   :  { %6567 = vmatprep.mubr.msk.f32.mxu1 %vm9276_vm0, %v9274_v0 }
  0xf6   :  { %6883 = vmatmul.mubr.f32.gmra.mrb[76].mxu0 %v1107_v18 }
  0xf7   :  { %6885 = vmatprep.mubr.msk.f32.mxu0 %vm9276_vm0, %v9274_v0 }
  0xf8   :  { %6568 = vmatmul.mubr.f32.gmra.mrb[80].mxu1 %v132_v7  ;;  %v8454_v7 = vpack.c.bf16 %v1384_v6, %v1383_v4 }
  0xf9   :  { %6570 = vmatprep.mubr.msk.f32.mxu1 %vm9276_vm0, %v9274_v0 }
  0xfa   :  { %6886 = vmatmul.mubr.f32.gmra.mrb[78].mxu0 %v1108_v26 }
  0xfb   :  { %6888 = vmatprep.mubr.msk.f32.mxu0 %vm9276_vm0, %v9274_v0 }
  0xfc   :  { %6571 = vmatmul.mubr.f32.gmra.mrb[82].mxu1 %v133_v11  ;;  %v1386_v11 = vld [vmem:[#allocation3 + $0x2c8] sm:$0xff] }
  0xfd   :  { %6573 = vmatprep.mubr.msk.f32.mxu1 %vm9276_vm0, %v9274_v0 }
  0xfe   :  { %6889 = vmatmul.mubr.f32.gmra.mrb[80].mxu0 %v1109_v31 }
  0xff   :  { %6891 = vmatprep.mubr.msk.f32.mxu0 %vm9276_vm0, %v9274_v0 }
 0x100   :  { %6574 = vmatmul.mubr.f32.gmra.mrb[84].mxu1 %v134_v21  ;;  %v8457_v21 = vpack.c.bf16 %v1386_v11, %v1385_v9 }
 0x101   :  { %6576 = vmatprep.mubr.msk.f32.mxu1 %vm9276_vm0, %v9274_v0 }
 0x102   :  { %6892 = vmatmul.mubr.f32.gmra.mrb[82].mxu0 %v1110_v33  ;;  %v8460_v33 = vpack.c.bf16 %v1388_v25, %v1387_v22 }
 0x103   :  { %6894 = vmatprep.mubr.msk.f32.mxu0 %vm9276_vm0, %v9274_v0 }
 0x104   :  { %6577 = vmatmul.mubr.f32.gmra.mrb[86].mxu1 %v135_v28  ;;  %v2151_v28 = vld [vmem:[#allocation3 + $0x418] sm:$0xff] }
 0x105   :  { %6579 = vmatprep.mubr.msk.f32.mxu1 %vm9276_vm0, %v9274_v0 }
 0x106   :  { %6895 = vmatmul.mubr.f32.gmra.mrb[84].mxu0 %v1111_v37  ;;  %v1390_v37 = vld [vmem:[#allocation3 + $0x2e8] sm:$0xff] }
 0x107   :  { %6897 = vmatprep.mubr.msk.f32.mxu0 %vm9276_vm0, %v9975_v39 }
 0x108   :  { %6580 = vmatmul.mubr.f32.gmra.mrb[88].mxu1 %v136_v32  ;;  %v10068_v32 = vld [vmem:[%s12119_s0 + $0x21] sm:$0xff] }
 0x109   :  { %6582 = vmatprep.mubr.msk.f32.mxu1 %vm9276_vm0, %v9274_v0  ;;  %v1112_v0 = vld [vmem:[%s12119_s0 + $0xa0] sm:$0xff] }
 0x10a   :  { %6898 = vmatmul.mubr.f32.gmra.mrb[86].mxu0 %v1112_v0  ;;  %v2152_v0 = vld [vmem:[#allocation3 + $0x420] sm:$0xff] }
 0x10b   :  { %6900 = vmatprep.mubr.msk.f32.mxu0 %vm9276_vm0, %v9975_v39 }
 0x10c   :  { %6583 = vmatmul.mubr.f32.gmra.mrb[90].mxu1 %v137_v34  ;;  %v1389_v34 = vld [vmem:[#allocation3 + $0x2e0] sm:$0xff] }
 0x10d   :  { %6585 = vmatprep.mubr.msk.f32.mxu1 %vm9276_vm0, %v9975_v39 }
 0x10e   :  { %6901 = vmatmul.mubr.f32.gmra.mrb[88].mxu0 %v1113_v44 }
 0x10f   :  { %6903 = vmatprep.mubr.msk.f32.mxu0 %vm9276_vm0, %v9975_v39 }
 0x110   :  { %6586 = vmatmul.mubr.f32.gmra.mrb[92].mxu1 %v138_v41 }
 0x111   :  { %6588 = vmatprep.mubr.msk.f32.mxu1 %vm9276_vm0, %v9975_v39 }
 0x112   :  { %6904 = vmatmul.mubr.f32.gmra.mrb[90].mxu0 %v1114_v48  ;;  %v8463_v48 = vpack.c.bf16 %v1390_v37, %v1389_v34  ;;  %v10178_v37 = vld [vmem:[%s12119_s0 + $0x59] sm:$0xff] }
 0x113   :  { %6906 = vmatprep.mubr.msk.f32.mxu0 %vm9276_vm0, %v9975_v39 }
 0x114   :  { %6589 = vmatmul.mubr.f32.gmra.mrb[94].mxu1 %v139_v42  ;;  %v2153_v42 = vld [vmem:[#allocation3 + $0x428] sm:$0xff] }
 0x115   :  { %6591 = vmatprep.mubr.msk.f32.mxu1 %vm9276_vm0, %v9975_v39  ;;  %v8523_v52 = vpack.c.bf16 %v2153_v42, %v2152_v0 }
 0x116   :  { %6907 = vmatmul.mubr.f32.gmra.mrb[92].mxu0 %v1115_v53 }
 0x117   :  { %6909 = vmatprep.mubr.msk.f32.mxu0 %vm9276_vm0, %v9975_v39 }
 0x118   :  { %6592 = vmatmul.mubr.f32.gmra.mrb[96].mxu1 %v140_v46  ;;  %v10083_v46 = vld [vmem:[%s12119_s0 + $0x29] sm:$0xff] }
 0x119   :  { %6594 = vmatprep.mubr.msk.f32.mxu1 %vm9276_vm0, %v9975_v39 }
 0x11a   :  { %6910 = vmatmul.mubr.f32.gmra.mrb[94].mxu0 %v1116_v60  ;;  %v2154_v60 = vld [vmem:[#allocation3 + $0x430] sm:$0xff] }
 0x11b   :  { %6912 = vmatprep.mubr.msk.f32.mxu0 %vm9276_vm0, %v9975_v39 }
 0x11c   :  { %6595 = vmatmul.mubr.f32.gmra.mrb[98].mxu1 %v141_v50  ;;  %v1391_v50 = vld [vmem:[#allocation3 + $0x2f0] sm:$0xff] }
 0x11d   :  { %6736 = vmatprep.mubr.msk.f32.mxu1 %vm9276_vm0, %v9975_v39  ;;  %v8466_v57 = vpack.c.bf16 %v1392_v51, %v1391_v50 }
 0x120   :  { %6737 = vmatmul.mubr.f32.vlgmr.msra.gmra.mrb[100].mxu1 %v9465_v16  ;;  %v1117_v16 = vld [vmem:[%s12119_s0 + $0xc8] sm:$0xff] }
 0x121   :  { %6739 = vmatprep.mubr.msk.f32.mxu1 %vm9276_vm0, %v9975_v39  ;;  %8446 = vmatpush3.bf16.msra.mxu1 %v8445_v55  ;;  %v10098_v55 = vld [vmem:[%s12119_s0 + $0x31] sm:$0xff] }
 0x122   :  { %8447 = vmatprep.subr.bf16.mxu1 %v12134_v1  ;;  %6913 = vmatmul.mubr.f32.gmra.mrb[96].mxu0 %v1117_v16  ;;  %v10115_v16 = vld [vmem:[%s12119_s0 + $0x39] sm:$0xff] }
 0x123   :  { %6915 = vmatprep.mubr.msk.f32.mxu0 %vm9276_vm0, %v9975_v39 }
 0x124   :  { %6740 = vmatmul.mubr.f32.gmra.mrb[102].mxu1 %v9480_v24  ;;  %v1118_v24 = vld [vmem:[%s12119_s0 + $0xd0] sm:$0xff] }
 0x125   :  { %6742 = vmatprep.mubr.msk.f32.mxu1 %vm9276_vm0, %v9975_v39  ;;  %8449 = vmatpush3.bf16.msra.mxu1 %v8448_v61 }
 0x126   :  { %8450 = vmatprep.subr.bf16.mxu1 %v12134_v1  ;;  %6916 = vmatmul.mubr.f32.gmra.mrb[98].mxu0 %v1118_v24 }
 0x127   :  { %7057 = vmatprep.mubr.msk.f32.mxu0 %vm9276_vm0, %v9975_v39 }
 0x128   :  { %6743 = vmatmul.mubr.f32.gmra.mrb[104].mxu1 %v9495_v30  ;;  %v2148_v30 = vld [vmem:[#allocation3 + $0x400] sm:$0xff] }
 0x129   :  { %6745 = vmatprep.mubr.msk.f32.mxu1 %vm9276_vm0, %v9975_v39  ;;  %8452 = vmatpush3.bf16.msra.mxu1 %v8451_v3  ;;  %v8517_v26 = vpack.c.bf16 %v2149_v15, %v2148_v30  ;;  %v8526_v3 = vpack.c.bf16 %v2155_v62, %v2154_v60 }
 0x12a   :  { %8453 = vmatprep.subr.bf16.mxu1 %v12134_v1  ;;  %7058 = vmatmul.mubr.f32.vlgmr.msra.gmra.mrb[100].mxu0 %v10054_v20 }
 0x12b   :  { %v10046_v13 = vpop.f32.mrb[0].mxu1  ;;  %7060 = vmatprep.mubr.msk.f32.mxu0 %vm9276_vm0, %v9975_v39  ;;  %8518 = vmatpush3.bf16.msra.mxu0 %v8517_v26 }
 0x12c   :  { %v6417_v18 = vpop.f32.mrb[1].mxu1  ;;  %6746 = vmatmul.mubr.f32.gmra.mrb[106].mxu1 %v9510_v36  ;;  %v2150_v36 = vld [vmem:[#allocation3 + $0x410] sm:$0xff]  ;;  %8519 = vmatprep.subr.bf16.mxu0 %v12134_v1 }
 0x12d   :  { %6748 = vmatprep.mubr.msk.f32.mxu1 %vm9276_vm0, %v9975_v39  ;;  %8455 = vmatpush3.bf16.msra.mxu1 %v8454_v7  ;;  %v8520_v41 = vpack.c.bf16 %v2151_v28, %v2150_v36  ;;  %v10132_v7 = vld [vmem:[%s12119_s0 + $0x41] sm:$0xff]  ;;  %v10162_v36 = vld [vmem:[%s12119_s0 + $0x51] sm:$0xff] }
 0x12e   :  { %8456 = vmatprep.subr.bf16.mxu1 %v12134_v1  ;;  %7061 = vmatmul.mubr.f32.gmra.mrb[102].mxu0 %v10068_v32 }
 0x12f   :  { %v10059_v27 = vpop.f32.mrb[2].mxu1  ;;  %7063 = vmatprep.mubr.msk.f32.mxu0 %vm9276_vm0, %v9975_v39  ;;  %8521 = vmatpush3.bf16.msra.mxu0 %v8520_v41 }
 0x130   :  { %v6420_v31 = vpop.f32.mrb[3].mxu1  ;;  %6749 = vmatmul.mubr.f32.gmra.mrb[108].mxu1 %v9525_v38  ;;  %8522 = vmatprep.subr.bf16.mxu0 %v12134_v1 }
 0x131   :  { %6751 = vmatprep.mubr.msk.f32.mxu1 %vm9276_vm0, %v9975_v39  ;;  %8458 = vmatpush3.bf16.msra.mxu1 %v8457_v21  ;;  %v10103_v59 = vpop.f32.mrb[0].mxu0  ;;  %v2156_v21 = vld [vmem:[#allocation3 + $0x440] sm:$0xff] }
 0x132   :  { %8459 = vmatprep.subr.bf16.mxu1 %v12134_v1  ;;  %7064 = vmatmul.mubr.f32.gmra.mrb[104].mxu0 %v10083_v46  ;;  %v6631_v61 = vpop.f32.mrb[1].mxu0 }
 0x133   :  { %v10073_v38 = vpop.f32.mrb[4].mxu1  ;;  %7066 = vmatprep.mubr.msk.f32.mxu0 %vm9276_vm0, %v9975_v39  ;;  %8524 = vmatpush3.bf16.msra.mxu0 %v8523_v52  ;;  %v2158_v52 = vld [vmem:[#allocation3 + $0x450] sm:$0xff] }
 0x134   :  { %v6423_v44 = vpop.f32.mrb[5].mxu1  ;;  %6752 = vmatmul.mubr.f32.gmra.mrb[110].mxu1 %v9538_v40  ;;  %8525 = vmatprep.subr.bf16.mxu0 %v12134_v1 }
 0x135   :  { %6754 = vmatprep.mubr.msk.f32.mxu1 %vm9276_vm0, %v9975_v39  ;;  %8461 = vmatpush3.bf16.msra.mxu1 %v8460_v33  ;;  %v10120_v4 = vpop.f32.mrb[2].mxu0 }
 0x136   :  { %8462 = vmatprep.subr.bf16.mxu1 %v12134_v1  ;;  %7067 = vmatmul.mubr.f32.gmra.mrb[106].mxu0 %v10098_v55 }
 0x137   :  { %v10088_v40 = vpop.f32.mrb[6].mxu1  ;;  %7069 = vmatprep.mubr.msk.f32.mxu0 %vm9276_vm0, %v9975_v39  ;;  %8527 = vmatpush3.bf16.msra.mxu0 %v8526_v3  ;;  %v10224_v3 = vld [vmem:[%s12119_s0 + $0x71] sm:$0xff] }
 0x138   :  { %v6426_v53 = vpop.f32.mrb[7].mxu1  ;;  %6755 = vmatmul.mubr.f32.gmra.mrb[112].mxu1 %v9551_v45  ;;  %8528 = vmatprep.subr.bf16.mxu0 %v12134_v1 }
 0x139   :  { %6757 = vmatprep.mubr.msk.f32.mxu1 %vm9276_vm0, %v9975_v39  ;;  %8464 = vmatpush3.bf16.msra.mxu1 %v8463_v48 }
 0x13a   :  { %8465 = vmatprep.subr.bf16.mxu1 %v12134_v1  ;;  %7070 = vmatmul.mubr.f32.gmra.mrb[108].mxu0 %v10115_v16 }
 0x13b   :  { %v10105_v45 = vpop.f32.mrb[8].mxu1  ;;  %7072 = vmatprep.mubr.msk.f32.mxu0 %vm9276_vm0, %v9975_v39 }
 0x13c   :  { %v6429_v2 = vpop.f32.mrb[9].mxu1  ;;  %6758 = vmatmul.mubr.f32.gmra.mrb[114].mxu1 %v9565_v47  ;;  %v6634_v47 = vpop.f32.mrb[3].mxu0 }
 0x13d   :  { %6760 = vmatprep.mubr.msk.f32.mxu1 %vm9276_vm0, %v9975_v39  ;;  %8467 = vmatpush3.bf16.msra.mxu1 %v8466_v57  ;;  %v10136_v9 = vpop.f32.mrb[4].mxu0  ;;  %v10208_v57 = vld [vmem:[%s12119_s0 + $0x69] sm:$0xff] }
 0x13e   :  { %8492 = vmatprep.subr.bf16.mxu1 %v12134_v1  ;;  %v6637_v30 = vpop.f32.mrb[5].mxu0  ;;  %7073 = vmatmul.mubr.f32.gmra.mrb[110].mxu0 %v10132_v7 }
 0x13f   :  { %v10122_v6 = vpop.f32.mrb[10].mxu1  ;;  %7075 = vmatprep.mubr.msk.f32.mxu0 %vm9276_vm0, %v9975_v39  ;;  %v10151_v18 = vpop.f32.mrb[6].mxu0 }
 0x140   :  { %v6432_v24 = vpop.f32.mrb[11].mxu1  ;;  %6761 = vmatmul.mubr.f32.gmra.mrb[116].mxu1 %v9578_v49  ;;  %v10147_v49 = vld [vmem:[%s12119_s0 + $0x49] sm:$0xff]  ;;  %v6640_v25 = vpop.f32.mrb[7].mxu0 }
 0x141   :  { %6763 = vmatprep.mubr.msk.f32.mxu1 %vm9276_vm0, %v9975_v39  ;;  %v10166_v31 = vpop.f32.mrb[8].mxu0 }
 0x142   :  { %7076 = vmatmul.mubr.f32.gmra.mrb[112].mxu0 %v10147_v49  ;;  %v6643_v34 = vpop.f32.mrb[9].mxu0 }
 0x143   :  { %v10138_v11 = vpop.f32.mrb[12].mxu1  ;;  %7078 = vmatprep.mubr.msk.f32.mxu0 %vm9276_vm0, %v9975_v39  ;;  %v10254_v34 = vld [vmem:[%s12119_s0 + $0x81] sm:$0xff] }
 0x144   :  { %v6435_v15 = vpop.f32.mrb[13].mxu1  ;;  %6764 = vmatmul.mubr.f32.gmra.mrb[118].mxu1 %v9591_v54  ;;  %v2157_v54 = vld [vmem:[#allocation3 + $0x448] sm:$0xff] }
 0x145   :  { %6766 = vmatprep.mubr.msk.f32.mxu1 %vm9276_vm0, %v9975_v39  ;;  %v8529_v28 = vpack.c.bf16 %v2157_v54, %v2156_v21  ;;  %v10182_v41 = vpop.f32.mrb[10].mxu0 }
 0x146   :  { %7079 = vmatmul.mubr.f32.gmra.mrb[114].mxu0 %v10162_v36  ;;  %v6646_v42 = vpop.f32.mrb[11].mxu0 }
 0x147   :  { %v10153_v22 = vpop.f32.mrb[14].mxu1  ;;  %8530 = vmatpush3.bf16.msra.mxu0 %v8529_v28  ;;  %7081 = vmatprep.mubr.msk.f32.mxu0 %vm9276_vm0, %v9975_v39 }
 0x148   :  { %v6438_v26 = vpop.f32.mrb[15].mxu1  ;;  %6767 = vmatmul.mubr.f32.gmra.mrb[120].mxu1 %v9605_v56  ;;  %8531 = vmatprep.subr.bf16.mxu0 %v12134_v1 }
 0x149   :  { %6769 = vmatprep.mubr.msk.f32.mxu1 %vm9276_vm0, %v9975_v39  ;;  %v10197_v48 = vpop.f32.mrb[12].mxu0  ;;  %v2160_v26 = vld [vmem:[#allocation3 + $0x460] sm:$0xff] }
 0x14a   :  { %7082 = vmatmul.mubr.f32.gmra.mrb[116].mxu0 %v10178_v37  ;;  %v6649_v51 = vpop.f32.mrb[13].mxu0 }
 0x14b   :  { %v10168_v33 = vpop.f32.mrb[16].mxu1  ;;  %7084 = vmatprep.mubr.msk.f32.mxu0 %vm9276_vm0, %v9975_v39 }
 0x14c   :  { %v6441_v56 = vpop.f32.mrb[17].mxu1  ;;  %6770 = vmatmul.mubr.f32.gmra.mrb[122].mxu1 %v9618_v58  ;;  %v10193_v58 = vld [vmem:[%s12119_s0 + $0x61] sm:$0xff] }
 0x14d   :  { %6772 = vmatprep.mubr.msk.f32.mxu1 %vm9276_vm0, %v9975_v39  ;;  %v10212_v61 = vpop.f32.mrb[14].mxu0 }
 0x14e   :  { %7085 = vmatmul.mubr.f32.gmra.mrb[118].mxu0 %v10193_v58  ;;  %v6652_v2 = vpop.f32.mrb[15].mxu0 }
 0x14f   :  { %v10184_v0 = vpop.f32.mrb[18].mxu1  ;;  %7087 = vmatprep.mubr.msk.f32.mxu0 %vm9276_vm0, %v9975_v39 }
 0x150   :  { %v6444_v44 = vpop.f32.mrb[19].mxu1  ;;  %6773 = vmatmul.mubr.f32.gmra.mrb[124].mxu1 %v9631_v63  ;;  %v2159_v63 = vld [vmem:[#allocation3 + $0x458] sm:$0xff] }
 0x151   :  { %6775 = vmatprep.mubr.msk.f32.mxu1 %vm9276_vm0, %v9975_v39  ;;  %v8532_v60 = vpack.c.bf16 %v2159_v63, %v2158_v52  ;;  %v10228_v47 = vpop.f32.mrb[16].mxu0  ;;  %v2163_v52 = vld [vmem:[#allocation3 + $0x478] sm:$0xff] }
 0x152   :  { %7088 = vmatmul.mubr.f32.gmra.mrb[120].mxu0 %v10208_v57  ;;  %v6655_v30 = vpop.f32.mrb[17].mxu0 }
 0x153   :  { %v10199_v50 = vpop.f32.mrb[20].mxu1  ;;  %8533 = vmatpush3.bf16.msra.mxu0 %v8532_v60  ;;  %7090 = vmatprep.mubr.msk.f32.mxu0 %vm9276_vm0, %v9975_v39 }
 0x154   :  { %v6447_v53 = vpop.f32.mrb[21].mxu1  ;;  %6776 = vmatmul.mubr.f32.gmra.mrb[126].mxu1 %v9645_v5  ;;  %8534 = vmatprep.subr.bf16.mxu0 %v12134_v1 }
 0x155   :  { %6778 = vmatprep.mubr.msk.f32.mxu1 %vm9276_vm0, %v9975_v39  ;;  %v10243_v21 = vpop.f32.mrb[18].mxu0  ;;  %v10270_v53 = vld [vmem:[%s12119_s0 + $0x89] sm:$0xff] }
 0x156   :  { %7091 = vmatmul.mubr.f32.gmra.mrb[122].mxu0 %v10224_v3  ;;  %v6658_v54 = vpop.f32.mrb[19].mxu0 }
 0x157   :  { %v10214_v62 = vpop.f32.mrb[22].mxu1  ;;  %7093 = vmatprep.mubr.msk.f32.mxu0 %vm9276_vm0, %v9975_v39 }
 0x158   :  { %v6450_v5 = vpop.f32.mrb[23].mxu1  ;;  %6779 = vmatmul.mubr.f32.gmra.mrb[128].mxu1 %v9659_v8  ;;  %v10239_v8 = vld [vmem:[%s12119_s0 + $0x79] sm:$0xff] }
 0x159   :  { %6781 = vmatprep.mubr.msk.f32.mxu1 %vm9276_vm0, %v9975_v39  ;;  %v10258_v42 = vpop.f32.mrb[20].mxu0 }
 0x15a   :  { %7094 = vmatmul.mubr.f32.gmra.mrb[124].mxu0 %v10239_v8  ;;  %v6661_v51 = vpop.f32.mrb[21].mxu0 }
 0x15b   :  { %v10230_v24 = vpop.f32.mrb[24].mxu1  ;;  %7096 = vmatprep.mubr.msk.f32.mxu0 %vm9276_vm0, %v9975_v39 }
 0x15c   :  { %v6453_v15 = vpop.f32.mrb[25].mxu1  ;;  %6782 = vmatmul.mubr.f32.gmra.mrb[130].mxu1 %v9672_v10  ;;  %v2161_v10 = vld [vmem:[#allocation3 + $0x468] sm:$0xff] }
 0x15d   :  { %6784 = vmatprep.mubr.msk.f32.mxu1 %vm9276_vm0, %v9975_v39  ;;  %v8535_v56 = vpack.c.bf16 %v2161_v10, %v2160_v26  ;;  %v10274_v2 = vpop.f32.mrb[22].mxu0  ;;  %v10286_v15 = vld [vmem:[%s12119_s0 + $0x91] sm:$0xff] }
 0x15e   :  { %7097 = vmatmul.mubr.f32.gmra.mrb[126].mxu0 %v10254_v34  ;;  %v6664_v30 = vpop.f32.mrb[23].mxu0 }
 0x15f   :  { %v10245_v25 = vpop.f32.mrb[26].mxu1  ;;  %8536 = vmatpush3.bf16.msra.mxu0 %v8535_v56  ;;  %7099 = vmatprep.mubr.msk.f32.mxu0 %vm9276_vm0, %v9975_v39 }
 0x160   :  { %v6456_v28 = vpop.f32.mrb[27].mxu1  ;;  %6785 = vmatmul.mubr.f32.gmra.mrb[132].mxu1 %v9685_v12  ;;  %8537 = vmatprep.subr.bf16.mxu0 %v12134_v1  ;;  %v2162_v12 = vld [vmem:[#allocation3 + $0x470] sm:$0xff] }
 0x161   :  { %6787 = vmatprep.mubr.msk.f32.mxu1 %vm9276_vm0, %v9975_v39  ;;  %v8538_v60 = vpack.c.bf16 %v2163_v52, %v2162_v12  ;;  %v10290_v54 = vpop.f32.mrb[24].mxu0 }
 0x162   :  { %7100 = vmatmul.mubr.f32.gmra.mrb[128].mxu0 %v10270_v53  ;;  %v6667_v10 = vpop.f32.mrb[25].mxu0 }
 0x163   :  { %v10260_v44 = vpop.f32.mrb[28].mxu1  ;;  %8539 = vmatpush3.bf16.msra.mxu0 %v8538_v60  ;;  %7102 = vmatprep.mubr.msk.f32.mxu0 %vm9276_vm0, %v9975_v39 }
 0x164   :  { %v6459_v63 = vpop.f32.mrb[29].mxu1  ;;  %6788 = vmatmul.mubr.f32.gmra.mrb[134].mxu1 %v9698_v14  ;;  %8624 = vmatprep.subr.bf16.mxu0 %v12134_v1  ;;  %v1891_v1 = vld [vmem:[#allocation3 + $0x380] sm:$0xff] }
 0x165   :  { %6790 = vmatprep.mubr.msk.f32.mxu1 %vm9276_vm0, %v9975_v39  ;;  %v10305_v56 = vpop.f32.mrb[26].mxu0 }
 0x166   :  { %7103 = vmatmul.mubr.f32.gmra.mrb[130].mxu0 %v10286_v15  ;;  %v6670_v12 = vpop.f32.mrb[27].mxu0 }
 0x167   :  { %v10276_v5 = vpop.f32.mrb[30].mxu1  ;;  %7105 = vmatprep.mubr.msk.f32.mxu0 %vm9276_vm0, %v9975_v39 }
 0x168   :  { %v6462_v14 = vpop.f32.mrb[31].mxu1  ;;  %6791 = vmatmul.mubr.f32.gmra.mrb[136].mxu1 %v9711_v17  ;;  %v10301_v17 = vld [vmem:[%s12119_s0 + $0x99] sm:$0xff] }
 0x169   :  { %6793 = vmatprep.mubr.msk.f32.mxu1 %vm9276_vm0, %v9975_v39  ;;  %v10320_v63 = vpop.f32.mrb[28].mxu0 }
 0x16a   :  { %7106 = vmatmul.mubr.f32.gmra.mrb[132].mxu0 %v10301_v17  ;;  %v6673_v30 = vpop.f32.mrb[29].mxu0 }
 0x16b   :  { %v10292_v26 = vpop.f32.mrb[32].mxu1  ;;  %7108 = vmatprep.mubr.msk.f32.mxu0 %vm9276_vm0, %v9975_v39 }
 0x16c   :  { %v6465_v28 = vpop.f32.mrb[33].mxu1  ;;  %6794 = vmatmul.mubr.f32.gmra.mrb[138].mxu1 %v9724_v19  ;;  %v10316_v19 = vld [vmem:[%s12119_s0 + $0xa1] sm:$0xff] }
 0x16d   :  { %6796 = vmatprep.mubr.msk.f32.mxu1 %vm9276_vm0, %v9975_v39  ;;  %v10335_v10 = vpop.f32.mrb[30].mxu0 }
 0x16e   :  { %7109 = vmatmul.mubr.f32.gmra.mrb[134].mxu0 %v10316_v19  ;;  %v6676_v12 = vpop.f32.mrb[31].mxu0 }
 0x16f   :  { %v10307_v51 = vpop.f32.mrb[34].mxu1  ;;  %7111 = vmatprep.mubr.msk.f32.mxu0 %vm9276_vm0, %v9975_v39 }
 0x170   :  { %12142 = vst [vmem:[#allocation10_spill] sm:$0xff] %v10307_v51  ;;  %v6468_v52 = vpop.f32.mrb[35].mxu1  ;;  %6797 = vmatmul.mubr.f32.gmra.mrb[140].mxu1 %v9737_v23  ;;  %v10331_v23 = vld [vmem:[%s12119_s0 + $0xa9] sm:$0xff] }
 0x171   :  { %6799 = vmatprep.mubr.msk.f32.mxu1 %vm9276_vm0, %v9975_v39  ;;  %12144 = vst [vmem:[#allocation12_spill] sm:$0xff] %v10331_v23  ;;  %v10350_v30 = vpop.f32.mrb[32].mxu0 }
 0x172   :  { %7112 = vmatmul.mubr.f32.gmra.mrb[136].mxu0 %v10331_v23  ;;  %12147 = vst [vmem:[#allocation15_spill] sm:$0xff] %v10350_v30  ;;  %v6679_v12 = vpop.f32.mrb[33].mxu0  ;;  %v10395_v23 = vld [vmem:[%s12119_s0 + $0xc9] sm:$0xff] }
 0x173   :  { %v10322_v60 = vpop.f32.mrb[36].mxu1  ;;  %7114 = vmatprep.mubr.msk.f32.mxu0 %vm9276_vm0, %v9975_v39  ;;  %v861_v12 = vld [vmem:[%s12119_s0 + $0xcf] sm:$0xff]  ;;  %12155 = vst [vmem:[#allocation23_spill] sm:$0xff] %v10395_v23 }
 0x174   :  { %12143 = vst [vmem:[#allocation11_spill] sm:$0xff] %v10322_v60  ;;  %v6471_v14 = vpop.f32.mrb[37].mxu1  ;;  %6800 = vmatmul.mubr.f32.gmra.mrb[142].mxu1 %v9750_v29  ;;  %v10346_v29 = vld [vmem:[%s12119_s0 + $0xb1] sm:$0xff] }
 0x175   :  { %6802 = vmatprep.mubr.msk.f32.mxu1 %vm9276_vm0, %v9975_v39  ;;  %12146 = vst [vmem:[#allocation14_spill] sm:$0xff] %v10346_v29 }
 0x176   :  { %7115 = vmatmul.mubr.f32.gmra.mrb[138].mxu0 %v10346_v29  ;;  %v10378_v29 = vld [vmem:[%s12119_s0 + $0xc1] sm:$0xff] }
 0x177   :  { %v10337_v28 = vpop.f32.mrb[38].mxu1  ;;  %7117 = vmatprep.mubr.msk.f32.mxu0 %vm9276_vm0, %v9975_v39  ;;  %12152 = vst [vmem:[#allocation20_spill] sm:$0xff] %v10378_v29 }
 0x178   :  { %12145 = vst [vmem:[#allocation13_spill] sm:$0xff] %v10337_v28  ;;  %v6474_v52 = vpop.f32.mrb[39].mxu1  ;;  %6803 = vmatmul.mubr.f32.gmra.mrb[144].mxu1 %v9764_v35  ;;  %v10361_v35 = vld [vmem:[%s12119_s0 + $0xb9] sm:$0xff] }
 0x179   :  { %6805 = vmatprep.mubr.msk.f32.mxu1 %vm9276_vm0, %v9975_v39  ;;  %12149 = vst [vmem:[#allocation17_spill] sm:$0xff] %v10361_v35 }
 0x17a   :  { %7118 = vmatmul.mubr.f32.gmra.mrb[140].mxu0 %v10361_v35  ;;  %v1894_v35 = vld [vmem:[#allocation3 + $0x398] sm:$0xff] }
 0x17b   :  { %v10352_v14 = vpop.f32.mrb[40].mxu1  ;;  %7120 = vmatprep.mubr.msk.f32.mxu0 %vm9276_vm0, %v9975_v39 }
 0x17c   :  { %12148 = vst [vmem:[#allocation16_spill] sm:$0xff] %v10352_v14  ;;  %v6477_v52 = vpop.f32.mrb[41].mxu1  ;;  %6806 = vmatmul.mubr.f32.gmra.mrb[146].mxu1 %v9778_v43  ;;  %v1892_v14 = vld [vmem:[#allocation3 + $0x388] sm:$0xff] }
 0x17d   :  { %6808 = vmatprep.mubr.msk.f32.mxu1 %vm9276_vm0, %v9975_v39  ;;  %v10368_v52 = vpop.f32.mrb[34].mxu0 }
 0x17e   :  { %12150 = vst [vmem:[#allocation18_spill] sm:$0xff] %v10368_v52  ;;  %v6682_v28 = vpop.f32.mrb[35].mxu0  ;;  %v1893_v52 = vld [vmem:[#allocation3 + $0x390] sm:$0xff]  ;;  %7121 = vmatmul.mubr.f32.gmra.mrb[142].mxu0 %v10378_v29 }
 0x17f   :  { %v10370_v43 = vpop.f32.mrb[42].mxu1  ;;  %v8493_v28 = vpack.c.bf16 %v1892_v14, %v1891_v1  ;;  %7123 = vmatprep.mubr.msk.f32.mxu0 %vm9276_vm0, %v9975_v39  ;;  %v8496_v1 = vpack.c.bf16 %v1894_v35, %v1893_v52  ;;  %v12156_v14 = vmov 0.0|0.0   ;;  %v10411_v35 = vld [vmem:[%s12119_s0 + $0xd1] sm:$0xff] }
 0x180   :  { %12151 = vst [vmem:[#allocation19_spill] sm:$0xff] %v10370_v43  ;;  %v6480_v60 = vpop.f32.mrb[43].mxu1  ;;  %6809 = vmatmul.mubr.f32.gmra.mrb[148].mxu1 %v861_v12  ;;  %v1351_v43 = vld [vmem:[%s12119_s0 + $0x11] sm:$0xff]  ;;  %12158 = vst [vmem:[#allocation25_spill] sm:$0xff] %v10411_v35 }
 0x181   :  { %6950 = vmatprep.mubr.msk.f32.mxu1 %vm9276_vm0, %v9975_v39  ;;  %v10385_v60 = vpop.f32.mrb[36].mxu0 }
 0x182   :  { %12153 = vst [vmem:[#allocation21_spill] sm:$0xff] %v10385_v60  ;;  %v6685_v51 = vpop.f32.mrb[37].mxu0  ;;  %7124 = vmatmul.mubr.f32.gmra.mrb[144].mxu0 %v10395_v23 }
 0x183   :  { %v10387_v12 = vpop.f32.mrb[44].mxu1  ;;  %v1895_v51 = vld [vmem:[#allocation3 + $0x3a0] sm:$0xff]  ;;  %v10400_v29 = vpop.f32.mrb[38].mxu0  ;;  %7126 = vmatprep.mubr.msk.f32.mxu0 %vm9276_vm0, %v9975_v39 }
 0x184   :  { %12154 = vst [vmem:[#allocation22_spill] sm:$0xff] %v10387_v12  ;;  %v6483_v30 = vpop.f32.mrb[45].mxu1  ;;  %6951 = vmatmul.mubr.f32.vlgmr.msra.gmra.mrb[150].mxu1 %v1351_v43  ;;  %v1896_v12 = vld [vmem:[#allocation3 + $0x3a8] sm:$0xff]  ;;  %v6688_v43 = vpop.f32.mrb[39].mxu0 }
 0x185   :  { %6953 = vmatprep.mubr.msk.f32.mxu1 %vm9276_vm0, %v9975_v39  ;;  %8494 = vmatpush3.bf16.msra.mxu1 %v8493_v28  ;;  %v8499_v52 = vpack.c.bf16 %v1896_v12, %v1895_v51  ;;  %v1897_v28 = vld [vmem:[#allocation3 + $0x3b0] sm:$0xff]  ;;  %v1898_v43 = vld [vmem:[#allocation3 + $0x3b8] sm:$0xff]  ;;  %v1899_v51 = vld [vmem:[#allocation3 + $0x3c0] sm:$0xff] }
 0x186   :  { %8495 = vmatprep.subr.bf16.mxu1 %v12156_v14  ;;  %7127 = vmatmul.mubr.f32.gmra.mrb[146].mxu0 %v10411_v35  ;;  %v1632_v12 = vld [vmem:[%s12119_s0 + $0xd9] sm:$0xff] }
 0x187   :  { %v10402_v30 = vpop.f32.mrb[46].mxu1  ;;  %7129 = vmatprep.mubr.msk.f32.mxu0 %vm9276_vm0, %v9975_v39 }
 0x188   :  { %12157 = vst [vmem:[#allocation24_spill] sm:$0xff] %v10402_v30  ;;  %v6486_v60 = vpop.f32.mrb[47].mxu1  ;;  %6954 = vmatmul.mubr.f32.gmra.mrb[152].mxu1 %v10054_v20 }
 0x189   :  { %6956 = vmatprep.mubr.msk.f32.mxu1 %vm9276_vm0, %v9975_v39  ;;  %8497 = vmatpush3.bf16.msra.mxu1 %v8496_v1  ;;  %v10416_v60 = vpop.f32.mrb[40].mxu0  ;;  %v8502_v1 = vpack.c.bf16 %v1898_v43, %v1897_v28 }
 0x18a   :  { %8498 = vmatprep.subr.bf16.mxu1 %v12156_v14  ;;  %12159 = vst [vmem:[#allocation26_spill] sm:$0xff] %v10416_v60  ;;  %v6691_v30 = vpop.f32.mrb[41].mxu0  ;;  %7130 = vmatmul.mubr.f32.gmra.mrb[148].mxu0 %v1632_v12 }
 0x18b   :  { %v10418_v20 = vpop.f32.mrb[48].mxu1  ;;  %v1900_v30 = vld [vmem:[#allocation3 + $0x3c8] sm:$0xff]  ;;  %7271 = vmatprep.mubr.msk.f32.mxu0 %vm9276_vm0, %v9975_v39 }
 0x18c   :  { %12160 = vst [vmem:[#allocation27_spill] sm:$0xff] %v10418_v20  ;;  %v6489_v23 = vpop.f32.mrb[49].mxu1  ;;  %6957 = vmatmul.mubr.f32.gmra.mrb[154].mxu1 %v10068_v32  ;;  %v10430_v20 = vpop.f32.mrb[42].mxu0  ;;  %v8505_v28 = vpack.c.bf16 %v1900_v30, %v1899_v51 }
 0x18d   :  { %6959 = vmatprep.mubr.msk.f32.mxu1 %vm9276_vm0, %v9975_v39  ;;  %8500 = vmatpush3.bf16.msra.mxu1 %v8499_v52  ;;  %12161 = vst [vmem:[#allocation28_spill] sm:$0xff] %v10430_v20  ;;  %v6694_v32 = vpop.f32.mrb[43].mxu0  ;;  %v2122_v52 = vld [vmem:[%s12119_s0 + $0x1b] sm:$0xff] }
 0x18e   :  { %8501 = vmatprep.subr.bf16.mxu1 %v12156_v14  ;;  %7272 = vmatmul.mubr.f32.vlgmr.msra.gmra.mrb[150].mxu0 %v2122_v52 }
 0x18f   :  { %v456_v23 = vpop.f32.mrb[50].mxu1  ;;  %7274 = vmatprep.mubr.msk.f32.mxu0 %vm9276_vm0, %v9975_v39 }
 0x190   :  { %v457_v35 = vadd.f32 %v456_v23, %v10046_v13  ;;  %v6524_v60 = vpop.f32.mrb[51].mxu1  ;;  %6960 = vmatmul.mubr.f32.gmra.mrb[156].mxu1 %v10083_v46  ;;  %v1901_v13 = vld [vmem:[#allocation3 + $0x3d0] sm:$0xff]  ;;  %v10445_v46 = vpop.f32.mrb[44].mxu0 }
 0x191   :  { %6962 = vmatprep.mubr.msk.f32.mxu1 %vm9276_vm0, %v9975_v39  ;;  %8503 = vmatpush3.bf16.msra.mxu1 %v8502_v1  ;;  %v1902_v60 = vld [vmem:[#allocation3 + $0x3d8] sm:$0xff]  ;;  %v6697_v23 = vpop.f32.mrb[45].mxu0 }
 0x192   :  { %v10442_v43 = vadd.f32 %v10103_v59, %v457_v35  ;;  %8504 = vmatprep.subr.bf16.mxu1 %v12156_v14  ;;  %v2123_v59 = vld [vmem:[%s12119_s0 + $0x23] sm:$0xff]  ;;  %v8508_v35 = vpack.c.bf16 %v1902_v60, %v1901_v13 }
 0x193   :  { %v461_v12 = vpop.f32.mrb[52].mxu1  ;;  %7275 = vmatmul.mubr.f32.gmra.mrb[152].mxu0 %v2123_v59  ;;  %v1906_v60 = vld [vmem:[#allocation3 + $0x3f8] sm:$0xff] }
 0x194   :  { %v462_v32 = vadd.f32 %v461_v12, %v10059_v27  ;;  %v6527_v20 = vpop.f32.mrb[53].mxu1  ;;  %6963 = vmatmul.mubr.f32.gmra.mrb[158].mxu1 %v10098_v55  ;;  %v1903_v27 = vld [vmem:[#allocation3 + $0x3e0] sm:$0xff]  ;;  %v10460_v55 = vpop.f32.mrb[46].mxu0  ;;  %7277 = vmatprep.mubr.msk.f32.mxu0 %vm9276_vm0, %v9975_v39 }
 0x195   :  { %6965 = vmatprep.mubr.msk.f32.mxu1 %vm9276_vm0, %v9975_v39  ;;  %8506 = vmatpush3.bf16.msra.mxu1 %v8505_v28  ;;  %v1904_v20 = vld [vmem:[#allocation3 + $0x3e8] sm:$0xff]  ;;  %v6700_v30 = vpop.f32.mrb[47].mxu0 }
 0x196   :  { %v10457_v1 = vadd.f32 %v10120_v4, %v462_v32  ;;  %8507 = vmatprep.subr.bf16.mxu1 %v12156_v14  ;;  %v2124_v4 = vld [vmem:[%s12119_s0 + $0x2b] sm:$0xff]  ;;  %v8511_v28 = vpack.c.bf16 %v1904_v20, %v1903_v27 }
 0x197   :  { %v466_v51 = vpop.f32.mrb[54].mxu1  ;;  %7278 = vmatmul.mubr.f32.gmra.mrb[154].mxu0 %v2124_v4 }
 0x198   :  { %v467_v52 = vadd.f32 %v466_v51, %v10073_v38  ;;  %v6530_v12 = vpop.f32.mrb[55].mxu1  ;;  %6966 = vmatmul.mubr.f32.gmra.mrb[160].mxu1 %v10115_v16  ;;  %v1905_v38 = vld [vmem:[#allocation3 + $0x3f0] sm:$0xff]  ;;  %v10475_v16 = vpop.f32.mrb[48].mxu0  ;;  %7280 = vmatprep.mubr.msk.f32.mxu0 %vm9276_vm0, %v9975_v39 }
 0x199   :  { %6968 = vmatprep.mubr.msk.f32.mxu1 %vm9276_vm0, %v9975_v39  ;;  %8509 = vmatpush3.bf16.msra.mxu1 %v8508_v35  ;;  %v6703_v32 = vpop.f32.mrb[49].mxu0  ;;  %v8514_v35 = vpack.c.bf16 %v1906_v60, %v1905_v38 }
 0x19a   :  { %v10472_v13 = vadd.f32 %v10136_v9, %v467_v52  ;;  %8510 = vmatprep.subr.bf16.mxu1 %v12156_v14  ;;  %v2125_v9 = vld [vmem:[%s12119_s0 + $0x33] sm:$0xff] }
 0x19b   :  { %v471_v23 = vpop.f32.mrb[56].mxu1  ;;  %7281 = vmatmul.mubr.f32.gmra.mrb[156].mxu0 %v2125_v9 }
 0x19c   :  { %v472_v59 = vadd.f32 %v471_v23, %v10088_v40  ;;  %v6533_v51 = vpop.f32.mrb[57].mxu1  ;;  %6969 = vmatmul.mubr.f32.gmra.mrb[162].mxu1 %v10132_v7  ;;  %v10490_v40 = vpop.f32.mrb[50].mxu0  ;;  %7283 = vmatprep.mubr.msk.f32.mxu0 %vm9276_vm0, %v9975_v39 }
 0x19d   :  { %6971 = vmatprep.mubr.msk.f32.mxu1 %vm9276_vm0, %v9975_v39  ;;  %8512 = vmatpush3.bf16.msra.mxu1 %v8511_v28  ;;  %v6845_v20 = vpop.f32.mrb[51].mxu0  ;;  %v2128_v51 = vld [vmem:[%s12119_s0 + $0x4b] sm:$0xff] }
 0x19e   :  { %v10487_v27 = vadd.f32 %v10151_v18, %v472_v59  ;;  %8513 = vmatprep.subr.bf16.mxu1 %v12156_v14  ;;  %v2126_v18 = vld [vmem:[%s12119_s0 + $0x3b] sm:$0xff]  ;;  %v10504_v4 = vpop.f32.mrb[52].mxu0  ;;  %v2129_v20 = vld [vmem:[%s12119_s0 + $0x53] sm:$0xff] }
 0x19f   :  { %v476_v7 = vpop.f32.mrb[58].mxu1  ;;  %7284 = vmatmul.mubr.f32.gmra.mrb[158].mxu0 %v2126_v18 }
 0x1a0   :  { %v477_v30 = vadd.f32 %v476_v7, %v10105_v45  ;;  %v6536_v52 = vpop.f32.mrb[59].mxu1  ;;  %6972 = vmatmul.mubr.f32.gmra.mrb[164].mxu1 %v10147_v49  ;;  %v6848_v49 = vpop.f32.mrb[53].mxu0  ;;  %7286 = vmatprep.mubr.msk.f32.mxu0 %vm9276_vm0, %v9975_v39 }
 0x1a1   :  { %6974 = vmatprep.mubr.msk.f32.mxu1 %vm9276_vm0, %v9975_v39  ;;  %8515 = vmatpush3.bf16.msra.mxu1 %v8514_v35  ;;  %v10519_v23 = vpop.f32.mrb[54].mxu0 }
 0x1a2   :  { %v10502_v12 = vadd.f32 %v10166_v31, %v477_v30  ;;  %8540 = vmatprep.subr.bf16.mxu1 %v12156_v14  ;;  %v2127_v31 = vld [vmem:[%s12119_s0 + $0x43] sm:$0xff] }
 0x1a3   :  { %v481_v45 = vpop.f32.mrb[60].mxu1  ;;  %7287 = vmatmul.mubr.f32.gmra.mrb[160].mxu0 %v2127_v31  ;;  %v2131_v31 = vld [vmem:[%s12119_s0 + $0x63] sm:$0xff] }
 0x1a4   :  { %v482_v28 = vadd.f32 %v481_v45, %v10122_v6  ;;  %v6539_v38 = vpop.f32.mrb[61].mxu1  ;;  %6975 = vmatmul.mubr.f32.gmra.mrb[166].mxu1 %v10162_v36  ;;  %v6851_v6 = vpop.f32.mrb[55].mxu0  ;;  %7289 = vmatprep.mubr.msk.f32.mxu0 %vm9276_vm0, %v9975_v39  ;;  %v2130_v45 = vld [vmem:[%s12119_s0 + $0x5b] sm:$0xff] }
 0x1a5   :  { %6977 = vmatprep.mubr.msk.f32.mxu1 %vm9276_vm0, %v9975_v39 }
 0x1a6   :  { %v10517_v60 = vadd.f32 %v10182_v41, %v482_v28  ;;  %v10530_v41 = vpop.f32.mrb[56].mxu0 }
 0x1a7   :  { %v486_v32 = vpop.f32.mrb[62].mxu1  ;;  %7290 = vmatmul.mubr.f32.gmra.mrb[162].mxu0 %v2128_v51 }
 0x1a8   :  { %v487_v36 = vadd.f32 %v486_v32, %v10138_v11  ;;  %v6542_v59 = vpop.f32.mrb[63].mxu1  ;;  %6978 = vmatmul.mubr.f32.gmra.mrb[168].mxu1 %v10178_v37  ;;  %v6854_v11 = vpop.f32.mrb[57].mxu0  ;;  %7292 = vmatprep.mubr.msk.f32.mxu0 %vm9276_vm0, %v9975_v39 }
 0x1a9   :  { %6980 = vmatprep.mubr.msk.f32.mxu1 %vm9276_vm0, %v9975_v39  ;;  %v2132_v59 = vld [vmem:[%s12119_s0 + $0x6b] sm:$0xff] }
 0x1aa   :  { %v10533_v9 = vadd.f32 %v10197_v48, %v487_v36  ;;  %v10544_v48 = vpop.f32.mrb[58].mxu0 }
 0x1ab   :  { %v491_v35 = vpop.f32.mrb[64].mxu1  ;;  %7293 = vmatmul.mubr.f32.gmra.mrb[164].mxu0 %v2129_v20 }
 0x1ac   :  { %v492_v37 = vadd.f32 %v491_v35, %v10153_v22  ;;  %v6545_v7 = vpop.f32.mrb[65].mxu1  ;;  %6981 = vmatmul.mubr.f32.gmra.mrb[170].mxu1 %v10193_v58  ;;  %v6857_v22 = vpop.f32.mrb[59].mxu0  ;;  %7295 = vmatprep.mubr.msk.f32.mxu0 %vm9276_vm0, %v9975_v39 }
 0x1ad   :  { %6983 = vmatprep.mubr.msk.f32.mxu1 %vm9276_vm0, %v9975_v39  ;;  %v10607_v22 = vld [vmem:[#allocation2] sm:$0xff] }
 0x1ae   :  { %v10547_v30 = vadd.f32 %v10212_v61, %v492_v37  ;;  %v10558_v61 = vpop.f32.mrb[60].mxu0  ;;  %v2133_v37 = vld [vmem:[%s12119_s0 + $0x73] sm:$0xff] }
 0x1af   :  { %v496_v52 = vpop.f32.mrb[66].mxu1  ;;  %7296 = vmatmul.mubr.f32.gmra.mrb[166].mxu0 %v2130_v45 }
 0x1b0   :  { %v497_v58 = vadd.f32 %v496_v52, %v10168_v33  ;;  %v6548_v18 = vpop.f32.mrb[67].mxu1  ;;  %6984 = vmatmul.mubr.f32.gmra.mrb[172].mxu1 %v10208_v57  ;;  %v6860_v33 = vpop.f32.mrb[61].mxu0  ;;  %7298 = vmatprep.mubr.msk.f32.mxu0 %vm9276_vm0, %v9975_v39 }
 0x1b1   :  { %6986 = vmatprep.mubr.msk.f32.mxu1 %vm9276_vm0, %v9975_v39 }
 0x1b2   :  { %v10561_v49 = vadd.f32 %v10228_v47, %v497_v58  ;;  %v10572_v47 = vpop.f32.mrb[62].mxu0 }
 0x1b3   :  { %v501_v28 = vpop.f32.mrb[68].mxu1  ;;  %7299 = vmatmul.mubr.f32.gmra.mrb[168].mxu0 %v2131_v31  ;;  %v2136_v31 = vld [vmem:[%s12119_s0 + $0x8b] sm:$0xff] }
 0x1b4   :  { %v502_v57 = vadd.f32 %v501_v28, %v10184_v0  ;;  %v6551_v38 = vpop.f32.mrb[69].mxu1  ;;  %6987 = vmatmul.mubr.f32.gmra.mrb[174].mxu1 %v10224_v3  ;;  %v6863_v0 = vpop.f32.mrb[63].mxu0  ;;  %7301 = vmatprep.mubr.msk.f32.mxu0 %vm9276_vm0, %v9975_v39  ;;  %v2135_v28 = vld [vmem:[%s12119_s0 + $0x83] sm:$0xff] }
 0x1b5   :  { %6989 = vmatprep.mubr.msk.f32.mxu1 %vm9276_vm0, %v9975_v39  ;;  %v10589_v51 = vpop.f32.mrb[64].mxu0 }
 0x1b6   :  { %v10575_v32 = vadd.f32 %v10243_v21, %v502_v57  ;;  %v6866_v11 = vpop.f32.mrb[65].mxu0 }
 0x1b7   :  { %v506_v6 = vpop.f32.mrb[70].mxu1  ;;  %7302 = vmatmul.mubr.f32.gmra.mrb[170].mxu0 %v2132_v59  ;;  %v10603_v7 = vpop.f32.mrb[66].mxu0 }
 0x1b8   :  { %v6554_v36 = vpop.f32.mrb[71].mxu1  ;;  %v507_v3 = vadd.f32 %v506_v6, %v10199_v50  ;;  %6990 = vmatmul.mubr.f32.gmra.mrb[176].mxu1 %v10239_v8  ;;  %7304 = vmatprep.mubr.msk.f32.mxu0 %vm9276_vm0, %v9975_v39  ;;  %v6869_v52 = vpop.f32.mrb[67].mxu0 }
 0x1b9   :  { %6992 = vmatprep.mubr.msk.f32.mxu1 %vm9276_vm0, %v9975_v39  ;;  %v10619_v58 = vpop.f32.mrb[68].mxu0 }
 0x1ba   :  { %v10587_v21 = vadd.f32 %v10258_v42, %v507_v3  ;;  %v6872_v18 = vpop.f32.mrb[69].mxu0  ;;  %v2137_v3 = vld [vmem:[%s12119_s0 + $0x93] sm:$0xff] }
 0x1bb   :  { %v511_v35 = vpop.f32.mrb[72].mxu1  ;;  %7305 = vmatmul.mubr.f32.gmra.mrb[172].mxu0 %v2133_v37  ;;  %v2139_v18 = vld [vmem:[%s12119_s0 + $0xa3] sm:$0xff] }
 0x1bc   :  { %v6557_v50 = vpop.f32.mrb[73].mxu1  ;;  %v512_v8 = vadd.f32 %v511_v35, %v10214_v62  ;;  %6993 = vmatmul.mubr.f32.gmra.mrb[178].mxu1 %v10254_v34  ;;  %7307 = vmatprep.mubr.msk.f32.mxu0 %vm9276_vm0, %v10607_v22 }
 0x1bd   :  { %6995 = vmatprep.mubr.msk.f32.mxu1 %vm9276_vm0, %v9975_v39  ;;  %v2134_v39 = vld [vmem:[%s12119_s0 + $0x7b] sm:$0xff]  ;;  %v10633_v33 = vpop.f32.mrb[70].mxu0 }
 0x1be   :  { %v10601_v42 = vadd.f32 %v10274_v2, %v512_v8  ;;  %v6875_v38 = vpop.f32.mrb[71].mxu0  ;;  %v12162_v50 = vld [vmem:[#allocation12_spill] sm:$0xff] }
 0x1bf   :  { %v516_v20 = vpop.f32.mrb[74].mxu1  ;;  %7308 = vmatmul.mubr.f32.gmra.mrb[174].mxu0 %v2134_v39  ;;  %v2138_v8 = vld [vmem:[%s12119_s0 + $0x9b] sm:$0xff] }
 0x1c0   :  { %v6560_v62 = vpop.f32.mrb[75].mxu1  ;;  %v517_v34 = vadd.f32 %v516_v20, %v10230_v24  ;;  %6996 = vmatmul.mubr.f32.gmra.mrb[180].mxu1 %v10270_v53  ;;  %7310 = vmatprep.mubr.msk.f32.mxu0 %vm9276_vm0, %v10607_v22 }
 0x1c1   :  { %6998 = vmatprep.mubr.msk.f32.mxu1 %vm9276_vm0, %v10607_v22  ;;  %v10647_v6 = vpop.f32.mrb[72].mxu0 }
 0x1c2   :  { %v10617_v2 = vadd.f32 %v10290_v54, %v517_v34  ;;  %v6878_v36 = vpop.f32.mrb[73].mxu0  ;;  %v12164_v34 = vld [vmem:[#allocation10_spill] sm:$0xff] }
 0x1c3   :  { %v521_v24 = vpop.f32.mrb[76].mxu1  ;;  %7311 = vmatmul.mubr.f32.gmra.mrb[176].mxu0 %v2135_v28  ;;  %v2140_v36 = vld [vmem:[%s12119_s0 + $0xab] sm:$0xff] }
 0x1c4   :  { %v6563_v53 = vpop.f32.mrb[77].mxu1  ;;  %v522_v45 = vadd.f32 %v521_v24, %v10245_v25  ;;  %6999 = vmatmul.mubr.f32.gmra.mrb[182].mxu1 %v10286_v15  ;;  %7313 = vmatprep.mubr.msk.f32.mxu0 %vm9276_vm0, %v10607_v22  ;;  %v12165_v24 = vld [vmem:[#allocation14_spill] sm:$0xff] }
 0x1c5   :  { %7001 = vmatprep.mubr.msk.f32.mxu1 %vm9276_vm0, %v10607_v22  ;;  %v10661_v59 = vpop.f32.mrb[74].mxu0  ;;  %v12166_v53 = vld [vmem:[#allocation18_spill] sm:$0xff] }
 0x1c6   :  { %v10631_v54 = vadd.f32 %v10305_v56, %v522_v45  ;;  %v6881_v11 = vpop.f32.mrb[75].mxu0 }
 0x1c7   :  { %v526_v57 = vpop.f32.mrb[78].mxu1  ;;  %7314 = vmatmul.mubr.f32.gmra.mrb[178].mxu0 %v2136_v31 }
 0x1c8   :  { %v6566_v25 = vpop.f32.mrb[79].mxu1  ;;  %v527_v15 = vadd.f32 %v526_v57, %v10260_v44  ;;  %7002 = vmatmul.mubr.f32.gmra.mrb[184].mxu1 %v10301_v17  ;;  %7316 = vmatprep.mubr.msk.f32.mxu0 %vm9276_vm0, %v10607_v22 }
 0x1c9   :  { %7004 = vmatprep.mubr.msk.f32.mxu1 %vm9276_vm0, %v10607_v22  ;;  %v10675_v20 = vpop.f32.mrb[76].mxu0 }
 0x1ca   :  { %v10645_v56 = vadd.f32 %v10320_v63, %v527_v15  ;;  %v6884_v62 = vpop.f32.mrb[77].mxu0  ;;  %v12167_v15 = vld [vmem:[#allocation11_spill] sm:$0xff] }
 0x1cb   :  { %v531_v0 = vpop.f32.mrb[80].mxu1  ;;  %7317 = vmatmul.mubr.f32.gmra.mrb[180].mxu0 %v2137_v3 }
 0x1cc   :  { %v6569_v44 = vpop.f32.mrb[81].mxu1  ;;  %v532_v17 = vadd.f32 %v531_v0, %v10276_v5  ;;  %7005 = vmatmul.mubr.f32.gmra.mrb[186].mxu1 %v10316_v19  ;;  %7319 = vmatprep.mubr.msk.f32.mxu0 %vm9276_vm0, %v10607_v22  ;;  %v12168_v0 = vld [vmem:[#allocation17_spill] sm:$0xff] }
 0x1cd   :  { %7007 = vmatprep.mubr.msk.f32.mxu1 %vm9276_vm0, %v10607_v22  ;;  %v10689_v28 = vpop.f32.mrb[78].mxu0  ;;  %v12169_v44 = vld [vmem:[#allocation21_spill] sm:$0xff] }
 0x1ce   :  { %v10659_v63 = vadd.f32 %v10335_v10, %v532_v17  ;;  %v12163_v10 = vld [vmem:[#allocation15_spill] sm:$0xff]  ;;  %v6887_v38 = vpop.f32.mrb[79].mxu0 }
 0x1cf   :  { %v536_v35 = vpop.f32.mrb[82].mxu1  ;;  %7320 = vmatmul.mubr.f32.gmra.mrb[182].mxu0 %v2138_v8  ;;  %v12171_v8 = vld [vmem:[#allocation20_spill] sm:$0xff] }
 0x1d0   :  { %v6572_v5 = vpop.f32.mrb[83].mxu1  ;;  %v537_v19 = vadd.f32 %v536_v35, %v10292_v26  ;;  %7008 = vmatmul.mubr.f32.gmra.mrb[188].mxu1 %v12162_v50  ;;  %7322 = vmatprep.mubr.msk.f32.mxu0 %vm9276_vm0, %v10607_v22 }
 0x1d1   :  { %7010 = vmatprep.mubr.msk.f32.mxu1 %vm9276_vm0, %v10607_v22  ;;  %v10703_v3 = vpop.f32.mrb[80].mxu0 }
 0x1d2   :  { %v10673_v37 = vadd.f32 %v12163_v10, %v537_v19  ;;  %v6890_v11 = vpop.f32.mrb[81].mxu0  ;;  %v12170_v19 = vld [vmem:[#allocation13_spill] sm:$0xff]  ;;  %v2141_v10 = vld [vmem:[%s12119_s0 + $0xb3] sm:$0xff] }
 0x1d3   :  { %v541_v52 = vpop.f32.mrb[84].mxu1  ;;  %7323 = vmatmul.mubr.f32.gmra.mrb[184].mxu0 %v2139_v18  ;;  %v2143_v11 = vld [vmem:[%s12119_s0 + $0xc3] sm:$0xff] }
 0x1d4   :  { %v6575_v26 = vpop.f32.mrb[85].mxu1  ;;  %v542_v39 = vadd.f32 %v541_v52, %v12164_v34  ;;  %7011 = vmatmul.mubr.f32.gmra.mrb[190].mxu1 %v12165_v24  ;;  %7325 = vmatprep.mubr.msk.f32.mxu0 %vm9276_vm0, %v10607_v22  ;;  %v12172_v24 = vld [vmem:[#allocation16_spill] sm:$0xff] }
 0x1d5   :  { %7013 = vmatprep.mubr.msk.f32.mxu1 %vm9276_vm0, %v10607_v22  ;;  %v10717_v62 = vpop.f32.mrb[82].mxu0 }
 0x1d6   :  { %v10687_v45 = vadd.f32 %v12166_v53, %v542_v39  ;;  %v6893_v34 = vpop.f32.mrb[83].mxu0  ;;  %v12173_v53 = vld [vmem:[#allocation23_spill] sm:$0xff] }
 0x1d7   :  { %v546_v57 = vpop.f32.mrb[86].mxu1  ;;  %7326 = vmatmul.mubr.f32.gmra.mrb[186].mxu0 %v2140_v36  ;;  %v12175_v36 = vld [vmem:[#allocation19_spill] sm:$0xff] }
 0x1d8   :  { %v6578_v25 = vpop.f32.mrb[87].mxu1  ;;  %v547_v31 = vadd.f32 %v546_v57, %v12167_v15  ;;  %7014 = vmatmul.mubr.f32.gmra.mrb[192].mxu1 %v12168_v0  ;;  %7328 = vmatprep.mubr.msk.f32.mxu0 %vm9276_vm0, %v10607_v22  ;;  %v2142_v57 = vld [vmem:[%s12119_s0 + $0xbb] sm:$0xff] }
 0x1d9   :  { %7016 = vmatprep.mubr.msk.f32.mxu1 %vm9276_vm0, %v10607_v22  ;;  %v10731_v25 = vpop.f32.mrb[84].mxu0 }
 0x1da   :  { %v10701_v17 = vadd.f32 %v12169_v44, %v547_v31  ;;  %v6896_v31 = vpop.f32.mrb[85].mxu0 }
 0x1db   :  { %v551_v35 = vpop.f32.mrb[88].mxu1  ;;  %7329 = vmatmul.mubr.f32.gmra.mrb[188].mxu0 %v2141_v10 }
 0x1dc   :  { %v6581_v5 = vpop.f32.mrb[89].mxu1  ;;  %v552_v50 = vadd.f32 %v551_v35, %v12170_v19  ;;  %7017 = vmatmul.mubr.f32.gmra.mrb[194].mxu1 %v12171_v8  ;;  %7331 = vmatprep.mubr.msk.f32.mxu0 %vm9276_vm0, %v10607_v22  ;;  %v12176_v35 = vld [vmem:[#allocation25_spill] sm:$0xff]  ;;  %v12177_v19 = vld [vmem:[#allocation28_spill] sm:$0xff] }
 0x1dd   :  { %7019 = vmatprep.mubr.msk.f32.mxu1 %vm9276_vm0, %v10607_v22  ;;  %v1865_v5 = vld [vmem:[%s12119_s0 + $0x1a] sm:$0xff]  ;;  %v10748_v8 = vpop.f32.mrb[86].mxu0 }
 0x1de   :  { %v10715_v52 = vadd.f32 %v10400_v29, %v552_v50  ;;  %v12174_v29 = vld [vmem:[#allocation26_spill] sm:$0xff] }
 0x1df   :  { %v556_v26 = vpop.f32.mrb[90].mxu1  ;;  %7332 = vmatmul.mubr.f32.gmra.mrb[190].mxu0 %v2142_v57 }
 0x1e0   :  { %v6584_v39 = vpop.f32.mrb[91].mxu1  ;;  %v557_v18 = vadd.f32 %v556_v26, %v12172_v24  ;;  %7020 = vmatmul.mubr.f32.gmra.mrb[196].mxu1 %v12173_v53  ;;  %7334 = vmatprep.mubr.msk.f32.mxu0 %vm9276_vm0, %v10607_v22  ;;  %v6899_v26 = vpop.f32.mrb[87].mxu0  ;;  %v1866_v53 = vld [vmem:[%s12119_s0 + $0x22] sm:$0xff] }
 0x1e1   :  { %7022 = vmatprep.mubr.msk.f32.mxu1 %vm9276_vm0, %v10607_v22  ;;  %v12178_v39 = vld [vmem:[#allocation22_spill] sm:$0xff] }
 0x1e2   :  { %v10729_v38 = vadd.f32 %v12174_v29, %v557_v18  ;;  %v2144_v18 = vld [vmem:[%s12119_s0 + $0xcb] sm:$0xff]  ;;  %v10764_v29 = vpop.f32.mrb[88].mxu0 }
 0x1e3   :  { %v561_v15 = vpop.f32.mrb[92].mxu1  ;;  %7335 = vmatmul.mubr.f32.gmra.mrb[192].mxu0 %v2143_v11  ;;  %v6902_v31 = vpop.f32.mrb[89].mxu0 }
 0x1e4   :  { %v6587_v0 = vpop.f32.mrb[93].mxu1  ;;  %v562_v44 = vadd.f32 %v561_v15, %v12175_v36  ;;  %7023 = vmatmul.mubr.f32.gmra.mrb[198].mxu1 %v12176_v35  ;;  %7337 = vmatprep.mubr.msk.f32.mxu0 %vm9276_vm0, %v10607_v22  ;;  %v12179_v36 = vld [vmem:[#allocation24_spill] sm:$0xff] }
 0x1e5   :  { %7164 = vmatprep.mubr.msk.f32.mxu1 %vm9276_vm0, %v10607_v22  ;;  %v2145_v35 = vld [vmem:[%s12119_s0 + $0xd3] sm:$0xff] }
 0x1e6   :  { %v10746_v50 = vadd.f32 %v12177_v19, %v562_v44 }
 0x1e7   :  { %v566_v10 = vpop.f32.mrb[94].mxu1  ;;  %7338 = vmatmul.mubr.f32.gmra.mrb[194].mxu0 %v2144_v18 }
 0x1e8   :  { %v6590_v34 = vpop.f32.mrb[95].mxu1  ;;  %v567_v24 = vadd.f32 %v566_v10, %v12178_v39  ;;  %7165 = vmatmul.mubr.f32.vlgmr.msra.gmra.mrb[200].mxu1 %v1865_v5  ;;  %7340 = vmatprep.mubr.msk.f32.mxu0 %vm9276_vm0, %v10607_v22  ;;  %v10780_v5 = vpop.f32.mrb[90].mxu0 }
 0x1e9   :  { %7167 = vmatprep.mubr.msk.f32.mxu1 %vm9276_vm0, %v10607_v22  ;;  %v6905_v10 = vpop.f32.mrb[91].mxu0  ;;  %v12180_v34 = vld [vmem:[#allocation27_spill] sm:$0xff] }
 0x1ea   :  { %v10762_v57 = vadd.f32 %v10445_v46, %v567_v24  ;;  %v1867_v46 = vld [vmem:[%s12119_s0 + $0x2a] sm:$0xff]  ;;  %v2146_v24 = vld [vmem:[%s12119_s0 + $0xdb] sm:$0xff] }
 0x1eb   :  { %v571_v15 = vpop.f32.mrb[96].mxu1  ;;  %7341 = vmatmul.mubr.f32.gmra.mrb[196].mxu0 %v2145_v35 }
 0x1ec   :  { %v6593_v0 = vpop.f32.mrb[97].mxu1  ;;  %v572_v44 = vadd.f32 %v571_v15, %v12179_v36  ;;  %7168 = vmatmul.mubr.f32.gmra.mrb[202].mxu1 %v1866_v53  ;;  %7343 = vmatprep.mubr.msk.f32.mxu0 %vm9276_vm0, %v10607_v22  ;;  %v10796_v53 = vpop.f32.mrb[92].mxu0 }
 0x1ed   :  { %7170 = vmatprep.mubr.msk.f32.mxu1 %vm9276_vm0, %v10607_v22  ;;  %v6908_v31 = vpop.f32.mrb[93].mxu0 }
 0x1ee   :  { %v10778_v11 = vadd.f32 %v10460_v55, %v572_v44  ;;  %v1868_v55 = vld [vmem:[%s12119_s0 + $0x32] sm:$0xff]  ;;  %v10809_v35 = vpop.f32.mrb[94].mxu0 }
 0x1ef   :  { %v576_v19 = vpop.f32.mrb[98].mxu1  ;;  %7344 = vmatmul.mubr.f32.gmra.mrb[198].mxu0 %v2146_v24 }
 0x1f0   :  { %v6596_v26 = vpop.f32.mrb[99].mxu1  ;;  %v577_v39 = vadd.f32 %v576_v19, %v12180_v34  ;;  %7171 = vmatmul.mubr.f32.gmra.mrb[204].mxu1 %v1867_v46  ;;  %7496 = vmatprep.mubr.msk.f32.mxu0 %vm9276_vm0, %v10607_v22  ;;  %v6911_v19 = vpop.f32.mrb[95].mxu0 }
 0x1f1   :  { %7173 = vmatprep.mubr.msk.f32.mxu1 %vm9276_vm0, %v10607_v22  ;;  %v1870_v26 = vld [vmem:[%s12119_s0 + $0x42] sm:$0xff] }
 0x1f2   :  { %v10794_v18 = vadd.f32 %v10475_v16, %v577_v39  ;;  %v1869_v16 = vld [vmem:[%s12119_s0 + $0x3a] sm:$0xff] }
 0x1f3   :  { %v945_v15 = vpop.f32.mrb[100].mxu1 }
 0x1f4   :  { %v6738_v0 = vpop.f32.mrb[101].mxu1  ;;  %v1069_v36 = vadd.f32 %v945_v15, %v10442_v43  ;;  %7174 = vmatmul.mubr.f32.gmra.mrb[206].mxu1 %v1868_v55 }
 0x1f5   :  { %7176 = vmatprep.mubr.msk.f32.mxu1 %vm9276_vm0, %v10607_v22 }
 0x1f6   :  { %v10807_v44 = vadd.f32 %v10490_v40, %v1069_v36  ;;  %v10820_v40 = vpop.f32.mrb[96].mxu0 }
 0x1f7   :  { %v950_v46 = vpop.f32.mrb[102].mxu1  ;;  %v6914_v24 = vpop.f32.mrb[97].mxu0 }
 0x1f8   :  { %v6741_v10 = vpop.f32.mrb[103].mxu1  ;;  %v1070_v43 = vadd.f32 %v950_v46, %v10457_v1  ;;  %7177 = vmatmul.mubr.f32.gmra.mrb[208].mxu1 %v1869_v16  ;;  %v1871_v1 = vld [vmem:[%s12119_s0 + $0x4a] sm:$0xff] }
 0x1f9   :  { %7179 = vmatprep.mubr.msk.f32.mxu1 %vm9276_vm0, %v10607_v22 }
 0x1fa   :  { %v10818_v34 = vadd.f32 %v10504_v4, %v1070_v43  ;;  %v10831_v4 = vpop.f32.mrb[98].mxu0 }
 0x1fb   :  { %v955_v39 = vpop.f32.mrb[104].mxu1  ;;  %v6917_v36 = vpop.f32.mrb[99].mxu0 }
 0x1fc   :  { %v6744_v55 = vpop.f32.mrb[105].mxu1  ;;  %v1071_v15 = vadd.f32 %v955_v39, %v10472_v13  ;;  %7180 = vmatmul.mubr.f32.gmra.mrb[210].mxu1 %v1870_v26  ;;  %v1872_v13 = vld [vmem:[%s12119_s0 + $0x52] sm:$0xff] }
 0x1fd   :  { %7182 = vmatprep.mubr.msk.f32.mxu1 %vm9276_vm0, %v10607_v22 }
 0x1fe   :  { %v10829_v31 = vadd.f32 %v10519_v23, %v1071_v15  ;;  %v10842_v23 = vpop.f32.mrb[100].mxu0 }
 0x1ff   :  { %v960_v0 = vpop.f32.mrb[106].mxu1  ;;  %v7059_v43 = vpop.f32.mrb[101].mxu0 }
 0x200   :  { %v6747_v16 = vpop.f32.mrb[107].mxu1  ;;  %v1072_v46 = vadd.f32 %v960_v0, %v10487_v27  ;;  %7183 = vmatmul.mubr.f32.gmra.mrb[212].mxu1 %v1871_v1  ;;  %v1873_v27 = vld [vmem:[%s12119_s0 + $0x5a] sm:$0xff] }
 0x201   :  { %7185 = vmatprep.mubr.msk.f32.mxu1 %vm9276_vm0, %v10607_v22 }
 0x202   :  { %v10840_v19 = vadd.f32 %v10530_v41, %v1072_v46  ;;  %v10853_v41 = vpop.f32.mrb[102].mxu0 }
 0x203   :  { %v965_v10 = vpop.f32.mrb[108].mxu1  ;;  %v7062_v15 = vpop.f32.mrb[103].mxu0 }
 0x204   :  { %v6750_v26 = vpop.f32.mrb[109].mxu1  ;;  %v1073_v39 = vadd.f32 %v965_v10, %v10502_v12  ;;  %7186 = vmatmul.mubr.f32.gmra.mrb[214].mxu1 %v1872_v13  ;;  %v1874_v12 = vld [vmem:[%s12119_s0 + $0x62] sm:$0xff] }
 0x205   :  { %7188 = vmatprep.mubr.msk.f32.mxu1 %vm9276_vm0, %v10607_v22 }
 0x206   :  { %v10851_v24 = vadd.f32 %v10544_v48, %v1073_v39  ;;  %v10864_v48 = vpop.f32.mrb[104].mxu0 }
 0x207   :  { %v970_v55 = vpop.f32.mrb[110].mxu1  ;;  %v7065_v46 = vpop.f32.mrb[105].mxu0 }
 0x208   :  { %v6753_v1 = vpop.f32.mrb[111].mxu1  ;;  %v1074_v0 = vadd.f32 %v970_v55, %v10517_v60  ;;  %7189 = vmatmul.mubr.f32.gmra.mrb[216].mxu1 %v1873_v27  ;;  %v1875_v60 = vld [vmem:[%s12119_s0 + $0x6a] sm:$0xff] }
 0x209   :  { %7191 = vmatprep.mubr.msk.f32.mxu1 %vm9276_vm0, %v10607_v22 }
 0x20a   :  { %v10862_v36 = vadd.f32 %v10558_v61, %v1074_v0  ;;  %v10875_v61 = vpop.f32.mrb[106].mxu0 }
 0x20b   :  { %v975_v16 = vpop.f32.mrb[112].mxu1  ;;  %v7068_v39 = vpop.f32.mrb[107].mxu0 }
 0x20c   :  { %v1075_v13 = vadd.f32 %v975_v16, %v10533_v9  ;;  %v6756_v10 = vpop.f32.mrb[113].mxu1  ;;  %7192 = vmatmul.mubr.f32.gmra.mrb[218].mxu1 %v1874_v12  ;;  %v1876_v9 = vld [vmem:[%s12119_s0 + $0x72] sm:$0xff] }
 0x20d   :  { %7194 = vmatprep.mubr.msk.f32.mxu1 %vm9276_vm0, %v10607_v22 }
 0x20e   :  { %v10873_v43 = vadd.f32 %v10572_v47, %v1075_v13  ;;  %v10886_v47 = vpop.f32.mrb[108].mxu0 }
 0x20f   :  { %v980_v26 = vpop.f32.mrb[114].mxu1  ;;  %v7071_v0 = vpop.f32.mrb[109].mxu0 }
 0x210   :  { %v1076_v27 = vadd.f32 %v980_v26, %v10547_v30  ;;  %v6759_v55 = vpop.f32.mrb[115].mxu1  ;;  %7195 = vmatmul.mubr.f32.gmra.mrb[220].mxu1 %v1875_v60  ;;  %v1877_v30 = vld [vmem:[%s12119_s0 + $0x7a] sm:$0xff] }
 0x211   :  { %7197 = vmatprep.mubr.msk.f32.mxu1 %vm9276_vm0, %v10607_v22 }
 0x212   :  { %v10884_v15 = vadd.f32 %v10589_v51, %v1076_v27  ;;  %v10897_v51 = vpop.f32.mrb[110].mxu0 }
 0x213   :  { %v985_v1 = vpop.f32.mrb[116].mxu1  ;;  %v7074_v10 = vpop.f32.mrb[111].mxu0 }
 0x214   :  { %v1077_v12 = vadd.f32 %v985_v1, %v10561_v49  ;;  %v6762_v16 = vpop.f32.mrb[117].mxu1  ;;  %7198 = vmatmul.mubr.f32.gmra.mrb[222].mxu1 %v1876_v9  ;;  %v1878_v49 = vld [vmem:[%s12119_s0 + $0x82] sm:$0xff] }
 0x215   :  { %7200 = vmatprep.mubr.msk.f32.mxu1 %vm9276_vm0, %v10607_v22 }
 0x216   :  { %v10895_v46 = vadd.f32 %v10603_v7, %v1077_v12  ;;  %v10908_v7 = vpop.f32.mrb[112].mxu0 }
 0x217   :  { %v990_v13 = vpop.f32.mrb[118].mxu1  ;;  %v7077_v55 = vpop.f32.mrb[113].mxu0 }
 0x218   :  { %v1078_v60 = vadd.f32 %v990_v13, %v10575_v32  ;;  %v6765_v26 = vpop.f32.mrb[119].mxu1  ;;  %7201 = vmatmul.mubr.f32.gmra.mrb[224].mxu1 %v1877_v30  ;;  %v1879_v32 = vld [vmem:[%s12119_s0 + $0x8a] sm:$0xff] }
 0x219   :  { %7203 = vmatprep.mubr.msk.f32.mxu1 %vm9276_vm0, %v10607_v22 }
 0x21a   :  { %v10906_v39 = vadd.f32 %v10619_v58, %v1078_v60  ;;  %v10919_v58 = vpop.f32.mrb[114].mxu0 }
 0x21b   :  { %v995_v27 = vpop.f32.mrb[120].mxu1  ;;  %v7080_v16 = vpop.f32.mrb[115].mxu0 }
 0x21c   :  { %v1079_v9 = vadd.f32 %v995_v27, %v10587_v21  ;;  %v6768_v1 = vpop.f32.mrb[121].mxu1  ;;  %7204 = vmatmul.mubr.f32.gmra.mrb[226].mxu1 %v1878_v49  ;;  %v1880_v21 = vld [vmem:[%s12119_s0 + $0x92] sm:$0xff] }
 0x21d   :  { %7206 = vmatprep.mubr.msk.f32.mxu1 %vm9276_vm0, %v10607_v22 }
 0x21e   :  { %v10917_v0 = vadd.f32 %v10633_v33, %v1079_v9  ;;  %v10930_v33 = vpop.f32.mrb[116].mxu0 }
 0x21f   :  { %v1000_v12 = vpop.f32.mrb[122].mxu1  ;;  %v7083_v26 = vpop.f32.mrb[117].mxu0 }
 0x220   :  { %v1080_v30 = vadd.f32 %v1000_v12, %v10601_v42  ;;  %v6771_v13 = vpop.f32.mrb[123].mxu1  ;;  %7207 = vmatmul.mubr.f32.gmra.mrb[228].mxu1 %v1879_v32  ;;  %v1881_v42 = vld [vmem:[%s12119_s0 + $0x9a] sm:$0xff] }
 0x221   :  { %7209 = vmatprep.mubr.msk.f32.mxu1 %vm9276_vm0, %v10607_v22 }
 0x222   :  { %v10928_v10 = vadd.f32 %v10647_v6, %v1080_v30  ;;  %v10941_v6 = vpop.f32.mrb[118].mxu0 }
 0x223   :  { %v1005_v60 = vpop.f32.mrb[124].mxu1  ;;  %v7086_v1 = vpop.f32.mrb[119].mxu0 }
 0x224   :  { %v1081_v49 = vadd.f32 %v1005_v60, %v10617_v2  ;;  %v6774_v27 = vpop.f32.mrb[125].mxu1  ;;  %7210 = vmatmul.mubr.f32.gmra.mrb[230].mxu1 %v1880_v21  ;;  %v1882_v2 = vld [vmem:[%s12119_s0 + $0xa2] sm:$0xff] }
 0x225   :  { %7212 = vmatprep.mubr.msk.f32.mxu1 %vm9276_vm0, %v10607_v22 }
 0x226   :  { %v10939_v55 = vadd.f32 %v10661_v59, %v1081_v49  ;;  %v10952_v59 = vpop.f32.mrb[120].mxu0 }
 0x227   :  { %v1010_v9 = vpop.f32.mrb[126].mxu1  ;;  %v7089_v13 = vpop.f32.mrb[121].mxu0 }
 0x228   :  { %v1082_v32 = vadd.f32 %v1010_v9, %v10631_v54  ;;  %v6777_v12 = vpop.f32.mrb[127].mxu1  ;;  %7213 = vmatmul.mubr.f32.gmra.mrb[232].mxu1 %v1881_v42  ;;  %v1883_v54 = vld [vmem:[%s12119_s0 + $0xaa] sm:$0xff] }
 0x229   :  { %7215 = vmatprep.mubr.msk.f32.mxu1 %vm9276_vm0, %v10607_v22 }
 0x22a   :  { %v10950_v16 = vadd.f32 %v10675_v20, %v1082_v32  ;;  %v10963_v20 = vpop.f32.mrb[122].mxu0 }
 0x22b   :  { %v1015_v30 = vpop.f32.mrb[128].mxu1  ;;  %v7092_v27 = vpop.f32.mrb[123].mxu0 }
 0x22c   :  { %v1083_v21 = vadd.f32 %v1015_v30, %v10645_v56  ;;  %v6780_v60 = vpop.f32.mrb[129].mxu1  ;;  %7216 = vmatmul.mubr.f32.gmra.mrb[234].mxu1 %v1882_v2  ;;  %v1884_v56 = vld [vmem:[%s12119_s0 + $0xb2] sm:$0xff] }
 0x22d   :  { %7218 = vmatprep.mubr.msk.f32.mxu1 %vm9276_vm0, %v10607_v22 }
 0x22e   :  { %v10961_v26 = vadd.f32 %v10689_v28, %v1083_v21  ;;  %v10974_v28 = vpop.f32.mrb[124].mxu0 }
 0x22f   :  { %v1020_v49 = vpop.f32.mrb[130].mxu1  ;;  %v7095_v12 = vpop.f32.mrb[125].mxu0 }
 0x230   :  { %v1084_v42 = vadd.f32 %v1020_v49, %v10659_v63  ;;  %v6783_v9 = vpop.f32.mrb[131].mxu1  ;;  %7219 = vmatmul.mubr.f32.gmra.mrb[236].mxu1 %v1883_v54  ;;  %v1885_v63 = vld [vmem:[%s12119_s0 + $0xba] sm:$0xff] }
 0x231   :  { %7221 = vmatprep.mubr.msk.f32.mxu1 %vm9276_vm0, %v10607_v22 }
 0x232   :  { %v10972_v1 = vadd.f32 %v10703_v3, %v1084_v42  ;;  %v10985_v3 = vpop.f32.mrb[126].mxu0 }
 0x233   :  { %v1025_v32 = vpop.f32.mrb[132].mxu1  ;;  %v7098_v60 = vpop.f32.mrb[127].mxu0 }
 0x234   :  { %v1085_v2 = vadd.f32 %v1025_v32, %v10673_v37  ;;  %v6786_v30 = vpop.f32.mrb[133].mxu1  ;;  %7222 = vmatmul.mubr.f32.gmra.mrb[238].mxu1 %v1884_v56  ;;  %v1886_v37 = vld [vmem:[%s12119_s0 + $0xc2] sm:$0xff] }
 0x235   :  { %7224 = vmatprep.mubr.msk.f32.mxu1 %vm9276_vm0, %v10607_v22 }
 0x236   :  { %v10983_v13 = vadd.f32 %v10717_v62, %v1085_v2  ;;  %v10996_v62 = vpop.f32.mrb[128].mxu0 }
 0x237   :  { %v1030_v21 = vpop.f32.mrb[134].mxu1  ;;  %v7101_v9 = vpop.f32.mrb[129].mxu0 }
 0x238   :  { %v1086_v54 = vadd.f32 %v1030_v21, %v10687_v45  ;;  %v6789_v49 = vpop.f32.mrb[135].mxu1  ;;  %7225 = vmatmul.mubr.f32.gmra.mrb[240].mxu1 %v1885_v63  ;;  %v1887_v45 = vld [vmem:[%s12119_s0 + $0xca] sm:$0xff] }
 0x239   :  { %7227 = vmatprep.mubr.msk.f32.mxu1 %vm9276_vm0, %v10607_v22 }
 0x23a   :  { %v10994_v27 = vadd.f32 %v10731_v25, %v1086_v54  ;;  %v11007_v25 = vpop.f32.mrb[130].mxu0 }
 0x23b   :  { %v1035_v42 = vpop.f32.mrb[136].mxu1  ;;  %v7104_v30 = vpop.f32.mrb[131].mxu0 }
 0x23c   :  { %v1087_v56 = vadd.f32 %v1035_v42, %v10701_v17  ;;  %v6792_v32 = vpop.f32.mrb[137].mxu1  ;;  %7228 = vmatmul.mubr.f32.gmra.mrb[242].mxu1 %v1886_v37  ;;  %v1888_v17 = vld [vmem:[%s12119_s0 + $0xd2] sm:$0xff] }
 0x23d   :  { %7230 = vmatprep.mubr.msk.f32.mxu1 %vm9276_vm0, %v10607_v22 }
 0x23e   :  { %v11005_v12 = vadd.f32 %v10748_v8, %v1087_v56  ;;  %v11018_v8 = vpop.f32.mrb[132].mxu0 }
 0x23f   :  { %v1040_v2 = vpop.f32.mrb[138].mxu1  ;;  %v7107_v49 = vpop.f32.mrb[133].mxu0 }
 0x240   :  { %v1088_v63 = vadd.f32 %v1040_v2, %v10715_v52  ;;  %v6795_v21 = vpop.f32.mrb[139].mxu1  ;;  %7231 = vmatmul.mubr.f32.gmra.mrb[244].mxu1 %v1887_v45  ;;  %v1889_v52 = vld [vmem:[%s12119_s0 + $0xda] sm:$0xff] }
 0x241   :  { %7233 = vmatprep.mubr.msk.f32.mxu1 %vm9276_vm0, %v10607_v22 }
 0x242   :  { %v11016_v60 = vadd.f32 %v10764_v29, %v1088_v63  ;;  %v11029_v29 = vpop.f32.mrb[134].mxu0 }
 0x243   :  { %v1045_v54 = vpop.f32.mrb[140].mxu1  ;;  %v7110_v32 = vpop.f32.mrb[135].mxu0 }
 0x244   :  { %v1089_v37 = vadd.f32 %v1045_v54, %v10729_v38  ;;  %v6798_v42 = vpop.f32.mrb[141].mxu1  ;;  %7234 = vmatmul.mubr.f32.gmra.mrb[246].mxu1 %v1888_v17 }
 0x245   :  { %7236 = vmatprep.mubr.msk.f32.mxu1 %vm9276_vm0, %v10607_v22  ;;  %v11035_v30 = vpop.f32.mrb[136].mxu0 }
 0x246   :  { %v11027_v9 = vadd.f32 %v10780_v5, %v1089_v37  ;;  %v7113_v63 = vpop.f32.mrb[137].mxu0 }
 0x247   :  { %v1050_v56 = vpop.f32.mrb[142].mxu1 }
 0x248   :  { %v1090_v45 = vadd.f32 %v1050_v56, %v10746_v50  ;;  %v6801_v2 = vpop.f32.mrb[143].mxu1  ;;  %7237 = vmatmul.mubr.f32.gmra.mrb[248].mxu1 %v1889_v52 }
 0x249   :  { %v11041_v54 = vpop.f32.mrb[138].mxu0 }
 0x24a   :  { %v11033_v38 = vadd.f32 %v10796_v53, %v1090_v45  ;;  %v7116_v37 = vpop.f32.mrb[139].mxu0 }
 0x24b   :  { %v1055_v22 = vpop.f32.mrb[144].mxu1 }
 0x24c   :  { %v1091_v21 = vadd.f32 %v1055_v22, %v10762_v57  ;;  %v6804_v17 = vpop.f32.mrb[145].mxu1 }
 0x24d   :  { %v11047_v52 = vpop.f32.mrb[140].mxu0 }
 0x24e   :  { %v11039_v5 = vadd.f32 %v10809_v35, %v1091_v21  ;;  %v7119_v32 = vpop.f32.mrb[141].mxu0 }
 0x24f   :  { %v1060_v49 = vpop.f32.mrb[146].mxu1 }
 0x250   :  { %v1092_v50 = vadd.f32 %v1060_v49, %v10778_v11  ;;  %v6807_v42 = vpop.f32.mrb[147].mxu1 }
 0x251   :  { %v11053_v2 = vpop.f32.mrb[142].mxu0 }
 0x252   :  { %v11045_v53 = vadd.f32 %v10820_v40, %v1092_v50  ;;  %v7122_v63 = vpop.f32.mrb[143].mxu0 }
 0x253   :  { %v1065_v56 = vpop.f32.mrb[148].mxu1 }
 0x254   :  { %v1093_v57 = vadd.f32 %v1065_v56, %v10794_v18  ;;  %v6810_v45 = vpop.f32.mrb[149].mxu1 }
 0x255   :  { %v11059_v17 = vpop.f32.mrb[144].mxu0 }
 0x256   :  { %v11051_v35 = vadd.f32 %v10831_v4, %v1093_v57  ;;  %v7125_v37 = vpop.f32.mrb[145].mxu0 }
 0x257   :  { %v1459_v22 = vpop.f32.mrb[150].mxu1 }
 0x258   :  { %v1583_v11 = vadd.f32 %v1459_v22, %v10807_v44  ;;  %v6952_v21 = vpop.f32.mrb[151].mxu1 }
 0x259   :  { %v11065_v42 = vpop.f32.mrb[146].mxu0 }
 0x25a   :  { %v11057_v40 = vadd.f32 %v10842_v23, %v1583_v11  ;;  %v7128_v32 = vpop.f32.mrb[147].mxu0 }
 0x25b   :  { %v1464_v49 = vpop.f32.mrb[152].mxu1 }
 0x25c   :  { %v1584_v18 = vadd.f32 %v1464_v49, %v10818_v34  ;;  %v6955_v50 = vpop.f32.mrb[153].mxu1 }
 0x25d   :  { %v11071_v45 = vpop.f32.mrb[148].mxu0 }
 0x25e   :  { %v11063_v4 = vadd.f32 %v10853_v41, %v1584_v18  ;;  %v7131_v63 = vpop.f32.mrb[149].mxu0 }
 0x25f   :  { %v1469_v56 = vpop.f32.mrb[154].mxu1 }
 0x260   :  { %v1585_v44 = vadd.f32 %v1469_v56, %v10829_v31  ;;  %v6958_v57 = vpop.f32.mrb[155].mxu1 }
 0x261   :  { %v11077_v21 = vpop.f32.mrb[150].mxu0 }
 0x262   :  { %v11069_v23 = vadd.f32 %v10864_v48, %v1585_v44  ;;  %v7273_v37 = vpop.f32.mrb[151].mxu0 }
 0x263   :  { %v1474_v22 = vpop.f32.mrb[156].mxu1 }
 0x264   :  { %v1586_v34 = vadd.f32 %v1474_v22, %v10840_v19  ;;  %v6961_v11 = vpop.f32.mrb[157].mxu1 }
 0x266   :  { %v11075_v41 = vadd.f32 %v10875_v61, %v1586_v34  ;;  %v11083_v50 = vpop.f32.mrb[152].mxu0 }
 0x267   :  { %v1479_v49 = vpop.f32.mrb[158].mxu1  ;;  %v7276_v32 = vpop.f32.mrb[153].mxu0 }
 0x268   :  { %v1587_v31 = vadd.f32 %v1479_v49, %v10851_v24  ;;  %v6964_v18 = vpop.f32.mrb[159].mxu1 }
 0x26a   :  { %v11081_v48 = vadd.f32 %v10886_v47, %v1587_v31  ;;  %v11089_v57 = vpop.f32.mrb[154].mxu0 }
 0x26b   :  { %v1484_v56 = vpop.f32.mrb[160].mxu1  ;;  %v7279_v63 = vpop.f32.mrb[155].mxu0 }
 0x26c   :  { %v1588_v19 = vadd.f32 %v1484_v56, %v10862_v36  ;;  %v6967_v44 = vpop.f32.mrb[161].mxu1 }
 0x26e   :  { %v11087_v61 = vadd.f32 %v10897_v51, %v1588_v19  ;;  %v11095_v11 = vpop.f32.mrb[156].mxu0 }
 0x26f   :  { %v1489_v22 = vpop.f32.mrb[162].mxu1  ;;  %v7282_v37 = vpop.f32.mrb[157].mxu0 }
 0x270   :  { %v1589_v24 = vadd.f32 %v1489_v22, %v10873_v43  ;;  %v6970_v34 = vpop.f32.mrb[163].mxu1 }
 0x272   :  { %v11093_v47 = vadd.f32 %v10908_v7, %v1589_v24  ;;  %v11101_v18 = vpop.f32.mrb[158].mxu0 }
 0x273   :  { %v1494_v49 = vpop.f32.mrb[164].mxu1  ;;  %v7285_v32 = vpop.f32.mrb[159].mxu0 }
 0x274   :  { %v1590_v36 = vadd.f32 %v1494_v49, %v10884_v15  ;;  %v6973_v31 = vpop.f32.mrb[165].mxu1 }
 0x276   :  { %v11099_v51 = vadd.f32 %v10919_v58, %v1590_v36  ;;  %v11107_v44 = vpop.f32.mrb[160].mxu0 }
 0x277   :  { %v1499_v56 = vpop.f32.mrb[166].mxu1  ;;  %v7288_v63 = vpop.f32.mrb[161].mxu0 }
 0x278   :  { %v1591_v43 = vadd.f32 %v1499_v56, %v10895_v46  ;;  %v6976_v19 = vpop.f32.mrb[167].mxu1 }
 0x27a   :  { %v11105_v7 = vadd.f32 %v10930_v33, %v1591_v43  ;;  %v11113_v34 = vpop.f32.mrb[162].mxu0 }
 0x27b   :  { %v1504_v22 = vpop.f32.mrb[168].mxu1  ;;  %v7291_v37 = vpop.f32.mrb[163].mxu0 }
 0x27c   :  { %v1592_v15 = vadd.f32 %v1504_v22, %v10906_v39  ;;  %v6979_v24 = vpop.f32.mrb[169].mxu1 }
 0x27e   :  { %v11111_v58 = vadd.f32 %v10941_v6, %v1592_v15  ;;  %v11119_v31 = vpop.f32.mrb[164].mxu0 }
 0x27f   :  { %v1509_v49 = vpop.f32.mrb[170].mxu1  ;;  %v7294_v32 = vpop.f32.mrb[165].mxu0 }
 0x280   :  { %v1593_v46 = vadd.f32 %v1509_v49, %v10917_v0  ;;  %v6982_v36 = vpop.f32.mrb[171].mxu1 }
 0x282   :  { %v11117_v33 = vadd.f32 %v10952_v59, %v1593_v46  ;;  %v11125_v19 = vpop.f32.mrb[166].mxu0 }
 0x283   :  { %v1514_v56 = vpop.f32.mrb[172].mxu1  ;;  %v7297_v63 = vpop.f32.mrb[167].mxu0 }
 0x284   :  { %v1594_v39 = vadd.f32 %v1514_v56, %v10928_v10  ;;  %v6985_v43 = vpop.f32.mrb[173].mxu1 }
 0x286   :  { %v11123_v6 = vadd.f32 %v10963_v20, %v1594_v39  ;;  %v11131_v24 = vpop.f32.mrb[168].mxu0 }
 0x287   :  { %v1519_v22 = vpop.f32.mrb[174].mxu1  ;;  %v7300_v37 = vpop.f32.mrb[169].mxu0 }
 0x288   :  { %v1595_v0 = vadd.f32 %v1519_v22, %v10939_v55  ;;  %v6988_v15 = vpop.f32.mrb[175].mxu1 }
 0x28a   :  { %v11129_v59 = vadd.f32 %v10974_v28, %v1595_v0  ;;  %v11137_v36 = vpop.f32.mrb[170].mxu0 }
 0x28b   :  { %v1524_v49 = vpop.f32.mrb[176].mxu1  ;;  %v7303_v32 = vpop.f32.mrb[171].mxu0 }
 0x28c   :  { %v1596_v10 = vadd.f32 %v1524_v49, %v10950_v16  ;;  %v6991_v46 = vpop.f32.mrb[177].mxu1 }
 0x28e   :  { %v11135_v20 = vadd.f32 %v10985_v3, %v1596_v10  ;;  %v11143_v43 = vpop.f32.mrb[172].mxu0 }
 0x28f   :  { %v1529_v56 = vpop.f32.mrb[178].mxu1  ;;  %v7306_v63 = vpop.f32.mrb[173].mxu0 }
 0x290   :  { %v1597_v55 = vadd.f32 %v1529_v56, %v10961_v26  ;;  %v6994_v39 = vpop.f32.mrb[179].mxu1 }
 0x292   :  { %v11141_v28 = vadd.f32 %v10996_v62, %v1597_v55  ;;  %v11149_v15 = vpop.f32.mrb[174].mxu0 }
 0x293   :  { %v1534_v22 = vpop.f32.mrb[180].mxu1  ;;  %v7309_v37 = vpop.f32.mrb[175].mxu0 }
 0x294   :  { %v1598_v16 = vadd.f32 %v1534_v22, %v10972_v1  ;;  %v6997_v0 = vpop.f32.mrb[181].mxu1 }
 0x296   :  { %v11147_v3 = vadd.f32 %v11007_v25, %v1598_v16  ;;  %v11155_v46 = vpop.f32.mrb[176].mxu0 }
 0x297   :  { %v1539_v49 = vpop.f32.mrb[182].mxu1  ;;  %v7312_v32 = vpop.f32.mrb[177].mxu0 }
 0x298   :  { %v1599_v26 = vadd.f32 %v1539_v49, %v10983_v13  ;;  %v7000_v10 = vpop.f32.mrb[183].mxu1 }
 0x29a   :  { %v11153_v62 = vadd.f32 %v11018_v8, %v1599_v26  ;;  %v11161_v39 = vpop.f32.mrb[178].mxu0 }
 0x29b   :  { %v1544_v56 = vpop.f32.mrb[184].mxu1  ;;  %v7315_v63 = vpop.f32.mrb[179].mxu0 }
 0x29c   :  { %v1600_v1 = vadd.f32 %v1544_v56, %v10994_v27  ;;  %v7003_v55 = vpop.f32.mrb[185].mxu1 }
 0x29e   :  { %v11159_v25 = vadd.f32 %v11029_v29, %v1600_v1  ;;  %v11167_v0 = vpop.f32.mrb[180].mxu0 }
 0x29f   :  { %v1549_v22 = vpop.f32.mrb[186].mxu1  ;;  %v7318_v37 = vpop.f32.mrb[181].mxu0 }
 0x2a0   :  { %v1601_v13 = vadd.f32 %v1549_v22, %v11005_v12  ;;  %v7006_v16 = vpop.f32.mrb[187].mxu1 }
 0x2a2   :  { %v11165_v8 = vadd.f32 %v11035_v30, %v1601_v13  ;;  %v11173_v10 = vpop.f32.mrb[182].mxu0 }
 0x2a3   :  { %v1554_v49 = vpop.f32.mrb[188].mxu1  ;;  %v7321_v32 = vpop.f32.mrb[183].mxu0 }
 0x2a4   :  { %v1602_v27 = vadd.f32 %v1554_v49, %v11016_v60  ;;  %v7009_v26 = vpop.f32.mrb[189].mxu1 }
 0x2a6   :  { %v11171_v29 = vadd.f32 %v11041_v54, %v1602_v27  ;;  %v11179_v55 = vpop.f32.mrb[184].mxu0 }
 0x2a7   :  { %v1559_v56 = vpop.f32.mrb[190].mxu1  ;;  %v7324_v63 = vpop.f32.mrb[185].mxu0 }
 0x2a8   :  { %v1603_v12 = vadd.f32 %v1559_v56, %v11027_v9  ;;  %v7012_v1 = vpop.f32.mrb[191].mxu1 }
 0x2aa   :  { %v11177_v30 = vadd.f32 %v11047_v52, %v1603_v12  ;;  %v11185_v16 = vpop.f32.mrb[186].mxu0 }
 0x2ab   :  { %v1564_v22 = vpop.f32.mrb[192].mxu1  ;;  %v7327_v37 = vpop.f32.mrb[187].mxu0 }
 0x2ac   :  { %v1604_v60 = vadd.f32 %v1564_v22, %v11033_v38  ;;  %v7015_v13 = vpop.f32.mrb[193].mxu1 }
 0x2ae   :  { %v11183_v54 = vadd.f32 %v11053_v2, %v1604_v60  ;;  %v11191_v26 = vpop.f32.mrb[188].mxu0  ;;  %v2587_v2 = vld [vmem:[%s12122_s3 + $0x8] sm:$0xff] }
 0x2af   :  { %v1569_v49 = vpop.f32.mrb[194].mxu1  ;;  %v7330_v32 = vpop.f32.mrb[189].mxu0  ;;  %5539 = vmatprep.mubr.msk.f32.mxu1 %vm2604_vm1, %v2587_v2 }
 0x2b0   :  { %v1605_v9 = vadd.f32 %v1569_v49, %v11039_v5  ;;  %v7018_v27 = vpop.f32.mrb[195].mxu1 }
 0x2b2   :  { %v11189_v52 = vadd.f32 %v11059_v17, %v1605_v9  ;;  %v11201_v1 = vpop.f32.mrb[190].mxu0 }
 0x2b3   :  { %v1574_v56 = vpop.f32.mrb[196].mxu1  ;;  %v7333_v22 = vpop.f32.mrb[191].mxu0 }
 0x2b4   :  { %v1606_v38 = vadd.f32 %v1574_v56, %v11045_v53  ;;  %v7021_v12 = vpop.f32.mrb[197].mxu1 }
 0x2b6   :  { %v11199_v5 = vadd.f32 %v11065_v42, %v1606_v38  ;;  %v11207_v13 = vpop.f32.mrb[192].mxu0  ;;  %v11213_v42 = vld [vmem:[%s12121_s2] ss:$0 sm:$0xff] }
 0x2b7   :  { %v1579_v17 = vpop.f32.mrb[198].mxu1  ;;  %v7336_v37 = vpop.f32.mrb[193].mxu0 }
 0x2b8   :  { %12181 = vst [vmem:[#allocation12_spill] sm:$0xff] %v11199_v5  ;;  %v1607_v63 = vadd.f32 %v1579_v17, %v11051_v35  ;;  %v7024_v60 = vpop.f32.mrb[199].mxu1 }
 0x2ba   :  { %v11205_v53 = vadd.f32 %v11071_v45, %v1607_v63  ;;  %v11216_v32 = vpop.f32.mrb[194].mxu0 }
 0x2bb   :  { %v1973_v49 = vpop.f32.mrb[200].mxu1  ;;  %v7339_v38 = vpop.f32.mrb[195].mxu0 }
 0x2bc   :  { %12182 = vst [vmem:[#allocation15_spill] sm:$0xff] %v11205_v53  ;;  %v2097_v9 = vadd.f32 %v1973_v49, %v11057_v40  ;;  %v7166_v27 = vpop.f32.mrb[201].mxu1 }
 0x2be   :  { %v2354_v56 = vadd.f32 %v11077_v21, %v2097_v9  ;;  %v11221_v17 = vpop.f32.mrb[196].mxu0 }
 0x2bf   :  { %v1978_v35 = vpop.f32.mrb[202].mxu1  ;;  %12183 = vst [vmem:[#allocation10_spill] sm:$0xff] %v11221_v17  ;;  %v7342_v63 = vpop.f32.mrb[197].mxu0 }
 0x2c0   :  { %v2386_v45 = vadd.f32 %v11213_v42, %v2354_v56  ;;  %v2098_v12 = vadd.f32 %v1978_v35, %v11063_v4  ;;  %v7169_v2 = vpop.f32.mrb[203].mxu1 }
 0x2c2   :  { %2411 = vst [vmem:[#allocation2 + $0x10] sm:$0xff] %v2386_v45  ;;  %v2355_v40 = vadd.f32 %v11083_v50, %v2098_v12  ;;  %v11226_v9 = vpop.f32.mrb[198].mxu0 }
 0x2c3   :  { %v1983_v22 = vpop.f32.mrb[204].mxu1  ;;  %12184 = vst [vmem:[#allocation14_spill] sm:$0xff] %v11226_v9  ;;  %v7345_v4 = vpop.f32.mrb[199].mxu0 }
 0x2c4   :  { %v2387_v60 = vadd.f32 %v11213_v42, %v2355_v40  ;;  %v2099_v21 = vadd.f32 %v1983_v22, %v11069_v23  ;;  %v7172_v49 = vpop.f32.mrb[205].mxu1 }
 0x2c6   :  { %2412 = vst [vmem:[#allocation2 + $0x18] sm:$0xff] %v2387_v60  ;;  %v2356_v37 = vadd.f32 %v11089_v57, %v2099_v21 }
 0x2c7   :  { %v1988_v27 = vpop.f32.mrb[206].mxu1 }
 0x2c8   :  { %v11229_v56 = vadd.f32 %v11213_v42, %v2356_v37  ;;  %v2100_v50 = vadd.f32 %v1988_v27, %v11075_v41  ;;  %v7175_v35 = vpop.f32.mrb[207].mxu1 }
 0x2ca   :  { %2413 = vst [vmem:[#allocation2 + $0x20] sm:$0xff] %v11229_v56  ;;  %v2357_v38 = vadd.f32 %v11095_v11, %v2100_v50 }
 0x2cb   :  { %v1993_v12 = vpop.f32.mrb[208].mxu1 }
 0x2cc   :  { %v11235_v23 = vadd.f32 %v11213_v42, %v2357_v38  ;;  %v2101_v57 = vadd.f32 %v1993_v12, %v11081_v48  ;;  %v7178_v2 = vpop.f32.mrb[209].mxu1 }
 0x2cd   :  { %v2436_v48 = vld [vmem:[#allocation2 + $0x11] sm:$0xff] }
 0x2ce   :  { %2414 = vst [vmem:[#allocation2 + $0x28] sm:$0xff] %v11235_v23  ;;  %v2358_v40 = vadd.f32 %v11101_v18, %v2101_v57  ;;  %v2461_v2 = vmax.f32 %v2386_v45, %v2436_v48  ;;  %v3045_v48 = vld [vmem:[#allocation5 + $0x120] sm:$0xff] }
 0x2cf   :  { %v1998_v22 = vpop.f32.mrb[210].mxu1 }
 0x2d0   :  { %v11241_v63 = vadd.f32 %v11213_v42, %v2358_v40  ;;  %v2102_v41 = vadd.f32 %v1998_v22, %v11087_v61  ;;  %v7181_v21 = vpop.f32.mrb[211].mxu1 }
 0x2d1   :  { %v2486_v49 = vld [vmem:[#allocation2 + $0x1a] sm:$0xff] }
 0x2d2   :  { %v2511_v11 = vld [vmem:[#allocation2 + $0x1b] sm:$0xff]  ;;  %2415 = vst [vmem:[#allocation2 + $0x30] sm:$0xff] %v11241_v63  ;;  %v2359_v37 = vadd.f32 %v11107_v44, %v2102_v41  ;;  %v3041_v44 = vld [vmem:[#allocation5 + $0x100] sm:$0xff]  ;;  %v3042_v41 = vld [vmem:[#allocation5 + $0x108] sm:$0xff] }
 0x2d3   :  { %v2003_v27 = vpop.f32.mrb[212].mxu1  ;;  %v2437_v4 = vld [vmem:[#allocation2 + $0x19] sm:$0xff]  ;;  %v2536_v38 = vmax.f32 %v2486_v49, %v2511_v11  ;;  %v8625_v53 = vpack.c.bf16 %v3042_v41, %v3041_v44 }
 0x2d4   :  { %v11247_v50 = vadd.f32 %v11213_v42, %v2359_v37  ;;  %v2103_v18 = vadd.f32 %v2003_v27, %v11093_v47  ;;  %v7184_v35 = vpop.f32.mrb[213].mxu1  ;;  %v2462_v40 = vmax.f32 %v2387_v60, %v2437_v4  ;;  %v3043_v21 = vld [vmem:[#allocation5 + $0x110] sm:$0xff]  ;;  %v3044_v37 = vld [vmem:[#allocation5 + $0x118] sm:$0xff]  ;;  %v3046_v4 = vld [vmem:[#allocation5 + $0x128] sm:$0xff] }
 0x2d5   :  { %v2487_v12 = vld [vmem:[#allocation2 + $0x22] sm:$0xff]  ;;  %v2561_v11 = vmax.f32 %v2461_v2, %v2536_v38  ;;  %8626 = vmatpush3.bf16.msra.mxu0 %v8625_v53  ;;  %v8631_v2 = vpack.c.bf16 %v3046_v4, %v3045_v48 }
 0x2d6   :  { %v2512_v57 = vld [vmem:[#allocation2 + $0x23] sm:$0xff]  ;;  %2416 = vst [vmem:[#allocation2 + $0x38] sm:$0xff] %v11247_v50  ;;  %v2360_v61 = vadd.f32 %v11113_v34, %v2103_v18  ;;  %v8628_v34 = vpack.c.bf16 %v3044_v37, %v3043_v21  ;;  %8627 = vmatprep.subr.bf16.mxu0 %v12156_v14 }
 0x2d7   :  { %v2537_v22 = vmax.f32 %v2487_v12, %v2512_v57  ;;  %v2008_v9 = vpop.f32.mrb[214].mxu1  ;;  %v2438_v12 = vld [vmem:[#allocation2 + $0x21] sm:$0xff] }
 0x2d8   :  { %v11253_v17 = vadd.f32 %v11213_v42, %v2360_v61  ;;  %v2104_v47 = vadd.f32 %v2008_v9, %v11099_v51  ;;  %v7187_v49 = vpop.f32.mrb[215].mxu1  ;;  %v3048_v21 = vld [vmem:[#allocation5 + $0x138] sm:$0xff] }
 0x2d9   :  { %v2562_v27 = vmax.f32 %v2462_v40, %v2537_v22  ;;  %v2488_v35 = vld [vmem:[#allocation2 + $0x2a] sm:$0xff]  ;;  %8629 = vmatpush3.bf16.msra.mxu0 %v8628_v34  ;;  %v2463_v22 = vmax.f32 %v11229_v56, %v2438_v12 }
 0x2da   :  { %v2513_v5 = vld [vmem:[#allocation2 + $0x2b] sm:$0xff]  ;;  %2417 = vst [vmem:[#allocation2 + $0x40] sm:$0xff] %v11253_v17  ;;  %v2361_v45 = vadd.f32 %v11119_v31, %v2104_v47  ;;  %8630 = vmatprep.subr.bf16.mxu0 %v12156_v14 }
 0x2db   :  { %v8541_v60 = vpack.c.bf16 %v2562_v27, %v2561_v11  ;;  %v2013_v18 = vpop.f32.mrb[216].mxu1  ;;  %v2439_v57 = vld [vmem:[#allocation2 + $0x29] sm:$0xff]  ;;  %v2538_v53 = vmax.f32 %v2488_v35, %v2513_v5 }
 0x2dc   :  { %v11260_v51 = vadd.f32 %v11213_v42, %v2361_v45  ;;  %v2105_v9 = vadd.f32 %v2013_v18, %v11105_v7  ;;  %v7190_v38 = vpop.f32.mrb[217].mxu1  ;;  %v2464_v44 = vmax.f32 %v11235_v23, %v2439_v57  ;;  %v3047_v7 = vld [vmem:[#allocation5 + $0x130] sm:$0xff]  ;;  %v3049_v45 = vld [vmem:[#allocation5 + $0x140] sm:$0xff] }
 0x2dd   :  { %8542 = vmatpush1.bf16.msra.mxu1 %v8541_v60  ;;  %v2489_v61 = vld [vmem:[#allocation2 + $0x32] sm:$0xff]  ;;  %v2563_v11 = vmax.f32 %v2463_v22, %v2538_v53  ;;  %8632 = vmatpush3.bf16.msra.mxu0 %v8631_v2  ;;  %v8634_v56 = vpack.c.bf16 %v3048_v21, %v3047_v7 }
 0x2de   :  { %8543 = vmatprep.subr.bf16.mxu1 %v12156_v14  ;;  %v2514_v31 = vld [vmem:[#allocation2 + $0x33] sm:$0xff]  ;;  %2418 = vst [vmem:[#allocation2 + $0x48] sm:$0xff] %v11260_v51  ;;  %v2362_v40 = vadd.f32 %v11125_v19, %v2105_v9  ;;  %8633 = vmatprep.subr.bf16.mxu0 %v12156_v14 }
 0x2df   :  { %v2539_v41 = vmax.f32 %v2489_v61, %v2514_v31  ;;  %v2018_v5 = vpop.f32.mrb[218].mxu1  ;;  %v3050_v60 = vld [vmem:[#allocation5 + $0x148] sm:$0xff] }
 0x2e0   :  { %v11270_v37 = vadd.f32 %v11213_v42, %v2362_v40  ;;  %v2106_v47 = vadd.f32 %v2018_v5, %v11111_v58  ;;  %v7193_v49 = vpop.f32.mrb[219].mxu1  ;;  %v2440_v4 = vld [vmem:[#allocation2 + $0x31] sm:$0xff]  ;;  %v8637_v53 = vpack.c.bf16 %v3050_v60, %v3049_v45 }
 0x2e1   :  { %v2564_v27 = vmax.f32 %v2464_v44, %v2539_v41  ;;  %v2490_v35 = vld [vmem:[#allocation2 + $0x3a] sm:$0xff]  ;;  %8635 = vmatpush3.bf16.msra.mxu0 %v8634_v56  ;;  %v2465_v31 = vmax.f32 %v11241_v63, %v2440_v4 }
 0x2e2   :  { %v2515_v19 = vld [vmem:[#allocation2 + $0x3b] sm:$0xff]  ;;  %2419 = vst [vmem:[#allocation2 + $0x50] sm:$0xff] %v11270_v37  ;;  %v2363_v23 = vadd.f32 %v11131_v24, %v2106_v47  ;;  %8636 = vmatprep.subr.bf16.mxu0 %v12156_v14 }
 0x2e3   :  { %v8544_v34 = vpack.c.bf16 %v2564_v27, %v2563_v11  ;;  %v2023_v48 = vpop.f32.mrb[220].mxu1  ;;  %v2441_v18 = vld [vmem:[#allocation2 + $0x39] sm:$0xff]  ;;  %v2540_v9 = vmax.f32 %v2490_v35, %v2515_v19 }
 0x2e4   :  { %v11277_v58 = vadd.f32 %v11213_v42, %v2363_v23  ;;  %v2107_v12 = vadd.f32 %v2023_v48, %v11117_v33  ;;  %v7196_v57 = vpop.f32.mrb[221].mxu1  ;;  %v2466_v2 = vmax.f32 %v11247_v50, %v2441_v18 }
 0x2e5   :  { %8545 = vmatpush1.bf16.msra.mxu1 %v8544_v34  ;;  %v2491_v38 = vld [vmem:[#allocation2 + $0x42] sm:$0xff]  ;;  %v2565_v7 = vmax.f32 %v2465_v31, %v2540_v9  ;;  %8638 = vmatpush3.bf16.msra.mxu0 %v8637_v53 }
 0x2e6   :  { %8546 = vmatprep.subr.bf16.mxu1 %v12156_v14  ;;  %v2516_v24 = vld [vmem:[#allocation2 + $0x43] sm:$0xff]  ;;  %2420 = vst [vmem:[#allocation2 + $0x58] sm:$0xff] %v11277_v58  ;;  %v2364_v61 = vadd.f32 %v11137_v36, %v2107_v12  ;;  %8639 = vmatprep.subr.bf16.mxu0 %v12156_v14 }
 0x2e7   :  { %v2541_v40 = vmax.f32 %v2491_v38, %v2516_v24  ;;  %v2028_v33 = vpop.f32.mrb[222].mxu1  ;;  %v2442_v49 = vld [vmem:[#allocation2 + $0x41] sm:$0xff] }
 0x2e8   :  { %v11287_v22 = vadd.f32 %v11213_v42, %v2364_v61  ;;  %v2108_v44 = vadd.f32 %v2028_v33, %v11123_v6  ;;  %v7199_v41 = vpop.f32.mrb[223].mxu1  ;;  %v2467_v34 = vmax.f32 %v11253_v17, %v2442_v49 }
 0x2e9   :  { %v2566_v21 = vmax.f32 %v2466_v2, %v2541_v40  ;;  %v2492_v5 = vld [vmem:[#allocation2 + $0x4a] sm:$0xff] }
 0x2ea   :  { %v2517_v47 = vld [vmem:[#allocation2 + $0x4b] sm:$0xff]  ;;  %2421 = vst [vmem:[#allocation2 + $0x60] sm:$0xff] %v11287_v22  ;;  %v2365_v36 = vadd.f32 %v11143_v43, %v2108_v44 }
 0x2eb   :  { %v8547_v63 = vpack.c.bf16 %v2566_v21, %v2565_v7  ;;  %v2033_v50 = vpop.f32.mrb[224].mxu1  ;;  %v2443_v11 = vld [vmem:[#allocation2 + $0x49] sm:$0xff]  ;;  %v2542_v19 = vmax.f32 %v2492_v5, %v2517_v47 }
 0x2ec   :  { %v11294_v27 = vadd.f32 %v11213_v42, %v2365_v36  ;;  %v2109_v6 = vadd.f32 %v2033_v50, %v11129_v59  ;;  %v7202_v35 = vpop.f32.mrb[225].mxu1  ;;  %v2468_v45 = vmax.f32 %v11260_v51, %v2443_v11 }
 0x2ed   :  { %8548 = vmatpush1.bf16.msra.mxu1 %v8547_v63  ;;  %v2493_v56 = vld [vmem:[#allocation2 + $0x52] sm:$0xff]  ;;  %v2567_v12 = vmax.f32 %v2467_v34, %v2542_v19 }
 0x2ee   :  { %8549 = vmatprep.subr.bf16.mxu1 %v12156_v14  ;;  %v2518_v23 = vld [vmem:[#allocation2 + $0x53] sm:$0xff]  ;;  %2422 = vst [vmem:[#allocation2 + $0x68] sm:$0xff] %v11294_v27  ;;  %v2366_v43 = vadd.f32 %v11149_v15, %v2109_v6 }
 0x2ef   :  { %v2543_v60 = vmax.f32 %v2493_v56, %v2518_v23  ;;  %v2038_v48 = vpop.f32.mrb[226].mxu1  ;;  %v2444_v53 = vld [vmem:[#allocation2 + $0x51] sm:$0xff] }
 0x2f0   :  { %v11303_v4 = vadd.f32 %v11213_v42, %v2366_v43  ;;  %v2110_v59 = vadd.f32 %v2038_v48, %v11135_v20  ;;  %v7205_v18 = vpop.f32.mrb[227].mxu1  ;;  %v2469_v44 = vmax.f32 %v11270_v37, %v2444_v53 }
 0x2f1   :  { %v2568_v57 = vmax.f32 %v2468_v45, %v2543_v60  ;;  %v2494_v9 = vld [vmem:[#allocation2 + $0x5a] sm:$0xff] }
 0x2f2   :  { %v2519_v38 = vld [vmem:[#allocation2 + $0x5b] sm:$0xff]  ;;  %2423 = vst [vmem:[#allocation2 + $0x70] sm:$0xff] %v11303_v4  ;;  %v2367_v15 = vadd.f32 %v11155_v46, %v2110_v59 }
 0x2f3   :  { %v8550_v24 = vpack.c.bf16 %v2568_v57, %v2567_v12  ;;  %v2043_v17 = vpop.f32.mrb[228].mxu1  ;;  %v2445_v51 = vld [vmem:[#allocation2 + $0x59] sm:$0xff]  ;;  %v2544_v20 = vmax.f32 %v2494_v9, %v2519_v38 }
 0x2f4   :  { %v11309_v61 = vadd.f32 %v11213_v42, %v2367_v15  ;;  %v2111_v31 = vadd.f32 %v2043_v17, %v11141_v28  ;;  %v7208_v2 = vpop.f32.mrb[229].mxu1  ;;  %v2470_v41 = vmax.f32 %v11277_v58, %v2445_v51 }
 0x2f5   :  { %8551 = vmatpush1.bf16.msra.mxu1 %v8550_v24  ;;  %v2495_v40 = vld [vmem:[#allocation2 + $0x62] sm:$0xff]  ;;  %v2569_v36 = vmax.f32 %v2469_v44, %v2544_v20 }
 0x2f6   :  { %8552 = vmatprep.subr.bf16.mxu1 %v12156_v14  ;;  %v2520_v33 = vld [vmem:[#allocation2 + $0x63] sm:$0xff]  ;;  %2424 = vst [vmem:[#allocation2 + $0x78] sm:$0xff] %v11309_v61  ;;  %v2368_v46 = vadd.f32 %v11161_v39, %v2111_v31 }
 0x2f7   :  { %v2545_v7 = vmax.f32 %v2495_v40, %v2520_v33  ;;  %v2048_v21 = vpop.f32.mrb[230].mxu1  ;;  %v2446_v6 = vld [vmem:[#allocation2 + $0x61] sm:$0xff] }
 0x2f8   :  { %v11318_v5 = vadd.f32 %v11213_v42, %v2368_v46  ;;  %v2112_v28 = vadd.f32 %v2048_v21, %v11147_v3  ;;  %v7211_v47 = vpop.f32.mrb[231].mxu1  ;;  %v2471_v34 = vmax.f32 %v11287_v22, %v2446_v6 }
 0x2f9   :  { %v2570_v63 = vmax.f32 %v2470_v41, %v2545_v7  ;;  %v2496_v50 = vld [vmem:[#allocation2 + $0x6a] sm:$0xff] }
 0x2fa   :  { %v2521_v49 = vld [vmem:[#allocation2 + $0x6b] sm:$0xff]  ;;  %2425 = vst [vmem:[#allocation2 + $0x80] sm:$0xff] %v11318_v5  ;;  %v2369_v39 = vadd.f32 %v11167_v0, %v2112_v28 }
 0x2fb   :  { %v8553_v11 = vpack.c.bf16 %v2570_v63, %v2569_v36  ;;  %v2053_v37 = vpop.f32.mrb[232].mxu1  ;;  %v2447_v58 = vld [vmem:[#allocation2 + $0x69] sm:$0xff]  ;;  %v2546_v3 = vmax.f32 %v2496_v50, %v2521_v49 }
 0x2fc   :  { %v11324_v35 = vadd.f32 %v11213_v42, %v2369_v39  ;;  %v2113_v19 = vadd.f32 %v2053_v37, %v11153_v62  ;;  %v7214_v56 = vpop.f32.mrb[233].mxu1  ;;  %v2472_v45 = vmax.f32 %v11294_v27, %v2447_v58 }
 0x2fd   :  { %8554 = vmatpush1.bf16.msra.mxu1 %v8553_v11  ;;  %v2497_v23 = vld [vmem:[#allocation2 + $0x72] sm:$0xff]  ;;  %v2571_v12 = vmax.f32 %v2471_v34, %v2546_v3 }
 0x2fe   :  { %8555 = vmatprep.subr.bf16.mxu1 %v12156_v14  ;;  %v2522_v43 = vld [vmem:[#allocation2 + $0x73] sm:$0xff]  ;;  %2426 = vst [vmem:[#allocation2 + $0x88] sm:$0xff] %v11324_v35  ;;  %v2370_v0 = vadd.f32 %v11173_v10, %v2113_v19 }
 0x2ff   :  { %v2547_v60 = vmax.f32 %v2497_v23, %v2522_v43  ;;  %v2058_v48 = vpop.f32.mrb[234].mxu1  ;;  %v2448_v24 = vld [vmem:[#allocation2 + $0x71] sm:$0xff] }
 0x300   :  { %v11333_v59 = vadd.f32 %v11213_v42, %v2370_v0  ;;  %v2114_v62 = vadd.f32 %v2058_v48, %v11159_v25  ;;  %v7217_v18 = vpop.f32.mrb[235].mxu1  ;;  %v2473_v20 = vmax.f32 %v11303_v4, %v2448_v24 }
 0x301   :  { %v2572_v57 = vmax.f32 %v2472_v45, %v2547_v60  ;;  %v2498_v9 = vld [vmem:[#allocation2 + $0x7a] sm:$0xff] }
 0x302   :  { %v2523_v38 = vld [vmem:[#allocation2 + $0x7b] sm:$0xff]  ;;  %2427 = vst [vmem:[#allocation2 + $0x90] sm:$0xff] %v11333_v59  ;;  %v2371_v10 = vadd.f32 %v11179_v55, %v2114_v62 }
 0x303   :  { %v8556_v15 = vpack.c.bf16 %v2572_v57, %v2571_v12  ;;  %v2063_v22 = vpop.f32.mrb[236].mxu1  ;;  %v2449_v27 = vld [vmem:[#allocation2 + $0x79] sm:$0xff]  ;;  %v2548_v25 = vmax.f32 %v2498_v9, %v2523_v38 }
 0x304   :  { %v11339_v17 = vadd.f32 %v11213_v42, %v2371_v10  ;;  %v2115_v53 = vadd.f32 %v2063_v22, %v11165_v8  ;;  %v7220_v51 = vpop.f32.mrb[237].mxu1  ;;  %v2474_v40 = vmax.f32 %v11309_v61, %v2449_v27  ;;  %v12185_v27 = vld [vmem:[#allocation12_spill] sm:$0xff] }
 0x305   :  { %8557 = vmatpush1.bf16.msra.mxu1 %v8556_v15  ;;  %v2499_v31 = vld [vmem:[#allocation2 + $0x82] sm:$0xff]  ;;  %v2573_v7 = vmax.f32 %v2473_v20, %v2548_v25 }
 0x306   :  { %8558 = vmatprep.subr.bf16.mxu1 %v12156_v14  ;;  %v2524_v2 = vld [vmem:[#allocation2 + $0x83] sm:$0xff]  ;;  %2428 = vst [vmem:[#allocation2 + $0x98] sm:$0xff] %v11339_v17  ;;  %v2372_v55 = vadd.f32 %v11185_v16, %v2115_v53 }
 0x307   :  { %v2549_v33 = vmax.f32 %v2499_v31, %v2524_v2  ;;  %v2068_v46 = vpop.f32.mrb[238].mxu1  ;;  %v2450_v63 = vld [vmem:[#allocation2 + $0x81] sm:$0xff] }
 0x308   :  { %v11348_v44 = vadd.f32 %v11213_v42, %v2372_v55  ;;  %v2116_v8 = vadd.f32 %v2068_v46, %v11171_v29  ;;  %v7223_v41 = vpop.f32.mrb[239].mxu1  ;;  %v2475_v6 = vmax.f32 %v11318_v5, %v2450_v63  ;;  %v12186_v55 = vld [vmem:[#allocation10_spill] sm:$0xff]  ;;  %v12187_v46 = vld [vmem:[#allocation15_spill] sm:$0xff] }
 0x309   :  { %v2574_v21 = vmax.f32 %v2474_v40, %v2549_v33  ;;  %v2500_v28 = vld [vmem:[#allocation2 + $0x8a] sm:$0xff] }
 0x30a   :  { %v2525_v47 = vld [vmem:[#allocation2 + $0x8b] sm:$0xff]  ;;  %2429 = vst [vmem:[#allocation2 + $0xa0] sm:$0xff] %v11348_v44  ;;  %v2373_v16 = vadd.f32 %v11191_v26, %v2116_v8 }
 0x30b   :  { %v8559_v36 = vpack.c.bf16 %v2574_v21, %v2573_v7  ;;  %v2073_v4 = vpop.f32.mrb[240].mxu1  ;;  %v2451_v61 = vld [vmem:[#allocation2 + $0x89] sm:$0xff]  ;;  %v2550_v29 = vmax.f32 %v2500_v28, %v2525_v47 }
 0x30c   :  { %v11354_v50 = vadd.f32 %v11213_v42, %v2373_v16  ;;  %v2117_v49 = vadd.f32 %v2073_v4, %v11177_v30  ;;  %v7226_v39 = vpop.f32.mrb[241].mxu1  ;;  %v2476_v58 = vmax.f32 %v11324_v35, %v2451_v61  ;;  %v12188_v47 = vld [vmem:[#allocation14_spill] sm:$0xff] }
 0x30d   :  { %8560 = vmatpush1.bf16.msra.mxu1 %v8559_v36  ;;  %v2501_v11 = vld [vmem:[#allocation2 + $0x92] sm:$0xff]  ;;  %v2575_v43 = vmax.f32 %v2475_v6, %v2550_v29 }
 0x30e   :  { %8561 = vmatprep.subr.bf16.mxu1 %v12156_v14  ;;  %v2526_v37 = vld [vmem:[#allocation2 + $0x93] sm:$0xff]  ;;  %2430 = vst [vmem:[#allocation2 + $0xa8] sm:$0xff] %v11354_v50  ;;  %v2374_v26 = vadd.f32 %v11201_v1, %v2117_v49 }
 0x30f   :  { %v2551_v19 = vmax.f32 %v2501_v11, %v2526_v37  ;;  %v2078_v56 = vpop.f32.mrb[242].mxu1  ;;  %v2452_v48 = vld [vmem:[#allocation2 + $0x91] sm:$0xff] }
 0x310   :  { %v11363_v3 = vadd.f32 %v11213_v42, %v2374_v26  ;;  %v2118_v30 = vadd.f32 %v2078_v56, %v11183_v54  ;;  %v7229_v23 = vpop.f32.mrb[243].mxu1 }
 0x311   :  { %v2576_v0 = vmax.f32 %v2476_v58, %v2551_v19  ;;  %v2502_v34 = vld [vmem:[#allocation2 + $0x9a] sm:$0xff] }
 0x312   :  { %v2527_v45 = vld [vmem:[#allocation2 + $0x9b] sm:$0xff]  ;;  %2431 = vst [vmem:[#allocation2 + $0xb0] sm:$0xff] %v11363_v3  ;;  %v2375_v1 = vadd.f32 %v11207_v13, %v2118_v30  ;;  %v2477_v13 = vmax.f32 %v11333_v59, %v2452_v48 }
 0x313   :  { %v8562_v60 = vpack.c.bf16 %v2576_v0, %v2575_v43  ;;  %v2083_v5 = vpop.f32.mrb[244].mxu1  ;;  %v2453_v35 = vld [vmem:[#allocation2 + $0x99] sm:$0xff]  ;;  %v2552_v54 = vmax.f32 %v2502_v34, %v2527_v45 }
 0x314   :  { %v2407_v62 = vadd.f32 %v11213_v42, %v2375_v1  ;;  %v2119_v18 = vadd.f32 %v2083_v5, %v11189_v52  ;;  %v7232_v12 = vpop.f32.mrb[245].mxu1  ;;  %v2478_v10 = vmax.f32 %v11339_v17, %v2453_v35 }
 0x315   :  { %8563 = vmatpush1.bf16.msra.mxu1 %v8562_v60  ;;  %v2503_v57 = vld [vmem:[#allocation2 + $0xa2] sm:$0xff]  ;;  %v2577_v51 = vmax.f32 %v2477_v13, %v2552_v54 }
 0x316   :  { %8564 = vmatprep.subr.bf16.mxu1 %v12156_v14  ;;  %v2528_v9 = vld [vmem:[#allocation2 + $0xa3] sm:$0xff]  ;;  %2432 = vst [vmem:[#allocation2 + $0xb8] sm:$0xff] %v2407_v62  ;;  %v2376_v38 = vadd.f32 %v11216_v32, %v2119_v18 }
 0x317   :  { %v2553_v15 = vmax.f32 %v2503_v57, %v2528_v9  ;;  %v2088_v22 = vpop.f32.mrb[246].mxu1  ;;  %v2454_v33 = vld [vmem:[#allocation2 + $0xa1] sm:$0xff] }
 0x318   :  { %v2408_v24 = vadd.f32 %v11213_v42, %v2376_v38  ;;  %v2120_v52 = vadd.f32 %v2088_v22, %v12185_v27  ;;  %v7235_v53 = vpop.f32.mrb[247].mxu1  ;;  %v2479_v36 = vmax.f32 %v11348_v44, %v2454_v33  ;;  %v2510_v57 = vld [vmem:[#allocation2 + $0xda] sm:$0xff]  ;;  %v2796_v22 = vld [vmem:[#allocation5 + $0x88] sm:$0xff] }
 0x319   :  { %v2578_v25 = vmax.f32 %v2478_v10, %v2553_v15  ;;  %v2504_v31 = vld [vmem:[#allocation2 + $0xaa] sm:$0xff]  ;;  %v2535_v9 = vld [vmem:[#allocation2 + $0xdb] sm:$0xff] }
 0x31a   :  { %v2529_v2 = vld [vmem:[#allocation2 + $0xab] sm:$0xff]  ;;  %2433 = vst [vmem:[#allocation2 + $0xc0] sm:$0xff] %v2408_v24  ;;  %v2377_v20 = vadd.f32 %v12186_v55, %v2120_v52  ;;  %v2560_v13 = vmax.f32 %v2510_v57, %v2535_v9  ;;  %v11387_v27 = vld [vmem:[#allocation2] sm:$0xff] }
 0x31b   :  { %v8565_v40 = vpack.c.bf16 %v2578_v25, %v2577_v51  ;;  %v2093_v32 = vpop.f32.mrb[248].mxu1  ;;  %v2455_v59 = vld [vmem:[#allocation2 + $0xa9] sm:$0xff]  ;;  %v2554_v7 = vmax.f32 %v2504_v31, %v2529_v2  ;;  %v2586_v52 = vld [vmem:[%s12122_s3] sm:$0xff]  ;;  %v2589_v51 = vld [vmem:[%s12122_s3 + $0x18] sm:$0xff] }
 0x31c   :  { %v2409_v17 = vadd.f32 %v11213_v42, %v2377_v20  ;;  %v2121_v8 = vadd.f32 %v2093_v32, %v12187_v46  ;;  %v7238_v41 = vpop.f32.mrb[249].mxu1  ;;  %v2480_v4 = vmax.f32 %v11354_v50, %v2455_v59  ;;  %v2795_v15 = vld [vmem:[#allocation5 + $0x80] sm:$0xff]  ;;  %v2797_v25 = vld [vmem:[#allocation5 + $0x90] sm:$0xff]  ;;  %v2798_v31 = vld [vmem:[#allocation5 + $0x98] sm:$0xff] }
 0x31d   :  { %8566 = vmatpush1.bf16.msra.mxu1 %v8565_v40  ;;  %v2505_v21 = vld [vmem:[#allocation2 + $0xb2] sm:$0xff]  ;;  %v2579_v49 = vmax.f32 %v2479_v36, %v2554_v7  ;;  %v8577_v53 = vpack.c.bf16 %v2796_v22, %v2795_v15  ;;  %v8580_v55 = vpack.c.bf16 %v2798_v31, %v2797_v25  ;;  %v2591_v20 = vld [vmem:[%s12122_s3 + $0x28] sm:$0xff]  ;;  %v2590_v33 = vld [vmem:[%s12122_s3 + $0x20] sm:$0xff] }
 0x31e   :  { %8567 = vmatprep.subr.bf16.mxu1 %v12156_v14  ;;  %v2530_v28 = vld [vmem:[#allocation2 + $0xb3] sm:$0xff]  ;;  %2434 = vst [vmem:[#allocation2 + $0xc8] sm:$0xff] %v2409_v17  ;;  %v2378_v16 = vadd.f32 %v12188_v47, %v2121_v8  ;;  %v2799_v40 = vld [vmem:[#allocation5 + $0xa0] sm:$0xff]  ;;  %v2802_v8 = vld [vmem:[#allocation5 + $0xb8] sm:$0xff] }
 0x31f   :  { %v2555_v63 = vmax.f32 %v2505_v21, %v2530_v28  ;;  %v2456_v26 = vld [vmem:[#allocation2 + $0xb1] sm:$0xff]  ;;  %v2595_v21 = vld [vmem:[%s12122_s3 + $0x48] sm:$0xff] }
 0x320   :  { %v2410_v61 = vadd.f32 %v11213_v42, %v2378_v16  ;;  %v2481_v44 = vmax.f32 %v11363_v3, %v2456_v26  ;;  %v2588_v2 = vld [vmem:[%s12122_s3 + $0x10] sm:$0xff]  ;;  %v2801_v46 = vld [vmem:[#allocation5 + $0xb0] sm:$0xff]  ;;  %v2803_v28 = vld [vmem:[#allocation5 + $0xc0] sm:$0xff] }
 0x321   :  { %v2580_v39 = vmax.f32 %v2480_v4, %v2555_v63  ;;  %v2506_v29 = vld [vmem:[#allocation2 + $0xba] sm:$0xff]  ;;  %v2800_v32 = vld [vmem:[#allocation5 + $0xa8] sm:$0xff]  ;;  %v8586_v7 = vpack.c.bf16 %v2802_v8, %v2801_v46  ;;  %v3335_v8 = vld [vmem:[#allocation5 + $0x220] sm:$0xff] }
 0x322   :  { %v2531_v11 = vld [vmem:[#allocation2 + $0xbb] sm:$0xff]  ;;  %2435 = vst [vmem:[#allocation2 + $0xd0] sm:$0xff] %v2410_v61  ;;  %v8583_v59 = vpack.c.bf16 %v2800_v32, %v2799_v40  ;;  %v2592_v41 = vld [vmem:[%s12122_s3 + $0x30] sm:$0xff] }
 0x323   :  { %v8568_v37 = vpack.c.bf16 %v2580_v39, %v2579_v49  ;;  %v2457_v6 = vld [vmem:[#allocation2 + $0xb9] sm:$0xff]  ;;  %v2556_v58 = vmax.f32 %v2506_v29, %v2531_v11  ;;  %v2804_v47 = vld [vmem:[#allocation5 + $0xc8] sm:$0xff]  ;;  %v2603_v11 = vld [vmem:[%s12122_s3 + $0x88] sm:$0xff] }
 0x324   :  { %v2482_v50 = vmax.f32 %v2407_v62, %v2457_v6  ;;  %v2594_v16 = vld [vmem:[%s12122_s3 + $0x40] sm:$0xff]  ;;  %v8589_v36 = vpack.c.bf16 %v2804_v47, %v2803_v28  ;;  %v2597_v4 = vld [vmem:[%s12122_s3 + $0x58] sm:$0xff]  ;;  %v2596_v63 = vld [vmem:[%s12122_s3 + $0x50] sm:$0xff] }
 0x325   :  { %8569 = vmatpush1.bf16.msra.mxu1 %v8568_v37  ;;  %v2507_v19 = vld [vmem:[#allocation2 + $0xc2] sm:$0xff]  ;;  %v2581_v23 = vmax.f32 %v2481_v44, %v2556_v58  ;;  %v2601_v39 = vld [vmem:[%s12122_s3 + $0x78] sm:$0xff]  ;;  %v2600_v29 = vld [vmem:[%s12122_s3 + $0x70] sm:$0xff] }
 0x326   :  { %8570 = vmatprep.subr.bf16.mxu1 %v12156_v14  ;;  %v2532_v56 = vld [vmem:[#allocation2 + $0xc3] sm:$0xff]  ;;  %v2805_v26 = vld [vmem:[#allocation5 + $0xd0] sm:$0xff]  ;;  %v2774_v46 = vld [vmem:[#allocation5 + $0x28] sm:$0xff] }
 0x327   :  { %v2557_v30 = vmax.f32 %v2507_v19, %v2532_v56  ;;  %v2458_v43 = vld [vmem:[#allocation2 + $0xc1] sm:$0xff]  ;;  %v3051_v58 = vld [vmem:[#allocation5 + $0x150] sm:$0xff] }
 0x328   :  { %v2483_v35 = vmax.f32 %v2408_v24, %v2458_v43  ;;  %v2598_v49 = vld [vmem:[%s12122_s3 + $0x60] sm:$0xff]  ;;  %v3054_v43 = vld [vmem:[#allocation5 + $0x168] sm:$0xff]  ;;  %v3333_v25 = vld [vmem:[#allocation5 + $0x210] sm:$0xff] }
 0x329   :  { %v2582_v42 = vmax.f32 %v2482_v50, %v2557_v30  ;;  %v2459_v0 = vld [vmem:[#allocation2 + $0xc9] sm:$0xff]  ;;  %v2509_v60 = vld [vmem:[#allocation2 + $0xd2] sm:$0xff]  ;;  %v2602_v37 = vld [vmem:[%s12122_s3 + $0x80] sm:$0xff] }
 0x32a   :  { %v2508_v34 = vld [vmem:[#allocation2 + $0xca] sm:$0xff]  ;;  %v2484_v1 = vmax.f32 %v2409_v17, %v2459_v0  ;;  %v2534_v48 = vld [vmem:[#allocation2 + $0xd3] sm:$0xff]  ;;  %v2806_v6 = vld [vmem:[#allocation5 + $0xd8] sm:$0xff] }
 0x32b   :  { %v8571_v45 = vpack.c.bf16 %v2582_v42, %v2581_v23  ;;  %v2533_v5 = vld [vmem:[#allocation2 + $0xcb] sm:$0xff]  ;;  %v2559_v12 = vmax.f32 %v2509_v60, %v2534_v48  ;;  %v2593_v17 = vld [vmem:[%s12122_s3 + $0x38] sm:$0xff]  ;;  %v8592_v19 = vpack.c.bf16 %v2806_v6, %v2805_v26  ;;  %v3052_v56 = vld [vmem:[#allocation5 + $0x158] sm:$0xff] }
 0x32c   :  { %v2558_v18 = vmax.f32 %v2508_v34, %v2533_v5  ;;  %v2460_v54 = vld [vmem:[#allocation2 + $0xd1] sm:$0xff]  ;;  %v8640_v44 = vpack.c.bf16 %v3052_v56, %v3051_v58  ;;  %v2807_v50 = vld [vmem:[#allocation5 + $0xe0] sm:$0xff]  ;;  %v3056_v5 = vld [vmem:[#allocation5 + $0x178] sm:$0xff] }
 0x32d   :  { %8572 = vmatpush1.bf16.msra.mxu1 %v8571_v45  ;;  %v2584_v62 = vmax.f32 %v2484_v1, %v2559_v12  ;;  %v2485_v38 = vmax.f32 %v2410_v61, %v2460_v54  ;;  %v2599_v61 = vld [vmem:[%s12122_s3 + $0x68] sm:$0xff]  ;;  %v2808_v30 = vld [vmem:[#allocation5 + $0xe8] sm:$0xff]  ;;  %v2809_v34 = vld [vmem:[#allocation5 + $0xf0] sm:$0xff] }
 0x32e   :  { %8573 = vmatprep.subr.bf16.mxu1 %v12156_v14  ;;  %v2583_v3 = vmax.f32 %v2483_v35, %v2558_v18  ;;  %8641 = vmatpush3.bf16.msra.mxu0 %v8640_v44  ;;  %v3053_v23 = vld [vmem:[#allocation5 + $0x160] sm:$0xff]  ;;  %v8595_v42 = vpack.c.bf16 %v2808_v30, %v2807_v50  ;;  %v2810_v45 = vld [vmem:[#allocation5 + $0xf8] sm:$0xff]  ;;  %v3055_v1 = vld [vmem:[#allocation5 + $0x170] sm:$0xff] }
 0x32f   :  { %v2585_v24 = vmax.f32 %v2485_v38, %v2560_v13  ;;  %8642 = vmatprep.subr.bf16.mxu0 %v12156_v14  ;;  %v8643_v0 = vpack.c.bf16 %v3054_v43, %v3053_v23  ;;  %v8598_v60 = vpack.c.bf16 %v2810_v45, %v2809_v34  ;;  %v8646_v48 = vpack.c.bf16 %v3056_v5, %v3055_v1  ;;  %v3331_v38 = vld [vmem:[#allocation5 + $0x200] sm:$0xff]  ;;  %v3332_v13 = vld [vmem:[#allocation5 + $0x208] sm:$0xff]  ;;  %v2780_v5 = vld [vmem:[#allocation5 + $0x58] sm:$0xff] }
 0x330   :  { %v8574_v10 = vpack.c.bf16 %v2584_v62, %v2583_v3  ;;  %v2769_v3 = vld [vmem:[#allocation5] sm:$0xff]  ;;  %v2770_v62 = vld [vmem:[#allocation5 + $0x8] sm:$0xff] }
 0x331   :  { %v2777_v56 = vld [vmem:[#allocation5 + $0x40] sm:$0xff]  ;;  %v2778_v44 = vld [vmem:[#allocation5 + $0x48] sm:$0xff] }
 0x332   :  { %8575 = vmatpush1.bf16.msra.mxu1 %v8574_v10  ;;  %8644 = vmatpush3.bf16.msra.mxu0 %v8643_v0  ;;  %v3339_v50 = vld [vmem:[#allocation5 + $0x240] sm:$0xff]  ;;  %v8613_v45 = vpack.c.bf16 %v2778_v44, %v2777_v56  ;;  %v3188_v44 = vld [vmem:[#allocation5 + $0x190] sm:$0xff] }
 0x333   :  { %2680 = vmatprep.subr.mxu1 %v11387_v27  ;;  %8645 = vmatprep.subr.bf16.mxu0 %v12156_v14 }
 0x336   :  { %2681 = vmatpush1.msra.mxu1 %v2585_v24  ;;  %8647 = vmatpush3.bf16.msra.mxu0 %v8646_v48  ;;  %v8601_v24 = vpack.c.bf16 %v2770_v62, %v2769_v3  ;;  %v3341_v48 = vld [vmem:[#allocation5 + $0x250] sm:$0xff]  ;;  %v3342_v3 = vld [vmem:[#allocation5 + $0x258] sm:$0xff] }
 0x337   :  { %2697 = vmatmul.mubr.f32.vlgmr.msra.gmra.mrb[250].mxu1 %v2586_v52  ;;  %8576 = vmatprep.subr.bf16.mxu1 %v12156_v14  ;;  %v8673_v52 = vpack.c.bf16 %v3332_v13, %v3331_v38 }
 0x338   :  { %5540 = vmatprep.mubr.msk.f32.mxu1 %vm2604_vm1, %v2589_v51  ;;  %8578 = vmatpush3.bf16.msra.mxu1 %v8577_v53  ;;  %v2771_v53 = vld [vmem:[#allocation5 + $0x10] sm:$0xff]  ;;  %v2772_v51 = vld [vmem:[#allocation5 + $0x18] sm:$0xff] }
 0x339   :  { %8579 = vmatprep.subr.bf16.mxu1 %v12156_v14  ;;  %8672 = vmatprep.subr.bf16.mxu0 %v12156_v14 }
 0x33b   :  { %2702 = vmatmul.mubr.f32.gmra.mrb[252].mxu1 %v2588_v2 }
 0x33c   :  { %5541 = vmatprep.mubr.msk.f32.mxu1 %vm2604_vm1, %v2591_v20  ;;  %8581 = vmatpush3.bf16.msra.mxu1 %v8580_v55  ;;  %v3334_v55 = vld [vmem:[#allocation5 + $0x218] sm:$0xff] }
 0x33d   :  { %8582 = vmatprep.subr.bf16.mxu1 %v12156_v14 }
 0x33f   :  { %2707 = vmatmul.mubr.f32.gmra.mrb[254].mxu1 %v2590_v33  ;;  %v8604_v33 = vpack.c.bf16 %v2772_v51, %v2771_v53  ;;  %v2782_v53 = vld [vmem:[#allocation5 + $0x68] sm:$0xff]  ;;  %v3343_v51 = vld [vmem:[#allocation5 + $0x260] sm:$0xff] }
 0x340   :  { %5542 = vmatprep.mubr.msk.f32.mxu1 %vm2604_vm1, %v2593_v17  ;;  %8584 = vmatpush3.bf16.msra.mxu1 %v8583_v59  ;;  %v8676_v59 = vpack.c.bf16 %v3334_v55, %v3333_v25  ;;  %v2773_v17 = vld [vmem:[#allocation5 + $0x20] sm:$0xff] }
 0x341   :  { %8585 = vmatprep.subr.bf16.mxu1 %v12156_v14 }
 0x343   :  { %2712 = vmatmul.mubr.f32.gmra.mrb[0].mxu1 %v2592_v41 }
 0x344   :  { %5543 = vmatprep.mubr.msk.f32.mxu1 %vm2604_vm1, %v2595_v21  ;;  %8587 = vmatpush3.bf16.msra.mxu1 %v8586_v7  ;;  %v3336_v21 = vld [vmem:[#allocation5 + $0x228] sm:$0xff] }
 0x345   :  { %8588 = vmatprep.subr.bf16.mxu1 %v12156_v14 }
 0x347   :  { %2717 = vmatmul.mubr.f32.gmra.mrb[2].mxu1 %v2594_v16 }
 0x348   :  { %5544 = vmatprep.mubr.msk.f32.mxu1 %vm2604_vm1, %v2597_v4  ;;  %8590 = vmatpush3.bf16.msra.mxu1 %v8589_v36  ;;  %v8607_v36 = vpack.c.bf16 %v2774_v46, %v2773_v17  ;;  %v8679_v4 = vpack.c.bf16 %v3336_v21, %v3335_v8  ;;  %v2783_v46 = vld [vmem:[#allocation5 + $0x70] sm:$0xff]  ;;  %v2784_v8 = vld [vmem:[#allocation5 + $0x78] sm:$0xff] }
 0x349   :  { %8591 = vmatprep.subr.bf16.mxu1 %v12156_v14 }
 0x34b   :  { %2722 = vmatmul.mubr.f32.gmra.mrb[4].mxu1 %v2596_v63  ;;  %v2775_v63 = vld [vmem:[#allocation5 + $0x30] sm:$0xff] }
 0x34c   :  { %5545 = vmatprep.mubr.msk.f32.mxu1 %vm2604_vm1, %v2599_v61  ;;  %8593 = vmatpush3.bf16.msra.mxu1 %v8592_v19  ;;  %v2776_v61 = vld [vmem:[#allocation5 + $0x38] sm:$0xff] }
 0x34d   :  { %8594 = vmatprep.subr.bf16.mxu1 %v12156_v14  ;;  %v8610_v58 = vpack.c.bf16 %v2776_v61, %v2775_v63 }
 0x34f   :  { %2727 = vmatmul.mubr.f32.gmra.mrb[6].mxu1 %v2598_v49  ;;  %v3337_v49 = vld [vmem:[#allocation5 + $0x230] sm:$0xff] }
 0x350   :  { %5546 = vmatprep.mubr.msk.f32.mxu1 %vm2604_vm1, %v2601_v39  ;;  %8596 = vmatpush3.bf16.msra.mxu1 %v8595_v42  ;;  %v3340_v42 = vld [vmem:[#allocation5 + $0x248] sm:$0xff] }
 0x351   :  { %8597 = vmatprep.subr.bf16.mxu1 %v12156_v14  ;;  %v8685_v1 = vpack.c.bf16 %v3340_v42, %v3339_v50  ;;  %v3189_v50 = vld [vmem:[#allocation5 + $0x198] sm:$0xff] }
 0x352   :  { %v3624_v42 = vld [vmem:[#allocation5 + $0x318] sm:$0xff] }
 0x353   :  { %2732 = vmatmul.mubr.f32.gmra.mrb[8].mxu1 %v2600_v29 }
 0x354   :  { %5547 = vmatprep.mubr.msk.f32.mxu1 %vm2604_vm1, %v2603_v11  ;;  %8599 = vmatpush3.bf16.msra.mxu1 %v8598_v60  ;;  %v3338_v11 = vld [vmem:[#allocation5 + $0x238] sm:$0xff]  ;;  %v2779_v60 = vld [vmem:[#allocation5 + $0x50] sm:$0xff] }
 0x355   :  { %8600 = vmatprep.subr.bf16.mxu1 %v12156_v14  ;;  %v8682_v19 = vpack.c.bf16 %v3338_v11, %v3337_v49  ;;  %v3186_v49 = vld [vmem:[#allocation5 + $0x180] sm:$0xff] }
 0x357   :  { %2737 = vmatmul.mubr.f32.gmra.mrb[10].mxu1 %v2602_v37 }
 0x358   :  { %7378 = vmatprep.mubr.msk.f32.mxu1 %vm9276_vm0, %v11387_v27 }
 0x40a   :  { %v11463_v35 = vpop.f32.mrb[250].mxu1 }
 0x40b   :  { %v2742_v18 = vmax.f32 %v11463_v35, 0.0  ;;  %v2700_v12 = vpop.f32.mrb[251].mxu1  ;;  %v3625_v35 = vld [vmem:[#allocation5 + $0x320] sm:$0xff] }
 0x40d   :  { %2751 = vst [vmem:[#allocation2 + $0x10] sm:$0xff] %v2742_v18 }
 0x40e   :  { %v11468_v54 = vpop.f32.mrb[252].mxu1 }
 0x40f   :  { %v2743_v57 = vmax.f32 %v11468_v54, 0.0  ;;  %v2705_v9 = vpop.f32.mrb[253].mxu1  ;;  %v3627_v54 = vld [vmem:[#allocation5 + $0x330] sm:$0xff] }
 0x411   :  { %2752 = vst [vmem:[#allocation2 + $0x18] sm:$0xff] %v2743_v57 }
 0x412   :  { %v11473_v10 = vpop.f32.mrb[254].mxu1 }
 0x413   :  { %v2744_v15 = vmax.f32 %v11473_v10, 0.0  ;;  %v2710_v22 = vpop.f32.mrb[255].mxu1  ;;  %v3629_v10 = vld [vmem:[#allocation5 + $0x340] sm:$0xff] }
 0x414   :  { %v2785_v31 = vld [vmem:[#allocation2 + $0xa] sm:$0xff]  ;;  %v8616_v22 = vpack.c.bf16 %v2780_v5, %v2779_v60 }
 0x415   :  { %v3031_v2 = vld [vmem:[#allocation2 + $0xb] sm:$0xff]  ;;  %2753 = vst [vmem:[#allocation2 + $0x20] sm:$0xff] %v2744_v15  ;;  %7379 = vmatmul.mubr.f32.vlgmr.msra.gmra.mrb[12].mxu1 %v2785_v31 }
 0x416   :  { %7497 = vmatmul.mubr.f32.vlgmr.msra.gmra.mrb[200].mxu0 %v3031_v2  ;;  %v11478_v20 = vpop.f32.mrb[0].mxu1  ;;  %7381 = vmatprep.mubr.msk.f32.mxu1 %vm9276_vm0, %v11387_v27  ;;  %v3344_v2 = vld [vmem:[#allocation5 + $0x268] sm:$0xff] }
 0x417   :  { %7499 = vmatprep.mubr.msk.f32.mxu0 %vm9276_vm0, %v11387_v27  ;;  %v2745_v40 = vmax.f32 %v11478_v20, 0.0  ;;  %v2715_v32 = vpop.f32.mrb[1].mxu1  ;;  %8602 = vmatpush3.bf16.msra.mxu1 %v8601_v24  ;;  %v8688_v24 = vpack.c.bf16 %v3342_v3, %v3341_v48  ;;  %v8691_v17 = vpack.c.bf16 %v3344_v2, %v3343_v51  ;;  %v3191_v60 = vld [vmem:[#allocation5 + $0x1a8] sm:$0xff]  ;;  %v3193_v3 = vld [vmem:[#allocation5 + $0x1b8] sm:$0xff]  ;;  %v3196_v2 = vld [vmem:[#allocation5 + $0x1d0] sm:$0xff] }
 0x418   :  { %8674 = vmatpush3.bf16.msra.mxu0 %v8673_v52  ;;  %v2786_v41 = vld [vmem:[#allocation2 + $0x12] sm:$0xff]  ;;  %8603 = vmatprep.subr.bf16.mxu1 %v12156_v14  ;;  %v2781_v52 = vld [vmem:[#allocation5 + $0x60] sm:$0xff] }
 0x419   :  { %v3032_v7 = vld [vmem:[#allocation2 + $0x13] sm:$0xff]  ;;  %8675 = vmatprep.subr.bf16.mxu0 %v12156_v14  ;;  %2754 = vst [vmem:[#allocation2 + $0x28] sm:$0xff] %v2745_v40  ;;  %7382 = vmatmul.mubr.f32.gmra.mrb[14].mxu1 %v2786_v41 }
 0x41a   :  { %7500 = vmatmul.mubr.f32.gmra.mrb[202].mxu0 %v3032_v7  ;;  %v11489_v28 = vpop.f32.mrb[2].mxu1  ;;  %7384 = vmatprep.mubr.msk.f32.mxu1 %vm9276_vm0, %v11387_v27  ;;  %v3345_v41 = vld [vmem:[#allocation5 + $0x270] sm:$0xff] }
 0x41b   :  { %7502 = vmatprep.mubr.msk.f32.mxu0 %vm9276_vm0, %v11387_v27  ;;  %v2746_v47 = vmax.f32 %v11489_v28, 0.0  ;;  %v2720_v16 = vpop.f32.mrb[3].mxu1  ;;  %8605 = vmatpush3.bf16.msra.mxu1 %v8604_v33  ;;  %v11566_v5 = vld [vmem:[#allocation2 + $0x11] sm:$0xff]  ;;  %v3633_v28 = vld [vmem:[#allocation5 + $0x360] sm:$0xff] }
 0x41c   :  { %8677 = vmatpush3.bf16.msra.mxu0 %v8676_v59  ;;  %v2787_v39 = vld [vmem:[#allocation2 + $0x1a] sm:$0xff]  ;;  %8606 = vmatprep.subr.bf16.mxu1 %v12156_v14  ;;  %v8619_v59 = vpack.c.bf16 %v2782_v53, %v2781_v52  ;;  %v3194_v52 = vld [vmem:[#allocation5 + $0x1c0] sm:$0xff]  ;;  %v3195_v53 = vld [vmem:[#allocation5 + $0x1c8] sm:$0xff] }
 0x41d   :  { %v3033_v29 = vld [vmem:[#allocation2 + $0x1b] sm:$0xff]  ;;  %8678 = vmatprep.subr.bf16.mxu0 %v12156_v14  ;;  %2755 = vst [vmem:[#allocation2 + $0x30] sm:$0xff] %v2746_v47  ;;  %7385 = vmatmul.mubr.f32.gmra.mrb[16].mxu1 %v2787_v39  ;;  %v3187_v39 = vld [vmem:[#allocation5 + $0x188] sm:$0xff] }
 0x41e   :  { %7503 = vmatmul.mubr.f32.gmra.mrb[204].mxu0 %v3033_v29  ;;  %v11500_v37 = vpop.f32.mrb[4].mxu1  ;;  %7387 = vmatprep.mubr.msk.f32.mxu1 %vm9276_vm0, %v11387_v27  ;;  %v3346_v16 = vld [vmem:[#allocation5 + $0x278] sm:$0xff]  ;;  %v3621_v29 = vld [vmem:[#allocation5 + $0x300] sm:$0xff]  ;;  %v3631_v20 = vld [vmem:[#allocation5 + $0x350] sm:$0xff] }
 0x41f   :  { %7505 = vmatprep.mubr.msk.f32.mxu0 %vm9276_vm0, %v11387_v27  ;;  %v2747_v26 = vmax.f32 %v11500_v37, 0.0  ;;  %v2725_v6 = vpop.f32.mrb[5].mxu1  ;;  %8608 = vmatpush3.bf16.msra.mxu1 %v8607_v36  ;;  %v8622_v36 = vpack.c.bf16 %v2784_v8, %v2783_v46  ;;  %v3198_v8 = vld [vmem:[#allocation5 + $0x1e0] sm:$0xff]  ;;  %v3635_v37 = vld [vmem:[#allocation5 + $0x370] sm:$0xff] }
 0x420   :  { %8680 = vmatpush3.bf16.msra.mxu0 %v8679_v4  ;;  %v2788_v30 = vld [vmem:[#allocation2 + $0x22] sm:$0xff]  ;;  %8609 = vmatprep.subr.bf16.mxu1 %v12156_v14  ;;  %v8694_v4 = vpack.c.bf16 %v3346_v16, %v3345_v41  ;;  %v3199_v41 = vld [vmem:[#allocation5 + $0x1e8] sm:$0xff] }
 0x421   :  { %v3034_v23 = vld [vmem:[#allocation2 + $0x23] sm:$0xff]  ;;  %8681 = vmatprep.subr.bf16.mxu0 %v12156_v14  ;;  %2756 = vst [vmem:[#allocation2 + $0x38] sm:$0xff] %v2747_v26  ;;  %7388 = vmatmul.mubr.f32.gmra.mrb[18].mxu1 %v2788_v30 }
 0x422   :  { %7506 = vmatmul.mubr.f32.gmra.mrb[206].mxu0 %v3034_v23  ;;  %v11511_v43 = vpop.f32.mrb[6].mxu1  ;;  %7390 = vmatprep.mubr.msk.f32.mxu1 %vm9276_vm0, %v11387_v27  ;;  %v2760_v30 = vld [vmem:[#allocation2 + $0x9] sm:$0xff]  ;;  %v3623_v23 = vld [vmem:[#allocation5 + $0x310] sm:$0xff]  ;;  %v11588_v51 = vld [vmem:[#allocation2 + $0x21] sm:$0xff] }
 0x423   :  { %7508 = vmatprep.mubr.msk.f32.mxu0 %vm9276_vm0, %v11387_v27  ;;  %v2748_v0 = vmax.f32 %v11511_v43, 0.0  ;;  %v2730_v34 = vpop.f32.mrb[7].mxu1  ;;  %8611 = vmatpush3.bf16.msra.mxu1 %v8610_v58  ;;  %v3622_v58 = vld [vmem:[#allocation5 + $0x308] sm:$0xff]  ;;  %v3476_v43 = vld [vmem:[#allocation5 + $0x280] sm:$0xff] }
 0x424   :  { %8683 = vmatpush3.bf16.msra.mxu0 %v8682_v19  ;;  %v2789_v12 = vld [vmem:[#allocation2 + $0x2a] sm:$0xff]  ;;  %8612 = vmatprep.subr.bf16.mxu1 %v12156_v14  ;;  %v8649_v19 = vpack.c.bf16 %v3187_v39, %v3186_v49  ;;  %v8721_v56 = vpack.c.bf16 %v3622_v58, %v3621_v29  ;;  %v8652_v34 = vpack.c.bf16 %v3189_v50, %v3188_v44  ;;  %v3478_v58 = vld [vmem:[#allocation5 + $0x290] sm:$0xff] }
 0x425   :  { %v3035_v9 = vld [vmem:[#allocation2 + $0x2b] sm:$0xff]  ;;  %8684 = vmatprep.subr.bf16.mxu0 %v12156_v14  ;;  %2757 = vst [vmem:[#allocation2 + $0x40] sm:$0xff] %v2748_v0  ;;  %7391 = vmatmul.mubr.f32.gmra.mrb[20].mxu1 %v2789_v12  ;;  %v3611_v50 = vld [vmem:[#allocation2 + $0x15] sm:$0xff] }
 0x426   :  { %7509 = vmatmul.mubr.f32.gmra.mrb[208].mxu0 %v3035_v9  ;;  %v11522_v62 = vpop.f32.mrb[8].mxu1  ;;  %7393 = vmatprep.mubr.msk.f32.mxu1 %vm9276_vm0, %v11387_v27  ;;  %v3192_v9 = vld [vmem:[#allocation5 + $0x1b0] sm:$0xff]  ;;  %v3176_v44 = vld [vmem:[#allocation2 + $0xf] sm:$0xff] }
 0x427   :  { %7511 = vmatprep.mubr.msk.f32.mxu0 %vm9276_vm0, %v11387_v27  ;;  %v2749_v38 = vmax.f32 %v11522_v62, 0.0  ;;  %v2735_v13 = vpop.f32.mrb[9].mxu1  ;;  %8614 = vmatpush3.bf16.msra.mxu1 %v8613_v45  ;;  %v8724_v45 = vpack.c.bf16 %v3624_v42, %v3623_v23  ;;  %v3480_v23 = vld [vmem:[#allocation5 + $0x2a0] sm:$0xff]  ;;  %v3481_v42 = vld [vmem:[#allocation5 + $0x2a8] sm:$0xff] }
 0x428   :  { %8686 = vmatpush3.bf16.msra.mxu0 %v8685_v1  ;;  %v2790_v25 = vld [vmem:[#allocation2 + $0x32] sm:$0xff]  ;;  %8615 = vmatprep.subr.bf16.mxu1 %v12156_v14  ;;  %v3190_v1 = vld [vmem:[#allocation5 + $0x1a0] sm:$0xff] }
 0x429   :  { %v3036_v31 = vld [vmem:[#allocation2 + $0x33] sm:$0xff]  ;;  %8687 = vmatprep.subr.bf16.mxu0 %v12156_v14  ;;  %2758 = vst [vmem:[#allocation2 + $0x48] sm:$0xff] %v2749_v38  ;;  %7394 = vmatmul.mubr.f32.gmra.mrb[22].mxu1 %v2790_v25  ;;  %v8655_v48 = vpack.c.bf16 %v3191_v60, %v3190_v1  ;;  %v8661_v25 = vpack.c.bf16 %v3195_v53, %v3194_v52  ;;  %v3612_v1 = vld [vmem:[#allocation2 + $0x1d] sm:$0xff]  ;;  %v3484_v52 = vld [vmem:[#allocation5 + $0x2c0] sm:$0xff] }
 0x42a   :  { %7512 = vmatmul.mubr.f32.gmra.mrb[210].mxu0 %v3036_v31  ;;  %v11533_v55 = vpop.f32.mrb[10].mxu1  ;;  %7396 = vmatprep.mubr.msk.f32.mxu1 %vm9276_vm0, %v11387_v27  ;;  %v11577_v13 = vld [vmem:[#allocation2 + $0x19] sm:$0xff]  ;;  %v3916_v60 = vld [vmem:[#allocation5 + $0x428] sm:$0xff] }
 0x42b   :  { %7514 = vmatprep.mubr.msk.f32.mxu0 %vm9276_vm0, %v11387_v27  ;;  %v2750_v32 = vmax.f32 %v11533_v55, 0.0  ;;  %8617 = vmatpush3.bf16.msra.mxu1 %v8616_v22  ;;  %v2740_v33 = vpop.f32.mrb[11].mxu1  ;;  %v8658_v22 = vpack.c.bf16 %v3193_v3, %v3192_v9  ;;  %v3917_v9 = vld [vmem:[#allocation5 + $0x430] sm:$0xff]  ;;  %v3485_v53 = vld [vmem:[#allocation5 + $0x2c8] sm:$0xff] }
 0x42c   :  { %8689 = vmatpush3.bf16.msra.mxu0 %v8688_v24  ;;  %v2791_v7 = vld [vmem:[#allocation2 + $0x3a] sm:$0xff]  ;;  %8618 = vmatprep.subr.bf16.mxu1 %v12156_v14 }
 0x42d   :  { %v3037_v21 = vld [vmem:[#allocation2 + $0x3b] sm:$0xff]  ;;  %8690 = vmatprep.subr.bf16.mxu0 %v12156_v14  ;;  %2759 = vst [vmem:[#allocation2 + $0x50] sm:$0xff] %v2750_v32  ;;  %7397 = vmatmul.mubr.f32.gmra.mrb[24].mxu1 %v2791_v7  ;;  %v11610_v7 = vld [vmem:[#allocation2 + $0x31] sm:$0xff] }
 0x42e   :  { %7515 = vmatmul.mubr.f32.gmra.mrb[212].mxu0 %v3037_v21  ;;  %7399 = vmatprep.mubr.msk.f32.mxu1 %vm9276_vm0, %v11387_v27  ;;  %v3197_v33 = vld [vmem:[#allocation5 + $0x1d8] sm:$0xff]  ;;  %v8667_v21 = vpack.c.bf16 %v3199_v41, %v3198_v8  ;;  %v3615_v8 = vld [vmem:[#allocation2 + $0x35] sm:$0xff] }
 0x42f   :  { %7517 = vmatprep.mubr.msk.f32.mxu0 %vm9276_vm0, %v11387_v27  ;;  %8620 = vmatpush3.bf16.msra.mxu1 %v8619_v59  ;;  %v11599_v59 = vld [vmem:[#allocation2 + $0x29] sm:$0xff]  ;;  %v11667_v3 = vld [vmem:[#allocation2 + $0x1f] sm:$0xff] }
 0x430   :  { %8692 = vmatpush3.bf16.msra.mxu0 %v8691_v17  ;;  %v2792_v63 = vld [vmem:[#allocation2 + $0x42] sm:$0xff]  ;;  %8621 = vmatprep.subr.bf16.mxu1 %v12156_v14  ;;  %v8664_v17 = vpack.c.bf16 %v3197_v33, %v3196_v2  ;;  %v8709_v2 = vpack.c.bf16 %v3485_v53, %v3484_v52  ;;  %v3756_v53 = vld [vmem:[#allocation2 + $0x16] sm:$0xff] }
 0x431   :  { %v3038_v61 = vld [vmem:[#allocation2 + $0x43] sm:$0xff]  ;;  %8693 = vmatprep.subr.bf16.mxu0 %v12156_v14  ;;  %7400 = vmatmul.mubr.f32.gmra.mrb[26].mxu1 %v2792_v63  ;;  %v11621_v63 = vld [vmem:[#allocation2 + $0x39] sm:$0xff] }
 0x432   :  { %7518 = vmatmul.mubr.f32.gmra.mrb[214].mxu0 %v3038_v61  ;;  %7402 = vmatprep.mubr.msk.f32.mxu1 %vm9276_vm0, %v11387_v27  ;;  %v11632_v39 = vld [vmem:[#allocation2 + $0x41] sm:$0xff] }
 0x433   :  { %7520 = vmatprep.mubr.msk.f32.mxu0 %vm9276_vm0, %v11387_v27  ;;  %8623 = vmatpush3.bf16.msra.mxu1 %v8622_v36  ;;  %v3200_v36 = vld [vmem:[#allocation5 + $0x1f0] sm:$0xff]  ;;  %v3922_v41 = vld [vmem:[#allocation5 + $0x458] sm:$0xff] }
 0x434   :  { %8695 = vmatpush3.bf16.msra.mxu0 %v8694_v4  ;;  %v2793_v11 = vld [vmem:[#allocation2 + $0x4a] sm:$0xff]  ;;  %8648 = vmatprep.subr.bf16.mxu1 %v12156_v14  ;;  %v3201_v4 = vld [vmem:[#allocation5 + $0x1f8] sm:$0xff]  ;;  %v3909_v52 = vld [vmem:[#allocation2 + $0x57] sm:$0xff] }
 0x435   :  { %v3039_v6 = vld [vmem:[#allocation2 + $0x4b] sm:$0xff]  ;;  %8720 = vmatprep.subr.bf16.mxu0 %v12156_v14  ;;  %7403 = vmatmul.mubr.f32.gmra.mrb[28].mxu1 %v2793_v11  ;;  %v8670_v61 = vpack.c.bf16 %v3201_v4, %v3200_v36  ;;  %v11694_v4 = vld [vmem:[#allocation2 + $0x37] sm:$0xff] }
 0x436   :  { %7521 = vmatmul.mubr.f32.gmra.mrb[216].mxu0 %v3039_v6  ;;  %7437 = vmatprep.mubr.msk.f32.mxu1 %vm9276_vm0, %v11387_v27  ;;  %v11643_v29 = vld [vmem:[#allocation2 + $0x49] sm:$0xff] }
 0x437   :  { %7614 = vmatprep.mubr.msk.f32.mxu0 %vm9276_vm0, %v11387_v27  ;;  %v3911_v11 = vld [vmem:[#allocation5 + $0x400] sm:$0xff]  ;;  %v3912_v6 = vld [vmem:[#allocation5 + $0x408] sm:$0xff] }
 0x438   :  { %v3923_v36 = vld [vmem:[#allocation5 + $0x460] sm:$0xff] }
 0x439   :  { %7438 = vmatmul.mubr.f32.vlgmr.msra.gmra.mrb[30].mxu1 %v2760_v30  ;;  %v3914_v30 = vld [vmem:[#allocation5 + $0x418] sm:$0xff] }
 0x43a   :  { %7615 = vmatmul.mubr.f32.vlgmr.msra.gmra.mrb[218].mxu0 %v2742_v18  ;;  %7440 = vmatprep.mubr.msk.f32.mxu1 %vm9276_vm0, %v11387_v27  ;;  %v3626_v18 = vld [vmem:[#allocation5 + $0x328] sm:$0xff] }
 0x43b   :  { %7617 = vmatprep.mubr.msk.f32.mxu0 %vm9276_vm0, %v11387_v27  ;;  %8650 = vmatpush3.bf16.msra.mxu1 %v8649_v19  ;;  %v8727_v12 = vpack.c.bf16 %v3626_v18, %v3625_v35  ;;  %v3479_v19 = vld [vmem:[#allocation5 + $0x298] sm:$0xff]  ;;  %v8703_v35 = vpack.c.bf16 %v3481_v42, %v3480_v23  ;;  %v3768_v42 = vld [vmem:[#allocation5 + $0x390] sm:$0xff] }
 0x43c   :  { %8722 = vmatpush3.bf16.msra.mxu0 %v8721_v56  ;;  %8651 = vmatprep.subr.bf16.mxu1 %v12156_v14  ;;  %v3913_v56 = vld [vmem:[#allocation5 + $0x410] sm:$0xff]  ;;  %v8700_v55 = vpack.c.bf16 %v3479_v19, %v3478_v58  ;;  %v11725_v23 = vld [vmem:[#allocation2] sm:$0xff] }
 0x43d   :  { %8723 = vmatprep.subr.bf16.mxu0 %v12156_v14  ;;  %7441 = vmatmul.mubr.f32.gmra.mrb[32].mxu1 %v11566_v5 }
 0x43e   :  { %7618 = vmatmul.mubr.f32.gmra.mrb[220].mxu0 %v2743_v57  ;;  %7443 = vmatprep.mubr.msk.f32.mxu1 %vm9276_vm0, %v11387_v27  ;;  %v3628_v57 = vld [vmem:[#allocation5 + $0x338] sm:$0xff] }
 0x43f   :  { %7620 = vmatprep.mubr.msk.f32.mxu0 %vm9276_vm0, %v11387_v27  ;;  %8653 = vmatpush3.bf16.msra.mxu1 %v8652_v34  ;;  %v8730_v24 = vpack.c.bf16 %v3628_v57, %v3627_v54  ;;  %v3915_v34 = vld [vmem:[#allocation5 + $0x420] sm:$0xff]  ;;  %v3918_v57 = vld [vmem:[#allocation5 + $0x438] sm:$0xff] }
 0x440   :  { %8725 = vmatpush3.bf16.msra.mxu0 %v8724_v45  ;;  %8654 = vmatprep.subr.bf16.mxu1 %v12156_v14  ;;  %v11658_v45 = vld [vmem:[#allocation2 + $0x17] sm:$0xff]  ;;  %v8775_v18 = vpack.c.bf16 %v3916_v60, %v3915_v34  ;;  %v3613_v54 = vld [vmem:[#allocation2 + $0x25] sm:$0xff] }
 0x441   :  { %8726 = vmatprep.subr.bf16.mxu0 %v12156_v14  ;;  %7444 = vmatmul.mubr.f32.gmra.mrb[34].mxu1 %v11577_v13  ;;  %v3769_v34 = vld [vmem:[#allocation5 + $0x398] sm:$0xff]  ;;  %v3770_v60 = vld [vmem:[#allocation5 + $0x3a0] sm:$0xff] }
 0x442   :  { %7621 = vmatmul.mubr.f32.gmra.mrb[222].mxu0 %v2744_v15  ;;  %7446 = vmatprep.mubr.msk.f32.mxu1 %vm9276_vm0, %v11387_v27  ;;  %v3630_v15 = vld [vmem:[#allocation5 + $0x348] sm:$0xff] }
 0x443   :  { %7623 = vmatprep.mubr.msk.f32.mxu0 %vm9276_vm0, %v11387_v27  ;;  %8656 = vmatpush3.bf16.msra.mxu1 %v8655_v48  ;;  %v8733_v31 = vpack.c.bf16 %v3630_v15, %v3629_v10  ;;  %v3482_v48 = vld [vmem:[#allocation5 + $0x2b0] sm:$0xff]  ;;  %v3919_v10 = vld [vmem:[#allocation5 + $0x440] sm:$0xff] }
 0x444   :  { %8728 = vmatpush3.bf16.msra.mxu0 %v8727_v12  ;;  %8657 = vmatprep.subr.bf16.mxu1 %v12156_v14  ;;  %v3483_v12 = vld [vmem:[#allocation5 + $0x2b8] sm:$0xff] }
 0x445   :  { %8729 = vmatprep.subr.bf16.mxu0 %v12156_v14  ;;  %7447 = vmatmul.mubr.f32.gmra.mrb[36].mxu1 %v11588_v51  ;;  %v11676_v15 = vld [vmem:[#allocation2 + $0x27] sm:$0xff] }
 0x446   :  { %7624 = vmatmul.mubr.f32.gmra.mrb[224].mxu0 %v2745_v40  ;;  %7449 = vmatprep.mubr.msk.f32.mxu1 %vm9276_vm0, %v11387_v27  ;;  %v3632_v40 = vld [vmem:[#allocation5 + $0x358] sm:$0xff] }
 0x447   :  { %7626 = vmatprep.mubr.msk.f32.mxu0 %vm9276_vm0, %v11387_v27  ;;  %8659 = vmatpush3.bf16.msra.mxu1 %v8658_v22  ;;  %v8736_v46 = vpack.c.bf16 %v3632_v40, %v3631_v20  ;;  %v8706_v22 = vpack.c.bf16 %v3483_v12, %v3482_v48  ;;  %v3486_v20 = vld [vmem:[#allocation5 + $0x2d0] sm:$0xff]  ;;  %v3487_v40 = vld [vmem:[#allocation5 + $0x2d8] sm:$0xff]  ;;  %v3774_v48 = vld [vmem:[#allocation5 + $0x3c0] sm:$0xff] }
 0x448   :  { %8731 = vmatpush3.bf16.msra.mxu0 %v8730_v24  ;;  %8660 = vmatprep.subr.bf16.mxu1 %v12156_v14  ;;  %v8778_v24 = vpack.c.bf16 %v3918_v57, %v3917_v9  ;;  %v3775_v12 = vld [vmem:[#allocation5 + $0x3c8] sm:$0xff]  ;;  %v3776_v9 = vld [vmem:[#allocation5 + $0x3d0] sm:$0xff] }
 0x449   :  { %8732 = vmatprep.subr.bf16.mxu0 %v12156_v14  ;;  %7450 = vmatmul.mubr.f32.gmra.mrb[38].mxu1 %v11599_v59  ;;  %v3779_v57 = vld [vmem:[#allocation5 + $0x3e8] sm:$0xff] }
 0x44a   :  { %7627 = vmatmul.mubr.f32.gmra.mrb[226].mxu0 %v2746_v47  ;;  %7452 = vmatprep.mubr.msk.f32.mxu1 %vm9276_vm0, %v11387_v27  ;;  %v3634_v47 = vld [vmem:[#allocation5 + $0x368] sm:$0xff] }
 0x44b   :  { %7629 = vmatprep.mubr.msk.f32.mxu0 %vm9276_vm0, %v11387_v27  ;;  %8662 = vmatpush3.bf16.msra.mxu1 %v8661_v25  ;;  %v8739_v16 = vpack.c.bf16 %v3634_v47, %v3633_v28  ;;  %v3614_v25 = vld [vmem:[#allocation2 + $0x2d] sm:$0xff]  ;;  %v8712_v28 = vpack.c.bf16 %v3487_v40, %v3486_v20  ;;  %v3764_v20 = vld [vmem:[#allocation2 + $0x56] sm:$0xff] }
 0x44c   :  { %8734 = vmatpush3.bf16.msra.mxu0 %v8733_v31  ;;  %8663 = vmatprep.subr.bf16.mxu1 %v12156_v14  ;;  %v3920_v31 = vld [vmem:[#allocation5 + $0x448] sm:$0xff] }
 0x44d   :  { %8735 = vmatprep.subr.bf16.mxu0 %v12156_v14  ;;  %7453 = vmatmul.mubr.f32.gmra.mrb[40].mxu1 %v11610_v7  ;;  %v8781_v33 = vpack.c.bf16 %v3920_v31, %v3919_v10  ;;  %v3758_v10 = vld [vmem:[#allocation2 + $0x26] sm:$0xff]  ;;  %v3761_v31 = vld [vmem:[#allocation2 + $0x3e] sm:$0xff] }
 0x44e   :  { %7630 = vmatmul.mubr.f32.gmra.mrb[228].mxu0 %v2747_v26  ;;  %7455 = vmatprep.mubr.msk.f32.mxu1 %vm9276_vm0, %v11387_v27  ;;  %v3636_v26 = vld [vmem:[#allocation5 + $0x378] sm:$0xff] }
 0x44f   :  { %7632 = vmatprep.mubr.msk.f32.mxu0 %vm9276_vm0, %v11387_v27  ;;  %8665 = vmatpush3.bf16.msra.mxu1 %v8664_v17  ;;  %v8742_v49 = vpack.c.bf16 %v3636_v26, %v3635_v37  ;;  %v3921_v17 = vld [vmem:[#allocation5 + $0x450] sm:$0xff]  ;;  %v3924_v26 = vld [vmem:[#allocation5 + $0x468] sm:$0xff] }
 0x450   :  { %8737 = vmatpush3.bf16.msra.mxu0 %v8736_v46  ;;  %8666 = vmatprep.subr.bf16.mxu1 %v12156_v14  ;;  %v11685_v46 = vld [vmem:[#allocation2 + $0x2f] sm:$0xff]  ;;  %v8784_v47 = vpack.c.bf16 %v3922_v41, %v3921_v17  ;;  %v3616_v37 = vld [vmem:[#allocation2 + $0x3d] sm:$0xff] }
 0x451   :  { %8738 = vmatprep.subr.bf16.mxu0 %v12156_v14  ;;  %7456 = vmatmul.mubr.f32.gmra.mrb[42].mxu1 %v11621_v63 }
 0x452   :  { %7633 = vmatmul.mubr.f32.gmra.mrb[230].mxu0 %v2748_v0  ;;  %7458 = vmatprep.mubr.msk.f32.mxu1 %vm9276_vm0, %v11387_v27  ;;  %v3477_v0 = vld [vmem:[#allocation5 + $0x288] sm:$0xff] }
 0x453   :  { %7635 = vmatprep.mubr.msk.f32.mxu0 %vm9276_vm0, %v11387_v27  ;;  %8668 = vmatpush3.bf16.msra.mxu1 %v8667_v21  ;;  %v8697_v62 = vpack.c.bf16 %v3477_v0, %v3476_v43  ;;  %v3488_v21 = vld [vmem:[#allocation5 + $0x2e0] sm:$0xff]  ;;  %v3490_v43 = vld [vmem:[#allocation5 + $0x2f0] sm:$0xff]  ;;  %v3491_v0 = vld [vmem:[#allocation5 + $0x2f8] sm:$0xff] }
 0x454   :  { %8740 = vmatpush3.bf16.msra.mxu0 %v8739_v16  ;;  %8669 = vmatprep.subr.bf16.mxu1 %v12156_v14  ;;  %v3489_v16 = vld [vmem:[#allocation5 + $0x2e8] sm:$0xff]  ;;  %v8718_v58 = vpack.c.bf16 %v3491_v0, %v3490_v43 }
 0x455   :  { %8741 = vmatprep.subr.bf16.mxu0 %v12156_v14  ;;  %7459 = vmatmul.mubr.f32.gmra.mrb[44].mxu1 %v11632_v39 }
 0x456   :  { %7636 = vmatmul.mubr.f32.gmra.mrb[232].mxu0 %v2749_v38  ;;  %7461 = vmatprep.mubr.msk.f32.mxu1 %vm9276_vm0, %v11387_v27  ;;  %v8769_v38 = vpack.c.bf16 %v3912_v6, %v3911_v11  ;;  %v3925_v11 = vld [vmem:[#allocation5 + $0x470] sm:$0xff] }
 0x457   :  { %7638 = vmatprep.mubr.msk.f32.mxu0 %vm9276_vm0, %v11387_v27  ;;  %8671 = vmatpush3.bf16.msra.mxu1 %v8670_v61  ;;  %v8715_v61 = vpack.c.bf16 %v3489_v16, %v3488_v21  ;;  %v11703_v6 = vld [vmem:[#allocation2 + $0x3f] sm:$0xff] }
 0x458   :  { %8743 = vmatpush3.bf16.msra.mxu0 %v8742_v49  ;;  %8696 = vmatprep.subr.bf16.mxu1 %v12156_v14  ;;  %v8787_v49 = vpack.c.bf16 %v3924_v26, %v3923_v36 }
 0x459   :  { %8768 = vmatprep.subr.bf16.mxu0 %v12156_v14  ;;  %7462 = vmatmul.mubr.f32.gmra.mrb[46].mxu1 %v11643_v29 }
 0x45a   :  { %7639 = vmatmul.mubr.f32.gmra.mrb[234].mxu0 %v2750_v32  ;;  %7555 = vmatprep.mubr.msk.f32.mxu1 %vm9276_vm0, %v11387_v27  ;;  %v8772_v32 = vpack.c.bf16 %v3914_v30, %v3913_v56  ;;  %v11712_v56 = vld [vmem:[#allocation2 + $0x47] sm:$0xff]  ;;  %v11721_v30 = vld [vmem:[#allocation2 + $0x4f] sm:$0xff] }
 0x45b   :  { %7732 = vmatprep.mubr.msk.f32.mxu0 %vm9276_vm0, %v11387_v27 }
 0x45d   :  { %7556 = vmatmul.mubr.f32.vlgmr.msra.gmra.mrb[48].mxu1 %v3176_v44  ;;  %v3618_v44 = vld [vmem:[#allocation2 + $0x4d] sm:$0xff] }
 0x45e   :  { %7733 = vmatmul.mubr.f32.vlgmr.msra.gmra.mrb[236].mxu0 %v3611_v50  ;;  %7558 = vmatprep.mubr.msk.f32.mxu1 %vm9276_vm0, %v11387_v27  ;;  %v3766_v50 = vld [vmem:[#allocation5 + $0x380] sm:$0xff] }
 0x45f   :  { %7735 = vmatprep.mubr.msk.f32.mxu0 %vm9276_vm0, %v11387_v27  ;;  %8698 = vmatpush3.bf16.msra.mxu1 %v8697_v62  ;;  %v3617_v62 = vld [vmem:[#allocation2 + $0x45] sm:$0xff] }
 0x460   :  { %8770 = vmatpush3.bf16.msra.mxu0 %v8769_v38  ;;  %8699 = vmatprep.subr.bf16.mxu1 %v12156_v14  ;;  %v3926_v38 = vld [vmem:[#allocation5 + $0x478] sm:$0xff] }
 0x461   :  { %8771 = vmatprep.subr.bf16.mxu0 %v12156_v14  ;;  %7559 = vmatmul.mubr.f32.gmra.mrb[50].mxu1 %v11658_v45  ;;  %v8790_v19 = vpack.c.bf16 %v3926_v38, %v3925_v11 }
 0x462   :  { %7736 = vmatmul.mubr.f32.gmra.mrb[238].mxu0 %v3612_v1  ;;  %7561 = vmatprep.mubr.msk.f32.mxu1 %vm9276_vm0, %v11387_v27  ;;  %v8748_v1 = vpack.c.bf16 %v3769_v34, %v3768_v42 }
 0x463   :  { %7738 = vmatprep.mubr.msk.f32.mxu0 %vm9276_vm0, %v11387_v27  ;;  %8701 = vmatpush3.bf16.msra.mxu1 %v8700_v55  ;;  %v3619_v55 = vld [vmem:[#allocation2 + $0x55] sm:$0xff] }
 0x464   :  { %8773 = vmatpush3.bf16.msra.mxu0 %v8772_v32  ;;  %8702 = vmatprep.subr.bf16.mxu1 %v12156_v14  ;;  %v3767_v32 = vld [vmem:[#allocation5 + $0x388] sm:$0xff] }
 0x465   :  { %8774 = vmatprep.subr.bf16.mxu0 %v12156_v14  ;;  %7562 = vmatmul.mubr.f32.gmra.mrb[52].mxu1 %v11667_v3 }
 0x466   :  { %7739 = vmatmul.mubr.f32.gmra.mrb[240].mxu0 %v3613_v54  ;;  %7564 = vmatprep.mubr.msk.f32.mxu1 %vm9276_vm0, %v11387_v27  ;;  %v3778_v54 = vld [vmem:[#allocation5 + $0x3e0] sm:$0xff] }
 0x467   :  { %7741 = vmatprep.mubr.msk.f32.mxu0 %vm9276_vm0, %v11387_v27  ;;  %8704 = vmatpush3.bf16.msra.mxu1 %v8703_v35  ;;  %v3771_v35 = vld [vmem:[#allocation5 + $0x3a8] sm:$0xff] }
 0x468   :  { %8776 = vmatpush3.bf16.msra.mxu0 %v8775_v18  ;;  %8705 = vmatprep.subr.bf16.mxu1 %v12156_v14  ;;  %v3773_v18 = vld [vmem:[#allocation5 + $0x3b8] sm:$0xff] }
 0x469   :  { %8777 = vmatprep.subr.bf16.mxu0 %v12156_v14  ;;  %7565 = vmatmul.mubr.f32.gmra.mrb[54].mxu1 %v11676_v15 }
 0x46a   :  { %7742 = vmatmul.mubr.f32.gmra.mrb[242].mxu0 %v3614_v25  ;;  %7567 = vmatprep.mubr.msk.f32.mxu1 %vm9276_vm0, %v11387_v27  ;;  %v3760_v25 = vld [vmem:[#allocation2 + $0x36] sm:$0xff] }
 0x46b   :  { %7744 = vmatprep.mubr.msk.f32.mxu0 %vm9276_vm0, %v11387_v27  ;;  %8707 = vmatpush3.bf16.msra.mxu1 %v8706_v22  ;;  %v3780_v22 = vld [vmem:[#allocation5 + $0x3f0] sm:$0xff] }
 0x46c   :  { %8779 = vmatpush3.bf16.msra.mxu0 %v8778_v24  ;;  %8708 = vmatprep.subr.bf16.mxu1 %v12156_v14  ;;  %v3781_v24 = vld [vmem:[#allocation5 + $0x3f8] sm:$0xff] }
 0x46d   :  { %8780 = vmatprep.subr.bf16.mxu0 %v12156_v14  ;;  %7568 = vmatmul.mubr.f32.gmra.mrb[56].mxu1 %v11685_v46 }
 0x46e   :  { %7745 = vmatmul.mubr.f32.gmra.mrb[244].mxu0 %v3615_v8  ;;  %7570 = vmatprep.mubr.msk.f32.mxu1 %vm9276_vm0, %v11387_v27 }
 0x46f   :  { %7747 = vmatprep.mubr.msk.f32.mxu0 %vm9276_vm0, %v11387_v27  ;;  %8710 = vmatpush3.bf16.msra.mxu1 %v8709_v2  ;;  %v3762_v2 = vld [vmem:[#allocation2 + $0x46] sm:$0xff] }
 0x470   :  { %8782 = vmatpush3.bf16.msra.mxu0 %v8781_v33  ;;  %8711 = vmatprep.subr.bf16.mxu1 %v12156_v14  ;;  %v3763_v33 = vld [vmem:[#allocation2 + $0x4e] sm:$0xff] }
 0x471   :  { %8783 = vmatprep.subr.bf16.mxu0 %v12156_v14  ;;  %7571 = vmatmul.mubr.f32.gmra.mrb[58].mxu1 %v11694_v4 }
 0x472   :  { %7748 = vmatmul.mubr.f32.gmra.mrb[246].mxu0 %v3616_v37  ;;  %7573 = vmatprep.mubr.msk.f32.mxu1 %vm9276_vm0, %v11387_v27 }
 0x473   :  { %7750 = vmatprep.mubr.msk.f32.mxu0 %vm9276_vm0, %v11387_v27  ;;  %8713 = vmatpush3.bf16.msra.mxu1 %v8712_v28 }
 0x474   :  { %8785 = vmatpush3.bf16.msra.mxu0 %v8784_v47  ;;  %8714 = vmatprep.subr.bf16.mxu1 %v12156_v14 }
 0x475   :  { %8786 = vmatprep.subr.bf16.mxu0 %v12156_v14  ;;  %7574 = vmatmul.mubr.f32.gmra.mrb[60].mxu1 %v11703_v6 }
 0x476   :  { %7751 = vmatmul.mubr.f32.gmra.mrb[248].mxu0 %v3617_v62  ;;  %7576 = vmatprep.mubr.msk.f32.mxu1 %vm9276_vm0, %v11387_v27 }
 0x477   :  { %7753 = vmatprep.mubr.msk.f32.mxu0 %vm9276_vm0, %v11387_v27  ;;  %8716 = vmatpush3.bf16.msra.mxu1 %v8715_v61 }
 0x478   :  { %8788 = vmatpush3.bf16.msra.mxu0 %v8787_v49  ;;  %8717 = vmatprep.subr.bf16.mxu1 %v12156_v14 }
 0x479   :  { %8789 = vmatprep.subr.bf16.mxu0 %v12156_v14  ;;  %7577 = vmatmul.mubr.f32.gmra.mrb[62].mxu1 %v11712_v56 }
 0x47a   :  { %7754 = vmatmul.mubr.f32.gmra.mrb[250].mxu0 %v3618_v44  ;;  %7579 = vmatprep.mubr.msk.f32.mxu1 %vm9276_vm0, %v11387_v27 }
 0x47b   :  { %7756 = vmatprep.mubr.msk.f32.mxu0 %vm9276_vm0, %v11387_v27  ;;  %8719 = vmatpush3.bf16.msra.mxu1 %v8718_v58  ;;  %v8745_v27 = vpack.c.bf16 %v3767_v32, %v3766_v50 }
 0x47c   :  { %8791 = vmatpush3.bf16.msra.mxu0 %v8790_v19  ;;  %8744 = vmatprep.subr.bf16.mxu1 %v12156_v14 }
 0x47d   :  { %7580 = vmatmul.mubr.f32.gmra.mrb[64].mxu1 %v11721_v30 }
 0x47e   :  { %7757 = vmatmul.mubr.f32.gmra.mrb[252].mxu0 %v3619_v55  ;;  %7673 = vmatprep.mubr.msk.f32.mxu1 %vm9276_vm0, %v11725_v23 }
 0x47f   :  { %7850 = vmatprep.mubr.msk.f32.mxu0 %vm9276_vm0, %v11725_v23 }
 0x481   :  { %7674 = vmatmul.mubr.f32.vlgmr.msra.gmra.mrb[66].mxu1 %v11566_v5  ;;  %v8751_v5 = vpack.c.bf16 %v3771_v35, %v3770_v60 }
 0x482   :  { %7851 = vmatmul.mubr.f32.vlgmr.msra.gmra.mrb[254].mxu0 %v11658_v45  ;;  %7676 = vmatprep.mubr.msk.f32.mxu1 %vm9276_vm0, %v11725_v23  ;;  %v3772_v45 = vld [vmem:[#allocation5 + $0x3b0] sm:$0xff] }
 0x483   :  { %7853 = vmatprep.mubr.msk.f32.mxu0 %vm9276_vm0, %v11725_v23  ;;  %8746 = vmatpush3.bf16.msra.mxu1 %v8745_v27 }
 0x484   :  { %8747 = vmatprep.subr.bf16.mxu1 %v12156_v14 }
 0x485   :  { %7677 = vmatmul.mubr.f32.gmra.mrb[68].mxu1 %v11577_v13  ;;  %v8754_v13 = vpack.c.bf16 %v3773_v18, %v3772_v45 }
 0x486   :  { %7854 = vmatmul.mubr.f32.gmra.mrb[0].mxu0 %v11667_v3  ;;  %7679 = vmatprep.mubr.msk.f32.mxu1 %vm9276_vm0, %v11725_v23  ;;  %v3777_v3 = vld [vmem:[#allocation5 + $0x3d8] sm:$0xff] }
 0x487   :  { %7856 = vmatprep.mubr.msk.f32.mxu0 %vm9276_vm0, %v11725_v23  ;;  %8749 = vmatpush3.bf16.msra.mxu1 %v8748_v1 }
 0x488   :  { %8750 = vmatprep.subr.bf16.mxu1 %v12156_v14 }
 0x489   :  { %7680 = vmatmul.mubr.f32.gmra.mrb[70].mxu1 %v11588_v51  ;;  %v8757_v51 = vpack.c.bf16 %v3775_v12, %v3774_v48 }
 0x48a   :  { %7857 = vmatmul.mubr.f32.gmra.mrb[2].mxu0 %v11676_v15  ;;  %7682 = vmatprep.mubr.msk.f32.mxu1 %vm9276_vm0, %v11725_v23  ;;  %v3759_v15 = vld [vmem:[#allocation2 + $0x2e] sm:$0xff] }
 0x48b   :  { %7859 = vmatprep.mubr.msk.f32.mxu0 %vm9276_vm0, %v11725_v23  ;;  %8752 = vmatpush3.bf16.msra.mxu1 %v8751_v5 }
 0x48c   :  { %8753 = vmatprep.subr.bf16.mxu1 %v12156_v14 }
 0x48d   :  { %7683 = vmatmul.mubr.f32.gmra.mrb[72].mxu1 %v11599_v59  ;;  %v8760_v59 = vpack.c.bf16 %v3777_v3, %v3776_v9 }
 0x48e   :  { %7860 = vmatmul.mubr.f32.gmra.mrb[4].mxu0 %v11685_v46  ;;  %7685 = vmatprep.mubr.msk.f32.mxu1 %vm9276_vm0, %v11725_v23 }
 0x48f   :  { %7862 = vmatprep.mubr.msk.f32.mxu0 %vm9276_vm0, %v11725_v23  ;;  %8755 = vmatpush3.bf16.msra.mxu1 %v8754_v13 }
 0x490   :  { %8756 = vmatprep.subr.bf16.mxu1 %v12156_v14 }
 0x491   :  { %7686 = vmatmul.mubr.f32.gmra.mrb[74].mxu1 %v11610_v7  ;;  %v8763_v7 = vpack.c.bf16 %v3779_v57, %v3778_v54 }
 0x492   :  { %7863 = vmatmul.mubr.f32.gmra.mrb[6].mxu0 %v11694_v4  ;;  %7688 = vmatprep.mubr.msk.f32.mxu1 %vm9276_vm0, %v11725_v23 }
 0x493   :  { %7865 = vmatprep.mubr.msk.f32.mxu0 %vm9276_vm0, %v11725_v23  ;;  %8758 = vmatpush3.bf16.msra.mxu1 %v8757_v51 }
 0x494   :  { %8759 = vmatprep.subr.bf16.mxu1 %v12156_v14 }
 0x495   :  { %7689 = vmatmul.mubr.f32.gmra.mrb[76].mxu1 %v11621_v63  ;;  %v8766_v63 = vpack.c.bf16 %v3781_v24, %v3780_v22 }
 0x496   :  { %7866 = vmatmul.mubr.f32.gmra.mrb[8].mxu0 %v11703_v6  ;;  %7691 = vmatprep.mubr.msk.f32.mxu1 %vm9276_vm0, %v11725_v23 }
 0x497   :  { %7868 = vmatprep.mubr.msk.f32.mxu0 %vm9276_vm0, %v11725_v23  ;;  %8761 = vmatpush3.bf16.msra.mxu1 %v8760_v59 }
 0x498   :  { %8762 = vmatprep.subr.bf16.mxu1 %v12156_v14 }
 0x499   :  { %7692 = vmatmul.mubr.f32.gmra.mrb[78].mxu1 %v11632_v39  ;;  %v3474_v39 = vld [vmem:[#allocation2 + $0x51] sm:$0xff] }
 0x49a   :  { %7869 = vmatmul.mubr.f32.gmra.mrb[10].mxu0 %v11712_v56  ;;  %7694 = vmatprep.mubr.msk.f32.mxu1 %vm9276_vm0, %v11725_v23 }
 0x49b   :  { %7871 = vmatprep.mubr.msk.f32.mxu0 %vm9276_vm0, %v11725_v23  ;;  %8764 = vmatpush3.bf16.msra.mxu1 %v8763_v7 }
 0x49c   :  { %8765 = vmatprep.subr.bf16.mxu1 %v12156_v14 }
 0x49d   :  { %7695 = vmatmul.mubr.f32.gmra.mrb[80].mxu1 %v11643_v29  ;;  %v3757_v29 = vld [vmem:[#allocation2 + $0x1e] sm:$0xff] }
 0x49e   :  { %7872 = vmatmul.mubr.f32.gmra.mrb[12].mxu0 %v11721_v30  ;;  %7697 = vmatprep.mubr.msk.f32.mxu1 %vm9276_vm0, %v11725_v23 }
 0x49f   :  { %7874 = vmatprep.mubr.msk.f32.mxu0 %vm9276_vm0, %v11725_v23  ;;  %8767 = vmatpush3.bf16.msra.mxu1 %v8766_v63 }
 0x4a1   :  { %7698 = vmatmul.mubr.f32.gmra.mrb[82].mxu1 %v3474_v39 }
 0x4a2   :  { %7875 = vmatmul.mubr.f32.gmra.mrb[14].mxu0 %v3909_v52  ;;  %7791 = vmatprep.mubr.msk.f32.mxu1 %vm9276_vm0, %v11725_v23 }
 0x4a5   :  { %7792 = vmatmul.mubr.f32.vlgmr.msra.gmra.mrb[84].mxu1 %v3756_v53 }
 0x4a6   :  { %7794 = vmatprep.mubr.msk.f32.mxu1 %vm9276_vm0, %v11725_v23 }
 0x4a9   :  { %7795 = vmatmul.mubr.f32.gmra.mrb[86].mxu1 %v3757_v29 }
 0x4aa   :  { %7797 = vmatprep.mubr.msk.f32.mxu1 %vm9276_vm0, %v11725_v23 }
 0x4ad   :  { %7798 = vmatmul.mubr.f32.gmra.mrb[88].mxu1 %v3758_v10 }
 0x4ae   :  { %7800 = vmatprep.mubr.msk.f32.mxu1 %vm9276_vm0, %v11725_v23 }
 0x4b1   :  { %7801 = vmatmul.mubr.f32.gmra.mrb[90].mxu1 %v3759_v15 }
 0x4b2   :  { %7803 = vmatprep.mubr.msk.f32.mxu1 %vm9276_vm0, %v11725_v23 }
 0x4b5   :  { %7804 = vmatmul.mubr.f32.gmra.mrb[92].mxu1 %v3760_v25 }
 0x4b6   :  { %7806 = vmatprep.mubr.msk.f32.mxu1 %vm9276_vm0, %v11725_v23 }
 0x4b9   :  { %7807 = vmatmul.mubr.f32.gmra.mrb[94].mxu1 %v3761_v31 }
 0x4ba   :  { %7809 = vmatprep.mubr.msk.f32.mxu1 %vm9276_vm0, %v11725_v23 }
 0x4bd   :  { %7810 = vmatmul.mubr.f32.gmra.mrb[96].mxu1 %v3762_v2 }
 0x4be   :  { %7812 = vmatprep.mubr.msk.f32.mxu1 %vm9276_vm0, %v11725_v23 }
 0x4c1   :  { %7813 = vmatmul.mubr.f32.gmra.mrb[98].mxu1 %v3763_v33 }
 0x4c2   :  { %7815 = vmatprep.mubr.msk.f32.mxu1 %vm9276_vm0, %v11725_v23 }
 0x4c5   :  { %7816 = vmatmul.mubr.f32.gmra.mrb[100].mxu1 %v3764_v20 }
 0x4e8   :  { %v2877_v40 = vpop.f32.mrb[12].mxu1 }
 0x4e9   :  { %v3123_v17 = vpop.f32.mrb[200].mxu0  ;;  %v7380_v46 = vpop.f32.mrb[13].mxu1 }
 0x4ea   :  { %v7498_v8 = vpop.f32.mrb[201].mxu0 }
 0x4ec   :  { %v2882_v41 = vpop.f32.mrb[14].mxu1 }
 0x4ed   :  { %v3128_v28 = vpop.f32.mrb[202].mxu0  ;;  %v7383_v47 = vpop.f32.mrb[15].mxu1 }
 0x4ee   :  { %v7501_v21 = vpop.f32.mrb[203].mxu0 }
 0x4f0   :  { %v2887_v16 = vpop.f32.mrb[16].mxu1 }
 0x4f1   :  { %v3133_v36 = vpop.f32.mrb[204].mxu0  ;;  %v7386_v4 = vpop.f32.mrb[17].mxu1 }
 0x4f2   :  { %v7504_v37 = vpop.f32.mrb[205].mxu0 }
 0x4f4   :  { %v2892_v26 = vpop.f32.mrb[18].mxu1 }
 0x4f5   :  { %v3138_v61 = vpop.f32.mrb[206].mxu0  ;;  %v7389_v49 = vpop.f32.mrb[19].mxu1 }
 0x4f6   :  { %v7507_v43 = vpop.f32.mrb[207].mxu0 }
 0x4f8   :  { %v2897_v0 = vpop.f32.mrb[20].mxu1 }
 0x4f9   :  { %v3143_v11 = vpop.f32.mrb[208].mxu0  ;;  %v7392_v6 = vpop.f32.mrb[21].mxu1 }
 0x4fa   :  { %v7510_v62 = vpop.f32.mrb[209].mxu0 }
 0x4fc   :  { %v2902_v38 = vpop.f32.mrb[22].mxu1 }
 0x4fd   :  { %v3148_v58 = vpop.f32.mrb[210].mxu0  ;;  %v7395_v19 = vpop.f32.mrb[23].mxu1 }
 0x4fe   :  { %v7513_v56 = vpop.f32.mrb[211].mxu0 }
 0x500   :  { %v2907_v44 = vpop.f32.mrb[24].mxu1 }
 0x501   :  { %v3153_v50 = vpop.f32.mrb[212].mxu0  ;;  %v7398_v30 = vpop.f32.mrb[25].mxu1 }
 0x502   :  { %v7516_v55 = vpop.f32.mrb[213].mxu0 }
 0x504   :  { %v2912_v32 = vpop.f32.mrb[26].mxu1 }
 0x505   :  { %v3158_v27 = vpop.f32.mrb[214].mxu0  ;;  %v7401_v42 = vpop.f32.mrb[27].mxu1 }
 0x506   :  { %v7519_v34 = vpop.f32.mrb[215].mxu0 }
 0x508   :  { %v2917_v1 = vpop.f32.mrb[28].mxu1 }
 0x509   :  { %v3163_v60 = vpop.f32.mrb[216].mxu0  ;;  %v7404_v35 = vpop.f32.mrb[29].mxu1 }
 0x50a   :  { %v7522_v5 = vpop.f32.mrb[217].mxu0 }
 0x50c   :  { %v2987_v45 = vpop.f32.mrb[30].mxu1 }
 0x50d   :  { %v3413_v18 = vpop.f32.mrb[218].mxu0  ;;  %v2988_v13 = vadd.f32 %v2987_v45, %v2877_v40  ;;  %v7439_v48 = vpop.f32.mrb[31].mxu1 }
 0x50e   :  { %v7616_v12 = vpop.f32.mrb[219].mxu0 }
 0x50f   :  { %v3167_v51 = vadd.f32 %v3123_v17, %v2988_v13 }
 0x510   :  { %v2992_v9 = vpop.f32.mrb[32].mxu1 }
 0x511   :  { %v3418_v3 = vpop.f32.mrb[220].mxu0  ;;  %v2993_v59 = vadd.f32 %v2992_v9, %v2882_v41  ;;  %v7442_v54 = vpop.f32.mrb[33].mxu1 }
 0x512   :  { %v7619_v57 = vpop.f32.mrb[221].mxu0  ;;  %v4261_v54 = vld [vmem:[#allocation7 + $0x90] sm:$0xff] }
 0x513   :  { %v3168_v7 = vadd.f32 %v3128_v28, %v2993_v59  ;;  %v4259_v59 = vld [vmem:[#allocation7 + $0x80] sm:$0xff] }
 0x514   :  { %v2997_v22 = vpop.f32.mrb[34].mxu1 }
 0x515   :  { %v11804_v24 = vpop.f32.mrb[222].mxu0  ;;  %v2998_v63 = vadd.f32 %v2997_v22, %v2887_v16  ;;  %v7445_v39 = vpop.f32.mrb[35].mxu1 }
 0x516   :  { %v7622_v52 = vpop.f32.mrb[223].mxu0  ;;  %v4262_v39 = vld [vmem:[#allocation7 + $0x98] sm:$0xff] }
 0x517   :  { %v3169_v53 = vadd.f32 %v3133_v36, %v2998_v63 }
 0x518   :  { %v3002_v29 = vpop.f32.mrb[36].mxu1 }
 0x519   :  { %v11806_v10 = vpop.f32.mrb[224].mxu0  ;;  %v3003_v15 = vadd.f32 %v3002_v29, %v2892_v26  ;;  %v7448_v25 = vpop.f32.mrb[37].mxu1 }
 0x51a   :  { %v7625_v31 = vpop.f32.mrb[225].mxu0  ;;  %v4263_v25 = vld [vmem:[#allocation7 + $0xa0] sm:$0xff] }
 0x51b   :  { %v11808_v2 = vadd.f32 %v3138_v61, %v3003_v15  ;;  %v8812_v15 = vpack.c.bf16 %v4262_v39, %v4261_v54  ;;  %v4264_v31 = vld [vmem:[#allocation7 + $0xa8] sm:$0xff] }
 0x51c   :  { %v3007_v33 = vpop.f32.mrb[38].mxu1 }
 0x51d   :  { %v11810_v20 = vpop.f32.mrb[226].mxu0  ;;  %v3008_v40 = vadd.f32 %v3007_v33, %v2897_v0  ;;  %v7451_v17 = vpop.f32.mrb[39].mxu1 }
 0x51e   :  { %v7628_v46 = vpop.f32.mrb[227].mxu0 }
 0x51f   :  { %v11812_v8 = vadd.f32 %v3143_v11, %v3008_v40  ;;  %v8816_v40 = vpack.c.bf16 %v4264_v31, %v4263_v25 }
 0x520   :  { %v3012_v41 = vpop.f32.mrb[40].mxu1 }
 0x521   :  { %v11814_v28 = vpop.f32.mrb[228].mxu0  ;;  %v3013_v47 = vadd.f32 %v3012_v41, %v2902_v38  ;;  %v7454_v21 = vpop.f32.mrb[41].mxu1 }
 0x522   :  { %v7631_v16 = vpop.f32.mrb[229].mxu0 }
 0x523   :  { %v11816_v36 = vadd.f32 %v3148_v58, %v3013_v47  ;;  %v4266_v47 = vld [vmem:[#allocation7 + $0xb8] sm:$0xff] }
 0x524   :  { %v3017_v4 = vpop.f32.mrb[42].mxu1 }
 0x525   :  { %v11818_v37 = vpop.f32.mrb[230].mxu0  ;;  %v3018_v26 = vadd.f32 %v3017_v4, %v2907_v44  ;;  %v7457_v61 = vpop.f32.mrb[43].mxu1 }
 0x526   :  { %v7634_v49 = vpop.f32.mrb[231].mxu0 }
 0x527   :  { %v11820_v43 = vadd.f32 %v3153_v50, %v3018_v26 }
 0x528   :  { %v3022_v0 = vpop.f32.mrb[44].mxu1 }
 0x529   :  { %v11822_v6 = vpop.f32.mrb[232].mxu0  ;;  %v3023_v11 = vadd.f32 %v3022_v0, %v2912_v32  ;;  %v7460_v62 = vpop.f32.mrb[45].mxu1  ;;  %v4125_v32 = vld [vmem:[%s12125_s6] sm:$0xff]  ;;  %v4267_v0 = vld [vmem:[#allocation7 + $0xc0] sm:$0xff] }
 0x52a   :  { %v7637_v19 = vpop.f32.mrb[233].mxu0  ;;  %7895 = vmatprep.mubr.msk.f32.mxu1 %vm2604_vm1, %v4125_v32 }
 0x52b   :  { %v11824_v56 = vadd.f32 %v3158_v27, %v3023_v11  ;;  %v4268_v11 = vld [vmem:[#allocation7 + $0xc8] sm:$0xff] }
 0x52c   :  { %v3027_v38 = vpop.f32.mrb[46].mxu1 }
 0x52d   :  { %v11826_v30 = vpop.f32.mrb[234].mxu0  ;;  %v3028_v58 = vadd.f32 %v3027_v38, %v2917_v1  ;;  %v7463_v55 = vpop.f32.mrb[47].mxu1 }
 0x52e   :  { %v7640_v42 = vpop.f32.mrb[235].mxu0 }
 0x52f   :  { %v11828_v34 = vadd.f32 %v3163_v60, %v3028_v58 }
 0x530   :  { %v3268_v44 = vpop.f32.mrb[48].mxu1 }
 0x531   :  { %v11830_v35 = vpop.f32.mrb[236].mxu0  ;;  %v3312_v50 = vadd.f32 %v3268_v44, %v3167_v51  ;;  %v7557_v5 = vpop.f32.mrb[49].mxu1  ;;  %v4260_v51 = vld [vmem:[#allocation7 + $0x88] sm:$0xff] }
 0x532   :  { %v7734_v45 = vpop.f32.mrb[237].mxu0  ;;  %v8808_v63 = vpack.c.bf16 %v4260_v51, %v4259_v59 }
 0x533   :  { %v11835_v27 = vadd.f32 %v3413_v18, %v3312_v50 }
 0x534   :  { %v3273_v13 = vpop.f32.mrb[50].mxu1  ;;  %8809 = vmatprep.subr.bf16.mxu0 %v8808_v63 }
 0x535   :  { %v11838_v1 = vpop.f32.mrb[238].mxu0  ;;  %v3313_v48 = vadd.f32 %v3273_v13, %v3168_v7  ;;  %v7560_v60 = vpop.f32.mrb[51].mxu1  ;;  %8811 = vmatpush3.bf16.msra.mxu0 %v8808_v63 }
 0x536   :  { %v7737_v12 = vpop.f32.mrb[239].mxu0  ;;  %8813 = vmatprep.subr.bf16.mxu0 %v8812_v15 }
 0x537   :  { %v11840_v9 = vadd.f32 %v3418_v3, %v3313_v48 }
 0x538   :  { %v3278_v57 = vpop.f32.mrb[52].mxu1 }
 0x539   :  { %v11842_v22 = vpop.f32.mrb[240].mxu0  ;;  %v3314_v18 = vadd.f32 %v3278_v57, %v3169_v53  ;;  %v7563_v52 = vpop.f32.mrb[53].mxu1  ;;  %v4265_v53 = vld [vmem:[#allocation7 + $0xb0] sm:$0xff]  ;;  %8815 = vmatpush3.bf16.msra.mxu0 %v8812_v15 }
 0x53a   :  { %v7740_v29 = vpop.f32.mrb[241].mxu0  ;;  %8817 = vmatprep.subr.bf16.mxu0 %v8816_v40 }
 0x53b   :  { %v11845_v7 = vadd.f32 %v11804_v24, %v3314_v18  ;;  %v8820_v24 = vpack.c.bf16 %v4266_v47, %v4265_v53 }
 0x53c   :  { %v3283_v3 = vpop.f32.mrb[54].mxu1 }
 0x53d   :  { %v11847_v33 = vpop.f32.mrb[242].mxu0  ;;  %v3315_v17 = vadd.f32 %v3283_v3, %v11808_v2  ;;  %v7566_v46 = vpop.f32.mrb[55].mxu1  ;;  %8819 = vmatpush3.bf16.msra.mxu0 %v8816_v40 }
 0x53e   :  { %v7743_v41 = vpop.f32.mrb[243].mxu0  ;;  %8821 = vmatprep.subr.bf16.mxu0 %v8820_v24 }
 0x53f   :  { %v3460_v21 = vadd.f32 %v11806_v10, %v3315_v17  ;;  %v8824_v10 = vpack.c.bf16 %v4268_v11, %v4267_v0 }
 0x540   :  { %v3288_v16 = vpop.f32.mrb[56].mxu1 }
 0x541   :  { %v11851_v4 = vpop.f32.mrb[244].mxu0  ;;  %v3316_v26 = vadd.f32 %v3288_v16, %v11812_v8  ;;  %v7569_v61 = vpop.f32.mrb[57].mxu1  ;;  %8823 = vmatpush3.bf16.msra.mxu0 %v8820_v24 }
 0x542   :  { %v7746_v49 = vpop.f32.mrb[245].mxu0  ;;  %8825 = vmatprep.subr.bf16.mxu0 %v8824_v10 }
 0x543   :  { %v3461_v2 = vadd.f32 %v11810_v20, %v3316_v26 }
 0x544   :  { %v3293_v62 = vpop.f32.mrb[58].mxu1 }
 0x545   :  { %v11855_v19 = vpop.f32.mrb[246].mxu0  ;;  %v3317_v38 = vadd.f32 %v3293_v62, %v11816_v36  ;;  %v7572_v58 = vpop.f32.mrb[59].mxu1  ;;  %8827 = vmatpush3.bf16.msra.mxu0 %v8824_v10 }
 0x546   :  { %v7749_v55 = vpop.f32.mrb[247].mxu0 }
 0x547   :  { %v3462_v42 = vadd.f32 %v11814_v28, %v3317_v38 }
 0x548   :  { %v3298_v8 = vpop.f32.mrb[60].mxu1 }
 0x549   :  { %v3733_v44 = vpop.f32.mrb[248].mxu0  ;;  %v3318_v50 = vadd.f32 %v3298_v8, %v11820_v43  ;;  %v7575_v5 = vpop.f32.mrb[61].mxu1 }
 0x54a   :  { %v7752_v20 = vpop.f32.mrb[249].mxu0 }
 0x54b   :  { %v3463_v45 = vadd.f32 %v11818_v37, %v3318_v50 }
 0x54c   :  { %v3303_v32 = vpop.f32.mrb[62].mxu1 }
 0x54d   :  { %v3738_v13 = vpop.f32.mrb[250].mxu0  ;;  %v3319_v48 = vadd.f32 %v3303_v32, %v11824_v56  ;;  %v7578_v36 = vpop.f32.mrb[63].mxu1 }
 0x54e   :  { %v7755_v60 = vpop.f32.mrb[251].mxu0 }
 0x54f   :  { %v3464_v12 = vadd.f32 %v11822_v6, %v3319_v48 }
 0x550   :  { %v3308_v28 = vpop.f32.mrb[64].mxu1 }
 0x551   :  { %v3743_v59 = vpop.f32.mrb[252].mxu0  ;;  %v3320_v51 = vadd.f32 %v3308_v28, %v11828_v34  ;;  %v7581_v54 = vpop.f32.mrb[65].mxu1 }
 0x552   :  { %v7758_v57 = vpop.f32.mrb[253].mxu0 }
 0x553   :  { %v3465_v43 = vadd.f32 %v11826_v30, %v3320_v51 }
 0x554   :  { %v3558_v63 = vpop.f32.mrb[66].mxu1 }
 0x555   :  { %v3993_v39 = vpop.f32.mrb[254].mxu0  ;;  %v3602_v37 = vadd.f32 %v3558_v63, %v11835_v27  ;;  %v7675_v18 = vpop.f32.mrb[67].mxu1 }
 0x556   :  { %v7852_v52 = vpop.f32.mrb[255].mxu0 }
 0x557   :  { %v3747_v56 = vadd.f32 %v11830_v35, %v3602_v37 }
 0x558   :  { %v3563_v29 = vpop.f32.mrb[68].mxu1 }
 0x559   :  { %v3998_v15 = vpop.f32.mrb[0].mxu0  ;;  %v3603_v6 = vadd.f32 %v3563_v29, %v11840_v9  ;;  %v7678_v25 = vpop.f32.mrb[69].mxu1 }
 0x55a   :  { %v7855_v31 = vpop.f32.mrb[1].mxu0 }
 0x55b   :  { %v3748_v34 = vadd.f32 %v11838_v1, %v3603_v6 }
 0x55c   :  { %v3568_v3 = vpop.f32.mrb[70].mxu1 }
 0x55d   :  { %v4003_v40 = vpop.f32.mrb[2].mxu0  ;;  %v3604_v30 = vadd.f32 %v3568_v3, %v11845_v7  ;;  %v7681_v17 = vpop.f32.mrb[71].mxu1 }
 0x55e   :  { %v7858_v46 = vpop.f32.mrb[3].mxu0 }
 0x55f   :  { %v3749_v27 = vadd.f32 %v11842_v22, %v3604_v30 }
 0x560   :  { %v3573_v41 = vpop.f32.mrb[72].mxu1 }
 0x561   :  { %v4008_v53 = vpop.f32.mrb[4].mxu0  ;;  %v3605_v47 = vadd.f32 %v3573_v41, %v3460_v21  ;;  %v7684_v35 = vpop.f32.mrb[73].mxu1 }
 0x562   :  { %v7861_v16 = vpop.f32.mrb[5].mxu0 }
 0x563   :  { %v3750_v24 = vadd.f32 %v11847_v33, %v3605_v47 }
 0x564   :  { %v3578_v9 = vpop.f32.mrb[74].mxu1 }
 0x565   :  { %v4013_v26 = vpop.f32.mrb[6].mxu0  ;;  %v3606_v61 = vadd.f32 %v3578_v9, %v3461_v2  ;;  %v7687_v49 = vpop.f32.mrb[75].mxu1 }
 0x566   :  { %v7864_v1 = vpop.f32.mrb[7].mxu0 }
 0x567   :  { %v3751_v0 = vadd.f32 %v11851_v4, %v3606_v61 }
 0x568   :  { %v3583_v11 = vpop.f32.mrb[76].mxu1 }
 0x569   :  { %v11873_v7 = vpop.f32.mrb[8].mxu0  ;;  %v3607_v62 = vadd.f32 %v3583_v11, %v3462_v42  ;;  %v7690_v10 = vpop.f32.mrb[77].mxu1 }
 0x56a   :  { %v7867_v22 = vpop.f32.mrb[9].mxu0 }
 0x56b   :  { %v3752_v38 = vadd.f32 %v11855_v19, %v3607_v62 }
 0x56c   :  { %v3588_v21 = vpop.f32.mrb[78].mxu1 }
 0x56d   :  { %v11876_v58 = vpop.f32.mrb[10].mxu0  ;;  %v3608_v55 = vadd.f32 %v3588_v21, %v3463_v45  ;;  %v7693_v33 = vpop.f32.mrb[79].mxu1 }
 0x56e   :  { %v7870_v8 = vpop.f32.mrb[11].mxu0 }
 0x56f   :  { %v3753_v50 = vadd.f32 %v3733_v44, %v3608_v55  ;;  %v11889_v44 = vld [vmem:[%s12124_s5] ss:$0 sm:$0xff] }
 0x570   :  { %v3593_v2 = vpop.f32.mrb[80].mxu1 }
 0x571   :  { %v11878_v5 = vpop.f32.mrb[12].mxu0  ;;  %v3609_v20 = vadd.f32 %v3593_v2, %v3464_v12  ;;  %v7696_v4 = vpop.f32.mrb[81].mxu1 }
 0x572   :  { %v7873_v32 = vpop.f32.mrb[13].mxu0 }
 0x573   :  { %v11880_v48 = vadd.f32 %v3738_v13, %v3609_v20 }
 0x574   :  { %v3598_v42 = vpop.f32.mrb[82].mxu1 }
 0x575   :  { %v11882_v36 = vpop.f32.mrb[14].mxu0  ;;  %v3610_v60 = vadd.f32 %v3598_v42, %v3465_v43  ;;  %v7699_v19 = vpop.f32.mrb[83].mxu1 }
 0x576   :  { %v7876_v28 = vpop.f32.mrb[15].mxu0 }
 0x577   :  { %v11884_v51 = vadd.f32 %v3743_v59, %v3610_v60 }
 0x578   :  { %v3848_v45 = vpop.f32.mrb[84].mxu1 }
 0x579   :  { %v3892_v54 = vadd.f32 %v3848_v45, %v3747_v56  ;;  %v7793_v57 = vpop.f32.mrb[85].mxu1 }
 0x57b   :  { %v4037_v12 = vadd.f32 %v3993_v39, %v3892_v54 }
 0x57c   :  { %v3853_v63 = vpop.f32.mrb[86].mxu1 }
 0x57d   :  { %v4053_v13 = vadd.f32 %v11889_v44, %v4037_v12  ;;  %v3893_v37 = vadd.f32 %v3853_v63, %v3748_v34  ;;  %v7796_v18 = vpop.f32.mrb[87].mxu1 }
 0x57f   :  { %4062 = vst [vmem:[#allocation2 + $0x10] sm:$0xff] %v4053_v13  ;;  %v4038_v43 = vadd.f32 %v3998_v15, %v3893_v37 }
 0x580   :  { %v3858_v52 = vpop.f32.mrb[88].mxu1 }
 0x581   :  { %v4054_v59 = vadd.f32 %v11889_v44, %v4038_v43  ;;  %v3894_v29 = vadd.f32 %v3858_v52, %v3749_v27  ;;  %v7799_v6 = vpop.f32.mrb[89].mxu1 }
 0x583   :  { %4063 = vst [vmem:[#allocation2 + $0x18] sm:$0xff] %v4054_v59  ;;  %v4039_v56 = vadd.f32 %v4003_v40, %v3894_v29 }
 0x584   :  { %v3863_v25 = vpop.f32.mrb[90].mxu1 }
 0x585   :  { %v4055_v31 = vadd.f32 %v11889_v44, %v4039_v56  ;;  %v3895_v3 = vadd.f32 %v3863_v25, %v3750_v24  ;;  %v7802_v30 = vpop.f32.mrb[91].mxu1 }
 0x587   :  { %4064 = vst [vmem:[#allocation2 + $0x20] sm:$0xff] %v4055_v31  ;;  %v4040_v39 = vadd.f32 %v4008_v53, %v3895_v3 }
 0x588   :  { %v3868_v17 = vpop.f32.mrb[92].mxu1 }
 0x589   :  { %v4056_v34 = vadd.f32 %v11889_v44, %v4040_v39  ;;  %v3896_v46 = vadd.f32 %v3868_v17, %v3751_v0  ;;  %v7805_v41 = vpop.f32.mrb[93].mxu1 }
 0x58a   :  { %v4071_v15 = vld [vmem:[#allocation2 + $0x11] sm:$0xff] }
 0x58b   :  { %v4089_v47 = vld [vmem:[#allocation2 + $0x16] sm:$0xff]  ;;  %4065 = vst [vmem:[#allocation2 + $0x28] sm:$0xff] %v4056_v34  ;;  %v4041_v27 = vadd.f32 %v4013_v26, %v3896_v46  ;;  %v4080_v24 = vmax.f32 %v4053_v13, %v4071_v15 }
 0x58c   :  { %v4098_v35 = vld [vmem:[#allocation2 + $0x17] sm:$0xff]  ;;  %v3873_v16 = vpop.f32.mrb[94].mxu1 }
 0x58d   :  { %v11896_v40 = vadd.f32 %v11889_v44, %v4041_v27  ;;  %v3897_v9 = vadd.f32 %v3873_v16, %v3752_v38  ;;  %v7808_v61 = vpop.f32.mrb[95].mxu1  ;;  %v4107_v49 = vmax.f32 %v4089_v47, %v4098_v35 }
 0x58e   :  { %v4072_v1 = vld [vmem:[#allocation2 + $0x19] sm:$0xff] }
 0x58f   :  { %v4090_v53 = vld [vmem:[#allocation2 + $0x1e] sm:$0xff]  ;;  %4066 = vst [vmem:[#allocation2 + $0x30] sm:$0xff] %v11896_v40  ;;  %v4042_v0 = vadd.f32 %v11873_v7, %v3897_v9  ;;  %v4081_v62 = vmax.f32 %v4054_v59, %v4072_v1  ;;  %v4116_v33 = vmax.f32 %v4080_v24, %v4107_v49 }
 0x590   :  { %v4099_v11 = vld [vmem:[#allocation2 + $0x1f] sm:$0xff]  ;;  %v3878_v22 = vpop.f32.mrb[96].mxu1 }
 0x591   :  { %v4108_v10 = vmax.f32 %v4090_v53, %v4099_v11  ;;  %v4058_v26 = vadd.f32 %v11889_v44, %v4042_v0  ;;  %v3898_v21 = vadd.f32 %v3878_v22, %v3753_v50  ;;  %v7811_v55 = vpop.f32.mrb[97].mxu1 }
 0x592   :  { %v4073_v38 = vld [vmem:[#allocation2 + $0x21] sm:$0xff]  ;;  %v4127_v55 = vld [vmem:[%s12125_s6 + $0x10] sm:$0xff] }
 0x593   :  { %v4117_v8 = vmax.f32 %v4081_v62, %v4108_v10  ;;  %v4091_v2 = vld [vmem:[#allocation2 + $0x26] sm:$0xff]  ;;  %4067 = vst [vmem:[#allocation2 + $0x38] sm:$0xff] %v4058_v26  ;;  %v4043_v4 = vadd.f32 %v11876_v58, %v3898_v21  ;;  %v4082_v28 = vmax.f32 %v4055_v31, %v4073_v38 }
 0x594   :  { %v4100_v20 = vld [vmem:[#allocation2 + $0x27] sm:$0xff]  ;;  %v3883_v42 = vpop.f32.mrb[98].mxu1 }
 0x595   :  { %v8792_v32 = vpack.c.bf16 %v4117_v8, %v4116_v33  ;;  %v4059_v60 = vadd.f32 %v11889_v44, %v4043_v4  ;;  %v3899_v7 = vadd.f32 %v3883_v42, %v11880_v48  ;;  %v7814_v19 = vpop.f32.mrb[99].mxu1  ;;  %v4109_v45 = vmax.f32 %v4091_v2, %v4100_v20  ;;  %v4126_v21 = vld [vmem:[%s12125_s6 + $0x8] sm:$0xff]  ;;  %v4128_v33 = vld [vmem:[%s12125_s6 + $0x18] sm:$0xff]  ;;  %v4270_v38 = vld [vmem:[#allocation7 + $0xd8] sm:$0xff] }
 0x596   :  { %v4074_v50 = vld [vmem:[#allocation2 + $0x29] sm:$0xff]  ;;  %v4269_v8 = vld [vmem:[#allocation7 + $0xd0] sm:$0xff] }
 0x597   :  { %8793 = vmatprep.subr.bf16.mxu1 %v8792_v32  ;;  %v4092_v54 = vld [vmem:[#allocation2 + $0x2e] sm:$0xff]  ;;  %4068 = vst [vmem:[#allocation2 + $0x40] sm:$0xff] %v4059_v60  ;;  %v4044_v12 = vadd.f32 %v11878_v5, %v3899_v7  ;;  %v4083_v63 = vmax.f32 %v4056_v34, %v4074_v50  ;;  %v4118_v48 = vmax.f32 %v4082_v28, %v4109_v45  ;;  %v4273_v42 = vld [vmem:[#allocation7 + $0xf0] sm:$0xff] }
 0x598   :  { %8795 = vmatpush3.bf16.msra.mxu1 %v8792_v32  ;;  %v4101_v57 = vld [vmem:[#allocation2 + $0x2f] sm:$0xff]  ;;  %v3888_v58 = vpop.f32.mrb[100].mxu1  ;;  %v8828_v2 = vpack.c.bf16 %v4270_v38, %v4269_v8 }
 0x599   :  { %v4110_v13 = vmax.f32 %v4092_v54, %v4101_v57  ;;  %v4060_v37 = vadd.f32 %v11889_v44, %v4044_v12  ;;  %v3900_v18 = vadd.f32 %v3888_v58, %v11884_v51  ;;  %v7817_v43 = vpop.f32.mrb[101].mxu1  ;;  %v4271_v20 = vld [vmem:[#allocation7 + $0xe0] sm:$0xff]  ;;  %v4272_v4 = vld [vmem:[#allocation7 + $0xe8] sm:$0xff] }
 0x59a   :  { %v4075_v59 = vld [vmem:[#allocation2 + $0x31] sm:$0xff]  ;;  %8829 = vmatprep.subr.bf16.mxu0 %v8828_v2  ;;  %v8832_v32 = vpack.c.bf16 %v4272_v4, %v4271_v20  ;;  %v4238_v19 = vld [vmem:[#allocation7] sm:$0xff]  ;;  %v4461_v20 = vld [vmem:[#allocation7 + $0x158] sm:$0xff] }
 0x59b   :  { %v4119_v52 = vmax.f32 %v4083_v63, %v4110_v13  ;;  %v4093_v29 = vld [vmem:[#allocation2 + $0x36] sm:$0xff]  ;;  %4069 = vst [vmem:[#allocation2 + $0x48] sm:$0xff] %v4060_v37  ;;  %v4045_v56 = vadd.f32 %v11882_v36, %v3900_v18  ;;  %v4084_v5 = vmax.f32 %v11896_v40, %v4075_v59  ;;  %8831 = vmatpush3.bf16.msra.mxu0 %v8828_v2  ;;  %v4241_v18 = vld [vmem:[#allocation7 + $0x18] sm:$0xff]  ;;  %v4242_v59 = vld [vmem:[#allocation7 + $0x20] sm:$0xff] }
 0x59c   :  { %v4102_v6 = vld [vmem:[#allocation2 + $0x37] sm:$0xff]  ;;  %8833 = vmatprep.subr.bf16.mxu0 %v8832_v32 }
 0x59d   :  { %v8796_v25 = vpack.c.bf16 %v4119_v52, %v4118_v48  ;;  %v4061_v31 = vadd.f32 %v11889_v44, %v4045_v56  ;;  %v4111_v3 = vmax.f32 %v4093_v29, %v4102_v6  ;;  %v4239_v28 = vld [vmem:[#allocation7 + $0x8] sm:$0xff]  ;;  %v4460_v2 = vld [vmem:[#allocation7 + $0x150] sm:$0xff] }
 0x59e   :  { %v4076_v30 = vld [vmem:[#allocation2 + $0x39] sm:$0xff]  ;;  %v8840_v45 = vpack.c.bf16 %v4239_v28, %v4238_v19  ;;  %v4243_v29 = vld [vmem:[#allocation7 + $0x28] sm:$0xff]  ;;  %v8892_v4 = vpack.c.bf16 %v4461_v20, %v4460_v2 }
 0x59f   :  { %8797 = vmatprep.subr.bf16.mxu1 %v8796_v25  ;;  %v4094_v39 = vld [vmem:[#allocation2 + $0x3e] sm:$0xff]  ;;  %4070 = vst [vmem:[#allocation2 + $0x50] sm:$0xff] %v4061_v31  ;;  %v4085_v17 = vmax.f32 %v4058_v26, %v4076_v30  ;;  %v4120_v46 = vmax.f32 %v4084_v5, %v4111_v3  ;;  %8835 = vmatpush3.bf16.msra.mxu0 %v8832_v32  ;;  %v4459_v8 = vld [vmem:[#allocation7 + $0x148] sm:$0xff]  ;;  %v4462_v32 = vld [vmem:[#allocation7 + $0x160] sm:$0xff] }
 0x5a0   :  { %8799 = vmatpush3.bf16.msra.mxu1 %v8796_v25  ;;  %v4103_v51 = vld [vmem:[#allocation2 + $0x3f] sm:$0xff]  ;;  %v8848_v6 = vpack.c.bf16 %v4243_v29, %v4242_v59 }
 0x5a1   :  { %v4112_v34 = vmax.f32 %v4094_v39, %v4103_v51  ;;  %v4245_v5 = vld [vmem:[#allocation7 + $0x38] sm:$0xff]  ;;  %v4246_v39 = vld [vmem:[#allocation7 + $0x40] sm:$0xff]  ;;  %v4247_v51 = vld [vmem:[#allocation7 + $0x48] sm:$0xff] }
 0x5a2   :  { %v4077_v15 = vld [vmem:[#allocation2 + $0x41] sm:$0xff]  ;;  %v4676_v2 = vld [vmem:[#allocation7 + $0x230] sm:$0xff] }
 0x5a3   :  { %v4121_v41 = vmax.f32 %v4085_v17, %v4112_v34  ;;  %v4095_v47 = vld [vmem:[#allocation2 + $0x46] sm:$0xff]  ;;  %v4086_v27 = vmax.f32 %v4059_v60, %v4077_v15  ;;  %v8856_v17 = vpack.c.bf16 %v4247_v51, %v4246_v39  ;;  %v4248_v34 = vld [vmem:[#allocation7 + $0x50] sm:$0xff] }
 0x5a4   :  { %v4104_v35 = vld [vmem:[#allocation2 + $0x47] sm:$0xff]  ;;  %v4566_v39 = vld [vmem:[#allocation7 + $0x1b0] sm:$0xff] }
 0x5a5   :  { %v8800_v36 = vpack.c.bf16 %v4121_v41, %v4120_v46  ;;  %v4113_v44 = vmax.f32 %v4095_v47, %v4104_v35  ;;  %v4274_v60 = vld [vmem:[#allocation7 + $0xf8] sm:$0xff]  ;;  %v4250_v15 = vld [vmem:[#allocation7 + $0x60] sm:$0xff]  ;;  %v4251_v47 = vld [vmem:[#allocation7 + $0x68] sm:$0xff] }
 0x5a6   :  { %v4078_v16 = vld [vmem:[#allocation2 + $0x49] sm:$0xff]  ;;  %v4079_v49 = vld [vmem:[#allocation2 + $0x51] sm:$0xff]  ;;  %v8836_v7 = vpack.c.bf16 %v4274_v60, %v4273_v42  ;;  %v4249_v46 = vld [vmem:[#allocation7 + $0x58] sm:$0xff]  ;;  %v8864_v35 = vpack.c.bf16 %v4251_v47, %v4250_v15 }
 0x5a7   :  { %8801 = vmatprep.subr.bf16.mxu1 %v8800_v36  ;;  %v4096_v40 = vld [vmem:[#allocation2 + $0x4e] sm:$0xff]  ;;  %v4087_v61 = vmax.f32 %v4060_v37, %v4078_v16  ;;  %v4097_v1 = vld [vmem:[#allocation2 + $0x56] sm:$0xff]  ;;  %v4122_v11 = vmax.f32 %v4086_v27, %v4113_v44  ;;  %v4088_v62 = vmax.f32 %v4061_v31, %v4079_v49  ;;  %v8860_v41 = vpack.c.bf16 %v4249_v46, %v4248_v34  ;;  %v4253_v27 = vld [vmem:[#allocation7 + $0x78] sm:$0xff] }
 0x5a8   :  { %8803 = vmatpush3.bf16.msra.mxu1 %v8800_v36  ;;  %v4105_v9 = vld [vmem:[#allocation2 + $0x4f] sm:$0xff]  ;;  %v4106_v53 = vld [vmem:[#allocation2 + $0x57] sm:$0xff]  ;;  %8837 = vmatprep.subr.bf16.mxu0 %v8836_v7  ;;  %v4465_v19 = vld [vmem:[#allocation7 + $0x178] sm:$0xff] }
 0x5a9   :  { %v4114_v24 = vmax.f32 %v4096_v40, %v4105_v9  ;;  %v4115_v10 = vmax.f32 %v4097_v1, %v4106_v53  ;;  %8839 = vmatpush3.bf16.msra.mxu0 %v8836_v7  ;;  %v4240_v37 = vld [vmem:[#allocation7 + $0x10] sm:$0xff]  ;;  %v4450_v16 = vld [vmem:[#allocation7 + $0x100] sm:$0xff]  ;;  %v4451_v40 = vld [vmem:[#allocation7 + $0x108] sm:$0xff] }
 0x5aa   :  { %8841 = vmatprep.subr.bf16.mxu0 %v8840_v45  ;;  %v8844_v52 = vpack.c.bf16 %v4241_v18, %v4240_v37  ;;  %v4244_v31 = vld [vmem:[#allocation7 + $0x30] sm:$0xff]  ;;  %v8872_v9 = vpack.c.bf16 %v4451_v40, %v4450_v16  ;;  %v4454_v53 = vld [vmem:[#allocation7 + $0x120] sm:$0xff]  ;;  %v4463_v42 = vld [vmem:[#allocation7 + $0x168] sm:$0xff] }
 0x5ab   :  { %v4123_v0 = vmax.f32 %v4087_v61, %v4114_v24  ;;  %v4124_v26 = vmax.f32 %v4088_v62, %v4115_v10  ;;  %v8852_v30 = vpack.c.bf16 %v4245_v5, %v4244_v31  ;;  %v4252_v36 = vld [vmem:[#allocation7 + $0x70] sm:$0xff]  ;;  %v4453_v24 = vld [vmem:[#allocation7 + $0x118] sm:$0xff]  ;;  %v8896_v60 = vpack.c.bf16 %v4463_v42, %v4462_v32  ;;  %v4561_v37 = vld [vmem:[#allocation7 + $0x188] sm:$0xff] }
 0x5ac   :  { %v8868_v44 = vpack.c.bf16 %v4253_v27, %v4252_v36  ;;  %v4452_v61 = vld [vmem:[#allocation7 + $0x110] sm:$0xff]  ;;  %v4565_v31 = vld [vmem:[#allocation7 + $0x1a8] sm:$0xff]  ;;  %v4567_v51 = vld [vmem:[#allocation7 + $0x1b8] sm:$0xff] }
 0x5ad   :  { %v8804_v22 = vpack.c.bf16 %v4123_v0, %v4122_v11  ;;  %v8876_v49 = vpack.c.bf16 %v4453_v24, %v4452_v61  ;;  %v4455_v11 = vld [vmem:[#allocation7 + $0x128] sm:$0xff]  ;;  %v4464_v7 = vld [vmem:[#allocation7 + $0x170] sm:$0xff]  ;;  %v8916_v34 = vpack.c.bf16 %v4567_v51, %v4566_v39  ;;  %v4568_v46 = vld [vmem:[#allocation7 + $0x1c0] sm:$0xff] }
 0x5ae   :  { %v8880_v62 = vpack.c.bf16 %v4455_v11, %v4454_v53  ;;  %v8900_v28 = vpack.c.bf16 %v4465_v19, %v4464_v7  ;;  %v4570_v47 = vld [vmem:[#allocation7 + $0x1d0] sm:$0xff]  ;;  %v4572_v27 = vld [vmem:[#allocation7 + $0x1e0] sm:$0xff]  ;;  %v4677_v20 = vld [vmem:[#allocation7 + $0x238] sm:$0xff] }
 0x5af   :  { %8805 = vmatprep.subr.bf16.mxu1 %v8804_v22  ;;  %v4574_v40 = vld [vmem:[#allocation7 + $0x1f0] sm:$0xff]  ;;  %v4670_v24 = vld [vmem:[#allocation7 + $0x200] sm:$0xff]  ;;  %v4679_v42 = vld [vmem:[#allocation7 + $0x248] sm:$0xff] }
 0x5b0   :  { %8807 = vmatpush3.bf16.msra.mxu1 %v8804_v22  ;;  %v4456_v22 = vld [vmem:[#allocation7 + $0x130] sm:$0xff]  ;;  %v4678_v32 = vld [vmem:[#allocation7 + $0x240] sm:$0xff]  ;;  %v4681_v19 = vld [vmem:[#allocation7 + $0x258] sm:$0xff] }
 0x5b1   :  { %7893 = vmatprep.subr.mxu1 %v4124_v26  ;;  %v4672_v11 = vld [vmem:[#allocation7 + $0x210] sm:$0xff]  ;;  %v4784_v51 = vld [vmem:[#allocation7 + $0x2a0] sm:$0xff] }
 0x5b2   :  { %v4680_v7 = vld [vmem:[#allocation7 + $0x250] sm:$0xff] }
 0x5b4   :  { %7894 = vmatpush3.msra.mxu1 %v4124_v26  ;;  %v4457_v26 = vld [vmem:[#allocation7 + $0x138] sm:$0xff] }
 0x5b5   :  { %7896 = vmatmul.mubr.msk.f32.vlgmr.msra.gmra.mrb[102].mxu1 %vm2604_vm1, %v4126_v21  ;;  %9096 = vmatprep.subr.bf16.mxu1 %v12156_v14 }
 0x5b6   :  { %7898 = vmatprep.mubr.msk.f32.mxu1 %vm2604_vm1, %v4127_v55  ;;  %v8884_v55 = vpack.c.bf16 %v4457_v26, %v4456_v22 }
 0x5b9   :  { %7899 = vmatmul.mubr.msk.f32.gmra.mrb[104].mxu1 %vm2604_vm1, %v4128_v33  ;;  %v4458_v33 = vld [vmem:[#allocation7 + $0x140] sm:$0xff] }
 0x5ba   :  { %8251 = vmatprep.mubr.msk.f32.mxu1 %vm9276_vm0, %v11725_v23  ;;  %v8888_v38 = vpack.c.bf16 %v4459_v8, %v4458_v33 }
 0x688   :  { %v11925_v23 = vpop.f32.mrb[102].mxu1 }
 0x689   :  { %v4227_v50 = vmax.f32 %v11925_v23, 0.0  ;;  %v11928_v54 = vpop.f32.mrb[103].mxu1 }
 0x68a   :  { %v4226_v57 = vmax.f32 %v11928_v54, 0.0  ;;  %v4685_v54 = vld [vmem:[#allocation7 + $0x278] sm:$0xff] }
 0x68b   :  { %4231 = vst [vmem:[#allocation2 + $0x18] sm:$0xff] %v4227_v50 }
 0x68c   :  { %4230 = vst [vmem:[#allocation2 + $0x10] sm:$0xff] %v4226_v57  ;;  %v11935_v12 = vpop.f32.mrb[104].mxu1 }
 0x68d   :  { %v4229_v63 = vmax.f32 %v11935_v12, 0.0  ;;  %v11938_v13 = vpop.f32.mrb[105].mxu1 }
 0x68e   :  { %v4228_v58 = vmax.f32 %v11938_v13, 0.0  ;;  %v4791_v13 = vld [vmem:[#allocation7 + $0x2d8] sm:$0xff] }
 0x68f   :  { %4233 = vst [vmem:[#allocation2 + $0x28] sm:$0xff] %v4229_v63 }
 0x690   :  { %4232 = vst [vmem:[#allocation2 + $0x20] sm:$0xff] %v4228_v58 }
 0x693   :  { %v4254_v43 = vld [vmem:[#allocation2 + $0xc] sm:$0xff]  ;;  %v11945_v48 = vld [vmem:[#allocation2 + $0x14] sm:$0xff] }
 0x694   :  { %7933 = vmatprep.mubr.f32.mxu0 %v4254_v43  ;;  %v4234_v3 = vld [vmem:[#allocation2 + $0xb] sm:$0xff]  ;;  %v11954_v1 = vld [vmem:[#allocation2 + $0x13] sm:$0xff] }
 0x695   :  { %7934 = vmatmul.mubr.f32.vlgmr.msra.gmra.mrb[16].mxu0 %v11945_v48  ;;  %v4445_v21 = vld [vmem:[#allocation2 + $0xd] sm:$0xff]  ;;  %v4562_v43 = vld [vmem:[#allocation7 + $0x190] sm:$0xff] }
 0x696   :  { %8843 = vmatpush3.bf16.msra.mxu0 %v8840_v45  ;;  %v4560_v45 = vld [vmem:[#allocation7 + $0x180] sm:$0xff]  ;;  %v11963_v29 = vld [vmem:[#allocation2 + $0x15] sm:$0xff] }
 0x697   :  { %8845 = vmatprep.subr.bf16.mxu0 %v8844_v52  ;;  %v11948_v56 = vld [vmem:[#allocation2 + $0x1c] sm:$0xff]  ;;  %v11950_v25 = vld [vmem:[#allocation2 + $0x24] sm:$0xff]  ;;  %v8904_v18 = vpack.c.bf16 %v4561_v37, %v4560_v45  ;;  %v4683_v37 = vld [vmem:[#allocation7 + $0x268] sm:$0xff] }
 0x698   :  { %7936 = vmatprep.mubr.f32.mxu0 %v11948_v56  ;;  %v11957_v0 = vld [vmem:[#allocation2 + $0x1b] sm:$0xff]  ;;  %v11960_v10 = vld [vmem:[#allocation2 + $0x23] sm:$0xff] }
 0x699   :  { %7937 = vmatmul.mubr.f32.gmra.mrb[18].mxu0 %v11950_v25  ;;  %v11966_v5 = vld [vmem:[#allocation2 + $0x1d] sm:$0xff]  ;;  %v4682_v45 = vld [vmem:[#allocation7 + $0x260] sm:$0xff] }
 0x69a   :  { %8847 = vmatpush3.bf16.msra.mxu0 %v8844_v52  ;;  %7971 = vmatprep.mubr.f32.mxu0 %v4234_v3  ;;  %v4563_v52 = vld [vmem:[#allocation7 + $0x198] sm:$0xff]  ;;  %v4556_v26 = vld [vmem:[#allocation2 + $0x17] sm:$0xff] }
 0x69b   :  { %8849 = vmatprep.subr.bf16.mxu0 %v8848_v6  ;;  %v8908_v59 = vpack.c.bf16 %v4563_v52, %v4562_v43  ;;  %v4557_v33 = vld [vmem:[#allocation2 + $0x1f] sm:$0xff]  ;;  %v4780_v52 = vld [vmem:[#allocation7 + $0x280] sm:$0xff] }
 0x69c   :  { %v4684_v43 = vld [vmem:[#allocation7 + $0x270] sm:$0xff] }
 0x69e   :  { %8851 = vmatpush3.bf16.msra.mxu0 %v8848_v6  ;;  %v4564_v6 = vld [vmem:[#allocation7 + $0x1a0] sm:$0xff] }
 0x69f   :  { %8853 = vmatprep.subr.bf16.mxu0 %v8852_v30  ;;  %v8912_v3 = vpack.c.bf16 %v4565_v31, %v4564_v6  ;;  %v4782_v31 = vld [vmem:[#allocation7 + $0x290] sm:$0xff] }
 0x6a2   :  { %8855 = vmatpush3.bf16.msra.mxu0 %v8852_v30  ;;  %v11969_v30 = vld [vmem:[#allocation2 + $0x25] sm:$0xff] }
 0x6a3   :  { %8857 = vmatprep.subr.bf16.mxu0 %v8856_v17 }
 0x6a6   :  { %8859 = vmatpush3.bf16.msra.mxu0 %v8856_v17  ;;  %v4555_v17 = vld [vmem:[#allocation2 + $0xf] sm:$0xff] }
 0x6a7   :  { %8861 = vmatprep.subr.bf16.mxu0 %v8860_v41 }
 0x6aa   :  { %8863 = vmatpush3.bf16.msra.mxu0 %v8860_v41  ;;  %v4569_v41 = vld [vmem:[#allocation7 + $0x1c8] sm:$0xff] }
 0x6ab   :  { %8865 = vmatprep.subr.bf16.mxu0 %v8864_v35  ;;  %v8920_v15 = vpack.c.bf16 %v4569_v41, %v4568_v46  ;;  %v4786_v46 = vld [vmem:[#allocation7 + $0x2b0] sm:$0xff]  ;;  %v4787_v41 = vld [vmem:[#allocation7 + $0x2b8] sm:$0xff] }
 0x6ae   :  { %8867 = vmatpush3.bf16.msra.mxu0 %v8864_v35  ;;  %v4571_v35 = vld [vmem:[#allocation7 + $0x1d8] sm:$0xff] }
 0x6af   :  { %8869 = vmatprep.subr.bf16.mxu0 %v8868_v44  ;;  %v8924_v36 = vpack.c.bf16 %v4571_v35, %v4570_v47  ;;  %v8980_v47 = vpack.c.bf16 %v4787_v41, %v4786_v46  ;;  %v4788_v35 = vld [vmem:[#allocation7 + $0x2c0] sm:$0xff] }
 0x6b0   :  { %v5008_v41 = vld [vmem:[#allocation7 + $0x3c0] sm:$0xff] }
 0x6b2   :  { %8871 = vmatpush3.bf16.msra.mxu0 %v8868_v44  ;;  %v4573_v44 = vld [vmem:[#allocation7 + $0x1e8] sm:$0xff] }
 0x6b3   :  { %8873 = vmatprep.subr.bf16.mxu0 %v8872_v9  ;;  %v8928_v16 = vpack.c.bf16 %v4573_v44, %v4572_v27  ;;  %v4792_v27 = vld [vmem:[#allocation7 + $0x2e0] sm:$0xff]  ;;  %v4793_v44 = vld [vmem:[#allocation7 + $0x2e8] sm:$0xff] }
 0x6b4   :  { %v8992_v12 = vpack.c.bf16 %v4793_v44, %v4792_v27  ;;  %v5110_v27 = vld [vmem:[#allocation7 + $0x400] sm:$0xff]  ;;  %v5111_v44 = vld [vmem:[#allocation7 + $0x408] sm:$0xff] }
 0x6b5   :  { %7972 = vmatmul.mubr.f32.vlgmr.msra.gmra.mrb[16].mxu0 %v11954_v1 }
 0x6b6   :  { %7974 = vmatprep.mubr.f32.mxu0 %v11957_v0  ;;  %8875 = vmatpush3.bf16.msra.mxu0 %v8872_v9  ;;  %v4575_v9 = vld [vmem:[#allocation7 + $0x1f8] sm:$0xff] }
 0x6b7   :  { %8877 = vmatprep.subr.bf16.mxu0 %v8876_v49  ;;  %v8932_v61 = vpack.c.bf16 %v4575_v9, %v4574_v40  ;;  %v4890_v9 = vld [vmem:[#allocation7 + $0x300] sm:$0xff] }
 0x6b9   :  { %7975 = vmatmul.mubr.f32.gmra.mrb[18].mxu0 %v11960_v10 }
 0x6ba   :  { %8879 = vmatpush3.bf16.msra.mxu0 %v8876_v49  ;;  %8009 = vmatprep.mubr.f32.mxu0 %v4445_v21  ;;  %v4671_v49 = vld [vmem:[#allocation7 + $0x208] sm:$0xff]  ;;  %v4674_v21 = vld [vmem:[#allocation7 + $0x220] sm:$0xff] }
 0x6bb   :  { %8881 = vmatprep.subr.bf16.mxu0 %v8880_v62  ;;  %v8936_v53 = vpack.c.bf16 %v4671_v49, %v4670_v24  ;;  %v4892_v49 = vld [vmem:[#allocation7 + $0x310] sm:$0xff] }
 0x6be   :  { %8883 = vmatpush3.bf16.msra.mxu0 %v8880_v62  ;;  %v4673_v62 = vld [vmem:[#allocation7 + $0x218] sm:$0xff] }
 0x6bf   :  { %8885 = vmatprep.subr.bf16.mxu0 %v8884_v55  ;;  %v8940_v22 = vpack.c.bf16 %v4673_v62, %v4672_v11  ;;  %v4776_v62 = vld [vmem:[#allocation2 + $0x19] sm:$0xff] }
 0x6c2   :  { %8887 = vmatpush3.bf16.msra.mxu0 %v8884_v55  ;;  %v4675_v55 = vld [vmem:[#allocation7 + $0x228] sm:$0xff] }
 0x6c3   :  { %8889 = vmatprep.subr.bf16.mxu0 %v8888_v38  ;;  %v8944_v8 = vpack.c.bf16 %v4675_v55, %v4674_v21  ;;  %v4777_v21 = vld [vmem:[#allocation2 + $0x21] sm:$0xff] }
 0x6c6   :  { %8891 = vmatpush3.bf16.msra.mxu0 %v8888_v38  ;;  %v4558_v38 = vld [vmem:[#allocation2 + $0x27] sm:$0xff] }
 0x6c7   :  { %8893 = vmatprep.subr.bf16.mxu0 %v8892_v4 }
 0x6ca   :  { %8895 = vmatpush3.bf16.msra.mxu0 %v8892_v4  ;;  %v8948_v4 = vpack.c.bf16 %v4677_v20, %v4676_v2  ;;  %v4898_v20 = vld [vmem:[#allocation7 + $0x340] sm:$0xff] }
 0x6cb   :  { %8897 = vmatprep.subr.bf16.mxu0 %v8896_v60 }
 0x6ce   :  { %8899 = vmatpush3.bf16.msra.mxu0 %v8896_v60  ;;  %v8952_v60 = vpack.c.bf16 %v4679_v42, %v4678_v32  ;;  %v4900_v42 = vld [vmem:[#allocation7 + $0x350] sm:$0xff] }
 0x6cf   :  { %8901 = vmatprep.subr.bf16.mxu0 %v8900_v28 }
 0x6d2   :  { %8903 = vmatpush3.bf16.msra.mxu0 %v8900_v28  ;;  %v8956_v28 = vpack.c.bf16 %v4681_v19, %v4680_v7  ;;  %v4902_v19 = vld [vmem:[#allocation7 + $0x360] sm:$0xff] }
 0x6d3   :  { %8905 = vmatprep.subr.bf16.mxu0 %v8904_v18 }
 0x6d5   :  { %8010 = vmatmul.mubr.f32.vlgmr.msra.gmra.mrb[16].mxu0 %v11963_v29 }
 0x6d6   :  { %8012 = vmatprep.mubr.f32.mxu0 %v11966_v5  ;;  %8907 = vmatpush3.bf16.msra.mxu0 %v8904_v18  ;;  %v8960_v18 = vpack.c.bf16 %v4683_v37, %v4682_v45  ;;  %v4904_v37 = vld [vmem:[#allocation7 + $0x370] sm:$0xff] }
 0x6d7   :  { %8909 = vmatprep.subr.bf16.mxu0 %v8908_v59 }
 0x6d9   :  { %8013 = vmatmul.mubr.f32.gmra.mrb[18].mxu0 %v11969_v30 }
 0x6da   :  { %8911 = vmatpush3.bf16.msra.mxu0 %v8908_v59  ;;  %8047 = vmatprep.mubr.f32.mxu0 %v4555_v17  ;;  %v4781_v59 = vld [vmem:[#allocation7 + $0x288] sm:$0xff] }
 0x6db   :  { %8913 = vmatprep.subr.bf16.mxu0 %v8912_v3  ;;  %v8968_v6 = vpack.c.bf16 %v4781_v59, %v4780_v52  ;;  %v4785_v17 = vld [vmem:[#allocation7 + $0x2a8] sm:$0xff]  ;;  %v5002_v52 = vld [vmem:[#allocation7 + $0x390] sm:$0xff]  ;;  %v5003_v59 = vld [vmem:[#allocation7 + $0x398] sm:$0xff] }
 0x6de   :  { %8915 = vmatpush3.bf16.msra.mxu0 %v8912_v3  ;;  %v4783_v3 = vld [vmem:[#allocation7 + $0x298] sm:$0xff] }
 0x6df   :  { %8917 = vmatprep.subr.bf16.mxu0 %v8916_v34  ;;  %v8972_v39 = vpack.c.bf16 %v4783_v3, %v4782_v31  ;;  %v5004_v31 = vld [vmem:[#allocation7 + $0x3a0] sm:$0xff]  ;;  %v5005_v3 = vld [vmem:[#allocation7 + $0x3a8] sm:$0xff] }
 0x6e2   :  { %8919 = vmatpush3.bf16.msra.mxu0 %v8916_v34  ;;  %v8976_v34 = vpack.c.bf16 %v4785_v17, %v4784_v51  ;;  %v4888_v51 = vld [vmem:[#allocation2 + $0x2b] sm:$0xff]  ;;  %v5006_v17 = vld [vmem:[#allocation7 + $0x3b0] sm:$0xff] }
 0x6e3   :  { %8921 = vmatprep.subr.bf16.mxu0 %v8920_v15 }
 0x6e6   :  { %8923 = vmatpush3.bf16.msra.mxu0 %v8920_v15  ;;  %v4775_v15 = vld [vmem:[#allocation2 + $0x11] sm:$0xff] }
 0x6e7   :  { %8925 = vmatprep.subr.bf16.mxu0 %v8924_v36 }
 0x6ea   :  { %8927 = vmatpush3.bf16.msra.mxu0 %v8924_v36  ;;  %v4789_v36 = vld [vmem:[#allocation7 + $0x2c8] sm:$0xff] }
 0x6eb   :  { %8929 = vmatprep.subr.bf16.mxu0 %v8928_v16  ;;  %v8984_v23 = vpack.c.bf16 %v4789_v36, %v4788_v35  ;;  %v5011_v35 = vld [vmem:[#allocation7 + $0x3d8] sm:$0xff]  ;;  %v5012_v36 = vld [vmem:[#allocation7 + $0x3e0] sm:$0xff] }
 0x6ee   :  { %8931 = vmatpush3.bf16.msra.mxu0 %v8928_v16  ;;  %v4795_v16 = vld [vmem:[#allocation7 + $0x2f8] sm:$0xff] }
 0x6ef   :  { %8933 = vmatprep.subr.bf16.mxu0 %v8932_v61 }
 0x6f2   :  { %8935 = vmatpush3.bf16.msra.mxu0 %v8932_v61  ;;  %v4891_v61 = vld [vmem:[#allocation7 + $0x308] sm:$0xff] }
 0x6f3   :  { %8937 = vmatprep.subr.bf16.mxu0 %v8936_v53  ;;  %v9000_v24 = vpack.c.bf16 %v4891_v61, %v4890_v9  ;;  %v5114_v9 = vld [vmem:[#allocation7 + $0x420] sm:$0xff]  ;;  %v5115_v61 = vld [vmem:[#allocation7 + $0x428] sm:$0xff] }
 0x6f5   :  { %8048 = vmatmul.mubr.f32.vlgmr.msra.gmra.mrb[16].mxu0 %v4556_v26  ;;  %v4895_v26 = vld [vmem:[#allocation7 + $0x328] sm:$0xff] }
 0x6f6   :  { %8050 = vmatprep.mubr.f32.mxu0 %v4557_v33  ;;  %8939 = vmatpush3.bf16.msra.mxu0 %v8936_v53  ;;  %v4893_v53 = vld [vmem:[#allocation7 + $0x318] sm:$0xff]  ;;  %v4778_v33 = vld [vmem:[#allocation2 + $0x29] sm:$0xff] }
 0x6f7   :  { %8941 = vmatprep.subr.bf16.mxu0 %v8940_v22  ;;  %v9004_v11 = vpack.c.bf16 %v4893_v53, %v4892_v49  ;;  %v4998_v49 = vld [vmem:[#allocation2 + $0x2c] sm:$0xff]  ;;  %v5116_v53 = vld [vmem:[#allocation7 + $0x430] sm:$0xff] }
 0x6f9   :  { %8051 = vmatmul.mubr.f32.gmra.mrb[18].mxu0 %v4558_v38  ;;  %v4897_v38 = vld [vmem:[#allocation7 + $0x338] sm:$0xff] }
 0x6fa   :  { %8943 = vmatpush3.bf16.msra.mxu0 %v8940_v22  ;;  %8085 = vmatprep.mubr.f32.mxu0 %v4226_v57  ;;  %v8964_v57 = vpack.c.bf16 %v4685_v54, %v4684_v43  ;;  %v4894_v22 = vld [vmem:[#allocation7 + $0x320] sm:$0xff]  ;;  %v5001_v54 = vld [vmem:[#allocation7 + $0x388] sm:$0xff] }
 0x6fb   :  { %8945 = vmatprep.subr.bf16.mxu0 %v8944_v8  ;;  %v9008_v55 = vpack.c.bf16 %v4895_v26, %v4894_v22  ;;  %v5000_v43 = vld [vmem:[#allocation7 + $0x380] sm:$0xff]  ;;  %v5119_v26 = vld [vmem:[#allocation7 + $0x448] sm:$0xff] }
 0x6fc   :  { %v5118_v22 = vld [vmem:[#allocation7 + $0x440] sm:$0xff] }
 0x6fe   :  { %8947 = vmatpush3.bf16.msra.mxu0 %v8944_v8  ;;  %v4896_v8 = vld [vmem:[#allocation7 + $0x330] sm:$0xff] }
 0x6ff   :  { %8949 = vmatprep.subr.bf16.mxu0 %v8948_v4  ;;  %v9012_v2 = vpack.c.bf16 %v4897_v38, %v4896_v8  ;;  %v5123_v8 = vld [vmem:[#allocation7 + $0x468] sm:$0xff] }
 0x702   :  { %8951 = vmatpush3.bf16.msra.mxu0 %v8948_v4  ;;  %v4899_v4 = vld [vmem:[#allocation7 + $0x348] sm:$0xff] }
 0x703   :  { %8953 = vmatprep.subr.bf16.mxu0 %v8952_v60  ;;  %v9016_v32 = vpack.c.bf16 %v4899_v4, %v4898_v20  ;;  %v5125_v20 = vld [vmem:[#allocation7 + $0x478] sm:$0xff]  ;;  %v5108_v4 = vld [vmem:[#allocation2 + $0x2d] sm:$0xff] }
 0x706   :  { %8955 = vmatpush3.bf16.msra.mxu0 %v8952_v60  ;;  %v4901_v60 = vld [vmem:[#allocation7 + $0x358] sm:$0xff] }
 0x707   :  { %8957 = vmatprep.subr.bf16.mxu0 %v8956_v28  ;;  %v9020_v7 = vpack.c.bf16 %v4901_v60, %v4900_v42 }
 0x70a   :  { %8959 = vmatpush3.bf16.msra.mxu0 %v8956_v28  ;;  %v4903_v28 = vld [vmem:[#allocation7 + $0x368] sm:$0xff] }
 0x70b   :  { %8961 = vmatprep.subr.bf16.mxu0 %v8960_v18  ;;  %v9024_v45 = vpack.c.bf16 %v4903_v28, %v4902_v19 }
 0x70e   :  { %8963 = vmatpush3.bf16.msra.mxu0 %v8960_v18  ;;  %v4905_v18 = vld [vmem:[#allocation7 + $0x378] sm:$0xff] }
 0x70f   :  { %8965 = vmatprep.subr.bf16.mxu0 %v8964_v57 }
 0x712   :  { %8967 = vmatpush3.bf16.msra.mxu0 %v8964_v57  ;;  %v9032_v57 = vpack.c.bf16 %v5001_v54, %v5000_v43 }
 0x713   :  { %8969 = vmatprep.subr.bf16.mxu0 %v8968_v6 }
 0x715   :  { %8086 = vmatmul.mubr.f32.vlgmr.msra.gmra.mrb[16].mxu0 %v4227_v50  ;;  %v4790_v50 = vld [vmem:[#allocation7 + $0x2d0] sm:$0xff] }
 0x716   :  { %8088 = vmatprep.mubr.f32.mxu0 %v4228_v58  ;;  %8971 = vmatpush3.bf16.msra.mxu0 %v8968_v6  ;;  %v8988_v58 = vpack.c.bf16 %v4791_v13, %v4790_v50  ;;  %v9036_v6 = vpack.c.bf16 %v5003_v59, %v5002_v52  ;;  %v5014_v13 = vld [vmem:[#allocation7 + $0x3f0] sm:$0xff] }
 0x717   :  { %8973 = vmatprep.subr.bf16.mxu0 %v8972_v39 }
 0x719   :  { %8089 = vmatmul.mubr.f32.gmra.mrb[18].mxu0 %v4229_v63  ;;  %v4794_v63 = vld [vmem:[#allocation7 + $0x2f0] sm:$0xff] }
 0x71a   :  { %8975 = vmatpush3.bf16.msra.mxu0 %v8972_v39  ;;  %8123 = vmatprep.mubr.f32.mxu0 %v4775_v15  ;;  %v8996_v40 = vpack.c.bf16 %v4795_v16, %v4794_v63  ;;  %v9040_v39 = vpack.c.bf16 %v5005_v3, %v5004_v31  ;;  %v5009_v15 = vld [vmem:[#allocation7 + $0x3c8] sm:$0xff]  ;;  %v5112_v63 = vld [vmem:[#allocation7 + $0x410] sm:$0xff]  ;;  %v5113_v16 = vld [vmem:[#allocation7 + $0x418] sm:$0xff] }
 0x71b   :  { %8977 = vmatprep.subr.bf16.mxu0 %v8976_v34 }
 0x71e   :  { %8979 = vmatpush3.bf16.msra.mxu0 %v8976_v34  ;;  %v5007_v34 = vld [vmem:[#allocation7 + $0x3b8] sm:$0xff] }
 0x71f   :  { %8981 = vmatprep.subr.bf16.mxu0 %v8980_v47  ;;  %v9044_v46 = vpack.c.bf16 %v5007_v34, %v5006_v17 }
 0x722   :  { %8983 = vmatpush3.bf16.msra.mxu0 %v8980_v47  ;;  %v9048_v47 = vpack.c.bf16 %v5009_v15, %v5008_v41 }
 0x723   :  { %8985 = vmatprep.subr.bf16.mxu0 %v8984_v23 }
 0x726   :  { %8987 = vmatpush3.bf16.msra.mxu0 %v8984_v23  ;;  %v5013_v23 = vld [vmem:[#allocation7 + $0x3e8] sm:$0xff] }
 0x727   :  { %8989 = vmatprep.subr.bf16.mxu0 %v8988_v58  ;;  %v9056_v50 = vpack.c.bf16 %v5013_v23, %v5012_v36 }
 0x72a   :  { %8991 = vmatpush3.bf16.msra.mxu0 %v8988_v58  ;;  %v5015_v58 = vld [vmem:[#allocation7 + $0x3f8] sm:$0xff] }
 0x72b   :  { %8993 = vmatprep.subr.bf16.mxu0 %v8992_v12 }
 0x72e   :  { %8995 = vmatpush3.bf16.msra.mxu0 %v8992_v12  ;;  %v9064_v12 = vpack.c.bf16 %v5111_v44, %v5110_v27  ;;  %v5254_v27 = vld [vmem:[%s12128_s9] sm:$0xff] }
 0x72f   :  { %8997 = vmatprep.subr.bf16.mxu0 %v8996_v40 }
 0x732   :  { %8999 = vmatpush3.bf16.msra.mxu0 %v8996_v40  ;;  %v9068_v40 = vpack.c.bf16 %v5113_v16, %v5112_v63  ;;  %v5333_v63 = vld [vmem:[%s12129_s10 + $0x18] sm:$0xff] }
 0x733   :  { %9001 = vmatprep.subr.bf16.mxu0 %v9000_v24 }
 0x735   :  { %8124 = vmatmul.mubr.f32.vlgmr.msra.gmra.mrb[16].mxu0 %v4776_v62 }
 0x736   :  { %8126 = vmatprep.mubr.f32.mxu0 %v4777_v21  ;;  %9003 = vmatpush3.bf16.msra.mxu0 %v9000_v24  ;;  %v9072_v24 = vpack.c.bf16 %v5115_v61, %v5114_v9  ;;  %v9080_v21 = vpack.c.bf16 %v5119_v26, %v5118_v22  ;;  %v5334_v9 = vld [vmem:[%s12129_s10 + $0x20] sm:$0xff]  ;;  %v5335_v61 = vld [vmem:[%s12129_s10 + $0x28] sm:$0xff] }
 0x737   :  { %9005 = vmatprep.subr.bf16.mxu0 %v9004_v11  ;;  %v5339_v22 = vld [vmem:[%s12129_s10 + $0x48] sm:$0xff] }
 0x739   :  { %8127 = vmatmul.mubr.f32.gmra.mrb[18].mxu0 %v4778_v33  ;;  %v5122_v33 = vld [vmem:[#allocation7 + $0x460] sm:$0xff] }
 0x73a   :  { %9007 = vmatpush3.bf16.msra.mxu0 %v9004_v11  ;;  %8161 = vmatprep.mubr.f32.mxu0 %v11954_v1  ;;  %v9028_v1 = vpack.c.bf16 %v4905_v18, %v4904_v37  ;;  %v5117_v11 = vld [vmem:[#allocation7 + $0x438] sm:$0xff]  ;;  %v9088_v38 = vpack.c.bf16 %v5123_v8, %v5122_v33  ;;  %v5343_v33 = vld [vmem:[%s12129_s10 + $0x68] sm:$0xff] }
 0x73b   :  { %9009 = vmatprep.subr.bf16.mxu0 %v9008_v55  ;;  %v9076_v62 = vpack.c.bf16 %v5117_v11, %v5116_v53  ;;  %v5337_v53 = vld [vmem:[%s12129_s10 + $0x38] sm:$0xff] }
 0x73e   :  { %9011 = vmatpush3.bf16.msra.mxu0 %v9008_v55  ;;  %v5121_v55 = vld [vmem:[#allocation7 + $0x458] sm:$0xff] }
 0x73f   :  { %9013 = vmatprep.subr.bf16.mxu0 %v9012_v2 }
 0x742   :  { %9015 = vmatpush3.bf16.msra.mxu0 %v9012_v2  ;;  %v5124_v2 = vld [vmem:[#allocation7 + $0x470] sm:$0xff] }
 0x743   :  { %9017 = vmatprep.subr.bf16.mxu0 %v9016_v32 }
 0x746   :  { %9019 = vmatpush3.bf16.msra.mxu0 %v9016_v32  ;;  %v5553_v32 = vld [vmem:[%s12127_s8] ss:$0 sm:$0xff] }
 0x747   :  { %9021 = vmatprep.subr.bf16.mxu0 %v9020_v7 }
 0x74a   :  { %9023 = vmatpush3.bf16.msra.mxu0 %v9020_v7 }
 0x74b   :  { %9025 = vmatprep.subr.bf16.mxu0 %v9024_v45 }
 0x74e   :  { %9027 = vmatpush3.bf16.msra.mxu0 %v9024_v45 }
 0x74f   :  { %9029 = vmatprep.subr.bf16.mxu0 %v9028_v1 }
 0x752   :  { %9031 = vmatpush3.bf16.msra.mxu0 %v9028_v1 }
 0x753   :  { %9033 = vmatprep.subr.bf16.mxu0 %v9032_v57 }
 0x755   :  { %8162 = vmatmul.mubr.f32.vlgmr.msra.gmra.mrb[16].mxu0 %v11957_v0  ;;  %v5010_v0 = vld [vmem:[#allocation7 + $0x3d0] sm:$0xff] }
 0x756   :  { %8164 = vmatprep.mubr.f32.mxu0 %v11960_v10  ;;  %9035 = vmatpush3.bf16.msra.mxu0 %v9032_v57  ;;  %v9052_v10 = vpack.c.bf16 %v5011_v35, %v5010_v0 }
 0x757   :  { %9037 = vmatprep.subr.bf16.mxu0 %v9036_v6 }
 0x759   :  { %8165 = vmatmul.mubr.f32.gmra.mrb[18].mxu0 %v4888_v51 }
 0x75a   :  { %9039 = vmatpush3.bf16.msra.mxu0 %v9036_v6  ;;  %8199 = vmatprep.mubr.f32.mxu0 %v11945_v48  ;;  %v9060_v48 = vpack.c.bf16 %v5015_v58, %v5014_v13  ;;  %v5330_v58 = vld [vmem:[%s12129_s10] sm:$0xff] }
 0x75b   :  { %9041 = vmatprep.subr.bf16.mxu0 %v9040_v39 }
 0x75e   :  { %9043 = vmatpush3.bf16.msra.mxu0 %v9040_v39 }
 0x75f   :  { %9045 = vmatprep.subr.bf16.mxu0 %v9044_v46 }
 0x762   :  { %9047 = vmatpush3.bf16.msra.mxu0 %v9044_v46 }
 0x763   :  { %9049 = vmatprep.subr.bf16.mxu0 %v9048_v47 }
 0x766   :  { %9051 = vmatpush3.bf16.msra.mxu0 %v9048_v47 }
 0x767   :  { %9053 = vmatprep.subr.bf16.mxu0 %v9052_v10 }
 0x76a   :  { %9055 = vmatpush3.bf16.msra.mxu0 %v9052_v10 }
 0x76b   :  { %9057 = vmatprep.subr.bf16.mxu0 %v9056_v50 }
 0x76e   :  { %9059 = vmatpush3.bf16.msra.mxu0 %v9056_v50 }
 0x76f   :  { %9061 = vmatprep.subr.bf16.mxu0 %v9060_v48 }
 0x772   :  { %9063 = vmatpush3.bf16.msra.mxu0 %v9060_v48  ;;  %v5331_v48 = vld [vmem:[%s12129_s10 + $0x8] sm:$0xff] }
 0x773   :  { %9065 = vmatprep.subr.bf16.mxu0 %v9064_v12  ;;  %v9103_v44 = vpack.c.bf16 %v5331_v48, %v5330_v58 }
 0x775   :  { %8200 = vmatmul.mubr.f32.vlgmr.msra.gmra.mrb[16].mxu0 %v11948_v56  ;;  %v5120_v56 = vld [vmem:[#allocation7 + $0x450] sm:$0xff] }
 0x776   :  { %8202 = vmatprep.mubr.f32.mxu0 %v11950_v25  ;;  %9067 = vmatpush3.bf16.msra.mxu0 %v9064_v12  ;;  %v9084_v25 = vpack.c.bf16 %v5121_v55, %v5120_v56  ;;  %v5332_v12 = vld [vmem:[%s12129_s10 + $0x10] sm:$0xff]  ;;  %v5341_v56 = vld [vmem:[%s12129_s10 + $0x58] sm:$0xff] }
 0x777   :  { %9069 = vmatprep.subr.bf16.mxu0 %v9068_v40  ;;  %v9106_v16 = vpack.c.bf16 %v5333_v63, %v5332_v12 }
 0x779   :  { %8203 = vmatmul.mubr.f32.gmra.mrb[18].mxu0 %v4998_v49  ;;  %v5336_v49 = vld [vmem:[%s12129_s10 + $0x30] sm:$0xff] }
 0x77a   :  { %9071 = vmatpush3.bf16.msra.mxu0 %v9068_v40  ;;  %8237 = vmatprep.mubr.f32.mxu0 %v11963_v29  ;;  %v9092_v29 = vpack.c.bf16 %v5125_v20, %v5124_v2  ;;  %v9198_v40 = vld [vmem:[#allocation2] sm:$0xff]  ;;  %v9112_v11 = vpack.c.bf16 %v5337_v53, %v5336_v49  ;;  %v5345_v2 = vld [vmem:[%s12129_s10 + $0x78] sm:$0xff] }
 0x77b   :  { %9073 = vmatprep.subr.bf16.mxu0 %v9072_v24 }
 0x77e   :  { %9075 = vmatpush3.bf16.msra.mxu0 %v9072_v24  ;;  %v9109_v24 = vpack.c.bf16 %v5335_v61, %v5334_v9 }
 0x77f   :  { %9077 = vmatprep.subr.bf16.mxu0 %v9076_v62 }
 0x782   :  { %9079 = vmatpush3.bf16.msra.mxu0 %v9076_v62  ;;  %v5338_v62 = vld [vmem:[%s12129_s10 + $0x40] sm:$0xff] }
 0x783   :  { %9081 = vmatprep.subr.bf16.mxu0 %v9080_v21  ;;  %v9115_v26 = vpack.c.bf16 %v5339_v22, %v5338_v62 }
 0x786   :  { %9083 = vmatpush3.bf16.msra.mxu0 %v9080_v21  ;;  %v5340_v21 = vld [vmem:[%s12129_s10 + $0x50] sm:$0xff] }
 0x787   :  { %9085 = vmatprep.subr.bf16.mxu0 %v9084_v25  ;;  %v9118_v55 = vpack.c.bf16 %v5341_v56, %v5340_v21 }
 0x78a   :  { %9087 = vmatpush3.bf16.msra.mxu0 %v9084_v25  ;;  %v5342_v25 = vld [vmem:[%s12129_s10 + $0x60] sm:$0xff] }
 0x78b   :  { %9089 = vmatprep.subr.bf16.mxu0 %v9088_v38  ;;  %v9121_v8 = vpack.c.bf16 %v5343_v33, %v5342_v25 }
 0x78e   :  { %9091 = vmatpush3.bf16.msra.mxu0 %v9088_v38  ;;  %v5344_v38 = vld [vmem:[%s12129_s10 + $0x70] sm:$0xff] }
 0x78f   :  { %9093 = vmatprep.subr.bf16.mxu0 %v9092_v29  ;;  %v9124_v20 = vpack.c.bf16 %v5345_v2, %v5344_v38 }
 0x792   :  { %9095 = vmatpush3.bf16.msra.mxu0 %v9092_v29  ;;  %v5424_v29 = vld [vmem:[%s12131_s12] sm:$0xff] }
 0x795   :  { %8238 = vmatmul.mubr.f32.vlgmr.msra.gmra.mrb[16].mxu0 %v11966_v5 }
 0x796   :  { %8240 = vmatprep.mubr.f32.mxu0 %v11969_v30 }
 0x799   :  { %8241 = vmatmul.mubr.f32.gmra.mrb[18].mxu0 %v5108_v4  ;;  %v5425_v4 = vld [vmem:[%s12131_s12 + $0x8] sm:$0xff] }
 0x868   :  { %v8239_v42 = vpop.f32.mrb[16].mxu0 }
 0x869   :  { %v5223_v60 = vadd.f32 %v8239_v42, %v5553_v32  ;;  %v5192_v7 = vpop.f32.mrb[17].mxu0  ;;  %v9127_v42 = vpack.c.bf16 %v5425_v4, %v5424_v29 }
 0x86a   :  { %v5222_v19 = vadd.f32 %v5553_v32, %v5192_v7 }
 0x86b   :  { %5227 = vst [vmem:[#allocation2 + $0x18] sm:$0xff] %v5223_v60 }
 0x86c   :  { %5226 = vst [vmem:[#allocation2 + $0x10] sm:$0xff] %v5222_v19  ;;  %v8242_v28 = vpop.f32.mrb[18].mxu0 }
 0x86d   :  { %v5225_v45 = vadd.f32 %v8242_v28, %v5553_v32  ;;  %v5202_v37 = vpop.f32.mrb[19].mxu0  ;;  %v5427_v28 = vld [vmem:[%s12131_s12 + $0x18] sm:$0xff] }
 0x86e   :  { %v5224_v18 = vadd.f32 %v5553_v32, %v5202_v37  ;;  %v5428_v37 = vld [vmem:[%s12131_s12 + $0x20] sm:$0xff] }
 0x86f   :  { %5229 = vst [vmem:[#allocation2 + $0x28] sm:$0xff] %v5225_v45 }
 0x870   :  { %5228 = vst [vmem:[#allocation2 + $0x20] sm:$0xff] %v5224_v18 }
 0x873   :  { %v5230_v5 = vld [vmem:[#allocation2 + $0x11] sm:$0xff] }
 0x874   :  { %v5238_v30 = vld [vmem:[#allocation2 + $0x14] sm:$0xff]  ;;  %v5234_v52 = vmax.f32 %v5222_v19, %v5230_v5 }
 0x875   :  { %v5242_v1 = vld [vmem:[#allocation2 + $0x15] sm:$0xff] }
 0x876   :  { %v5233_v43 = vld [vmem:[#allocation2 + $0x29] sm:$0xff]  ;;  %v5246_v59 = vmax.f32 %v5238_v30, %v5242_v1  ;;  %v5431_v1 = vld [vmem:[%s12131_s12 + $0x38] sm:$0xff] }
 0x877   :  { %v5241_v54 = vld [vmem:[#allocation2 + $0x2c] sm:$0xff]  ;;  %v5237_v6 = vmax.f32 %v5225_v45, %v5233_v43  ;;  %v5232_v3 = vld [vmem:[#allocation2 + $0x21] sm:$0xff]  ;;  %v5231_v46 = vld [vmem:[#allocation2 + $0x19] sm:$0xff] }
 0x878   :  { %v5245_v57 = vld [vmem:[#allocation2 + $0x2d] sm:$0xff]  ;;  %v5240_v39 = vld [vmem:[#allocation2 + $0x24] sm:$0xff]  ;;  %v5236_v17 = vmax.f32 %v5224_v18, %v5232_v3  ;;  %v5239_v41 = vld [vmem:[#allocation2 + $0x1c] sm:$0xff]  ;;  %v5235_v0 = vmax.f32 %v5223_v60, %v5231_v46  ;;  %v5250_v36 = vmax.f32 %v5234_v52, %v5246_v59 }
 0x879   :  { %v5249_v31 = vmax.f32 %v5241_v54, %v5245_v57  ;;  %v5244_v51 = vld [vmem:[#allocation2 + $0x25] sm:$0xff]  ;;  %v5243_v15 = vld [vmem:[#allocation2 + $0x1d] sm:$0xff]  ;;  %v5426_v19 = vld [vmem:[%s12131_s12 + $0x10] sm:$0xff] }
 0x87a   :  { %v5248_v34 = vmax.f32 %v5240_v39, %v5244_v51  ;;  %v5247_v35 = vmax.f32 %v5239_v41, %v5243_v15  ;;  %v9130_v45 = vpack.c.bf16 %v5427_v28, %v5426_v19  ;;  %v5429_v18 = vld [vmem:[%s12131_s12 + $0x28] sm:$0xff]  ;;  %v5430_v30 = vld [vmem:[%s12131_s12 + $0x30] sm:$0xff]  ;;  %v5432_v54 = vld [vmem:[%s12131_s12 + $0x40] sm:$0xff] }
 0x87b   :  { %v5253_v47 = vmax.f32 %v5237_v6, %v5249_v31  ;;  %v9133_v5 = vpack.c.bf16 %v5429_v18, %v5428_v37  ;;  %v9136_v43 = vpack.c.bf16 %v5431_v1, %v5430_v30  ;;  %v5433_v57 = vld [vmem:[%s12131_s12 + $0x48] sm:$0xff]  ;;  %v5434_v59 = vld [vmem:[%s12131_s12 + $0x50] sm:$0xff]  ;;  %v5435_v6 = vld [vmem:[%s12131_s12 + $0x58] sm:$0xff] }
 0x87c   :  { %v5252_v10 = vmax.f32 %v5236_v17, %v5248_v34  ;;  %v5251_v23 = vmax.f32 %v5235_v0, %v5247_v35  ;;  %v9139_v52 = vpack.c.bf16 %v5433_v57, %v5432_v54  ;;  %v9142_v31 = vpack.c.bf16 %v5435_v6, %v5434_v59  ;;  %v5436_v3 = vld [vmem:[%s12131_s12 + $0x60] sm:$0xff]  ;;  %v5437_v39 = vld [vmem:[%s12131_s12 + $0x68] sm:$0xff]  ;;  %v5438_v17 = vld [vmem:[%s12131_s12 + $0x70] sm:$0xff] }
 0x87d   :  { %v9145_v51 = vpack.c.bf16 %v5437_v39, %v5436_v3  ;;  %v5439_v34 = vld [vmem:[%s12131_s12 + $0x78] sm:$0xff]  ;;  %v5555_v41 = vld [vmem:[%s12130_s11] ss:$0 sm:$0xff] }
 0x87e   :  { %v9100_v50 = vpack.c.bf16 %v5253_v47, %v5252_v10  ;;  %v9097_v13 = vpack.c.bf16 %v5251_v23, %v5250_v36  ;;  %v9148_v46 = vpack.c.bf16 %v5439_v34, %v5438_v17  ;;  %v5556_v10 = vld [vmem:[%s12132_s13] ss:$0 sm:$0xff] }
 0x880   :  { %9098 = vmatpush3.bf16.msra.mxu1 %v9097_v13 }
 0x881   :  { %9099 = vmatprep.subr.bf16.mxu1 %v12156_v14 }
 0x884   :  { %9101 = vmatpush3.bf16.msra.mxu1 %v9100_v50 }
 0x885   :  { %9102 = vmatprep.subr.bf16.mxu1 %v12156_v14 }
 0x887   :  { %8252 = vmatmul.mubr.msk.f32.vlgmr.msra.gmra.mrb[106].mxu1 %vm5255_vm2, %v5254_v27 }
 0x888   :  { %9104 = vmatpush3.bf16.msra.mxu1 %v9103_v44  ;;  %8286 = vmatprep.mubr.msk.f32.mxu1 %vm9276_vm0, %v9198_v40 }
 0x889   :  { %9105 = vmatprep.subr.bf16.mxu1 %v12156_v14 }
 0x88c   :  { %9107 = vmatpush3.bf16.msra.mxu1 %v9106_v16 }
 0x88d   :  { %9108 = vmatprep.subr.bf16.mxu1 %v12156_v14 }
 0x890   :  { %9110 = vmatpush3.bf16.msra.mxu1 %v9109_v24 }
 0x891   :  { %9111 = vmatprep.subr.bf16.mxu1 %v12156_v14 }
 0x894   :  { %9113 = vmatpush3.bf16.msra.mxu1 %v9112_v11 }
 0x895   :  { %9114 = vmatprep.subr.bf16.mxu1 %v12156_v14 }
 0x898   :  { %9116 = vmatpush3.bf16.msra.mxu1 %v9115_v26 }
 0x899   :  { %9117 = vmatprep.subr.bf16.mxu1 %v12156_v14 }
 0x89c   :  { %9119 = vmatpush3.bf16.msra.mxu1 %v9118_v55 }
 0x89d   :  { %9120 = vmatprep.subr.bf16.mxu1 %v12156_v14 }
 0x8a0   :  { %9122 = vmatpush3.bf16.msra.mxu1 %v9121_v8 }
 0x8a1   :  { %9123 = vmatprep.subr.bf16.mxu1 %v12156_v14 }
 0x8a4   :  { %9125 = vmatpush3.bf16.msra.mxu1 %v9124_v20 }
 0x8a5   :  { %9126 = vmatprep.subr.bf16.mxu1 %v12156_v14 }
 0x95a   :  { %v5325_v32 = vpop.f32.mrb[106].mxu1 }
 0x95b   :  { %v5329_v60 = vmax.f32 %v5325_v32, 0.0  ;;  %v8253_v7 = vpop.f32.mrb[107].mxu1 }
 0x95d   :  { %8287 = vmatmul.mubr.f32.vlgmr.msra.gmra.mrb[108].mxu1 %v5329_v60 }
 0x95e   :  { %9128 = vmatpush3.bf16.msra.mxu1 %v9127_v42  ;;  %8321 = vmatprep.mubr.msk.f32.mxu1 %vm9276_vm0, %v9198_v40 }
 0x95f   :  { %9129 = vmatprep.subr.bf16.mxu1 %v12156_v14 }
 0x962   :  { %9131 = vmatpush3.bf16.msra.mxu1 %v9130_v45 }
 0x963   :  { %9132 = vmatprep.subr.bf16.mxu1 %v12156_v14 }
 0x966   :  { %9134 = vmatpush3.bf16.msra.mxu1 %v9133_v5 }
 0x967   :  { %9135 = vmatprep.subr.bf16.mxu1 %v12156_v14 }
 0x96a   :  { %9137 = vmatpush3.bf16.msra.mxu1 %v9136_v43 }
 0x96b   :  { %9138 = vmatprep.subr.bf16.mxu1 %v12156_v14 }
 0x96e   :  { %9140 = vmatpush3.bf16.msra.mxu1 %v9139_v52 }
 0x96f   :  { %9141 = vmatprep.subr.bf16.mxu1 %v12156_v14 }
 0x972   :  { %9143 = vmatpush3.bf16.msra.mxu1 %v9142_v31 }
 0x973   :  { %9144 = vmatprep.subr.bf16.mxu1 %v12156_v14 }
 0x976   :  { %9146 = vmatpush3.bf16.msra.mxu1 %v9145_v51 }
 0x977   :  { %9147 = vmatprep.subr.bf16.mxu1 %v12156_v14  ;;  %v5518_v14 = vlaneseq }
 0x979   :  { %v5519_v36 = vand.u32 127, %v5518_v14 }
 0x97a   :  { %9149 = vmatpush3.bf16.msra.mxu1 %v9148_v46 }
 0x97b   :  { %vm5520_vm3 = vcmp.lt.s32.totalorder %v5519_v36, 2 }
 0xa30   :  { %v5419_v15 = vpop.f32.mrb[108].mxu1 }
 0xa31   :  { %v5420_v47 = vadd.f32 %v5555_v41, %v5419_v15  ;;  %v8288_v0 = vpop.f32.mrb[109].mxu1 }
 0xa33   :  { %v5423_v35 = vmax.f32 %v5420_v47, 0.0 }
 0xa35   :  { %8322 = vmatmul.mubr.f32.vlgmr.msra.gmra.mrb[110].mxu1 %v5423_v35 }
 0xb08   :  { %v5513_v23 = vpop.f32.mrb[110].mxu1 }
 0xb09   :  { %v5514_v50 = vadd.f32 %v5556_v10, %v5513_v23  ;;  %v8323_v13 = vpop.f32.mrb[111].mxu1 }
 0xb0b   :  { %v5517_v58 = vmax.f32 %v5514_v50, 0.0 }
 0xb0d   :  { %v5521_v48 = vsel %vm5520_vm3, %v5517_v58, -1e+30 }
 0xb0e   :  { %5522 = vmax.xlane.f32.xlu0 %v5521_v48 }
 0xb9b   :  { %v5523_v27 = vpop.xlane.xlu0 %5522 }
 0xb9c   :  { %v5524_v44 = vsub.f32 %v5521_v48, %v5523_v27 }
 0xb9e   :  { %v5525_v12 = vmul.f32 1.442695, %v5524_v44 }
 0xba0   :  { %9190 = vpow2.f32 %v5525_v12 }
 0xbaa   :  { %v9191_v63 = vpop.eup %9190 }
 0xbab   :  { %5527 = vadd.xlane.f32.xlu0 %v9191_v63 }
 0xc38   :  { %v5528_v16 = vpop.xlane.xlu0 %5527 }
 0xc39   :  { %9192 = vrcp.f32 %v5528_v16 }
 0xc43   :  { %v9193_v40 = vpop.eup %9192 }
 0xc44   :  { %v5530_v9 = vmul.f32 %v9193_v40, %v9191_v63 }
 0xc46   :  { %5531 = vst [vmem:[%s12133_s14] sm:$0xff] %v5530_v9 }
 0xc47   :  { %5536 = vsyncpa [#allocation4], 1 }
 0xc48   :  { %5537 = vsyncpa [#allocation6], 1 }

</bundles_post_ra>
